<compile_context>
chip_gen: v6e
topology: v6e:2x2x1
jax: 0.10.0
libtpu: 0.0.40
codegen_flags: <defaults>
</compile_context>

<pallas_src>
import functools

import jax
import jax.numpy as jnp
from jax import lax
from jax.experimental import pallas as pl
from jax.experimental.pallas import tpu as pltpu

# ---- model hyperparameters (match the PyTorch module) ----
N_EMBD = 256
BLOCK_SIZE = 128
N_HEAD = 4
N_LAYER = 3
VOCAB_SIZE = 256
HEAD_SIZE = N_EMBD // N_HEAD
LN_EPS = 1e-5


def _layernorm(x, g, b):
    mu = jnp.mean(x, axis=-1, keepdims=True)
    var = jnp.mean(jnp.square(x - mu), axis=-1, keepdims=True)
    return (x - mu) * lax.rsqrt(var + LN_EPS) * g + b


# ---------------------------------------------------------------------------
# Fused per-sequence forward kernel: embeddings -> 3 blocks -> ln_f -> lm_head
# One grid step per batch element; all weights VMEM-resident across steps.
# ---------------------------------------------------------------------------
def fused_forward_kernel(idx_ref, tok_emb_ref, pos_emb_ref,
                         ln1g_ref, ln1b_ref, wqkv_ref, wp_ref, bp_ref,
                         ln2g_ref, ln2b_ref, w1_ref, b1_ref, w2_ref, b2_ref,
                         lnfg_ref, lnfb_ref, lmw_ref, lmb_ref,
                         out_ref, *, seq_len):
    t = seq_len
    c = N_EMBD
    f32 = jnp.float32
    bf16 = jnp.bfloat16

    # ---- embeddings: token gather as a one-hot bf16 MXU matmul (exact) ----
    idx_col = idx_ref[0]                                            # (T, 1) int32
    vocab_iota = lax.broadcasted_iota(jnp.int32, (t, VOCAB_SIZE), 1)
    one_hot = (idx_col == vocab_iota).astype(bf16)                  # (T, V)
    x = jnp.dot(one_hot, tok_emb_ref[...],
                preferred_element_type=f32)                         # (T, C) f32
    x = x + pos_emb_ref[0:t, :]                                     # per-seq pos add

    # ---- causal additive bias, built once, reused by every head/layer ----
    row = lax.broadcasted_iota(jnp.int32, (t, t), 0)
    col = lax.broadcasted_iota(jnp.int32, (t, t), 1)
    bias = jnp.where(col <= row, 0.0, -1e30).astype(f32)            # (T, T)

    # NOTE: matches the PyTorch code, which scales by n_embd**-0.5 (not head_size).
    scale = f32(float(c) ** -0.5)

    for l in range(N_LAYER):
        # --- multi-head self-attention on LN1(x) ---
        xn = _layernorm(x, ln1g_ref[l], ln1b_ref[l]).astype(bf16)
        qkv = jnp.dot(xn, wqkv_ref[l], preferred_element_type=f32)  # (T, 3C) f32
        pv_heads = []
        for h in range(N_HEAD):
            lo = h * HEAD_SIZE
            # fold the softmax scale into q before the bf16 cast
            qh = (qkv[:, lo:lo + HEAD_SIZE] * scale).astype(bf16)
            kh = qkv[:, c + lo:c + lo + HEAD_SIZE].astype(bf16)
            vh = qkv[:, 2 * c + lo:2 * c + lo + HEAD_SIZE].astype(bf16)
            # q @ k^T without an explicit transpose (contract last dims).
            s = lax.dot_general(qh, kh, (((1,), (1,)), ((), ())),
                                preferred_element_type=f32) + bias  # (T, T)
            s = s - jnp.max(s, axis=-1, keepdims=True)
            e = jnp.exp(s)
            p = e / jnp.sum(e, axis=-1, keepdims=True)              # exact softmax
            pv_heads.append(jnp.dot(p.astype(bf16), vh,
                                    preferred_element_type=f32))    # (T, hd)
        # concat heads -> single K=256 projection matmul (full MXU depth)
        pv = jnp.concatenate(pv_heads, axis=1).astype(bf16)         # (T, C)
        x = x + jnp.dot(pv, wp_ref[l], preferred_element_type=f32) + bp_ref[l]

        # --- feed-forward on LN2(x) ---
        xn2 = _layernorm(x, ln2g_ref[l], ln2b_ref[l]).astype(bf16)
        h1 = jnp.dot(xn2, w1_ref[l], preferred_element_type=f32) + b1_ref[l]
        h1 = jnp.maximum(h1, 0.0).astype(bf16)
        x = x + jnp.dot(h1, w2_ref[l], preferred_element_type=f32) + b2_ref[l]

    # ---- final LayerNorm + lm_head ----
    xn = _layernorm(x, lnfg_ref[0], lnfb_ref[0]).astype(bf16)
    logits = jnp.dot(xn, lmw_ref[...], preferred_element_type=f32) + lmb_ref[0]
    out_ref[0] = logits


def _resident_spec(arr):
    """Full-shape block with a constant index_map -> fetched once, VMEM-resident."""
    zeros = (0,) * arr.ndim
    return pl.BlockSpec(arr.shape, lambda b, _z=zeros: _z)


@jax.jit
def bigram_lm_forward(params, idx):
    B, T = idx.shape
    idx3 = idx.reshape(B, T, 1).astype(jnp.int32)
    kernel = functools.partial(fused_forward_kernel, seq_len=T)

    weights = (params["tok_emb"], params["pos_emb"],
               params["ln1_g"], params["ln1_b"], params["wqkv"],
               params["wp"], params["bp"],
               params["ln2_g"], params["ln2_b"], params["w1"], params["b1"],
               params["w2"], params["b2"],
               params["lnf_g"], params["lnf_b"], params["lm_w"], params["lm_b"])

    logits = pl.pallas_call(
        kernel,
        grid=(B,),
        out_shape=jax.ShapeDtypeStruct((B, T, VOCAB_SIZE), jnp.float32),
        in_specs=[pl.BlockSpec((1, T, 1), lambda b: (b, 0, 0))]
                 + [_resident_spec(w) for w in weights],
        out_specs=pl.BlockSpec((1, T, VOCAB_SIZE), lambda b: (b, 0, 0)),
        compiler_params=pltpu.CompilerParams(
            dimension_semantics=("parallel",),
            vmem_limit_bytes=24 * 1024 * 1024),
    )(idx3, *weights)
    return logits  # loss is None in eval mode (targets=None)


# ---------------------------------------------------------------------------
# Parameter init (deterministic, synthetic), stacked per-layer and bf16-cast
# for the matmul operands (kernel-ready layout).
# ---------------------------------------------------------------------------
def init_params(key):
    keys = iter(jax.random.split(key, 32))
    nrm = lambda shape, s=0.02: s * jax.random.normal(next(keys), shape, jnp.float32)

    def per_layer(fn):
        return jnp.stack([fn() for _ in range(N_LAYER)], axis=0)

    return {
        "tok_emb": nrm((VOCAB_SIZE, N_EMBD)).astype(jnp.bfloat16),
        "pos_emb": nrm((BLOCK_SIZE, N_EMBD)),
        "ln1_g": jnp.ones((N_LAYER, N_EMBD), jnp.float32),
        "ln1_b": jnp.zeros((N_LAYER, N_EMBD), jnp.float32),
        # Q, K, V weights concatenated along the output dim -> one fused matmul.
        "wqkv": per_layer(lambda: jnp.concatenate(
            [nrm((N_EMBD, N_EMBD)) for _ in range(3)], axis=1)).astype(jnp.bfloat16),
        "wp": per_layer(lambda: nrm((N_EMBD, N_EMBD))).astype(jnp.bfloat16),
        "bp": jnp.zeros((N_LAYER, N_EMBD), jnp.float32),
        "ln2_g": jnp.ones((N_LAYER, N_EMBD), jnp.float32),
        "ln2_b": jnp.zeros((N_LAYER, N_EMBD), jnp.float32),
        "w1": per_layer(lambda: nrm((N_EMBD, 4 * N_EMBD))).astype(jnp.bfloat16),
        "b1": jnp.zeros((N_LAYER, 4 * N_EMBD), jnp.float32),
        "w2": per_layer(lambda: nrm((4 * N_EMBD, N_EMBD))).astype(jnp.bfloat16),
        "b2": jnp.zeros((N_LAYER, N_EMBD), jnp.float32),
        "lnf_g": jnp.ones((1, N_EMBD), jnp.float32),
        "lnf_b": jnp.zeros((1, N_EMBD), jnp.float32),
        "lm_w": nrm((N_EMBD, VOCAB_SIZE)).astype(jnp.bfloat16),
        "lm_b": jnp.zeros((1, VOCAB_SIZE), jnp.float32),
    }


# ---------------------------------------------------------------------------
# Pure-JAX reference that mirrors the kernel math exactly (same bf16 cast
# sites, scale folding, additive mask, exact softmax) — correctness check.
# ---------------------------------------------------------------------------
def _ref_forward(params, idx):
    B, T = idx.shape
    c = N_EMBD
    f32, bf16 = jnp.float32, jnp.bfloat16
    x = params["tok_emb"][idx].astype(f32) + params["pos_emb"][:T][None, :, :]
    row = lax.broadcasted_iota(jnp.int32, (T, T), 0)
    col = lax.broadcasted_iota(jnp.int32, (T, T), 1)
    bias = jnp.where(col <= row, 0.0, -1e30).astype(f32)
    scale = float(c) ** -0.5
    for l in range(N_LAYER):
        xn = _layernorm(x, params["ln1_g"][l], params["ln1_b"][l]).astype(bf16)
        qkv = jnp.einsum("btc,cd->btd", xn, params["wqkv"][l],
                         preferred_element_type=f32)
        pv_heads = []
        for h in range(N_HEAD):
            lo = h * HEAD_SIZE
            qh = (qkv[..., lo:lo + HEAD_SIZE] * scale).astype(bf16)
            kh = qkv[..., c + lo:c + lo + HEAD_SIZE].astype(bf16)
            vh = qkv[..., 2 * c + lo:2 * c + lo + HEAD_SIZE].astype(bf16)
            s = jnp.einsum("btd,bsd->bts", qh, kh,
                           preferred_element_type=f32) + bias
            s = s - jnp.max(s, axis=-1, keepdims=True)
            e = jnp.exp(s)
            p = e / jnp.sum(e, axis=-1, keepdims=True)
            pv_heads.append(jnp.einsum("bts,bsd->btd", p.astype(bf16), vh,
                                       preferred_element_type=f32))
        pv = jnp.concatenate(pv_heads, axis=-1).astype(bf16)
        x = x + jnp.einsum("btd,dc->btc", pv, params["wp"][l],
                           preferred_element_type=f32) + params["bp"][l]
        xn2 = _layernorm(x, params["ln2_g"][l], params["ln2_b"][l]).astype(bf16)
        h1 = jnp.einsum("btc,cd->btd", xn2, params["w1"][l],
                        preferred_element_type=f32) + params["b1"][l]
        h1 = jnp.maximum(h1, 0.0).astype(bf16)
        x = x + jnp.einsum("btd,dc->btc", h1, params["w2"][l],
                           preferred_element_type=f32) + params["b2"][l]
    xn = _layernorm(x, params["lnf_g"][0], params["lnf_b"][0]).astype(bf16)
    return jnp.einsum("btc,cv->btv", xn, params["lm_w"],
                      preferred_element_type=f32) + params["lm_b"][0]


if __name__ == "__main__":
    key = jax.random.PRNGKey(0)
    pkey, ikey = jax.random.split(key)
    params = init_params(pkey)

    B, T = 2, 16  # T <= block_size (128), T a multiple of 8
    idx = jax.random.randint(ikey, (B, T), 0, VOCAB_SIZE, dtype=jnp.int32)

    logits = bigram_lm_forward(params, idx)
    jax.block_until_ready(logits)
    assert logits.shape == (B, T, VOCAB_SIZE), logits.shape

    ref = _ref_forward(params, idx)
    max_err = float(jnp.max(jnp.abs(logits - ref)))
    # bf16 matmul operands + MXU accumulation-order differences dominate the gap.
    assert jnp.allclose(logits, ref, atol=1e-2, rtol=1e-2), max_err

    print("KERNEL_OK")
</pallas_src>

<mosaic_0001>
module attributes {stable_mosaic.version = 11 : i64} {
  func.func @fused_forward_kernel(%arg0: i32, %arg1: memref<1x16x1xi32, #tpu.memory_space<vmem>>, %arg2: memref<256x256xbf16, #tpu.memory_space<vmem>>, %arg3: memref<128x256xf32, #tpu.memory_space<vmem>>, %arg4: memref<3x256xf32, #tpu.memory_space<vmem>>, %arg5: memref<3x256xf32, #tpu.memory_space<vmem>>, %arg6: memref<3x256x768xbf16, #tpu.memory_space<vmem>>, %arg7: memref<3x256x256xbf16, #tpu.memory_space<vmem>>, %arg8: memref<3x256xf32, #tpu.memory_space<vmem>>, %arg9: memref<3x256xf32, #tpu.memory_space<vmem>>, %arg10: memref<3x256xf32, #tpu.memory_space<vmem>>, %arg11: memref<3x256x1024xbf16, #tpu.memory_space<vmem>>, %arg12: memref<3x1024xf32, #tpu.memory_space<vmem>>, %arg13: memref<3x1024x256xbf16, #tpu.memory_space<vmem>>, %arg14: memref<3x256xf32, #tpu.memory_space<vmem>>, %arg15: memref<1x256xf32, #tpu.memory_space<vmem>>, %arg16: memref<1x256xf32, #tpu.memory_space<vmem>>, %arg17: memref<256x256xbf16, #tpu.memory_space<vmem>>, %arg18: memref<1x256xf32, #tpu.memory_space<vmem>>, %arg19: memref<1x16x256xf32, #tpu.memory_space<vmem>>) attributes {dimension_semantics = [#tpu.dimension_semantics<parallel>], iteration_bounds = array<i64: 2>, scalar_prefetch = 0 : i64, scratch_operands = 0 : i64, tpu.core_type = #tpu.core_type<tc>, window_params = [{transform_indices = @transform_0, window_bounds = array<i64: 1, 16, 1>}, {pipeline_mode = #tpu.pipeline_mode<synchronous>, transform_indices = @transform_1, window_bounds = array<i64: 256, 256>}, {pipeline_mode = #tpu.pipeline_mode<synchronous>, transform_indices = @transform_2, window_bounds = array<i64: 128, 256>}, {pipeline_mode = #tpu.pipeline_mode<synchronous>, transform_indices = @transform_3, window_bounds = array<i64: 3, 256>}, {pipeline_mode = #tpu.pipeline_mode<synchronous>, transform_indices = @transform_4, window_bounds = array<i64: 3, 256>}, {pipeline_mode = #tpu.pipeline_mode<synchronous>, transform_indices = @transform_5, window_bounds = array<i64: 3, 256, 768>}, {pipeline_mode = #tpu.pipeline_mode<synchronous>, transform_indices = @transform_6, window_bounds = array<i64: 3, 256, 256>}, {pipeline_mode = #tpu.pipeline_mode<synchronous>, transform_indices = @transform_7, window_bounds = array<i64: 3, 256>}, {pipeline_mode = #tpu.pipeline_mode<synchronous>, transform_indices = @transform_8, window_bounds = array<i64: 3, 256>}, {pipeline_mode = #tpu.pipeline_mode<synchronous>, transform_indices = @transform_9, window_bounds = array<i64: 3, 256>}, {pipeline_mode = #tpu.pipeline_mode<synchronous>, transform_indices = @transform_10, window_bounds = array<i64: 3, 256, 1024>}, {pipeline_mode = #tpu.pipeline_mode<synchronous>, transform_indices = @transform_11, window_bounds = array<i64: 3, 1024>}, {pipeline_mode = #tpu.pipeline_mode<synchronous>, transform_indices = @transform_12, window_bounds = array<i64: 3, 1024, 256>}, {pipeline_mode = #tpu.pipeline_mode<synchronous>, transform_indices = @transform_13, window_bounds = array<i64: 3, 256>}, {pipeline_mode = #tpu.pipeline_mode<synchronous>, transform_indices = @transform_14, window_bounds = array<i64: 1, 256>}, {pipeline_mode = #tpu.pipeline_mode<synchronous>, transform_indices = @transform_15, window_bounds = array<i64: 1, 256>}, {pipeline_mode = #tpu.pipeline_mode<synchronous>, transform_indices = @transform_16, window_bounds = array<i64: 256, 256>}, {pipeline_mode = #tpu.pipeline_mode<synchronous>, transform_indices = @transform_17, window_bounds = array<i64: 1, 256>}, {transform_indices = @transform_18, window_bounds = array<i64: 1, 16, 256>}]} {
    %c0 = arith.constant 0 : index
    %c0_0 = arith.constant 0 : index
    %c0_1 = arith.constant 0 : index
    %0 = vector.load %arg1[%c0, %c0_0, %c0_1] : memref<1x16x1xi32, #tpu.memory_space<vmem>>, vector<1x16x1xi32>
    %1 = vector.shape_cast %0 : vector<1x16x1xi32> to vector<16x1xi32>
    %2 = tpu.iota {dimensions = array<i32: 1>} : vector<16x256xi32>
    %3 = vector.broadcast %1 : vector<16x1xi32> to vector<16x256xi32>
    %4 = arith.cmpi eq, %3, %2 : vector<16x256xi32>
    %5 = arith.extui %4 : vector<16x256xi1> to vector<16x256xi32>
    %6 = arith.sitofp %5 : vector<16x256xi32> to vector<16x256xf32>
    %7 = arith.truncf %6 : vector<16x256xf32> to vector<16x256xbf16>
    %c0_2 = arith.constant 0 : index
    %c0_3 = arith.constant 0 : index
    %8 = vector.load %arg2[%c0_2, %c0_3] : memref<256x256xbf16, #tpu.memory_space<vmem>>, vector<256x256xbf16>
    %cst = arith.constant dense<0.000000e+00> : vector<16x256xf32>
    %9 = tpu.matmul %7, %8, %cst {dimension_numbers = #tpu.dot_dimension_numbers<[1], [0], [0], [1], [0, 0, 1, 1], [], []>} : vector<16x256xbf16>, vector<256x256xbf16>, vector<16x256xf32> -> vector<16x256xf32>
    %c0_4 = arith.constant 0 : index
    %c0_5 = arith.constant 0 : index
    %10 = vector.load %arg3[%c0_4, %c0_5] : memref<128x256xf32, #tpu.memory_space<vmem>>, vector<16x256xf32>
    %11 = arith.addf %9, %10 : vector<16x256xf32>
    %12 = tpu.iota {dimensions = array<i32: 0>} : vector<16x16xi32>
    %13 = tpu.iota {dimensions = array<i32: 1>} : vector<16x16xi32>
    %14 = arith.cmpi sle, %13, %12 : vector<16x16xi32>
    %cst_6 = arith.constant 0.000000e+00 : f32
    %cst_7 = arith.constant -1.000000e+30 : f32
    %15 = vector.broadcast %cst_6 : f32 to vector<16x16xf32>
    %16 = vector.broadcast %cst_7 : f32 to vector<16x16xf32>
    %17 = arith.select %14, %15, %16 : vector<16x16xi1>, vector<16x16xf32>
    %c0_8 = arith.constant 0 : index
    %c0_9 = arith.constant 0 : index
    %18 = vector.load %arg4[%c0_8, %c0_9] : memref<3x256xf32, #tpu.memory_space<vmem>>, vector<1x256xf32>
    %19 = vector.shape_cast %18 : vector<1x256xf32> to vector<256xf32>
    %c0_10 = arith.constant 0 : index
    %c0_11 = arith.constant 0 : index
    %20 = vector.load %arg5[%c0_10, %c0_11] : memref<3x256xf32, #tpu.memory_space<vmem>>, vector<1x256xf32>
    %21 = vector.shape_cast %20 : vector<1x256xf32> to vector<256xf32>
    %cst_12 = arith.constant dense<0.000000e+00> : vector<16xf32>
    %22 = vector.multi_reduction <add>, %11, %cst_12 [1] : vector<16x256xf32> to vector<16xf32>
    %23 = vector.shape_cast %22 : vector<16xf32> to vector<16x1xf32>
    %cst_13 = arith.constant 2.560000e+02 : f32
    %24 = vector.broadcast %cst_13 : f32 to vector<16x1xf32>
    %25 = arith.divf %23, %24 : vector<16x1xf32>
    %26 = vector.broadcast %25 : vector<16x1xf32> to vector<16x256xf32>
    %27 = arith.subf %11, %26 : vector<16x256xf32>
    %28 = arith.mulf %27, %27 : vector<16x256xf32>
    %cst_14 = arith.constant dense<0.000000e+00> : vector<16xf32>
    %29 = vector.multi_reduction <add>, %28, %cst_14 [1] : vector<16x256xf32> to vector<16xf32>
    %30 = vector.shape_cast %29 : vector<16xf32> to vector<16x1xf32>
    %cst_15 = arith.constant 2.560000e+02 : f32
    %31 = vector.broadcast %cst_15 : f32 to vector<16x1xf32>
    %32 = arith.divf %30, %31 : vector<16x1xf32>
    %33 = vector.broadcast %25 : vector<16x1xf32> to vector<16x256xf32>
    %34 = arith.subf %11, %33 : vector<16x256xf32>
    %cst_16 = arith.constant 9.99999974E-6 : f32
    %35 = vector.broadcast %cst_16 : f32 to vector<16x1xf32>
    %36 = arith.addf %32, %35 : vector<16x1xf32>
    %37 = math.rsqrt %36 : vector<16x1xf32>
    %38 = vector.broadcast %37 : vector<16x1xf32> to vector<16x256xf32>
    %39 = arith.mulf %34, %38 : vector<16x256xf32>
    %40 = vector.shape_cast %19 : vector<256xf32> to vector<1x256xf32>
    %41 = vector.broadcast %40 : vector<1x256xf32> to vector<16x256xf32>
    %42 = arith.mulf %39, %41 : vector<16x256xf32>
    %43 = vector.shape_cast %21 : vector<256xf32> to vector<1x256xf32>
    %44 = vector.broadcast %43 : vector<1x256xf32> to vector<16x256xf32>
    %45 = arith.addf %42, %44 : vector<16x256xf32>
    %46 = arith.truncf %45 : vector<16x256xf32> to vector<16x256xbf16>
    %c0_17 = arith.constant 0 : index
    %c0_18 = arith.constant 0 : index
    %c0_19 = arith.constant 0 : index
    %47 = vector.load %arg6[%c0_17, %c0_18, %c0_19] : memref<3x256x768xbf16, #tpu.memory_space<vmem>>, vector<1x256x768xbf16>
    %48 = vector.shape_cast %47 : vector<1x256x768xbf16> to vector<256x768xbf16>
    %cst_20 = arith.constant dense<0.000000e+00> : vector<16x768xf32>
    %49 = tpu.matmul %46, %48, %cst_20 {dimension_numbers = #tpu.dot_dimension_numbers<[1], [0], [0], [1], [0, 0, 1, 1], [], []>} : vector<16x256xbf16>, vector<256x768xbf16>, vector<16x768xf32> -> vector<16x768xf32>
    %50 = vector.extract_strided_slice %49 {offsets = [0, 0], sizes = [16, 64], strides = [1, 1]} : vector<16x768xf32> to vector<16x64xf32>
    %cst_21 = arith.constant 6.250000e-02 : f32
    %51 = vector.broadcast %cst_21 : f32 to vector<16x64xf32>
    %52 = arith.mulf %50, %51 : vector<16x64xf32>
    %53 = arith.truncf %52 : vector<16x64xf32> to vector<16x64xbf16>
    %54 = vector.extract_strided_slice %49 {offsets = [0, 256], sizes = [16, 64], strides = [1, 1]} : vector<16x768xf32> to vector<16x64xf32>
    %55 = arith.truncf %54 : vector<16x64xf32> to vector<16x64xbf16>
    %56 = vector.extract_strided_slice %49 {offsets = [0, 512], sizes = [16, 64], strides = [1, 1]} : vector<16x768xf32> to vector<16x64xf32>
    %57 = arith.truncf %56 : vector<16x64xf32> to vector<16x64xbf16>
    %cst_22 = arith.constant dense<0.000000e+00> : vector<16x16xf32>
    %58 = tpu.matmul %53, %55, %cst_22 {dimension_numbers = #tpu.dot_dimension_numbers<[1], [1], [0], [0], [0, 0, 1, 0], [], []>} : vector<16x64xbf16>, vector<16x64xbf16>, vector<16x16xf32> -> vector<16x16xf32>
    %59 = arith.addf %58, %17 : vector<16x16xf32>
    %cst_23 = arith.constant dense<0xFF800000> : vector<16xf32>
    %60 = vector.multi_reduction <maximumf>, %59, %cst_23 [1] : vector<16x16xf32> to vector<16xf32>
    %61 = vector.shape_cast %60 : vector<16xf32> to vector<16x1xf32>
    %62 = vector.broadcast %61 : vector<16x1xf32> to vector<16x16xf32>
    %63 = arith.subf %59, %62 : vector<16x16xf32>
    %64 = math.exp %63 : vector<16x16xf32>
    %cst_24 = arith.constant dense<0.000000e+00> : vector<16xf32>
    %65 = vector.multi_reduction <add>, %64, %cst_24 [1] : vector<16x16xf32> to vector<16xf32>
    %66 = vector.shape_cast %65 : vector<16xf32> to vector<16x1xf32>
    %67 = vector.broadcast %66 : vector<16x1xf32> to vector<16x16xf32>
    %68 = arith.divf %64, %67 : vector<16x16xf32>
    %69 = arith.truncf %68 : vector<16x16xf32> to vector<16x16xbf16>
    %cst_25 = arith.constant dense<0.000000e+00> : vector<16x64xf32>
    %70 = tpu.matmul %69, %57, %cst_25 {dimension_numbers = #tpu.dot_dimension_numbers<[1], [0], [0], [1], [0, 0, 1, 1], [], []>} : vector<16x16xbf16>, vector<16x64xbf16>, vector<16x64xf32> -> vector<16x64xf32>
    %71 = vector.extract_strided_slice %49 {offsets = [0, 64], sizes = [16, 64], strides = [1, 1]} : vector<16x768xf32> to vector<16x64xf32>
    %cst_26 = arith.constant 6.250000e-02 : f32
    %72 = vector.broadcast %cst_26 : f32 to vector<16x64xf32>
    %73 = arith.mulf %71, %72 : vector<16x64xf32>
    %74 = arith.truncf %73 : vector<16x64xf32> to vector<16x64xbf16>
    %75 = vector.extract_strided_slice %49 {offsets = [0, 320], sizes = [16, 64], strides = [1, 1]} : vector<16x768xf32> to vector<16x64xf32>
    %76 = arith.truncf %75 : vector<16x64xf32> to vector<16x64xbf16>
    %77 = vector.extract_strided_slice %49 {offsets = [0, 576], sizes = [16, 64], strides = [1, 1]} : vector<16x768xf32> to vector<16x64xf32>
    %78 = arith.truncf %77 : vector<16x64xf32> to vector<16x64xbf16>
    %cst_27 = arith.constant dense<0.000000e+00> : vector<16x16xf32>
    %79 = tpu.matmul %74, %76, %cst_27 {dimension_numbers = #tpu.dot_dimension_numbers<[1], [1], [0], [0], [0, 0, 1, 0], [], []>} : vector<16x64xbf16>, vector<16x64xbf16>, vector<16x16xf32> -> vector<16x16xf32>
    %80 = arith.addf %79, %17 : vector<16x16xf32>
    %cst_28 = arith.constant dense<0xFF800000> : vector<16xf32>
    %81 = vector.multi_reduction <maximumf>, %80, %cst_28 [1] : vector<16x16xf32> to vector<16xf32>
    %82 = vector.shape_cast %81 : vector<16xf32> to vector<16x1xf32>
    %83 = vector.broadcast %82 : vector<16x1xf32> to vector<16x16xf32>
    %84 = arith.subf %80, %83 : vector<16x16xf32>
    %85 = math.exp %84 : vector<16x16xf32>
    %cst_29 = arith.constant dense<0.000000e+00> : vector<16xf32>
    %86 = vector.multi_reduction <add>, %85, %cst_29 [1] : vector<16x16xf32> to vector<16xf32>
    %87 = vector.shape_cast %86 : vector<16xf32> to vector<16x1xf32>
    %88 = vector.broadcast %87 : vector<16x1xf32> to vector<16x16xf32>
    %89 = arith.divf %85, %88 : vector<16x16xf32>
    %90 = arith.truncf %89 : vector<16x16xf32> to vector<16x16xbf16>
    %cst_30 = arith.constant dense<0.000000e+00> : vector<16x64xf32>
    %91 = tpu.matmul %90, %78, %cst_30 {dimension_numbers = #tpu.dot_dimension_numbers<[1], [0], [0], [1], [0, 0, 1, 1], [], []>} : vector<16x16xbf16>, vector<16x64xbf16>, vector<16x64xf32> -> vector<16x64xf32>
    %92 = vector.extract_strided_slice %49 {offsets = [0, 128], sizes = [16, 64], strides = [1, 1]} : vector<16x768xf32> to vector<16x64xf32>
    %cst_31 = arith.constant 6.250000e-02 : f32
    %93 = vector.broadcast %cst_31 : f32 to vector<16x64xf32>
    %94 = arith.mulf %92, %93 : vector<16x64xf32>
    %95 = arith.truncf %94 : vector<16x64xf32> to vector<16x64xbf16>
    %96 = vector.extract_strided_slice %49 {offsets = [0, 384], sizes = [16, 64], strides = [1, 1]} : vector<16x768xf32> to vector<16x64xf32>
    %97 = arith.truncf %96 : vector<16x64xf32> to vector<16x64xbf16>
    %98 = vector.extract_strided_slice %49 {offsets = [0, 640], sizes = [16, 64], strides = [1, 1]} : vector<16x768xf32> to vector<16x64xf32>
    %99 = arith.truncf %98 : vector<16x64xf32> to vector<16x64xbf16>
    %cst_32 = arith.constant dense<0.000000e+00> : vector<16x16xf32>
    %100 = tpu.matmul %95, %97, %cst_32 {dimension_numbers = #tpu.dot_dimension_numbers<[1], [1], [0], [0], [0, 0, 1, 0], [], []>} : vector<16x64xbf16>, vector<16x64xbf16>, vector<16x16xf32> -> vector<16x16xf32>
    %101 = arith.addf %100, %17 : vector<16x16xf32>
    %cst_33 = arith.constant dense<0xFF800000> : vector<16xf32>
    %102 = vector.multi_reduction <maximumf>, %101, %cst_33 [1] : vector<16x16xf32> to vector<16xf32>
    %103 = vector.shape_cast %102 : vector<16xf32> to vector<16x1xf32>
    %104 = vector.broadcast %103 : vector<16x1xf32> to vector<16x16xf32>
    %105 = arith.subf %101, %104 : vector<16x16xf32>
    %106 = math.exp %105 : vector<16x16xf32>
    %cst_34 = arith.constant dense<0.000000e+00> : vector<16xf32>
    %107 = vector.multi_reduction <add>, %106, %cst_34 [1] : vector<16x16xf32> to vector<16xf32>
    %108 = vector.shape_cast %107 : vector<16xf32> to vector<16x1xf32>
    %109 = vector.broadcast %108 : vector<16x1xf32> to vector<16x16xf32>
    %110 = arith.divf %106, %109 : vector<16x16xf32>
    %111 = arith.truncf %110 : vector<16x16xf32> to vector<16x16xbf16>
    %cst_35 = arith.constant dense<0.000000e+00> : vector<16x64xf32>
    %112 = tpu.matmul %111, %99, %cst_35 {dimension_numbers = #tpu.dot_dimension_numbers<[1], [0], [0], [1], [0, 0, 1, 1], [], []>} : vector<16x16xbf16>, vector<16x64xbf16>, vector<16x64xf32> -> vector<16x64xf32>
    %113 = vector.extract_strided_slice %49 {offsets = [0, 192], sizes = [16, 64], strides = [1, 1]} : vector<16x768xf32> to vector<16x64xf32>
    %cst_36 = arith.constant 6.250000e-02 : f32
    %114 = vector.broadcast %cst_36 : f32 to vector<16x64xf32>
    %115 = arith.mulf %113, %114 : vector<16x64xf32>
    %116 = arith.truncf %115 : vector<16x64xf32> to vector<16x64xbf16>
    %117 = vector.extract_strided_slice %49 {offsets = [0, 448], sizes = [16, 64], strides = [1, 1]} : vector<16x768xf32> to vector<16x64xf32>
    %118 = arith.truncf %117 : vector<16x64xf32> to vector<16x64xbf16>
    %119 = vector.extract_strided_slice %49 {offsets = [0, 704], sizes = [16, 64], strides = [1, 1]} : vector<16x768xf32> to vector<16x64xf32>
    %120 = arith.truncf %119 : vector<16x64xf32> to vector<16x64xbf16>
    %cst_37 = arith.constant dense<0.000000e+00> : vector<16x16xf32>
    %121 = tpu.matmul %116, %118, %cst_37 {dimension_numbers = #tpu.dot_dimension_numbers<[1], [1], [0], [0], [0, 0, 1, 0], [], []>} : vector<16x64xbf16>, vector<16x64xbf16>, vector<16x16xf32> -> vector<16x16xf32>
    %122 = arith.addf %121, %17 : vector<16x16xf32>
    %cst_38 = arith.constant dense<0xFF800000> : vector<16xf32>
    %123 = vector.multi_reduction <maximumf>, %122, %cst_38 [1] : vector<16x16xf32> to vector<16xf32>
    %124 = vector.shape_cast %123 : vector<16xf32> to vector<16x1xf32>
    %125 = vector.broadcast %124 : vector<16x1xf32> to vector<16x16xf32>
    %126 = arith.subf %122, %125 : vector<16x16xf32>
    %127 = math.exp %126 : vector<16x16xf32>
    %cst_39 = arith.constant dense<0.000000e+00> : vector<16xf32>
    %128 = vector.multi_reduction <add>, %127, %cst_39 [1] : vector<16x16xf32> to vector<16xf32>
    %129 = vector.shape_cast %128 : vector<16xf32> to vector<16x1xf32>
    %130 = vector.broadcast %129 : vector<16x1xf32> to vector<16x16xf32>
    %131 = arith.divf %127, %130 : vector<16x16xf32>
    %132 = arith.truncf %131 : vector<16x16xf32> to vector<16x16xbf16>
    %cst_40 = arith.constant dense<0.000000e+00> : vector<16x64xf32>
    %133 = tpu.matmul %132, %120, %cst_40 {dimension_numbers = #tpu.dot_dimension_numbers<[1], [0], [0], [1], [0, 0, 1, 1], [], []>} : vector<16x16xbf16>, vector<16x64xbf16>, vector<16x64xf32> -> vector<16x64xf32>
    %134 = tpu.concatenate %70, %91, %112, %133 in 1 : vector<16x64xf32>, vector<16x64xf32>, vector<16x64xf32>, vector<16x64xf32> -> vector<16x256xf32>
    %135 = arith.truncf %134 : vector<16x256xf32> to vector<16x256xbf16>
    %c0_41 = arith.constant 0 : index
    %c0_42 = arith.constant 0 : index
    %c0_43 = arith.constant 0 : index
    %136 = vector.load %arg7[%c0_41, %c0_42, %c0_43] : memref<3x256x256xbf16, #tpu.memory_space<vmem>>, vector<1x256x256xbf16>
    %137 = vector.shape_cast %136 : vector<1x256x256xbf16> to vector<256x256xbf16>
    %cst_44 = arith.constant dense<0.000000e+00> : vector<16x256xf32>
    %138 = tpu.matmul %135, %137, %cst_44 {dimension_numbers = #tpu.dot_dimension_numbers<[1], [0], [0], [1], [0, 0, 1, 1], [], []>} : vector<16x256xbf16>, vector<256x256xbf16>, vector<16x256xf32> -> vector<16x256xf32>
    %139 = arith.addf %11, %138 : vector<16x256xf32>
    %c0_45 = arith.constant 0 : index
    %c0_46 = arith.constant 0 : index
    %140 = vector.load %arg8[%c0_45, %c0_46] : memref<3x256xf32, #tpu.memory_space<vmem>>, vector<1x256xf32>
    %141 = vector.shape_cast %140 : vector<1x256xf32> to vector<256xf32>
    %142 = vector.shape_cast %141 : vector<256xf32> to vector<1x256xf32>
    %143 = vector.broadcast %142 : vector<1x256xf32> to vector<16x256xf32>
    %144 = arith.addf %139, %143 : vector<16x256xf32>
    %c0_47 = arith.constant 0 : index
    %c0_48 = arith.constant 0 : index
    %145 = vector.load %arg9[%c0_47, %c0_48] : memref<3x256xf32, #tpu.memory_space<vmem>>, vector<1x256xf32>
    %146 = vector.shape_cast %145 : vector<1x256xf32> to vector<256xf32>
    %c0_49 = arith.constant 0 : index
    %c0_50 = arith.constant 0 : index
    %147 = vector.load %arg10[%c0_49, %c0_50] : memref<3x256xf32, #tpu.memory_space<vmem>>, vector<1x256xf32>
    %148 = vector.shape_cast %147 : vector<1x256xf32> to vector<256xf32>
    %cst_51 = arith.constant dense<0.000000e+00> : vector<16xf32>
    %149 = vector.multi_reduction <add>, %144, %cst_51 [1] : vector<16x256xf32> to vector<16xf32>
    %150 = vector.shape_cast %149 : vector<16xf32> to vector<16x1xf32>
    %cst_52 = arith.constant 2.560000e+02 : f32
    %151 = vector.broadcast %cst_52 : f32 to vector<16x1xf32>
    %152 = arith.divf %150, %151 : vector<16x1xf32>
    %153 = vector.broadcast %152 : vector<16x1xf32> to vector<16x256xf32>
    %154 = arith.subf %144, %153 : vector<16x256xf32>
    %155 = arith.mulf %154, %154 : vector<16x256xf32>
    %cst_53 = arith.constant dense<0.000000e+00> : vector<16xf32>
    %156 = vector.multi_reduction <add>, %155, %cst_53 [1] : vector<16x256xf32> to vector<16xf32>
    %157 = vector.shape_cast %156 : vector<16xf32> to vector<16x1xf32>
    %cst_54 = arith.constant 2.560000e+02 : f32
    %158 = vector.broadcast %cst_54 : f32 to vector<16x1xf32>
    %159 = arith.divf %157, %158 : vector<16x1xf32>
    %160 = vector.broadcast %152 : vector<16x1xf32> to vector<16x256xf32>
    %161 = arith.subf %144, %160 : vector<16x256xf32>
    %cst_55 = arith.constant 9.99999974E-6 : f32
    %162 = vector.broadcast %cst_55 : f32 to vector<16x1xf32>
    %163 = arith.addf %159, %162 : vector<16x1xf32>
    %164 = math.rsqrt %163 : vector<16x1xf32>
    %165 = vector.broadcast %164 : vector<16x1xf32> to vector<16x256xf32>
    %166 = arith.mulf %161, %165 : vector<16x256xf32>
    %167 = vector.shape_cast %146 : vector<256xf32> to vector<1x256xf32>
    %168 = vector.broadcast %167 : vector<1x256xf32> to vector<16x256xf32>
    %169 = arith.mulf %166, %168 : vector<16x256xf32>
    %170 = vector.shape_cast %148 : vector<256xf32> to vector<1x256xf32>
    %171 = vector.broadcast %170 : vector<1x256xf32> to vector<16x256xf32>
    %172 = arith.addf %169, %171 : vector<16x256xf32>
    %173 = arith.truncf %172 : vector<16x256xf32> to vector<16x256xbf16>
    %c0_56 = arith.constant 0 : index
    %c0_57 = arith.constant 0 : index
    %c0_58 = arith.constant 0 : index
    %174 = vector.load %arg11[%c0_56, %c0_57, %c0_58] : memref<3x256x1024xbf16, #tpu.memory_space<vmem>>, vector<1x256x1024xbf16>
    %175 = vector.shape_cast %174 : vector<1x256x1024xbf16> to vector<256x1024xbf16>
    %cst_59 = arith.constant dense<0.000000e+00> : vector<16x1024xf32>
    %176 = tpu.matmul %173, %175, %cst_59 {dimension_numbers = #tpu.dot_dimension_numbers<[1], [0], [0], [1], [0, 0, 1, 1], [], []>} : vector<16x256xbf16>, vector<256x1024xbf16>, vector<16x1024xf32> -> vector<16x1024xf32>
    %c0_60 = arith.constant 0 : index
    %c0_61 = arith.constant 0 : index
    %177 = vector.load %arg12[%c0_60, %c0_61] : memref<3x1024xf32, #tpu.memory_space<vmem>>, vector<1x1024xf32>
    %178 = vector.shape_cast %177 : vector<1x1024xf32> to vector<1024xf32>
    %179 = vector.shape_cast %178 : vector<1024xf32> to vector<1x1024xf32>
    %180 = vector.broadcast %179 : vector<1x1024xf32> to vector<16x1024xf32>
    %181 = arith.addf %176, %180 : vector<16x1024xf32>
    %cst_62 = arith.constant 0.000000e+00 : f32
    %182 = vector.broadcast %cst_62 : f32 to vector<16x1024xf32>
    %183 = arith.maximumf %181, %182 : vector<16x1024xf32>
    %184 = arith.truncf %183 : vector<16x1024xf32> to vector<16x1024xbf16>
    %c0_63 = arith.constant 0 : index
    %c0_64 = arith.constant 0 : index
    %c0_65 = arith.constant 0 : index
    %185 = vector.load %arg13[%c0_63, %c0_64, %c0_65] : memref<3x1024x256xbf16, #tpu.memory_space<vmem>>, vector<1x1024x256xbf16>
    %186 = vector.shape_cast %185 : vector<1x1024x256xbf16> to vector<1024x256xbf16>
    %cst_66 = arith.constant dense<0.000000e+00> : vector<16x256xf32>
    %187 = tpu.matmul %184, %186, %cst_66 {dimension_numbers = #tpu.dot_dimension_numbers<[1], [0], [0], [1], [0, 0, 1, 1], [], []>} : vector<16x1024xbf16>, vector<1024x256xbf16>, vector<16x256xf32> -> vector<16x256xf32>
    %188 = arith.addf %144, %187 : vector<16x256xf32>
    %c0_67 = arith.constant 0 : index
    %c0_68 = arith.constant 0 : index
    %189 = vector.load %arg14[%c0_67, %c0_68] : memref<3x256xf32, #tpu.memory_space<vmem>>, vector<1x256xf32>
    %190 = vector.shape_cast %189 : vector<1x256xf32> to vector<256xf32>
    %191 = vector.shape_cast %190 : vector<256xf32> to vector<1x256xf32>
    %192 = vector.broadcast %191 : vector<1x256xf32> to vector<16x256xf32>
    %193 = arith.addf %188, %192 : vector<16x256xf32>
    %c1 = arith.constant 1 : index
    %c0_69 = arith.constant 0 : index
    %194 = vector.load %arg4[%c1, %c0_69] : memref<3x256xf32, #tpu.memory_space<vmem>>, vector<1x256xf32>
    %195 = vector.shape_cast %194 : vector<1x256xf32> to vector<256xf32>
    %c1_70 = arith.constant 1 : index
    %c0_71 = arith.constant 0 : index
    %196 = vector.load %arg5[%c1_70, %c0_71] : memref<3x256xf32, #tpu.memory_space<vmem>>, vector<1x256xf32>
    %197 = vector.shape_cast %196 : vector<1x256xf32> to vector<256xf32>
    %cst_72 = arith.constant dense<0.000000e+00> : vector<16xf32>
    %198 = vector.multi_reduction <add>, %193, %cst_72 [1] : vector<16x256xf32> to vector<16xf32>
    %199 = vector.shape_cast %198 : vector<16xf32> to vector<16x1xf32>
    %cst_73 = arith.constant 2.560000e+02 : f32
    %200 = vector.broadcast %cst_73 : f32 to vector<16x1xf32>
    %201 = arith.divf %199, %200 : vector<16x1xf32>
    %202 = vector.broadcast %201 : vector<16x1xf32> to vector<16x256xf32>
    %203 = arith.subf %193, %202 : vector<16x256xf32>
    %204 = arith.mulf %203, %203 : vector<16x256xf32>
    %cst_74 = arith.constant dense<0.000000e+00> : vector<16xf32>
    %205 = vector.multi_reduction <add>, %204, %cst_74 [1] : vector<16x256xf32> to vector<16xf32>
    %206 = vector.shape_cast %205 : vector<16xf32> to vector<16x1xf32>
    %cst_75 = arith.constant 2.560000e+02 : f32
    %207 = vector.broadcast %cst_75 : f32 to vector<16x1xf32>
    %208 = arith.divf %206, %207 : vector<16x1xf32>
    %209 = vector.broadcast %201 : vector<16x1xf32> to vector<16x256xf32>
    %210 = arith.subf %193, %209 : vector<16x256xf32>
    %cst_76 = arith.constant 9.99999974E-6 : f32
    %211 = vector.broadcast %cst_76 : f32 to vector<16x1xf32>
    %212 = arith.addf %208, %211 : vector<16x1xf32>
    %213 = math.rsqrt %212 : vector<16x1xf32>
    %214 = vector.broadcast %213 : vector<16x1xf32> to vector<16x256xf32>
    %215 = arith.mulf %210, %214 : vector<16x256xf32>
    %216 = vector.shape_cast %195 : vector<256xf32> to vector<1x256xf32>
    %217 = vector.broadcast %216 : vector<1x256xf32> to vector<16x256xf32>
    %218 = arith.mulf %215, %217 : vector<16x256xf32>
    %219 = vector.shape_cast %197 : vector<256xf32> to vector<1x256xf32>
    %220 = vector.broadcast %219 : vector<1x256xf32> to vector<16x256xf32>
    %221 = arith.addf %218, %220 : vector<16x256xf32>
    %222 = arith.truncf %221 : vector<16x256xf32> to vector<16x256xbf16>
    %c1_77 = arith.constant 1 : index
    %c0_78 = arith.constant 0 : index
    %c0_79 = arith.constant 0 : index
    %223 = vector.load %arg6[%c1_77, %c0_78, %c0_79] : memref<3x256x768xbf16, #tpu.memory_space<vmem>>, vector<1x256x768xbf16>
    %224 = vector.shape_cast %223 : vector<1x256x768xbf16> to vector<256x768xbf16>
    %cst_80 = arith.constant dense<0.000000e+00> : vector<16x768xf32>
    %225 = tpu.matmul %222, %224, %cst_80 {dimension_numbers = #tpu.dot_dimension_numbers<[1], [0], [0], [1], [0, 0, 1, 1], [], []>} : vector<16x256xbf16>, vector<256x768xbf16>, vector<16x768xf32> -> vector<16x768xf32>
    %226 = vector.extract_strided_slice %225 {offsets = [0, 0], sizes = [16, 64], strides = [1, 1]} : vector<16x768xf32> to vector<16x64xf32>
    %cst_81 = arith.constant 6.250000e-02 : f32
    %227 = vector.broadcast %cst_81 : f32 to vector<16x64xf32>
    %228 = arith.mulf %226, %227 : vector<16x64xf32>
    %229 = arith.truncf %228 : vector<16x64xf32> to vector<16x64xbf16>
    %230 = vector.extract_strided_slice %225 {offsets = [0, 256], sizes = [16, 64], strides = [1, 1]} : vector<16x768xf32> to vector<16x64xf32>
    %231 = arith.truncf %230 : vector<16x64xf32> to vector<16x64xbf16>
    %232 = vector.extract_strided_slice %225 {offsets = [0, 512], sizes = [16, 64], strides = [1, 1]} : vector<16x768xf32> to vector<16x64xf32>
    %233 = arith.truncf %232 : vector<16x64xf32> to vector<16x64xbf16>
    %cst_82 = arith.constant dense<0.000000e+00> : vector<16x16xf32>
    %234 = tpu.matmul %229, %231, %cst_82 {dimension_numbers = #tpu.dot_dimension_numbers<[1], [1], [0], [0], [0, 0, 1, 0], [], []>} : vector<16x64xbf16>, vector<16x64xbf16>, vector<16x16xf32> -> vector<16x16xf32>
    %235 = arith.addf %234, %17 : vector<16x16xf32>
    %cst_83 = arith.constant dense<0xFF800000> : vector<16xf32>
    %236 = vector.multi_reduction <maximumf>, %235, %cst_83 [1] : vector<16x16xf32> to vector<16xf32>
    %237 = vector.shape_cast %236 : vector<16xf32> to vector<16x1xf32>
    %238 = vector.broadcast %237 : vector<16x1xf32> to vector<16x16xf32>
    %239 = arith.subf %235, %238 : vector<16x16xf32>
    %240 = math.exp %239 : vector<16x16xf32>
    %cst_84 = arith.constant dense<0.000000e+00> : vector<16xf32>
    %241 = vector.multi_reduction <add>, %240, %cst_84 [1] : vector<16x16xf32> to vector<16xf32>
    %242 = vector.shape_cast %241 : vector<16xf32> to vector<16x1xf32>
    %243 = vector.broadcast %242 : vector<16x1xf32> to vector<16x16xf32>
    %244 = arith.divf %240, %243 : vector<16x16xf32>
    %245 = arith.truncf %244 : vector<16x16xf32> to vector<16x16xbf16>
    %cst_85 = arith.constant dense<0.000000e+00> : vector<16x64xf32>
    %246 = tpu.matmul %245, %233, %cst_85 {dimension_numbers = #tpu.dot_dimension_numbers<[1], [0], [0], [1], [0, 0, 1, 1], [], []>} : vector<16x16xbf16>, vector<16x64xbf16>, vector<16x64xf32> -> vector<16x64xf32>
    %247 = vector.extract_strided_slice %225 {offsets = [0, 64], sizes = [16, 64], strides = [1, 1]} : vector<16x768xf32> to vector<16x64xf32>
    %cst_86 = arith.constant 6.250000e-02 : f32
    %248 = vector.broadcast %cst_86 : f32 to vector<16x64xf32>
    %249 = arith.mulf %247, %248 : vector<16x64xf32>
    %250 = arith.truncf %249 : vector<16x64xf32> to vector<16x64xbf16>
    %251 = vector.extract_strided_slice %225 {offsets = [0, 320], sizes = [16, 64], strides = [1, 1]} : vector<16x768xf32> to vector<16x64xf32>
    %252 = arith.truncf %251 : vector<16x64xf32> to vector<16x64xbf16>
    %253 = vector.extract_strided_slice %225 {offsets = [0, 576], sizes = [16, 64], strides = [1, 1]} : vector<16x768xf32> to vector<16x64xf32>
    %254 = arith.truncf %253 : vector<16x64xf32> to vector<16x64xbf16>
    %cst_87 = arith.constant dense<0.000000e+00> : vector<16x16xf32>
    %255 = tpu.matmul %250, %252, %cst_87 {dimension_numbers = #tpu.dot_dimension_numbers<[1], [1], [0], [0], [0, 0, 1, 0], [], []>} : vector<16x64xbf16>, vector<16x64xbf16>, vector<16x16xf32> -> vector<16x16xf32>
    %256 = arith.addf %255, %17 : vector<16x16xf32>
    %cst_88 = arith.constant dense<0xFF800000> : vector<16xf32>
    %257 = vector.multi_reduction <maximumf>, %256, %cst_88 [1] : vector<16x16xf32> to vector<16xf32>
    %258 = vector.shape_cast %257 : vector<16xf32> to vector<16x1xf32>
    %259 = vector.broadcast %258 : vector<16x1xf32> to vector<16x16xf32>
    %260 = arith.subf %256, %259 : vector<16x16xf32>
    %261 = math.exp %260 : vector<16x16xf32>
    %cst_89 = arith.constant dense<0.000000e+00> : vector<16xf32>
    %262 = vector.multi_reduction <add>, %261, %cst_89 [1] : vector<16x16xf32> to vector<16xf32>
    %263 = vector.shape_cast %262 : vector<16xf32> to vector<16x1xf32>
    %264 = vector.broadcast %263 : vector<16x1xf32> to vector<16x16xf32>
    %265 = arith.divf %261, %264 : vector<16x16xf32>
    %266 = arith.truncf %265 : vector<16x16xf32> to vector<16x16xbf16>
    %cst_90 = arith.constant dense<0.000000e+00> : vector<16x64xf32>
    %267 = tpu.matmul %266, %254, %cst_90 {dimension_numbers = #tpu.dot_dimension_numbers<[1], [0], [0], [1], [0, 0, 1, 1], [], []>} : vector<16x16xbf16>, vector<16x64xbf16>, vector<16x64xf32> -> vector<16x64xf32>
    %268 = vector.extract_strided_slice %225 {offsets = [0, 128], sizes = [16, 64], strides = [1, 1]} : vector<16x768xf32> to vector<16x64xf32>
    %cst_91 = arith.constant 6.250000e-02 : f32
    %269 = vector.broadcast %cst_91 : f32 to vector<16x64xf32>
    %270 = arith.mulf %268, %269 : vector<16x64xf32>
    %271 = arith.truncf %270 : vector<16x64xf32> to vector<16x64xbf16>
    %272 = vector.extract_strided_slice %225 {offsets = [0, 384], sizes = [16, 64], strides = [1, 1]} : vector<16x768xf32> to vector<16x64xf32>
    %273 = arith.truncf %272 : vector<16x64xf32> to vector<16x64xbf16>
    %274 = vector.extract_strided_slice %225 {offsets = [0, 640], sizes = [16, 64], strides = [1, 1]} : vector<16x768xf32> to vector<16x64xf32>
    %275 = arith.truncf %274 : vector<16x64xf32> to vector<16x64xbf16>
    %cst_92 = arith.constant dense<0.000000e+00> : vector<16x16xf32>
    %276 = tpu.matmul %271, %273, %cst_92 {dimension_numbers = #tpu.dot_dimension_numbers<[1], [1], [0], [0], [0, 0, 1, 0], [], []>} : vector<16x64xbf16>, vector<16x64xbf16>, vector<16x16xf32> -> vector<16x16xf32>
    %277 = arith.addf %276, %17 : vector<16x16xf32>
    %cst_93 = arith.constant dense<0xFF800000> : vector<16xf32>
    %278 = vector.multi_reduction <maximumf>, %277, %cst_93 [1] : vector<16x16xf32> to vector<16xf32>
    %279 = vector.shape_cast %278 : vector<16xf32> to vector<16x1xf32>
    %280 = vector.broadcast %279 : vector<16x1xf32> to vector<16x16xf32>
    %281 = arith.subf %277, %280 : vector<16x16xf32>
    %282 = math.exp %281 : vector<16x16xf32>
    %cst_94 = arith.constant dense<0.000000e+00> : vector<16xf32>
    %283 = vector.multi_reduction <add>, %282, %cst_94 [1] : vector<16x16xf32> to vector<16xf32>
    %284 = vector.shape_cast %283 : vector<16xf32> to vector<16x1xf32>
    %285 = vector.broadcast %284 : vector<16x1xf32> to vector<16x16xf32>
    %286 = arith.divf %282, %285 : vector<16x16xf32>
    %287 = arith.truncf %286 : vector<16x16xf32> to vector<16x16xbf16>
    %cst_95 = arith.constant dense<0.000000e+00> : vector<16x64xf32>
    %288 = tpu.matmul %287, %275, %cst_95 {dimension_numbers = #tpu.dot_dimension_numbers<[1], [0], [0], [1], [0, 0, 1, 1], [], []>} : vector<16x16xbf16>, vector<16x64xbf16>, vector<16x64xf32> -> vector<16x64xf32>
    %289 = vector.extract_strided_slice %225 {offsets = [0, 192], sizes = [16, 64], strides = [1, 1]} : vector<16x768xf32> to vector<16x64xf32>
    %cst_96 = arith.constant 6.250000e-02 : f32
    %290 = vector.broadcast %cst_96 : f32 to vector<16x64xf32>
    %291 = arith.mulf %289, %290 : vector<16x64xf32>
    %292 = arith.truncf %291 : vector<16x64xf32> to vector<16x64xbf16>
    %293 = vector.extract_strided_slice %225 {offsets = [0, 448], sizes = [16, 64], strides = [1, 1]} : vector<16x768xf32> to vector<16x64xf32>
    %294 = arith.truncf %293 : vector<16x64xf32> to vector<16x64xbf16>
    %295 = vector.extract_strided_slice %225 {offsets = [0, 704], sizes = [16, 64], strides = [1, 1]} : vector<16x768xf32> to vector<16x64xf32>
    %296 = arith.truncf %295 : vector<16x64xf32> to vector<16x64xbf16>
    %cst_97 = arith.constant dense<0.000000e+00> : vector<16x16xf32>
    %297 = tpu.matmul %292, %294, %cst_97 {dimension_numbers = #tpu.dot_dimension_numbers<[1], [1], [0], [0], [0, 0, 1, 0], [], []>} : vector<16x64xbf16>, vector<16x64xbf16>, vector<16x16xf32> -> vector<16x16xf32>
    %298 = arith.addf %297, %17 : vector<16x16xf32>
    %cst_98 = arith.constant dense<0xFF800000> : vector<16xf32>
    %299 = vector.multi_reduction <maximumf>, %298, %cst_98 [1] : vector<16x16xf32> to vector<16xf32>
    %300 = vector.shape_cast %299 : vector<16xf32> to vector<16x1xf32>
    %301 = vector.broadcast %300 : vector<16x1xf32> to vector<16x16xf32>
    %302 = arith.subf %298, %301 : vector<16x16xf32>
    %303 = math.exp %302 : vector<16x16xf32>
    %cst_99 = arith.constant dense<0.000000e+00> : vector<16xf32>
    %304 = vector.multi_reduction <add>, %303, %cst_99 [1] : vector<16x16xf32> to vector<16xf32>
    %305 = vector.shape_cast %304 : vector<16xf32> to vector<16x1xf32>
    %306 = vector.broadcast %305 : vector<16x1xf32> to vector<16x16xf32>
    %307 = arith.divf %303, %306 : vector<16x16xf32>
    %308 = arith.truncf %307 : vector<16x16xf32> to vector<16x16xbf16>
    %cst_100 = arith.constant dense<0.000000e+00> : vector<16x64xf32>
    %309 = tpu.matmul %308, %296, %cst_100 {dimension_numbers = #tpu.dot_dimension_numbers<[1], [0], [0], [1], [0, 0, 1, 1], [], []>} : vector<16x16xbf16>, vector<16x64xbf16>, vector<16x64xf32> -> vector<16x64xf32>
    %310 = tpu.concatenate %246, %267, %288, %309 in 1 : vector<16x64xf32>, vector<16x64xf32>, vector<16x64xf32>, vector<16x64xf32> -> vector<16x256xf32>
    %311 = arith.truncf %310 : vector<16x256xf32> to vector<16x256xbf16>
    %c1_101 = arith.constant 1 : index
    %c0_102 = arith.constant 0 : index
    %c0_103 = arith.constant 0 : index
    %312 = vector.load %arg7[%c1_101, %c0_102, %c0_103] : memref<3x256x256xbf16, #tpu.memory_space<vmem>>, vector<1x256x256xbf16>
    %313 = vector.shape_cast %312 : vector<1x256x256xbf16> to vector<256x256xbf16>
    %cst_104 = arith.constant dense<0.000000e+00> : vector<16x256xf32>
    %314 = tpu.matmul %311, %313, %cst_104 {dimension_numbers = #tpu.dot_dimension_numbers<[1], [0], [0], [1], [0, 0, 1, 1], [], []>} : vector<16x256xbf16>, vector<256x256xbf16>, vector<16x256xf32> -> vector<16x256xf32>
    %315 = arith.addf %193, %314 : vector<16x256xf32>
    %c1_105 = arith.constant 1 : index
    %c0_106 = arith.constant 0 : index
    %316 = vector.load %arg8[%c1_105, %c0_106] : memref<3x256xf32, #tpu.memory_space<vmem>>, vector<1x256xf32>
    %317 = vector.shape_cast %316 : vector<1x256xf32> to vector<256xf32>
    %318 = vector.shape_cast %317 : vector<256xf32> to vector<1x256xf32>
    %319 = vector.broadcast %318 : vector<1x256xf32> to vector<16x256xf32>
    %320 = arith.addf %315, %319 : vector<16x256xf32>
    %c1_107 = arith.constant 1 : index
    %c0_108 = arith.constant 0 : index
    %321 = vector.load %arg9[%c1_107, %c0_108] : memref<3x256xf32, #tpu.memory_space<vmem>>, vector<1x256xf32>
    %322 = vector.shape_cast %321 : vector<1x256xf32> to vector<256xf32>
    %c1_109 = arith.constant 1 : index
    %c0_110 = arith.constant 0 : index
    %323 = vector.load %arg10[%c1_109, %c0_110] : memref<3x256xf32, #tpu.memory_space<vmem>>, vector<1x256xf32>
    %324 = vector.shape_cast %323 : vector<1x256xf32> to vector<256xf32>
    %cst_111 = arith.constant dense<0.000000e+00> : vector<16xf32>
    %325 = vector.multi_reduction <add>, %320, %cst_111 [1] : vector<16x256xf32> to vector<16xf32>
    %326 = vector.shape_cast %325 : vector<16xf32> to vector<16x1xf32>
    %cst_112 = arith.constant 2.560000e+02 : f32
    %327 = vector.broadcast %cst_112 : f32 to vector<16x1xf32>
    %328 = arith.divf %326, %327 : vector<16x1xf32>
    %329 = vector.broadcast %328 : vector<16x1xf32> to vector<16x256xf32>
    %330 = arith.subf %320, %329 : vector<16x256xf32>
    %331 = arith.mulf %330, %330 : vector<16x256xf32>
    %cst_113 = arith.constant dense<0.000000e+00> : vector<16xf32>
    %332 = vector.multi_reduction <add>, %331, %cst_113 [1] : vector<16x256xf32> to vector<16xf32>
    %333 = vector.shape_cast %332 : vector<16xf32> to vector<16x1xf32>
    %cst_114 = arith.constant 2.560000e+02 : f32
    %334 = vector.broadcast %cst_114 : f32 to vector<16x1xf32>
    %335 = arith.divf %333, %334 : vector<16x1xf32>
    %336 = vector.broadcast %328 : vector<16x1xf32> to vector<16x256xf32>
    %337 = arith.subf %320, %336 : vector<16x256xf32>
    %cst_115 = arith.constant 9.99999974E-6 : f32
    %338 = vector.broadcast %cst_115 : f32 to vector<16x1xf32>
    %339 = arith.addf %335, %338 : vector<16x1xf32>
    %340 = math.rsqrt %339 : vector<16x1xf32>
    %341 = vector.broadcast %340 : vector<16x1xf32> to vector<16x256xf32>
    %342 = arith.mulf %337, %341 : vector<16x256xf32>
    %343 = vector.shape_cast %322 : vector<256xf32> to vector<1x256xf32>
    %344 = vector.broadcast %343 : vector<1x256xf32> to vector<16x256xf32>
    %345 = arith.mulf %342, %344 : vector<16x256xf32>
    %346 = vector.shape_cast %324 : vector<256xf32> to vector<1x256xf32>
    %347 = vector.broadcast %346 : vector<1x256xf32> to vector<16x256xf32>
    %348 = arith.addf %345, %347 : vector<16x256xf32>
    %349 = arith.truncf %348 : vector<16x256xf32> to vector<16x256xbf16>
    %c1_116 = arith.constant 1 : index
    %c0_117 = arith.constant 0 : index
    %c0_118 = arith.constant 0 : index
    %350 = vector.load %arg11[%c1_116, %c0_117, %c0_118] : memref<3x256x1024xbf16, #tpu.memory_space<vmem>>, vector<1x256x1024xbf16>
    %351 = vector.shape_cast %350 : vector<1x256x1024xbf16> to vector<256x1024xbf16>
    %cst_119 = arith.constant dense<0.000000e+00> : vector<16x1024xf32>
    %352 = tpu.matmul %349, %351, %cst_119 {dimension_numbers = #tpu.dot_dimension_numbers<[1], [0], [0], [1], [0, 0, 1, 1], [], []>} : vector<16x256xbf16>, vector<256x1024xbf16>, vector<16x1024xf32> -> vector<16x1024xf32>
    %c1_120 = arith.constant 1 : index
    %c0_121 = arith.constant 0 : index
    %353 = vector.load %arg12[%c1_120, %c0_121] : memref<3x1024xf32, #tpu.memory_space<vmem>>, vector<1x1024xf32>
    %354 = vector.shape_cast %353 : vector<1x1024xf32> to vector<1024xf32>
    %355 = vector.shape_cast %354 : vector<1024xf32> to vector<1x1024xf32>
    %356 = vector.broadcast %355 : vector<1x1024xf32> to vector<16x1024xf32>
    %357 = arith.addf %352, %356 : vector<16x1024xf32>
    %cst_122 = arith.constant 0.000000e+00 : f32
    %358 = vector.broadcast %cst_122 : f32 to vector<16x1024xf32>
    %359 = arith.maximumf %357, %358 : vector<16x1024xf32>
    %360 = arith.truncf %359 : vector<16x1024xf32> to vector<16x1024xbf16>
    %c1_123 = arith.constant 1 : index
    %c0_124 = arith.constant 0 : index
    %c0_125 = arith.constant 0 : index
    %361 = vector.load %arg13[%c1_123, %c0_124, %c0_125] : memref<3x1024x256xbf16, #tpu.memory_space<vmem>>, vector<1x1024x256xbf16>
    %362 = vector.shape_cast %361 : vector<1x1024x256xbf16> to vector<1024x256xbf16>
    %cst_126 = arith.constant dense<0.000000e+00> : vector<16x256xf32>
    %363 = tpu.matmul %360, %362, %cst_126 {dimension_numbers = #tpu.dot_dimension_numbers<[1], [0], [0], [1], [0, 0, 1, 1], [], []>} : vector<16x1024xbf16>, vector<1024x256xbf16>, vector<16x256xf32> -> vector<16x256xf32>
    %364 = arith.addf %320, %363 : vector<16x256xf32>
    %c1_127 = arith.constant 1 : index
    %c0_128 = arith.constant 0 : index
    %365 = vector.load %arg14[%c1_127, %c0_128] : memref<3x256xf32, #tpu.memory_space<vmem>>, vector<1x256xf32>
    %366 = vector.shape_cast %365 : vector<1x256xf32> to vector<256xf32>
    %367 = vector.shape_cast %366 : vector<256xf32> to vector<1x256xf32>
    %368 = vector.broadcast %367 : vector<1x256xf32> to vector<16x256xf32>
    %369 = arith.addf %364, %368 : vector<16x256xf32>
    %c2 = arith.constant 2 : index
    %c0_129 = arith.constant 0 : index
    %370 = vector.load %arg4[%c2, %c0_129] : memref<3x256xf32, #tpu.memory_space<vmem>>, vector<1x256xf32>
    %371 = vector.shape_cast %370 : vector<1x256xf32> to vector<256xf32>
    %c2_130 = arith.constant 2 : index
    %c0_131 = arith.constant 0 : index
    %372 = vector.load %arg5[%c2_130, %c0_131] : memref<3x256xf32, #tpu.memory_space<vmem>>, vector<1x256xf32>
    %373 = vector.shape_cast %372 : vector<1x256xf32> to vector<256xf32>
    %cst_132 = arith.constant dense<0.000000e+00> : vector<16xf32>
    %374 = vector.multi_reduction <add>, %369, %cst_132 [1] : vector<16x256xf32> to vector<16xf32>
    %375 = vector.shape_cast %374 : vector<16xf32> to vector<16x1xf32>
    %cst_133 = arith.constant 2.560000e+02 : f32
    %376 = vector.broadcast %cst_133 : f32 to vector<16x1xf32>
    %377 = arith.divf %375, %376 : vector<16x1xf32>
    %378 = vector.broadcast %377 : vector<16x1xf32> to vector<16x256xf32>
    %379 = arith.subf %369, %378 : vector<16x256xf32>
    %380 = arith.mulf %379, %379 : vector<16x256xf32>
    %cst_134 = arith.constant dense<0.000000e+00> : vector<16xf32>
    %381 = vector.multi_reduction <add>, %380, %cst_134 [1] : vector<16x256xf32> to vector<16xf32>
    %382 = vector.shape_cast %381 : vector<16xf32> to vector<16x1xf32>
    %cst_135 = arith.constant 2.560000e+02 : f32
    %383 = vector.broadcast %cst_135 : f32 to vector<16x1xf32>
    %384 = arith.divf %382, %383 : vector<16x1xf32>
    %385 = vector.broadcast %377 : vector<16x1xf32> to vector<16x256xf32>
    %386 = arith.subf %369, %385 : vector<16x256xf32>
    %cst_136 = arith.constant 9.99999974E-6 : f32
    %387 = vector.broadcast %cst_136 : f32 to vector<16x1xf32>
    %388 = arith.addf %384, %387 : vector<16x1xf32>
    %389 = math.rsqrt %388 : vector<16x1xf32>
    %390 = vector.broadcast %389 : vector<16x1xf32> to vector<16x256xf32>
    %391 = arith.mulf %386, %390 : vector<16x256xf32>
    %392 = vector.shape_cast %371 : vector<256xf32> to vector<1x256xf32>
    %393 = vector.broadcast %392 : vector<1x256xf32> to vector<16x256xf32>
    %394 = arith.mulf %391, %393 : vector<16x256xf32>
    %395 = vector.shape_cast %373 : vector<256xf32> to vector<1x256xf32>
    %396 = vector.broadcast %395 : vector<1x256xf32> to vector<16x256xf32>
    %397 = arith.addf %394, %396 : vector<16x256xf32>
    %398 = arith.truncf %397 : vector<16x256xf32> to vector<16x256xbf16>
    %c2_137 = arith.constant 2 : index
    %c0_138 = arith.constant 0 : index
    %c0_139 = arith.constant 0 : index
    %399 = vector.load %arg6[%c2_137, %c0_138, %c0_139] : memref<3x256x768xbf16, #tpu.memory_space<vmem>>, vector<1x256x768xbf16>
    %400 = vector.shape_cast %399 : vector<1x256x768xbf16> to vector<256x768xbf16>
    %cst_140 = arith.constant dense<0.000000e+00> : vector<16x768xf32>
    %401 = tpu.matmul %398, %400, %cst_140 {dimension_numbers = #tpu.dot_dimension_numbers<[1], [0], [0], [1], [0, 0, 1, 1], [], []>} : vector<16x256xbf16>, vector<256x768xbf16>, vector<16x768xf32> -> vector<16x768xf32>
    %402 = vector.extract_strided_slice %401 {offsets = [0, 0], sizes = [16, 64], strides = [1, 1]} : vector<16x768xf32> to vector<16x64xf32>
    %cst_141 = arith.constant 6.250000e-02 : f32
    %403 = vector.broadcast %cst_141 : f32 to vector<16x64xf32>
    %404 = arith.mulf %402, %403 : vector<16x64xf32>
    %405 = arith.truncf %404 : vector<16x64xf32> to vector<16x64xbf16>
    %406 = vector.extract_strided_slice %401 {offsets = [0, 256], sizes = [16, 64], strides = [1, 1]} : vector<16x768xf32> to vector<16x64xf32>
    %407 = arith.truncf %406 : vector<16x64xf32> to vector<16x64xbf16>
    %408 = vector.extract_strided_slice %401 {offsets = [0, 512], sizes = [16, 64], strides = [1, 1]} : vector<16x768xf32> to vector<16x64xf32>
    %409 = arith.truncf %408 : vector<16x64xf32> to vector<16x64xbf16>
    %cst_142 = arith.constant dense<0.000000e+00> : vector<16x16xf32>
    %410 = tpu.matmul %405, %407, %cst_142 {dimension_numbers = #tpu.dot_dimension_numbers<[1], [1], [0], [0], [0, 0, 1, 0], [], []>} : vector<16x64xbf16>, vector<16x64xbf16>, vector<16x16xf32> -> vector<16x16xf32>
    %411 = arith.addf %410, %17 : vector<16x16xf32>
    %cst_143 = arith.constant dense<0xFF800000> : vector<16xf32>
    %412 = vector.multi_reduction <maximumf>, %411, %cst_143 [1] : vector<16x16xf32> to vector<16xf32>
    %413 = vector.shape_cast %412 : vector<16xf32> to vector<16x1xf32>
    %414 = vector.broadcast %413 : vector<16x1xf32> to vector<16x16xf32>
    %415 = arith.subf %411, %414 : vector<16x16xf32>
    %416 = math.exp %415 : vector<16x16xf32>
    %cst_144 = arith.constant dense<0.000000e+00> : vector<16xf32>
    %417 = vector.multi_reduction <add>, %416, %cst_144 [1] : vector<16x16xf32> to vector<16xf32>
    %418 = vector.shape_cast %417 : vector<16xf32> to vector<16x1xf32>
    %419 = vector.broadcast %418 : vector<16x1xf32> to vector<16x16xf32>
    %420 = arith.divf %416, %419 : vector<16x16xf32>
    %421 = arith.truncf %420 : vector<16x16xf32> to vector<16x16xbf16>
    %cst_145 = arith.constant dense<0.000000e+00> : vector<16x64xf32>
    %422 = tpu.matmul %421, %409, %cst_145 {dimension_numbers = #tpu.dot_dimension_numbers<[1], [0], [0], [1], [0, 0, 1, 1], [], []>} : vector<16x16xbf16>, vector<16x64xbf16>, vector<16x64xf32> -> vector<16x64xf32>
    %423 = vector.extract_strided_slice %401 {offsets = [0, 64], sizes = [16, 64], strides = [1, 1]} : vector<16x768xf32> to vector<16x64xf32>
    %cst_146 = arith.constant 6.250000e-02 : f32
    %424 = vector.broadcast %cst_146 : f32 to vector<16x64xf32>
    %425 = arith.mulf %423, %424 : vector<16x64xf32>
    %426 = arith.truncf %425 : vector<16x64xf32> to vector<16x64xbf16>
    %427 = vector.extract_strided_slice %401 {offsets = [0, 320], sizes = [16, 64], strides = [1, 1]} : vector<16x768xf32> to vector<16x64xf32>
    %428 = arith.truncf %427 : vector<16x64xf32> to vector<16x64xbf16>
    %429 = vector.extract_strided_slice %401 {offsets = [0, 576], sizes = [16, 64], strides = [1, 1]} : vector<16x768xf32> to vector<16x64xf32>
    %430 = arith.truncf %429 : vector<16x64xf32> to vector<16x64xbf16>
    %cst_147 = arith.constant dense<0.000000e+00> : vector<16x16xf32>
    %431 = tpu.matmul %426, %428, %cst_147 {dimension_numbers = #tpu.dot_dimension_numbers<[1], [1], [0], [0], [0, 0, 1, 0], [], []>} : vector<16x64xbf16>, vector<16x64xbf16>, vector<16x16xf32> -> vector<16x16xf32>
    %432 = arith.addf %431, %17 : vector<16x16xf32>
    %cst_148 = arith.constant dense<0xFF800000> : vector<16xf32>
    %433 = vector.multi_reduction <maximumf>, %432, %cst_148 [1] : vector<16x16xf32> to vector<16xf32>
    %434 = vector.shape_cast %433 : vector<16xf32> to vector<16x1xf32>
    %435 = vector.broadcast %434 : vector<16x1xf32> to vector<16x16xf32>
    %436 = arith.subf %432, %435 : vector<16x16xf32>
    %437 = math.exp %436 : vector<16x16xf32>
    %cst_149 = arith.constant dense<0.000000e+00> : vector<16xf32>
    %438 = vector.multi_reduction <add>, %437, %cst_149 [1] : vector<16x16xf32> to vector<16xf32>
    %439 = vector.shape_cast %438 : vector<16xf32> to vector<16x1xf32>
    %440 = vector.broadcast %439 : vector<16x1xf32> to vector<16x16xf32>
    %441 = arith.divf %437, %440 : vector<16x16xf32>
    %442 = arith.truncf %441 : vector<16x16xf32> to vector<16x16xbf16>
    %cst_150 = arith.constant dense<0.000000e+00> : vector<16x64xf32>
    %443 = tpu.matmul %442, %430, %cst_150 {dimension_numbers = #tpu.dot_dimension_numbers<[1], [0], [0], [1], [0, 0, 1, 1], [], []>} : vector<16x16xbf16>, vector<16x64xbf16>, vector<16x64xf32> -> vector<16x64xf32>
    %444 = vector.extract_strided_slice %401 {offsets = [0, 128], sizes = [16, 64], strides = [1, 1]} : vector<16x768xf32> to vector<16x64xf32>
    %cst_151 = arith.constant 6.250000e-02 : f32
    %445 = vector.broadcast %cst_151 : f32 to vector<16x64xf32>
    %446 = arith.mulf %444, %445 : vector<16x64xf32>
    %447 = arith.truncf %446 : vector<16x64xf32> to vector<16x64xbf16>
    %448 = vector.extract_strided_slice %401 {offsets = [0, 384], sizes = [16, 64], strides = [1, 1]} : vector<16x768xf32> to vector<16x64xf32>
    %449 = arith.truncf %448 : vector<16x64xf32> to vector<16x64xbf16>
    %450 = vector.extract_strided_slice %401 {offsets = [0, 640], sizes = [16, 64], strides = [1, 1]} : vector<16x768xf32> to vector<16x64xf32>
    %451 = arith.truncf %450 : vector<16x64xf32> to vector<16x64xbf16>
    %cst_152 = arith.constant dense<0.000000e+00> : vector<16x16xf32>
    %452 = tpu.matmul %447, %449, %cst_152 {dimension_numbers = #tpu.dot_dimension_numbers<[1], [1], [0], [0], [0, 0, 1, 0], [], []>} : vector<16x64xbf16>, vector<16x64xbf16>, vector<16x16xf32> -> vector<16x16xf32>
    %453 = arith.addf %452, %17 : vector<16x16xf32>
    %cst_153 = arith.constant dense<0xFF800000> : vector<16xf32>
    %454 = vector.multi_reduction <maximumf>, %453, %cst_153 [1] : vector<16x16xf32> to vector<16xf32>
    %455 = vector.shape_cast %454 : vector<16xf32> to vector<16x1xf32>
    %456 = vector.broadcast %455 : vector<16x1xf32> to vector<16x16xf32>
    %457 = arith.subf %453, %456 : vector<16x16xf32>
    %458 = math.exp %457 : vector<16x16xf32>
    %cst_154 = arith.constant dense<0.000000e+00> : vector<16xf32>
    %459 = vector.multi_reduction <add>, %458, %cst_154 [1] : vector<16x16xf32> to vector<16xf32>
    %460 = vector.shape_cast %459 : vector<16xf32> to vector<16x1xf32>
    %461 = vector.broadcast %460 : vector<16x1xf32> to vector<16x16xf32>
    %462 = arith.divf %458, %461 : vector<16x16xf32>
    %463 = arith.truncf %462 : vector<16x16xf32> to vector<16x16xbf16>
    %cst_155 = arith.constant dense<0.000000e+00> : vector<16x64xf32>
    %464 = tpu.matmul %463, %451, %cst_155 {dimension_numbers = #tpu.dot_dimension_numbers<[1], [0], [0], [1], [0, 0, 1, 1], [], []>} : vector<16x16xbf16>, vector<16x64xbf16>, vector<16x64xf32> -> vector<16x64xf32>
    %465 = vector.extract_strided_slice %401 {offsets = [0, 192], sizes = [16, 64], strides = [1, 1]} : vector<16x768xf32> to vector<16x64xf32>
    %cst_156 = arith.constant 6.250000e-02 : f32
    %466 = vector.broadcast %cst_156 : f32 to vector<16x64xf32>
    %467 = arith.mulf %465, %466 : vector<16x64xf32>
    %468 = arith.truncf %467 : vector<16x64xf32> to vector<16x64xbf16>
    %469 = vector.extract_strided_slice %401 {offsets = [0, 448], sizes = [16, 64], strides = [1, 1]} : vector<16x768xf32> to vector<16x64xf32>
    %470 = arith.truncf %469 : vector<16x64xf32> to vector<16x64xbf16>
    %471 = vector.extract_strided_slice %401 {offsets = [0, 704], sizes = [16, 64], strides = [1, 1]} : vector<16x768xf32> to vector<16x64xf32>
    %472 = arith.truncf %471 : vector<16x64xf32> to vector<16x64xbf16>
    %cst_157 = arith.constant dense<0.000000e+00> : vector<16x16xf32>
    %473 = tpu.matmul %468, %470, %cst_157 {dimension_numbers = #tpu.dot_dimension_numbers<[1], [1], [0], [0], [0, 0, 1, 0], [], []>} : vector<16x64xbf16>, vector<16x64xbf16>, vector<16x16xf32> -> vector<16x16xf32>
    %474 = arith.addf %473, %17 : vector<16x16xf32>
    %cst_158 = arith.constant dense<0xFF800000> : vector<16xf32>
    %475 = vector.multi_reduction <maximumf>, %474, %cst_158 [1] : vector<16x16xf32> to vector<16xf32>
    %476 = vector.shape_cast %475 : vector<16xf32> to vector<16x1xf32>
    %477 = vector.broadcast %476 : vector<16x1xf32> to vector<16x16xf32>
    %478 = arith.subf %474, %477 : vector<16x16xf32>
    %479 = math.exp %478 : vector<16x16xf32>
    %cst_159 = arith.constant dense<0.000000e+00> : vector<16xf32>
    %480 = vector.multi_reduction <add>, %479, %cst_159 [1] : vector<16x16xf32> to vector<16xf32>
    %481 = vector.shape_cast %480 : vector<16xf32> to vector<16x1xf32>
    %482 = vector.broadcast %481 : vector<16x1xf32> to vector<16x16xf32>
    %483 = arith.divf %479, %482 : vector<16x16xf32>
    %484 = arith.truncf %483 : vector<16x16xf32> to vector<16x16xbf16>
    %cst_160 = arith.constant dense<0.000000e+00> : vector<16x64xf32>
    %485 = tpu.matmul %484, %472, %cst_160 {dimension_numbers = #tpu.dot_dimension_numbers<[1], [0], [0], [1], [0, 0, 1, 1], [], []>} : vector<16x16xbf16>, vector<16x64xbf16>, vector<16x64xf32> -> vector<16x64xf32>
    %486 = tpu.concatenate %422, %443, %464, %485 in 1 : vector<16x64xf32>, vector<16x64xf32>, vector<16x64xf32>, vector<16x64xf32> -> vector<16x256xf32>
    %487 = arith.truncf %486 : vector<16x256xf32> to vector<16x256xbf16>
    %c2_161 = arith.constant 2 : index
    %c0_162 = arith.constant 0 : index
    %c0_163 = arith.constant 0 : index
    %488 = vector.load %arg7[%c2_161, %c0_162, %c0_163] : memref<3x256x256xbf16, #tpu.memory_space<vmem>>, vector<1x256x256xbf16>
    %489 = vector.shape_cast %488 : vector<1x256x256xbf16> to vector<256x256xbf16>
    %cst_164 = arith.constant dense<0.000000e+00> : vector<16x256xf32>
    %490 = tpu.matmul %487, %489, %cst_164 {dimension_numbers = #tpu.dot_dimension_numbers<[1], [0], [0], [1], [0, 0, 1, 1], [], []>} : vector<16x256xbf16>, vector<256x256xbf16>, vector<16x256xf32> -> vector<16x256xf32>
    %491 = arith.addf %369, %490 : vector<16x256xf32>
    %c2_165 = arith.constant 2 : index
    %c0_166 = arith.constant 0 : index
    %492 = vector.load %arg8[%c2_165, %c0_166] : memref<3x256xf32, #tpu.memory_space<vmem>>, vector<1x256xf32>
    %493 = vector.shape_cast %492 : vector<1x256xf32> to vector<256xf32>
    %494 = vector.shape_cast %493 : vector<256xf32> to vector<1x256xf32>
    %495 = vector.broadcast %494 : vector<1x256xf32> to vector<16x256xf32>
    %496 = arith.addf %491, %495 : vector<16x256xf32>
    %c2_167 = arith.constant 2 : index
    %c0_168 = arith.constant 0 : index
    %497 = vector.load %arg9[%c2_167, %c0_168] : memref<3x256xf32, #tpu.memory_space<vmem>>, vector<1x256xf32>
    %498 = vector.shape_cast %497 : vector<1x256xf32> to vector<256xf32>
    %c2_169 = arith.constant 2 : index
    %c0_170 = arith.constant 0 : index
    %499 = vector.load %arg10[%c2_169, %c0_170] : memref<3x256xf32, #tpu.memory_space<vmem>>, vector<1x256xf32>
    %500 = vector.shape_cast %499 : vector<1x256xf32> to vector<256xf32>
    %cst_171 = arith.constant dense<0.000000e+00> : vector<16xf32>
    %501 = vector.multi_reduction <add>, %496, %cst_171 [1] : vector<16x256xf32> to vector<16xf32>
    %502 = vector.shape_cast %501 : vector<16xf32> to vector<16x1xf32>
    %cst_172 = arith.constant 2.560000e+02 : f32
    %503 = vector.broadcast %cst_172 : f32 to vector<16x1xf32>
    %504 = arith.divf %502, %503 : vector<16x1xf32>
    %505 = vector.broadcast %504 : vector<16x1xf32> to vector<16x256xf32>
    %506 = arith.subf %496, %505 : vector<16x256xf32>
    %507 = arith.mulf %506, %506 : vector<16x256xf32>
    %cst_173 = arith.constant dense<0.000000e+00> : vector<16xf32>
    %508 = vector.multi_reduction <add>, %507, %cst_173 [1] : vector<16x256xf32> to vector<16xf32>
    %509 = vector.shape_cast %508 : vector<16xf32> to vector<16x1xf32>
    %cst_174 = arith.constant 2.560000e+02 : f32
    %510 = vector.broadcast %cst_174 : f32 to vector<16x1xf32>
    %511 = arith.divf %509, %510 : vector<16x1xf32>
    %512 = vector.broadcast %504 : vector<16x1xf32> to vector<16x256xf32>
    %513 = arith.subf %496, %512 : vector<16x256xf32>
    %cst_175 = arith.constant 9.99999974E-6 : f32
    %514 = vector.broadcast %cst_175 : f32 to vector<16x1xf32>
    %515 = arith.addf %511, %514 : vector<16x1xf32>
    %516 = math.rsqrt %515 : vector<16x1xf32>
    %517 = vector.broadcast %516 : vector<16x1xf32> to vector<16x256xf32>
    %518 = arith.mulf %513, %517 : vector<16x256xf32>
    %519 = vector.shape_cast %498 : vector<256xf32> to vector<1x256xf32>
    %520 = vector.broadcast %519 : vector<1x256xf32> to vector<16x256xf32>
    %521 = arith.mulf %518, %520 : vector<16x256xf32>
    %522 = vector.shape_cast %500 : vector<256xf32> to vector<1x256xf32>
    %523 = vector.broadcast %522 : vector<1x256xf32> to vector<16x256xf32>
    %524 = arith.addf %521, %523 : vector<16x256xf32>
    %525 = arith.truncf %524 : vector<16x256xf32> to vector<16x256xbf16>
    %c2_176 = arith.constant 2 : index
    %c0_177 = arith.constant 0 : index
    %c0_178 = arith.constant 0 : index
    %526 = vector.load %arg11[%c2_176, %c0_177, %c0_178] : memref<3x256x1024xbf16, #tpu.memory_space<vmem>>, vector<1x256x1024xbf16>
    %527 = vector.shape_cast %526 : vector<1x256x1024xbf16> to vector<256x1024xbf16>
    %cst_179 = arith.constant dense<0.000000e+00> : vector<16x1024xf32>
    %528 = tpu.matmul %525, %527, %cst_179 {dimension_numbers = #tpu.dot_dimension_numbers<[1], [0], [0], [1], [0, 0, 1, 1], [], []>} : vector<16x256xbf16>, vector<256x1024xbf16>, vector<16x1024xf32> -> vector<16x1024xf32>
    %c2_180 = arith.constant 2 : index
    %c0_181 = arith.constant 0 : index
    %529 = vector.load %arg12[%c2_180, %c0_181] : memref<3x1024xf32, #tpu.memory_space<vmem>>, vector<1x1024xf32>
    %530 = vector.shape_cast %529 : vector<1x1024xf32> to vector<1024xf32>
    %531 = vector.shape_cast %530 : vector<1024xf32> to vector<1x1024xf32>
    %532 = vector.broadcast %531 : vector<1x1024xf32> to vector<16x1024xf32>
    %533 = arith.addf %528, %532 : vector<16x1024xf32>
    %cst_182 = arith.constant 0.000000e+00 : f32
    %534 = vector.broadcast %cst_182 : f32 to vector<16x1024xf32>
    %535 = arith.maximumf %533, %534 : vector<16x1024xf32>
    %536 = arith.truncf %535 : vector<16x1024xf32> to vector<16x1024xbf16>
    %c2_183 = arith.constant 2 : index
    %c0_184 = arith.constant 0 : index
    %c0_185 = arith.constant 0 : index
    %537 = vector.load %arg13[%c2_183, %c0_184, %c0_185] : memref<3x1024x256xbf16, #tpu.memory_space<vmem>>, vector<1x1024x256xbf16>
    %538 = vector.shape_cast %537 : vector<1x1024x256xbf16> to vector<1024x256xbf16>
    %cst_186 = arith.constant dense<0.000000e+00> : vector<16x256xf32>
    %539 = tpu.matmul %536, %538, %cst_186 {dimension_numbers = #tpu.dot_dimension_numbers<[1], [0], [0], [1], [0, 0, 1, 1], [], []>} : vector<16x1024xbf16>, vector<1024x256xbf16>, vector<16x256xf32> -> vector<16x256xf32>
    %540 = arith.addf %496, %539 : vector<16x256xf32>
    %c2_187 = arith.constant 2 : index
    %c0_188 = arith.constant 0 : index
    %541 = vector.load %arg14[%c2_187, %c0_188] : memref<3x256xf32, #tpu.memory_space<vmem>>, vector<1x256xf32>
    %542 = vector.shape_cast %541 : vector<1x256xf32> to vector<256xf32>
    %543 = vector.shape_cast %542 : vector<256xf32> to vector<1x256xf32>
    %544 = vector.broadcast %543 : vector<1x256xf32> to vector<16x256xf32>
    %545 = arith.addf %540, %544 : vector<16x256xf32>
    %c0_189 = arith.constant 0 : index
    %c0_190 = arith.constant 0 : index
    %546 = vector.load %arg15[%c0_189, %c0_190] : memref<1x256xf32, #tpu.memory_space<vmem>>, vector<1x256xf32>
    %547 = vector.shape_cast %546 : vector<1x256xf32> to vector<256xf32>
    %c0_191 = arith.constant 0 : index
    %c0_192 = arith.constant 0 : index
    %548 = vector.load %arg16[%c0_191, %c0_192] : memref<1x256xf32, #tpu.memory_space<vmem>>, vector<1x256xf32>
    %549 = vector.shape_cast %548 : vector<1x256xf32> to vector<256xf32>
    %cst_193 = arith.constant dense<0.000000e+00> : vector<16xf32>
    %550 = vector.multi_reduction <add>, %545, %cst_193 [1] : vector<16x256xf32> to vector<16xf32>
    %551 = vector.shape_cast %550 : vector<16xf32> to vector<16x1xf32>
    %cst_194 = arith.constant 2.560000e+02 : f32
    %552 = vector.broadcast %cst_194 : f32 to vector<16x1xf32>
    %553 = arith.divf %551, %552 : vector<16x1xf32>
    %554 = vector.broadcast %553 : vector<16x1xf32> to vector<16x256xf32>
    %555 = arith.subf %545, %554 : vector<16x256xf32>
    %556 = arith.mulf %555, %555 : vector<16x256xf32>
    %cst_195 = arith.constant dense<0.000000e+00> : vector<16xf32>
    %557 = vector.multi_reduction <add>, %556, %cst_195 [1] : vector<16x256xf32> to vector<16xf32>
    %558 = vector.shape_cast %557 : vector<16xf32> to vector<16x1xf32>
    %cst_196 = arith.constant 2.560000e+02 : f32
    %559 = vector.broadcast %cst_196 : f32 to vector<16x1xf32>
    %560 = arith.divf %558, %559 : vector<16x1xf32>
    %561 = vector.broadcast %553 : vector<16x1xf32> to vector<16x256xf32>
    %562 = arith.subf %545, %561 : vector<16x256xf32>
    %cst_197 = arith.constant 9.99999974E-6 : f32
    %563 = vector.broadcast %cst_197 : f32 to vector<16x1xf32>
    %564 = arith.addf %560, %563 : vector<16x1xf32>
    %565 = math.rsqrt %564 : vector<16x1xf32>
    %566 = vector.broadcast %565 : vector<16x1xf32> to vector<16x256xf32>
    %567 = arith.mulf %562, %566 : vector<16x256xf32>
    %568 = vector.shape_cast %547 : vector<256xf32> to vector<1x256xf32>
    %569 = vector.broadcast %568 : vector<1x256xf32> to vector<16x256xf32>
    %570 = arith.mulf %567, %569 : vector<16x256xf32>
    %571 = vector.shape_cast %549 : vector<256xf32> to vector<1x256xf32>
    %572 = vector.broadcast %571 : vector<1x256xf32> to vector<16x256xf32>
    %573 = arith.addf %570, %572 : vector<16x256xf32>
    %574 = arith.truncf %573 : vector<16x256xf32> to vector<16x256xbf16>
    %c0_198 = arith.constant 0 : index
    %c0_199 = arith.constant 0 : index
    %575 = vector.load %arg17[%c0_198, %c0_199] : memref<256x256xbf16, #tpu.memory_space<vmem>>, vector<256x256xbf16>
    %cst_200 = arith.constant dense<0.000000e+00> : vector<16x256xf32>
    %576 = tpu.matmul %574, %575, %cst_200 {dimension_numbers = #tpu.dot_dimension_numbers<[1], [0], [0], [1], [0, 0, 1, 1], [], []>} : vector<16x256xbf16>, vector<256x256xbf16>, vector<16x256xf32> -> vector<16x256xf32>
    %c0_201 = arith.constant 0 : index
    %c0_202 = arith.constant 0 : index
    %577 = vector.load %arg18[%c0_201, %c0_202] : memref<1x256xf32, #tpu.memory_space<vmem>>, vector<1x256xf32>
    %578 = vector.shape_cast %577 : vector<1x256xf32> to vector<256xf32>
    %579 = vector.shape_cast %578 : vector<256xf32> to vector<1x256xf32>
    %580 = vector.broadcast %579 : vector<1x256xf32> to vector<16x256xf32>
    %581 = arith.addf %576, %580 : vector<16x256xf32>
    %c0_203 = arith.constant 0 : index
    %c0_204 = arith.constant 0 : index
    %c0_205 = arith.constant 0 : index
    %582 = vector.load %arg19[%c0_203, %c0_204, %c0_205] : memref<1x16x256xf32, #tpu.memory_space<vmem>>, vector<1x16x256xf32>
    %583 = vector.shape_cast %582 : vector<1x16x256xf32> to vector<16x256xf32>
    %584 = vector.shape_cast %581 : vector<16x256xf32> to vector<1x16x256xf32>
    tpu.vector_store %arg19[%c0_203, %c0_204, %c0_205], %584 {strides = array<i32>} : memref<1x16x256xf32, #tpu.memory_space<vmem>>, vector<1x16x256xf32>,
    return
  }
  func.func @transform_0(%arg0: i32) -> (i32, i32, i32) {
    %c0_i32 = arith.constant 0 : i32
    %c0_i32_0 = arith.constant 0 : i32
    %c0_i32_1 = arith.constant 0 : i32
    return %arg0, %c0_i32, %c0_i32_0 : i32, i32, i32
  }
  func.func @transform_1(%arg0: i32) -> (i32, i32) {
    %c0_i32 = arith.constant 0 : i32
    %c0_i32_0 = arith.constant 0 : i32
    %c0_i32_1 = arith.constant 0 : i32
    return %c0_i32, %c0_i32_0 : i32, i32
  }
  func.func @transform_2(%arg0: i32) -> (i32, i32) {
    %c0_i32 = arith.constant 0 : i32
    %c0_i32_0 = arith.constant 0 : i32
    %c0_i32_1 = arith.constant 0 : i32
    return %c0_i32, %c0_i32_0 : i32, i32
  }
  func.func @transform_3(%arg0: i32) -> (i32, i32) {
    %c0_i32 = arith.constant 0 : i32
    %c0_i32_0 = arith.constant 0 : i32
    %c0_i32_1 = arith.constant 0 : i32
    return %c0_i32, %c0_i32_0 : i32, i32
  }
  func.func @transform_4(%arg0: i32) -> (i32, i32) {
    %c0_i32 = arith.constant 0 : i32
    %c0_i32_0 = arith.constant 0 : i32
    %c0_i32_1 = arith.constant 0 : i32
    return %c0_i32, %c0_i32_0 : i32, i32
  }
  func.func @transform_5(%arg0: i32) -> (i32, i32, i32) {
    %c0_i32 = arith.constant 0 : i32
    %c0_i32_0 = arith.constant 0 : i32
    %c0_i32_1 = arith.constant 0 : i32
    %c0_i32_2 = arith.constant 0 : i32
    return %c0_i32, %c0_i32_0, %c0_i32_1 : i32, i32, i32
  }
  func.func @transform_6(%arg0: i32) -> (i32, i32, i32) {
    %c0_i32 = arith.constant 0 : i32
    %c0_i32_0 = arith.constant 0 : i32
    %c0_i32_1 = arith.constant 0 : i32
    %c0_i32_2 = arith.constant 0 : i32
    return %c0_i32, %c0_i32_0, %c0_i32_1 : i32, i32, i32
  }
  func.func @transform_7(%arg0: i32) -> (i32, i32) {
    %c0_i32 = arith.constant 0 : i32
    %c0_i32_0 = arith.constant 0 : i32
    %c0_i32_1 = arith.constant 0 : i32
    return %c0_i32, %c0_i32_0 : i32, i32
  }
  func.func @transform_8(%arg0: i32) -> (i32, i32) {
    %c0_i32 = arith.constant 0 : i32
    %c0_i32_0 = arith.constant 0 : i32
    %c0_i32_1 = arith.constant 0 : i32
    return %c0_i32, %c0_i32_0 : i32, i32
  }
  func.func @transform_9(%arg0: i32) -> (i32, i32) {
    %c0_i32 = arith.constant 0 : i32
    %c0_i32_0 = arith.constant 0 : i32
    %c0_i32_1 = arith.constant 0 : i32
    return %c0_i32, %c0_i32_0 : i32, i32
  }
  func.func @transform_10(%arg0: i32) -> (i32, i32, i32) {
    %c0_i32 = arith.constant 0 : i32
    %c0_i32_0 = arith.constant 0 : i32
    %c0_i32_1 = arith.constant 0 : i32
    %c0_i32_2 = arith.constant 0 : i32
    return %c0_i32, %c0_i32_0, %c0_i32_1 : i32, i32, i32
  }
  func.func @transform_11(%arg0: i32) -> (i32, i32) {
    %c0_i32 = arith.constant 0 : i32
    %c0_i32_0 = arith.constant 0 : i32
    %c0_i32_1 = arith.constant 0 : i32
    return %c0_i32, %c0_i32_0 : i32, i32
  }
  func.func @transform_12(%arg0: i32) -> (i32, i32, i32) {
    %c0_i32 = arith.constant 0 : i32
    %c0_i32_0 = arith.constant 0 : i32
    %c0_i32_1 = arith.constant 0 : i32
    %c0_i32_2 = arith.constant 0 : i32
    return %c0_i32, %c0_i32_0, %c0_i32_1 : i32, i32, i32
  }
  func.func @transform_13(%arg0: i32) -> (i32, i32) {
    %c0_i32 = arith.constant 0 : i32
    %c0_i32_0 = arith.constant 0 : i32
    %c0_i32_1 = arith.constant 0 : i32
    return %c0_i32, %c0_i32_0 : i32, i32
  }
  func.func @transform_14(%arg0: i32) -> (i32, i32) {
    %c0_i32 = arith.constant 0 : i32
    %c0_i32_0 = arith.constant 0 : i32
    %c0_i32_1 = arith.constant 0 : i32
    return %c0_i32, %c0_i32_0 : i32, i32
  }
  func.func @transform_15(%arg0: i32) -> (i32, i32) {
    %c0_i32 = arith.constant 0 : i32
    %c0_i32_0 = arith.constant 0 : i32
    %c0_i32_1 = arith.constant 0 : i32
    return %c0_i32, %c0_i32_0 : i32, i32
  }
  func.func @transform_16(%arg0: i32) -> (i32, i32) {
    %c0_i32 = arith.constant 0 : i32
    %c0_i32_0 = arith.constant 0 : i32
    %c0_i32_1 = arith.constant 0 : i32
    return %c0_i32, %c0_i32_0 : i32, i32
  }
  func.func @transform_17(%arg0: i32) -> (i32, i32) {
    %c0_i32 = arith.constant 0 : i32
    %c0_i32_0 = arith.constant 0 : i32
    %c0_i32_1 = arith.constant 0 : i32
    return %c0_i32, %c0_i32_0 : i32, i32
  }
  func.func @transform_18(%arg0: i32) -> (i32, i32, i32) {
    %c0_i32 = arith.constant 0 : i32
    %c0_i32_0 = arith.constant 0 : i32
    %c0_i32_1 = arith.constant 0 : i32
    return %arg0, %c0_i32, %c0_i32_0 : i32, i32, i32
  }
}

</mosaic_0001>

<bundles_post_ra>
// kernel: bigram_lm_forward.1
= control target key start
LH: loop header
LB: loop body
LE: loop exit
PB: predicated region body
PF: predicated region fallthrough
CT: control target
= control target key end

     0   :  { %s17094_s0 = inlined_call_operand.vmem [shape: s32[2,16,1], index: 0, kind: input, shape index: {}]   ;;  %s17095_s1 = inlined_call_operand.hbm [shape: bf16[256,256], index: 1, kind: input, shape index: {}]   ;;  %s17096_s2 = inlined_call_operand.hbm [shape: f32[128,256], index: 2, kind: input, shape index: {}]   ;;  %s17097_s3 = inlined_call_operand.hbm [shape: f32[3,256], index: 3, kind: input, shape index: {}]   ;;  %s17098_s4 = inlined_call_operand.hbm [shape: f32[3,256], index: 4, kind: input, shape index: {}]   ;;  %s17099_s5 = inlined_call_operand.hbm [shape: bf16[3,256,768], index: 5, kind: input, shape index: {}]   ;;  %s17100_s6 = inlined_call_operand.hbm [shape: bf16[3,256,256], index: 6, kind: input, shape index: {}]   ;;  %s17101_s7 = inlined_call_operand.hbm [shape: f32[3,256], index: 7, kind: input, shape index: {}]   ;;  %s17102_s8 = inlined_call_operand.hbm [shape: f32[3,256], index: 8, kind: input, shape index: {}]   ;;  %s17103_s9 = inlined_call_operand.hbm [shape: f32[3,256], index: 9, kind: input, shape index: {}]   ;;  %s17104_s10 = inlined_call_operand.hbm [shape: bf16[3,256,1024], index: 10, kind: input, shape index: {}]   ;;  %s17105_s11 = inlined_call_operand.hbm [shape: f32[3,1024], index: 11, kind: input, shape index: {}]   ;;  %s17106_s12 = inlined_call_operand.hbm [shape: bf16[3,1024,256], index: 12, kind: input, shape index: {}]   ;;  %s17107_s13 = inlined_call_operand.hbm [shape: f32[3,256], index: 13, kind: input, shape index: {}]   ;;  %s17108_s14 = inlined_call_operand.hbm [shape: f32[1,256], index: 14, kind: input, shape index: {}]   ;;  %s17109_s15 = inlined_call_operand.hbm [shape: f32[1,256], index: 15, kind: input, shape index: {}]   ;;  %s17110_s16 = inlined_call_operand.hbm [shape: bf16[256,256], index: 16, kind: input, shape index: {}]   ;;  %s17111_s17 = inlined_call_operand.hbm [shape: f32[1,256], index: 17, kind: input, shape index: {}]   ;;  %s17112_s18 = inlined_call_operand.hbm [shape: f32[2,16,256], index: 18, kind: output, shape index: {}]  }
   0x1   :  { %17129 = sst [smem:[#allocation47_spill]] %s17094_s0 }
   0x2   :  { %17130 = sst [smem:[#allocation48_spill]] %s17095_s1 }
   0x3   :  { %17131 = sst [smem:[#allocation49_spill]] %s17096_s2 }
   0x4   :  { %17132 = sst [smem:[#allocation50_spill]] %s17098_s4 }
   0x5   :  { %17133 = sst [smem:[#allocation51_spill]] %s17112_s18 }
   0x6   :  { %23 = vsyncpa [#allocation3], 0 }
   0x7   :  { %24 = vsyncpa [#allocation6], 0 }
   0x8   :  { %25 = vsyncpa [#allocation9], 0 }
   0x9   :  { %26 = vsyncpa [#allocation12], 0 }
   0xa   :  { %27 = vsyncpa [#allocation15], 0 }
   0xb   :  { %28 = vsyncpa [#allocation18], 0 }
   0xc   :  { %29 = vsyncpa [#allocation21], 0 }
   0xd   :  { %30 = vsyncpa [#allocation24], 0 }
   0xe   :  { %31 = vsyncpa [#allocation27], 0 }
   0xf   :  { %32 = vsyncpa [#allocation4], 0 }
  0x10   :  { %34 = vsyncpa [#allocation4 + $0x1], 0  ;;  %s16139_s27 = smov 0   ;;  %s16141_s28 = smov 0  }
  0x11   :  { %s16143_s29 = smov 0   ;;  %s16145_s30 = smov 0  }
  0x12 LB: > { %17134 = sst [smem:[#allocation40_spill]] %s15996_s27  ;;  %s16160_s0 = sadd.s32 4294967295, %s16008_s30   ;;  %s16008_s30 = sphi %s16145_s30, %s17178_s30   ;;  %s16004_s29 = sphi %s16143_s29, %s17180_s29   ;;  %s16000_s28 = sphi %s16141_s28, %s17182_s28   ;;  %s15996_s27 = sphi %s16139_s27, %s17181_s27  }
  0x13   : > { %17135 = sst [smem:[#allocation41_spill]] %s16004_s29  ;;  %s12353_s19 = sadd.s32 4294967294, %s16008_s30  }
  0x14   : > { %17136 = sst [smem:[#allocation42_spill]] %s16008_s30  ;;  %s16164_s1 = sadd.s32 1, %s16008_s30  }
  0x15   : > { %17137 = sst [smem:[#allocation43_spill]] %s16164_s1  ;;  %s430_s20 = sadd.s32 1, %s16004_s29 }
  0x16   : > { %s427_s21 = ssub.s32 %s16008_s30, %s16164_s1  ;;  %p440_p0 = scmp.ne.s32.totalorder %s16004_s29, %s16000_s28 }
  0x17   : > { %p428_p1 = scmp.eq.s32.totalorder %s427_s21, 0  ;;  %p441_p2 = scmp.eq.s32.totalorder %s16160_s0, 1 }
  0x18   : > { %p446_p3 = scmp.ne.s32.totalorder %s16000_s28, %s15996_s27  ;;  %p447_p4 = scmp.eq.s32.totalorder %s12353_s19, 1 }
  0x19   : > { %s16175_s22 = scalar_select %p428_p1, %s16004_s29, %s430_s20  }
  0x1a   : > { %p16177_p5 = por %p441_p2, %p440_p0  ;;  %p16181_p6 = por %p447_p4, %p446_p3 }
  0x1b   : > { %17138 = sst [smem:[#allocation44_spill]] %s16175_s22  ;;  %p12354_p7 = scmp.ge.s32.totalorder %s16008_s30, 1 }
  0x1c   : > { %s17139_s2 = scalar_select %p16177_p5, 1, 0 }
  0x1d   : > { %s17141_s23 = scalar_select %p16181_p6, 1, 0 }
  0x1e   : > { %17140 = sst [smem:[#allocation45_spill]] %s17139_s2  ;;  %p454_p8 = scmp.lt.s32.totalorder %s16008_s30, 3 }
  0x1f   : > { %17142 = sst [smem:[#allocation46_spill]] %s17141_s23  ;;  %p17119_p9 = scmp.eq.s32.totalorder %s16160_s0, 0 }
  0x20   : > { %p16188_p10 = pnand %p12354_p7, %p454_p8  ;;  %s16010_s25 = smov [#allocation5]  }
  0x21   : > { %s479_s26 = sshll.u32 %s16010_s25, 4  ;;  %s16011_s20 = smov [#allocation8]   ;;  %s480_s26 = int_to_ptr.vmem [resolvable:$true] %s479_s26 }
  0x22   : > { %s17143_s24 = scalar_select %p16188_p10, 1, 0 }
  0x23   : > { %p13911_p11 = pneg %p16188_p10  ;;  %s504_s21 = sshll.u32 %s16011_s20, 4  ;;  %s505_s21 = int_to_ptr.vmem [resolvable:$true] %s504_s21 }
  0x24   : > { %s15481_s29 = scalar_lea.vmem %s480_s26, 4096  ;;  %p15489_p3 = scmp.lt.s32.totalorder %s480_s26, %s480_s26 }
  0x25   : > { %p16196_p12 = pnand %p17119_p9, %p13911_p11  ;;  %p15482_p0 = scmp.ne.s32.totalorder %s480_s26, %s15481_s29 }
  0x26   : > { %p15490_p4 = scmp.lt.s32.totalorder %s15481_s29, %s15481_s29 }
  0x27   : > { %p16202_p13 = pneg %p16196_p12 }
  0x28   : > { %p15491_p7 = por %p15490_p4, %p15489_p3 }
  0x29   : > { %p15484_p1 = pnand %p15482_p0, %p16202_p13 }
  0x2b   : > { %p15485_p2 = pneg %p15484_p1 }
  0x2d   : > { %p15492_p8 = pnand %p15491_p7, %p15485_p2 }
  0x2f   : > { %15495 = shalt.err (!%p15492_p8)
}
  0x30   : > { %s16012_s25 = smov 256   ;;  %s16013_s20 = smov 16  }
  0x31   : > { %s17146_s27 = sld [smem:[#allocation49_spill]]  ;;  %s15507_s30 = scalar_lea.vmem %s505_s21, 128 }
  0x32   : > { %p15508_p11 = scmp.ne.s32.totalorder %s505_s21, %s15507_s30  ;;  %p15515_p1 = scmp.lt.s32.totalorder %s505_s21, %s505_s21 }
  0x33   : > { %p15516_p6 = scmp.lt.s32.totalorder %s15507_s30, %s15507_s30 }
  0x34   : > { %p15510_p9 = pnand %p15508_p11, %p16202_p13 }
  0x35   : > { %p15517_p5 = por %p15516_p6, %p15515_p1 }
  0x36   : > { %p15511_p0 = pneg %p15510_p9 }
  0x37   : > { %13917 = dma.hbm_to_vmem [thread:$0]  (!%p16196_p12), %s17146_s27, 4096, %s480_s26, [#allocation6], %s16012_s25, %s16012_s25, %s16013_s20  }
  0x38   : > { %p15518_p3 = pnand %p15517_p5, %p15511_p0 }
  0x3a   : > { %15521 = shalt.err (!%p15518_p3)
}
  0x3b   : > { %s17147_s4 = sld [smem:[#allocation50_spill]]  ;;  %s16014_s2 = smov [#allocation11]  }
  0x3c   : > { %s527_s1 = sshll.u32 %s16014_s2, 4  ;;  %s16015_s27 = smov [#allocation14]   ;;  %s528_s1 = int_to_ptr.vmem [resolvable:$true] %s527_s1 }
  0x3d   : > { %s552_s23 = sshll.u32 %s16015_s27, 4  ;;  %s15533_s26 = scalar_lea.vmem %s528_s1, 12288  ;;  %s553_s23 = int_to_ptr.vmem [resolvable:$true] %s552_s23 }
  0x3e   : > { %p15534_p9 = scmp.ne.s32.totalorder %s528_s1, %s15533_s26  ;;  %p15541_p5 = scmp.lt.s32.totalorder %s528_s1, %s528_s1 }
  0x3f   : > { %p15542_p4 = scmp.lt.s32.totalorder %s15533_s26, %s15533_s26 }
  0x40   : > { %p15536_p2 = pnand %p15534_p9, %p16202_p13 }
  0x41   : > { %13923 = dma.hbm_to_vmem [thread:$0]  (!%p16196_p12), %s17147_s4, 128, %s505_s21, [#allocation9]  }
  0x42   : > { %p15537_p6 = pneg %p15536_p2  ;;  %p15543_p7 = por %p15542_p4, %p15541_p5 }
  0x44   : > { %p15544_p8 = pnand %p15543_p7, %p15537_p6 }
  0x46   : > { %15547 = shalt.err (!%p15544_p8)
}
  0x47   : > { %s17124_s30 = smov 128   ;;  %s17126_s18 = smov 8  }
  0x48   : > { %13929 = dma.hbm_to_vmem [thread:$0]  (!%p16196_p12), %s17100_s6, 12288, %s528_s1, [#allocation12], %s17124_s30, %s17124_s30, %s17126_s18  }
  0x49   : > { %s15559_s25 = scalar_lea.vmem %s553_s23, 128  ;;  %p15567_p3 = scmp.lt.s32.totalorder %s553_s23, %s553_s23 }
  0x4a   : > { %p15560_p11 = scmp.ne.s32.totalorder %s553_s23, %s15559_s25  ;;  %p15568_p9 = scmp.lt.s32.totalorder %s15559_s25, %s15559_s25 }
  0x4c   : > { %p15562_p0 = pnand %p15560_p11, %p16202_p13  ;;  %p15569_p2 = por %p15568_p9, %p15567_p3 }
  0x4e   : > { %p15563_p1 = pneg %p15562_p0 }
  0x50   : > { %p15570_p6 = pnand %p15569_p2, %p15563_p1 }
  0x52   : > { %15573 = shalt.err (!%p15570_p6)
}
  0x53   : > { %13935 = dma.hbm_to_vmem [thread:$0]  (!%p16196_p12), %s17102_s8, 128, %s553_s23, [#allocation15]  }
  0x54   : > { %s16018_s27 = smov [#allocation17]  }
  0x55   : > { %s573_s26 = sshll.u32 %s16018_s27, 4  ;;  %s574_s26 = int_to_ptr.vmem [resolvable:$true] %s573_s26 }
  0x56   : > { %s15585_s1 = scalar_lea.vmem %s574_s26, 49152  ;;  %p15593_p8 = scmp.lt.s32.totalorder %s574_s26, %s574_s26 }
  0x57   : > { %p15586_p5 = scmp.ne.s32.totalorder %s574_s26, %s15585_s1  ;;  %p15594_p11 = scmp.lt.s32.totalorder %s15585_s1, %s15585_s1 }
  0x59   : > { %p15588_p4 = pnand %p15586_p5, %p16202_p13  ;;  %p15595_p0 = por %p15594_p11, %p15593_p8 }
  0x5b   : > { %p15589_p7 = pneg %p15588_p4 }
  0x5d   : > { %p15596_p1 = pnand %p15595_p0, %p15589_p7 }
  0x5f   : > { %15599 = shalt.err (!%p15596_p1)
}
  0x60   : > { %s16019_s2 = smov 512   ;;  %s16020_s21 = smov 32  }
  0x61   : > { %13941 = dma.hbm_to_vmem [thread:$0]  (!%p16196_p12), %s17104_s10, 49152, %s574_s26, [#allocation18], %s16019_s2, %s16019_s2, %s16020_s21  }
  0x62   : > { %s16021_s20 = smov [#allocation20]   ;;  %s16022_s27 = smov [#allocation23]  }
  0x63   : > { %s597_s29 = sshll.u32 %s16021_s20, 4  ;;  %s622_s30 = sshll.u32 %s16022_s27, 4  ;;  %s598_s29 = int_to_ptr.vmem [resolvable:$true] %s597_s29  ;;  %s623_s30 = int_to_ptr.vmem [resolvable:$true] %s622_s30 }
  0x64   : > { %s15611_s18 = scalar_lea.vmem %s598_s29, 49152  ;;  %p15619_p6 = scmp.lt.s32.totalorder %s598_s29, %s598_s29 }
  0x65   : > { %p15612_p3 = scmp.ne.s32.totalorder %s598_s29, %s15611_s18  ;;  %p15620_p5 = scmp.lt.s32.totalorder %s15611_s18, %s15611_s18 }
  0x67   : > { %p15614_p9 = pnand %p15612_p3, %p16202_p13  ;;  %p15621_p4 = por %p15620_p5, %p15619_p6 }
  0x69   : > { %p15615_p2 = pneg %p15614_p9 }
  0x6b   : > { %p15622_p7 = pnand %p15621_p4, %p15615_p2 }
  0x6d   : > { %15625 = shalt.err (!%p15622_p7)
}
  0x6e   : > { %s17148_s1 = smov 8   ;;  %s17149_s25 = smov 128  }
  0x6f   : > { %13947 = dma.hbm_to_vmem [thread:$0]  (!%p16196_p12), %s17106_s12, 49152, %s598_s29, [#allocation21], %s17149_s25, %s17149_s25, %s17148_s1  }
  0x70   : > { %s15637_s21 = scalar_lea.vmem %s623_s30, 32  ;;  %p15645_p1 = scmp.lt.s32.totalorder %s623_s30, %s623_s30 }
  0x71   : > { %p15638_p8 = scmp.ne.s32.totalorder %s623_s30, %s15637_s21  ;;  %p15646_p3 = scmp.lt.s32.totalorder %s15637_s21, %s15637_s21 }
  0x73   : > { %p15640_p11 = pnand %p15638_p8, %p16202_p13  ;;  %p15647_p9 = por %p15646_p3, %p15645_p1 }
  0x75   : > { %p15641_p0 = pneg %p15640_p11 }
  0x77   : > { %p15648_p2 = pnand %p15647_p9, %p15641_p0 }
  0x79   : > { %15651 = shalt.err (!%p15648_p2)
}
  0x7a   : > { %13953 = dma.hbm_to_vmem [thread:$0]  (!%p16196_p12), %s17108_s14, 32, %s623_s30, [#allocation24]  }
  0x7b   : > { %s16023_s20 = smov [#allocation26]   ;;  %s16024_s27 = smov [#allocation2]  }
  0x7c   : > { %s643_s29 = sshll.u32 %s16023_s20, 4  ;;  %s466_s26 = sshll.u32 %s16024_s27, 4  ;;  %s644_s29 = int_to_ptr.vmem [resolvable:$true] %s643_s29  ;;  %s467_s26 = int_to_ptr.vmem [resolvable:$true] %s466_s26 }
  0x7d   : > { %s15663_s2 = scalar_lea.vmem %s644_s29, 4096  ;;  %p15671_p7 = scmp.lt.s32.totalorder %s644_s29, %s644_s29 }
  0x7e   : > { %p15664_p6 = scmp.ne.s32.totalorder %s644_s29, %s15663_s2  ;;  %p15672_p8 = scmp.lt.s32.totalorder %s15663_s2, %s15663_s2 }
  0x80   : > { %p15666_p5 = pnand %p15664_p6, %p16202_p13  ;;  %p15673_p11 = por %p15672_p8, %p15671_p7 }
  0x82   : > { %p15667_p4 = pneg %p15666_p5 }
  0x84   : > { %p15674_p0 = pnand %p15673_p11, %p15667_p4 }
  0x86   : > { %15677 = shalt.err (!%p15674_p0)
}
  0x87   : > { %13959 = dma.hbm_to_vmem [thread:$0]  (!%p16196_p12), %s17110_s16, 4096, %s644_s29, [#allocation27], %s17149_s25, %s17149_s25, %s17148_s1  }
  0x88   : > { %s15689_s18 = scalar_lea.vmem %s467_s26, 4096  ;;  %p15697_p2 = scmp.lt.s32.totalorder %s467_s26, %s467_s26 }
  0x89   : > { %p15690_p1 = scmp.ne.s32.totalorder %s467_s26, %s15689_s18  ;;  %p15698_p6 = scmp.lt.s32.totalorder %s15689_s18, %s15689_s18 }
  0x8b   : > { %p15692_p3 = pnand %p15690_p1, %p16202_p13  ;;  %p15699_p5 = por %p15698_p6, %p15697_p2 }
  0x8d   : > { %p15693_p9 = pneg %p15692_p3 }
  0x8f   : > { %p15700_p4 = pnand %p15699_p5, %p15693_p9 }
  0x91   : > { %15703 = shalt.err (!%p15700_p4)
}
  0x92   : > { %s17150_s27 = sld [smem:[#allocation48_spill]]  ;;  %s16025_s29 = smov [#allocation7]  }
  0x93   : > { %s493_s2 = sshll.u32 %s16025_s29, 4  ;;  %s16026_s30 = smov [#allocation10]   ;;  %s494_s2 = int_to_ptr.vmem [resolvable:$true] %s493_s2 }
  0x94   : > { %s514_s21 = sshll.u32 %s16026_s30, 4  ;;  %s15715_s4 = scalar_lea.vmem %s494_s2, 128  ;;  %s515_s21 = int_to_ptr.vmem [resolvable:$true] %s514_s21 }
  0x95   : > { %p15716_p7 = scmp.ne.s32.totalorder %s494_s2, %s15715_s4  ;;  %p15723_p0 = scmp.lt.s32.totalorder %s494_s2, %s494_s2 }
  0x96   : > { %p15724_p1 = scmp.lt.s32.totalorder %s15715_s4, %s15715_s4 }
  0x97   : > { %p15718_p8 = pnand %p15716_p7, %p16202_p13 }
  0x98   : > { %13914 = dma.hbm_to_vmem [thread:$0]  (!%p16196_p12), %s17150_s27, 4096, %s467_s26, [#allocation3], %s17149_s25, %s17149_s25, %s17148_s1  }
  0x99   : > { %p15719_p11 = pneg %p15718_p8  ;;  %p15725_p3 = por %p15724_p1, %p15723_p0 }
  0x9b   : > { %p15726_p9 = pnand %p15725_p3, %p15719_p11 }
  0x9d   : > { %15729 = shalt.err (!%p15726_p9)
}
  0x9e   : > { %13920 = dma.hbm_to_vmem [thread:$0]  (!%p16196_p12), %s17097_s3, 128, %s494_s2, [#allocation6]  }
  0x9f   : > { %s15741_s1 = scalar_lea.vmem %s515_s21, 36864  ;;  %p15749_p4 = scmp.lt.s32.totalorder %s515_s21, %s515_s21 }
  0xa0   : > { %p15742_p2 = scmp.ne.s32.totalorder %s515_s21, %s15741_s1  ;;  %p15750_p7 = scmp.lt.s32.totalorder %s15741_s1, %s15741_s1 }
  0xa2   : > { %p15744_p6 = pnand %p15742_p2, %p16202_p13  ;;  %p15751_p8 = por %p15750_p7, %p15749_p4 }
  0xa4   : > { %p15745_p5 = pneg %p15744_p6 }
  0xa6   : > { %p15752_p10 = pnand %p15751_p8, %p15745_p5 }
  0xa8   : > { %15755 = shalt.err (!%p15752_p10)
}
  0xa9   : > { %s16027_s4 = smov 384   ;;  %s16028_s25 = smov 24  }
  0xaa   : > { %13926 = dma.hbm_to_vmem [thread:$0]  (!%p16196_p12), %s17099_s5, 36864, %s515_s21, [#allocation9], %s16027_s4, %s16027_s4, %s16028_s25  }
  0xab   : > { %s16029_s27 = smov [#allocation13]   ;;  %s16030_s2 = smov [#allocation16]  }
  0xac   : > { %s541_s29 = sshll.u32 %s16029_s27, 4  ;;  %s563_s30 = sshll.u32 %s16030_s2, 4  ;;  %s542_s29 = int_to_ptr.vmem [resolvable:$true] %s541_s29  ;;  %s564_s30 = int_to_ptr.vmem [resolvable:$true] %s563_s30 }
  0xad   : > { %s15767_s18 = scalar_lea.vmem %s542_s29, 128  ;;  %p15775_p10 = scmp.lt.s32.totalorder %s542_s29, %s542_s29 }
  0xae   : > { %p15768_p11 = scmp.ne.s32.totalorder %s542_s29, %s15767_s18  ;;  %p15776_p3 = scmp.lt.s32.totalorder %s15767_s18, %s15767_s18 }
  0xb0   : > { %p15770_p0 = pnand %p15768_p11, %p16202_p13  ;;  %p15777_p9 = por %p15776_p3, %p15775_p10 }
  0xb2   : > { %p15771_p1 = pneg %p15770_p0 }
  0xb4   : > { %p15778_p2 = pnand %p15777_p9, %p15771_p1 }
  0xb6   : > { %15781 = shalt.err (!%p15778_p2)
}
  0xb7   : > { %13932 = dma.hbm_to_vmem [thread:$0]  (!%p16196_p12), %s17101_s7, 128, %s542_s29, [#allocation12]  }
  0xb8   : > { %s15793_s21 = scalar_lea.vmem %s564_s30, 128  ;;  %p15801_p7 = scmp.lt.s32.totalorder %s564_s30, %s564_s30 }
  0xb9   : > { %p15794_p6 = scmp.ne.s32.totalorder %s564_s30, %s15793_s21  ;;  %p15802_p8 = scmp.lt.s32.totalorder %s15793_s21, %s15793_s21 }
  0xbb   : > { %p15796_p5 = pnand %p15794_p6, %p16202_p13  ;;  %p15803_p11 = por %p15802_p8, %p15801_p7 }
  0xbd   : > { %p15797_p4 = pneg %p15796_p5 }
  0xbf   : > { %p15804_p0 = pnand %p15803_p11, %p15797_p4 }
  0xc1   : > { %15807 = shalt.err (!%p15804_p0)
}
  0xc2   : > { %13938 = dma.hbm_to_vmem [thread:$0]  (!%p16196_p12), %s17103_s9, 128, %s564_s30, [#allocation15]  }
  0xc3   : > { %s16031_s26 = smov [#allocation19]   ;;  %s16032_s27 = smov [#allocation22]  }
  0xc4   : > { %s587_s20 = sshll.u32 %s16031_s26, 4  ;;  %s611_s29 = sshll.u32 %s16032_s27, 4  ;;  %s588_s20 = int_to_ptr.vmem [resolvable:$true] %s587_s20  ;;  %s612_s29 = int_to_ptr.vmem [resolvable:$true] %s611_s29 }
  0xc5   : > { %s15819_s2 = scalar_lea.vmem %s588_s20, 512  ;;  %p15827_p9 = scmp.lt.s32.totalorder %s588_s20, %s588_s20 }
  0xc6   : > { %p15820_p1 = scmp.ne.s32.totalorder %s588_s20, %s15819_s2  ;;  %p15828_p2 = scmp.lt.s32.totalorder %s15819_s2, %s15819_s2 }
  0xc8   : > { %p15822_p10 = pnand %p15820_p1, %p16202_p13  ;;  %p15829_p6 = por %p15828_p2, %p15827_p9 }
  0xca   : > { %p15823_p3 = pneg %p15822_p10 }
  0xcc   : > { %p15830_p5 = pnand %p15829_p6, %p15823_p3 }
  0xce   : > { %15833 = shalt.err (!%p15830_p5)
}
  0xcf   : > { %13944 = dma.hbm_to_vmem [thread:$0]  (!%p16196_p12), %s17105_s11, 512, %s588_s20, [#allocation18]  }
  0xd0   : > { %s15845_s30 = scalar_lea.vmem %s612_s29, 128  ;;  %p15853_p11 = scmp.lt.s32.totalorder %s612_s29, %s612_s29 }
  0xd1   : > { %p15846_p4 = scmp.ne.s32.totalorder %s612_s29, %s15845_s30  ;;  %p15854_p0 = scmp.lt.s32.totalorder %s15845_s30, %s15845_s30 }
  0xd3   : > { %p15848_p7 = pnand %p15846_p4, %p16202_p13  ;;  %p15855_p1 = por %p15854_p0, %p15853_p11 }
  0xd5   : > { %p15849_p8 = pneg %p15848_p7 }
  0xd7   : > { %p15856_p10 = pnand %p15855_p1, %p15849_p8 }
  0xd9   : > { %15859 = shalt.err (!%p15856_p10)
}
  0xda   : > { %13950 = dma.hbm_to_vmem [thread:$0]  (!%p16196_p12), %s17107_s13, 128, %s612_s29, [#allocation21]  }
  0xdb   : > { %s16033_s4 = smov [#allocation25]   ;;  %s16034_s26 = smov [#allocation28]  }
  0xdc   : > { %s633_s25 = sshll.u32 %s16033_s4, 4  ;;  %s657_s20 = sshll.u32 %s16034_s26, 4  ;;  %s634_s25 = int_to_ptr.vmem [resolvable:$true] %s633_s25  ;;  %s658_s20 = int_to_ptr.vmem [resolvable:$true] %s657_s20 }
  0xdd   : > { %s15871_s27 = scalar_lea.vmem %s634_s25, 32  ;;  %p15879_p6 = scmp.lt.s32.totalorder %s634_s25, %s634_s25 }
  0xde   : > { %p15872_p3 = scmp.ne.s32.totalorder %s634_s25, %s15871_s27  ;;  %p15880_p5 = scmp.lt.s32.totalorder %s15871_s27, %s15871_s27 }
  0xe0   : > { %p15874_p9 = pnand %p15872_p3, %p16202_p13  ;;  %p15881_p4 = por %p15880_p5, %p15879_p6 }
  0xe2   : > { %p15875_p2 = pneg %p15874_p9 }
  0xe4   : > { %p15882_p7 = pnand %p15881_p4, %p15875_p2 }
  0xe6   : > { %15885 = shalt.err (!%p15882_p7)
}
  0xe7   : > { %13956 = dma.hbm_to_vmem [thread:$0]  (!%p16196_p12), %s17109_s15, 32, %s634_s25, [#allocation24]  }
  0xe8   : > { %s15897_s29 = scalar_lea.vmem %s658_s20, 32  ;;  %p15905_p1 = scmp.lt.s32.totalorder %s658_s20, %s658_s20 }
  0xe9   : > { %p15898_p8 = scmp.ne.s32.totalorder %s658_s20, %s15897_s29  ;;  %p15906_p10 = scmp.lt.s32.totalorder %s15897_s29, %s15897_s29 }
  0xeb   : > { %p15900_p11 = pnand %p15898_p8, %p16202_p13  ;;  %p15907_p3 = por %p15906_p10, %p15905_p1 }
  0xed   : > { %p15901_p0 = pneg %p15900_p11 }
  0xef   : > { %p15908_p9 = pnand %p15907_p3, %p15901_p0 }
  0xf1   : > { %15911 = shalt.err (!%p15908_p9)
}
  0xf2   : > { %13962 = dma.hbm_to_vmem [thread:$0]  (!%p16196_p12), %s17111_s17, 32, %s658_s20, [#allocation27]  }
  0xf3   : > { %p17151_p2 = scmp.ne.s32.totalorder %s17143_s24, 0 }
  0xf4   : > { %p17152_p6 = scmp.eq.s32.totalorder (!%p17151_p2), %s16160_s0, 0 }
  0xf5   : > { %678 = sbr.rel (%p17151_p2) target bundleno = 8578 (0x2182), region = 92 }
  0xfa   : > { %15955 = dma.done.wait (%p17152_p6), [#allocation3], 4096   ;;  %p17153_p13 = pmov %p17152_p6 }
  0xfb   : > { %p17154_p5 = pmov %p17152_p6 }
  0xfc   : > { %15957 = vsyncadd (%p17153_p13), [#allocation3], 4294963200 }
  0xfd   : > { %15959 = dma.done.wait (%p17154_p5), [#allocation6], 4224   ;;  %p17155_p4 = pmov %p17154_p5 }
  0xff   : > { %15961 = vsyncadd (%p17155_p4), [#allocation6], 4294963072  ;;  %p17156_p7 = pmov %p17155_p4 }
 0x100   : > { %p17157_p12 = pmov %p17155_p4 }
 0x101   : > { %15963 = dma.done.wait (%p17156_p7), [#allocation9], 36992  }
 0x102   : > { %15965 = vsyncadd (%p17157_p12), [#allocation9], 4294930304  ;;  %p17158_p8 = pmov %p17155_p4 }
 0x103   : > { %p17159_p11 = pmov %p17155_p4 }
 0x104   : > { %15967 = dma.done.wait (%p17158_p8), [#allocation12], 12416  }
 0x105   : > { %15969 = vsyncadd (%p17159_p11), [#allocation12], 4294954880  ;;  %p17160_p0 = pmov %p17155_p4 }
 0x107   : > { %15971 = dma.done.wait (%p17160_p0), [#allocation15], 256   ;;  %p17161_p1 = pmov %p17160_p0 }
 0x108   : > { %p17162_p10 = pmov %p17160_p0 }
 0x109   : > { %15973 = vsyncadd (%p17161_p1), [#allocation15], 4294967040 }
 0x10a   : > { %15975 = dma.done.wait (%p17162_p10), [#allocation18], 49664   ;;  %p17163_p3 = pmov %p17160_p0 }
 0x10b   : > { %p17164_p9 = pmov %p17160_p0 }
 0x10c   : > { %15977 = vsyncadd (%p17163_p3), [#allocation18], 4294917632 }
 0x10d   : > { %15979 = dma.done.wait (%p17164_p9), [#allocation21], 49280   ;;  %p17165_p2 = pmov %p17160_p0 }
 0x10e   : > { %p17166_p6 = pmov %p17160_p0 }
 0x10f   : > { %15981 = vsyncadd (%p17165_p2), [#allocation21], 4294918016 }
 0x110   : > { %15983 = dma.done.wait (%p17166_p6), [#allocation24], 64   ;;  %p17167_p13 = pmov %p17160_p0 }
 0x111   : > { %p17168_p5 = pmov %p17160_p0 }
 0x112   : > { %15985 = vsyncadd (%p17167_p13), [#allocation24], 4294967232 }
 0x113   : > { %15987 = dma.done.wait (%p17168_p5), [#allocation27], 4128   ;;  %p17169_p4 = pmov %p17160_p0 }
 0x114   : > { %p796_p7 = scmp.lt.s32.totalorder %s16160_s0, 1  ;;  %v16035_v0 = vmov 0   ;;  %s17170_s21 = sld [smem:[#allocation47_spill]]  ;;  %v14098_v3 = vld [vmem:[#allocation2 + $0x74] ss:$8 sps:$4 sm:$0xff]   ;;  %v804_v35 = vlaneseq  ;;  %v859_v41 = vld [vmem:[#allocation5] sm:$0xff] }
 0x115   : > { %15989 = vsyncadd (%p17169_p4), [#allocation27], 4294963168  ;;  %14067 = vset.pattern.permute.xlu0 %v16035_v0  ;;  %v14100_v4 = vld [vmem:[#allocation2 + $0x70] ss:$8 sps:$4 sm:$0xff]   ;;  %v14101_v5 = vld [vmem:[#allocation2 + $0x64] ss:$8 sps:$4 sm:$0xff]   ;;  %1023 = vmatprep.subr.bf16.mxu0 %v14098_v3 }
 0x116   : > { %s797_s22 = scalar_select %p796_p7, %s16160_s0, 1  ;;  %1024 = vmatpush1.bf16.msra.mxu0 %v14100_v4  ;;  %v14103_v6 = vld [vmem:[#allocation2 + $0x60] ss:$8 sps:$4 sm:$0xff]   ;;  %v14104_v7 = vld [vmem:[#allocation2 + $0x54] ss:$8 sps:$4 sm:$0xff]   ;;  %v16381_v36 = vand.u32 127, %v804_v35 }
 0x117   : > { %1025 = vmatprep.subr.bf16.mxu0 %v14101_v5  ;;  %v14106_v8 = vld [vmem:[#allocation2 + $0x50] ss:$8 sps:$4 sm:$0xff]   ;;  %v14107_v9 = vld [vmem:[#allocation2 + $0x44] ss:$8 sps:$4 sm:$0xff]   ;;  %v14109_v10 = vld [vmem:[#allocation2 + $0x40] ss:$8 sps:$4 sm:$0xff]  }
 0x118   : > { %s13647_s24 = sshll.u32 %s797_s22, 4  ;;  %v14110_v11 = vld [vmem:[#allocation2 + $0x34] ss:$8 sps:$4 sm:$0xff]   ;;  %v14112_v12 = vld [vmem:[#allocation2 + $0x30] ss:$8 sps:$4 sm:$0xff]   ;;  %v806_v38 = vadd.s32 128, %v16381_v36 }
 0x119   : > { %v14113_v13 = vld [vmem:[#allocation2 + $0x24] ss:$8 sps:$4 sm:$0xff]   ;;  %v14115_v14 = vld [vmem:[#allocation2 + $0x20] ss:$8 sps:$4 sm:$0xff]   ;;  %v14116_v15 = vld [vmem:[#allocation2 + $0x14] ss:$8 sps:$4 sm:$0xff]  }
 0x11a   : > { %s800_s4 = scalar_lea.vmem %s17170_s21, %s13647_s24  ;;  %1026 = vmatpush1.bf16.msra.mxu0 %v14103_v6  ;;  %v14118_v16 = vld [vmem:[#allocation2 + $0x10] ss:$8 sps:$4 sm:$0xff]   ;;  %v14119_v17 = vld [vmem:[#allocation2 + $0x4] ss:$8 sps:$4 sm:$0xff]   ;;  %v14121_v18 = vld [vmem:[#allocation2] ss:$8 sps:$4 sm:$0xff]  }
 0x11b   : > { %v802_v1 = vld [vmem:[%s800_s4] sm:$0xff]  ;;  %v803_v2 = vld [vmem:[%s800_s4 + $0x8] sm:$0xff]  ;;  %1027 = vmatprep.subr.bf16.mxu0 %v14104_v7  ;;  %v14122_v19 = vld [vmem:[#allocation2 + $0xf4] ss:$8 sps:$4 sm:$0xff]   ;;  %v16036_v40 = vmov 1.0|1.0  }
 0x11c   : > { %808 = vperm.xlu0 %14067, %v802_v1   ;;  %v14124_v20 = vld [vmem:[#allocation2 + $0xf0] ss:$8 sps:$4 sm:$0xff]   ;;  %v14125_v21 = vld [vmem:[#allocation2 + $0xe4] ss:$8 sps:$4 sm:$0xff]   ;;  %v14127_v22 = vld [vmem:[#allocation2 + $0xe0] ss:$8 sps:$4 sm:$0xff]  }
 0x11d   : > { %v14128_v23 = vld [vmem:[#allocation2 + $0xd4] ss:$8 sps:$4 sm:$0xff]   ;;  %v14130_v24 = vld [vmem:[#allocation2 + $0xd0] ss:$8 sps:$4 sm:$0xff]   ;;  %v14131_v25 = vld [vmem:[#allocation2 + $0xc4] ss:$8 sps:$4 sm:$0xff]  }
 0x11e   : > { %1028 = vmatpush1.bf16.msra.mxu0 %v14106_v8  ;;  %v14133_v26 = vld [vmem:[#allocation2 + $0xc0] ss:$8 sps:$4 sm:$0xff]   ;;  %v14134_v27 = vld [vmem:[#allocation2 + $0xb4] ss:$8 sps:$4 sm:$0xff]   ;;  %v14136_v28 = vld [vmem:[#allocation2 + $0xb0] ss:$8 sps:$4 sm:$0xff]  }
 0x11f   : > { %1029 = vmatprep.subr.bf16.mxu0 %v14107_v9  ;;  %v14137_v29 = vld [vmem:[#allocation2 + $0xa4] ss:$8 sps:$4 sm:$0xff]   ;;  %v14139_v30 = vld [vmem:[#allocation2 + $0xa0] ss:$8 sps:$4 sm:$0xff]   ;;  %v14140_v31 = vld [vmem:[#allocation2 + $0x94] ss:$8 sps:$4 sm:$0xff]  }
 0x120   : > { %811 = vperm.xlu0 %14067, %v803_v2   ;;  %v14142_v32 = vld [vmem:[#allocation2 + $0x90] ss:$8 sps:$4 sm:$0xff]   ;;  %v14143_v33 = vld [vmem:[#allocation2 + $0x84] ss:$8 sps:$4 sm:$0xff]   ;;  %v14145_v34 = vld [vmem:[#allocation2 + $0x80] ss:$8 sps:$4 sm:$0xff]  }
 0x121   : > { %v860_v43 = vld [vmem:[#allocation5 + $0x8] sm:$0xff]  ;;  %v861_v47 = vld [vmem:[#allocation5 + $0x10] sm:$0xff]  ;;  %v862_v49 = vld [vmem:[#allocation5 + $0x18] sm:$0xff]  ;;  %vm16038_vm6 = vmmov 0   ;;  %vm1850_vm7 = vcmask 523264   ;;  %s16039_s25 = smov 64  }
 0x122   : > { %1030 = vmatpush1.bf16.msra.mxu0 %v14109_v10  ;;  %v14146_v55 = vld [vmem:[#allocation10 + $0x154] ss:$24 sps:$4 sm:$0xff]   ;;  %v14148_v56 = vld [vmem:[#allocation10 + $0x150] ss:$24 sps:$4 sm:$0xff]   ;;  %v14152_v59 = vld [vmem:[#allocation10 + $0x124] ss:$24 sps:$4 sm:$0xff]  }
 0x123   : > { %1031 = vmatprep.subr.bf16.mxu0 %v14110_v11  ;;  %v14149_v57 = vld [vmem:[#allocation10 + $0x158] ss:$24 sps:$4 sm:$0xff]   ;;  %v14151_v58 = vld [vmem:[#allocation10 + $0x15c] ss:$24 sps:$4 sm:$0xff]   ;;  %1716 = vmatprep.subr.bf16.mxu1 %v14146_v55  ;;  %v14157_v60 = vld [vmem:[#allocation10 + $0x12c] ss:$24 sps:$4 sm:$0xff]  }
 0x124   : > { %1717 = vmatpush1.bf16.msra.mxu1 %v14148_v56  ;;  %v14154_v61 = vld [vmem:[#allocation10 + $0x120] ss:$24 sps:$4 sm:$0xff]   ;;  %v14158_v63 = vld [vmem:[#allocation10 + $0xf4] ss:$24 sps:$4 sm:$0xff]   ;;  %v14160_v1 = vld [vmem:[#allocation10 + $0xf0] ss:$24 sps:$4 sm:$0xff]  }
 0x125   : > { %1718 = vmatprep.subr.bf16.mxu1 %v14152_v59  ;;  %v14155_v62 = vld [vmem:[#allocation10 + $0x128] ss:$24 sps:$4 sm:$0xff]   ;;  %v14163_v0 = vld [vmem:[#allocation10 + $0xfc] ss:$24 sps:$4 sm:$0xff]   ;;  %v14161_v2 = vld [vmem:[#allocation10 + $0xf8] ss:$24 sps:$4 sm:$0xff]  }
 0x126   : > { %1032 = vmatpush1.bf16.msra.mxu0 %v14112_v12  ;;  %v14164_v3 = vld [vmem:[#allocation10 + $0xc4] ss:$24 sps:$4 sm:$0xff]   ;;  %v14166_v5 = vld [vmem:[#allocation10 + $0xc0] ss:$24 sps:$4 sm:$0xff]   ;;  %v14170_v7 = vld [vmem:[#allocation10 + $0x94] ss:$24 sps:$4 sm:$0xff]  }
 0x127   : > { %1033 = vmatprep.subr.bf16.mxu0 %v14113_v13  ;;  %v14169_v4 = vld [vmem:[#allocation10 + $0xcc] ss:$24 sps:$4 sm:$0xff]   ;;  %v14167_v6 = vld [vmem:[#allocation10 + $0xc8] ss:$24 sps:$4 sm:$0xff]   ;;  %v14175_v8 = vld [vmem:[#allocation10 + $0x9c] ss:$24 sps:$4 sm:$0xff]  }
 0x128   : > { %1719 = vmatpush1.bf16.msra.mxu1 %v14154_v61  ;;  %v14172_v9 = vld [vmem:[#allocation10 + $0x90] ss:$24 sps:$4 sm:$0xff]   ;;  %v14176_v11 = vld [vmem:[#allocation10 + $0x64] ss:$24 sps:$4 sm:$0xff]   ;;  %v14178_v13 = vld [vmem:[#allocation10 + $0x60] ss:$24 sps:$4 sm:$0xff]  }
 0x129   : > { %1720 = vmatprep.subr.bf16.mxu1 %v14158_v63  ;;  %v14173_v10 = vld [vmem:[#allocation10 + $0x98] ss:$24 sps:$4 sm:$0xff]   ;;  %v14181_v12 = vld [vmem:[#allocation10 + $0x6c] ss:$24 sps:$4 sm:$0xff]   ;;  %vm1898_vm10 = vcmask 130048   ;;  %s793_s26 = sand.u32 1, %s16000_s28  }
 0x12a   : > { %1034 = vmatpush1.bf16.msra.mxu0 %v14115_v14  ;;  %v14179_v14 = vld [vmem:[#allocation10 + $0x68] ss:$24 sps:$4 sm:$0xff]   ;;  %v14212_v55 = vld [vmem:[#allocation10 + $0x244] ss:$24 sps:$4 sm:$0xff]   ;;  %v14218_v59 = vld [vmem:[#allocation10 + $0x214] ss:$24 sps:$4 sm:$0xff]  }
 0x12b   : > { %1035 = vmatprep.subr.bf16.mxu0 %v14116_v15  ;;  %v14182_v15 = vld [vmem:[#allocation10 + $0x34] ss:$24 sps:$4 sm:$0xff]   ;;  %v14214_v56 = vld [vmem:[#allocation10 + $0x240] ss:$24 sps:$4 sm:$0xff]   ;;  %v14220_v61 = vld [vmem:[#allocation10 + $0x210] ss:$24 sps:$4 sm:$0xff]  }
 0x12c   : > { %1721 = vmatpush1.bf16.msra.mxu1 %v14160_v1  ;;  %v14224_v63 = vld [vmem:[#allocation10 + $0x1e4] ss:$24 sps:$4 sm:$0xff]   ;;  %v14226_v1 = vld [vmem:[#allocation10 + $0x1e0] ss:$24 sps:$4 sm:$0xff]   ;;  %s12391_s20 = sshll.u32 %s793_s26, 5  ;;  %s17171_s2 = sld [smem:[#allocation45_spill]] }
 0x12d   : > { %1722 = vmatprep.subr.bf16.mxu1 %v14164_v3  ;;  %v14230_v3 = vld [vmem:[#allocation10 + $0x1b4] ss:$24 sps:$4 sm:$0xff]   ;;  %s795_s27 = scalar_lea.vmem [#allocation29], %s12391_s20  ;;  %s13648_s29 = sshll.u32 %s16160_s0, 9 }
 0x12e   : > { %1036 = vmatpush1.bf16.msra.mxu0 %v14118_v16  ;;  %v14187_v16 = vld [vmem:[#allocation10 + $0x3c] ss:$24 sps:$4 sm:$0xff]   ;;  %s12127_s18 = sshll.u32 %s795_s27, 4  ;;  %s17172_s22 = sld [smem:[#allocation51_spill]]  ;;  %s17047_s18 = int_to_ptr.vmem [resolvable:$true] %s12127_s18 }
 0x12f   : > { %1037 = vmatprep.subr.bf16.mxu0 %v14119_v17  ;;  %v14184_v17 = vld [vmem:[#allocation10 + $0x30] ss:$24 sps:$4 sm:$0xff]   ;;  %s17054_s19 = scalar_lea.sflag [#allocation4], %s793_s26  ;;  %s15912_s0 = scalar_lea.vmem %s17047_s18, 512 }
 0x130   : > { %1723 = vmatpush1.bf16.msra.mxu1 %v14166_v5  ;;  %v14232_v5 = vld [vmem:[#allocation10 + $0x1b0] ss:$24 sps:$4 sm:$0xff]   ;;  %p15913_p12 = scmp.ne.s32.totalorder %s17047_s18, %s15912_s0  ;;  %s16041_s1 = smov [#allocation29]  }
 0x131   : > { %1724 = vmatprep.subr.bf16.mxu1 %v14170_v7  ;;  %v14236_v7 = vld [vmem:[#allocation10 + $0x184] ss:$24 sps:$4 sm:$0xff]   ;;  %s15916_s21 = sshll.u32 %s16041_s1, 4  ;;  %s15917_s21 = int_to_ptr.vmem [resolvable:$false] %s15916_s21 }
 0x132   : > { %1038 = vmatpush1.bf16.msra.mxu0 %v14121_v18  ;;  %v14185_v18 = vld [vmem:[#allocation10 + $0x38] ss:$24 sps:$4 sm:$0xff]   ;;  %p17173_p8 = scmp.ne.s32.totalorder %s17171_s2, 0  ;;  %s15918_s4 = scalar_lea.vmem %s15917_s21, 1024 }
 0x133   : > { %1039 = vmatprep.subr.bf16.mxu0 %v14122_v19  ;;  %v14188_v19 = vld [vmem:[#allocation10 + $0x4] ss:$24 sps:$4 sm:$0xff]   ;;  %p15919_p1 = scmp.lt.s32.totalorder %s17047_s18, %s15917_s21  ;;  %p15920_p10 = scmp.lt.s32.totalorder %s15918_s4, %s15912_s0 }
 0x134   : > { %1725 = vmatpush1.bf16.msra.mxu1 %v14172_v9  ;;  %v14238_v9 = vld [vmem:[#allocation10 + $0x180] ss:$24 sps:$4 sm:$0xff]   ;;  %s17052_s24 = scalar_lea.hbm %s17172_s22, %s13648_s29  ;;  %p15914_p11 = pnand %p15913_p12, %p17173_p8 }
 0x135   : > { %1726 = vmatprep.subr.bf16.mxu1 %v14176_v11  ;;  %v14244_v11 = vld [vmem:[#allocation10 + $0x164] ss:$24 sps:$4 sm:$0xff]   ;;  %p15921_p3 = por %p15920_p10, %p15919_p1 }
 0x136   : > { %1040 = vmatpush2.bf16.msra.mxu0 %v14124_v20  ;;  %v14193_v20 = vld [vmem:[#allocation10 + $0xc] ss:$24 sps:$4 sm:$0xff]   ;;  %p15915_p0 = pneg %p15914_p11 }
 0x137   : > { %1041 = vmatprep.subr.bf16.mxu0 %v14125_v21  ;;  %v14190_v21 = vld [vmem:[#allocation10] ss:$24 sps:$4 sm:$0xff]  }
 0x138   : > { %1727 = vmatpush1.bf16.msra.mxu1 %v14178_v13  ;;  %p15922_p9 = pnand %p15921_p3, %p15915_p0 }
 0x139   : > { %1728 = vmatprep.subr.bf16.mxu1 %v14182_v15 }
 0x13a   : > { %1042 = vmatpush2.bf16.msra.mxu0 %v14127_v22  ;;  %v14191_v22 = vld [vmem:[#allocation10 + $0x8] ss:$24 sps:$4 sm:$0xff]  }
 0x13b   : > { %1043 = vmatprep.subr.bf16.mxu0 %v14128_v23  ;;  %v14194_v23 = vld [vmem:[#allocation10 + $0x2d4] ss:$24 sps:$4 sm:$0xff]  }
 0x13c   : > { %1729 = vmatpush1.bf16.msra.mxu1 %v14184_v17 }
 0x13d   : > { %1730 = vmatprep.subr.bf16.mxu1 %v14188_v19 }
 0x13e   : > { %1044 = vmatpush2.bf16.msra.mxu0 %v14130_v24  ;;  %v14199_v24 = vld [vmem:[#allocation10 + $0x2dc] ss:$24 sps:$4 sm:$0xff]  }
 0x13f   : > { %1045 = vmatprep.subr.bf16.mxu0 %v14131_v25  ;;  %v14196_v25 = vld [vmem:[#allocation10 + $0x2d0] ss:$24 sps:$4 sm:$0xff]  }
 0x140   : > { %1731 = vmatpush1.bf16.msra.mxu1 %v14190_v21  ;;  %v1073_v21 = vld [vmem:[#allocation7] ss:$4 sm:$0x3] }
 0x141   : > { %1732 = vmatprep.subr.bf16.mxu1 %v14194_v23  ;;  %v1074_v23 = vld [vmem:[#allocation8] ss:$4 sm:$0x3] }
 0x142   : > { %1046 = vmatpush2.bf16.msra.mxu0 %v14133_v26  ;;  %v14197_v26 = vld [vmem:[#allocation10 + $0x2d8] ss:$24 sps:$4 sm:$0xff]  }
 0x143   : > { %1047 = vmatprep.subr.bf16.mxu0 %v14134_v27 }
 0x144   : > { %1733 = vmatpush2.bf16.msra.mxu1 %v14196_v25 }
 0x146   : > { %1048 = vmatpush2.bf16.msra.mxu0 %v14136_v28 }
 0x147   : > { %1049 = vmatprep.subr.bf16.mxu0 %v14137_v29 }
 0x14a   : > { %1050 = vmatpush2.bf16.msra.mxu0 %v14139_v30 }
 0x14b   : > { %1051 = vmatprep.subr.bf16.mxu0 %v14140_v31 }
 0x14e   : > { %1052 = vmatpush2.bf16.msra.mxu0 %v14142_v32 }
 0x14f   : > { %1053 = vmatprep.subr.bf16.mxu0 %v14143_v33 }
 0x152   : > { %1054 = vmatpush2.bf16.msra.mxu0 %v14145_v34 }
 0x153   : > { %1759 = vmatprep.subr.bf16.mxu0 %v14151_v58  ;;  %v14217_v58 = vld [vmem:[#allocation10 + $0x24c] ss:$24 sps:$4 sm:$0xff]  }
 0x197   : > { %v809_v37 = vpop.permute.xlu0 %808 }
 0x198   : > { %vm814_vm1 = vcmp.eq.s32.totalorder %v809_v37, %v806_v38  ;;  %vm813_vm3 = vcmp.eq.s32.totalorder %v809_v37, %v16381_v36 }
 0x19b   : > { %v812_v39 = vpop.permute.xlu0 %811 }
 0x19c   : > { %vm815_vm0 = vcmp.eq.s32.totalorder %v812_v39, %v16381_v36  ;;  %vm816_vm2 = vcmp.eq.s32.totalorder %v812_v39, %v806_v38 }
 0x19d   : > { %vm12430_vm4 = vmpackc.low %vm816_vm2, %vm814_vm1 }
 0x19e   : > { %12431 = vmatprep.mubr.msk.bf16.mxu0 %vm12430_vm4, %v16036_v40  ;;  %vm12432_vm5 = vmpackc.low %vm815_vm0, %vm813_vm3 }
 0x19f   : > { %12433 = vmatmul.mubr.msk.bf16.vlgmr.msra.gmra.mxu0 %vm12432_vm5, %v16036_v40 }
 0x1a0   : > { %1760 = vmatpush1.bf16.msra.mxu0 %v14149_v57  ;;  %v14215_v57 = vld [vmem:[#allocation10 + $0x248] ss:$24 sps:$4 sm:$0xff]  }
 0x1a1   : > { %1761 = vmatprep.subr.bf16.mxu0 %v14157_v60  ;;  %v14223_v60 = vld [vmem:[#allocation10 + $0x21c] ss:$24 sps:$4 sm:$0xff]  }
 0x1a4   : > { %1762 = vmatpush1.bf16.msra.mxu0 %v14155_v62  ;;  %v14221_v62 = vld [vmem:[#allocation10 + $0x218] ss:$24 sps:$4 sm:$0xff]  }
 0x1a5   : > { %1763 = vmatprep.subr.bf16.mxu0 %v14163_v0  ;;  %v14229_v0 = vld [vmem:[#allocation10 + $0x1ec] ss:$24 sps:$4 sm:$0xff]  }
 0x1a8   : > { %1764 = vmatpush1.bf16.msra.mxu0 %v14161_v2  ;;  %v14227_v2 = vld [vmem:[#allocation10 + $0x1e8] ss:$24 sps:$4 sm:$0xff]  }
 0x1a9   : > { %1765 = vmatprep.subr.bf16.mxu0 %v14169_v4  ;;  %v14235_v4 = vld [vmem:[#allocation10 + $0x1bc] ss:$24 sps:$4 sm:$0xff]  }
 0x1ac   : > { %1766 = vmatpush1.bf16.msra.mxu0 %v14167_v6  ;;  %v14233_v6 = vld [vmem:[#allocation10 + $0x1b8] ss:$24 sps:$4 sm:$0xff]  }
 0x1ad   : > { %1767 = vmatprep.subr.bf16.mxu0 %v14175_v8  ;;  %v14241_v8 = vld [vmem:[#allocation10 + $0x18c] ss:$24 sps:$4 sm:$0xff]  }
 0x1b0   : > { %1768 = vmatpush1.bf16.msra.mxu0 %v14173_v10  ;;  %v14239_v10 = vld [vmem:[#allocation10 + $0x188] ss:$24 sps:$4 sm:$0xff]  }
 0x1b1   : > { %1769 = vmatprep.subr.bf16.mxu0 %v14181_v12 }
 0x1b4   : > { %1770 = vmatpush1.bf16.msra.mxu0 %v14179_v14 }
 0x1b5   : > { %1771 = vmatprep.subr.bf16.mxu0 %v14187_v16 }
 0x1b8   : > { %1772 = vmatpush1.bf16.msra.mxu0 %v14185_v18  ;;  %v16419_v18 = vshrl.u32 %v804_v35, 7 }
 0x1b9   : > { %1773 = vmatprep.subr.bf16.mxu0 %v14193_v20 }
 0x1ba   : > { %v16422_v19 = vsub.s32 0, %v16419_v18  ;;  %v16425_v20 = vsub.s32 1, %v16419_v18  ;;  %vm1069_vm8 = vcmp.le.s32.totalorder %v16381_v36, %v16419_v18 }
 0x1bc   : > { %1774 = vmatpush1.bf16.msra.mxu0 %v14191_v22  ;;  %v1116_v25 = vrot.slane %v1073_v21, %v16425_v20  ;;  %v1131_v35 = vrot.slane %v1074_v23, %v16425_v20 }
 0x1bd   : > { %1775 = vmatprep.subr.bf16.mxu0 %v14199_v24 }
 0x1c0   : > { %1776 = vmatpush2.bf16.msra.mxu0 %v14197_v26 }
 0x25f   : > { %v1057_v42 = vpop.f32.mrf.mxu0 }
 0x260   : > { %v16386_v45 = vadd.f32 %v1057_v42, %v859_v41 }
 0x261   : > { %v1059_v44 = vpop.f32.mrf.mxu0 }
 0x262   : > { %v16388_v46 = vadd.f32 %v1059_v44, %v860_v43  ;;  %v14200_v43 = vld [vmem:[#allocation10 + $0x2a4] ss:$24 sps:$4 sm:$0xff]   ;;  %v14202_v44 = vld [vmem:[#allocation10 + $0x2a0] ss:$24 sps:$4 sm:$0xff]  }
 0x263   : > { %v1061_v48 = vpop.f32.mrf.mxu0  ;;  %1734 = vmatprep.subr.bf16.mxu1 %v14200_v43 }
 0x264   : > { %v1075_v50 = vadd.f32 %v16388_v46, %v16386_v45  ;;  %v16392_v52 = vadd.f32 %v1061_v48, %v861_v47  ;;  %v14205_v47 = vld [vmem:[#allocation10 + $0x2ac] ss:$24 sps:$4 sm:$0xff]   ;;  %v14203_v48 = vld [vmem:[#allocation10 + $0x2a8] ss:$24 sps:$4 sm:$0xff]   ;;  %1735 = vmatpush2.bf16.msra.mxu1 %v14202_v44 }
 0x265   : > { %v1063_v51 = vpop.f32.mrf.mxu0  ;;  %1777 = vmatprep.subr.bf16.mxu0 %v14205_v47  ;;  %v14242_v47 = vld [vmem:[#allocation10 + $0x160] ss:$24 sps:$4 sm:$0xff]  }
 0x266   : > { %v16394_v53 = vadd.f32 %v1063_v51, %v862_v49  ;;  %1076 = vadd.xlane.f32.xlu1 %v1075_v50  ;;  %1778 = vmatpush2.bf16.msra.mxu0 %v14203_v48  ;;  %v14206_v49 = vld [vmem:[#allocation10 + $0x274] ss:$24 sps:$4 sm:$0xff]   ;;  %v14208_v50 = vld [vmem:[#allocation10 + $0x270] ss:$24 sps:$4 sm:$0xff]  }
 0x267   : > { %v14211_v51 = vld [vmem:[#allocation10 + $0x27c] ss:$24 sps:$4 sm:$0xff]   ;;  %1736 = vmatprep.subr.bf16.mxu1 %v14206_v49 }
 0x268   : > { %v1078_v54 = vadd.f32 %v16394_v53, %v16392_v52  ;;  %1737 = vmatpush2.bf16.msra.mxu1 %v14208_v50  ;;  %1779 = vmatprep.subr.bf16.mxu0 %v14211_v51  ;;  %v14247_v49 = vld [vmem:[#allocation10 + $0x134] ss:$24 sps:$4 sm:$0xff]   ;;  %v14248_v50 = vld [vmem:[#allocation10 + $0x100] ss:$24 sps:$4 sm:$0xff]  }
 0x269   : > { %1738 = vmatprep.subr.bf16.mxu1 %v14212_v55  ;;  %v14253_v51 = vld [vmem:[#allocation10 + $0xd4] ss:$24 sps:$4 sm:$0xff]   ;;  %v14256_v55 = vld [vmem:[#allocation10 + $0xa4] ss:$24 sps:$4 sm:$0xff]  }
 0x26a   : > { %1079 = vadd.xlane.f32.xlu1 %v1078_v54  ;;  %v14209_v54 = vld [vmem:[#allocation10 + $0x278] ss:$24 sps:$4 sm:$0xff]  }
 0x26b   : > { %1780 = vmatpush2.bf16.msra.mxu0 %v14209_v54  ;;  %v14251_v54 = vld [vmem:[#allocation10 + $0xd0] ss:$24 sps:$4 sm:$0xff]  }
 0x26c   : > { %1781 = vmatprep.subr.bf16.mxu0 %v14217_v58  ;;  %1739 = vmatpush2.bf16.msra.mxu1 %v14214_v56  ;;  %v14254_v56 = vld [vmem:[#allocation10 + $0xa0] ss:$24 sps:$4 sm:$0xff]   ;;  %v14257_v58 = vld [vmem:[#allocation10 + $0x70] ss:$24 sps:$4 sm:$0xff]  }
 0x26d   : > { %1740 = vmatprep.subr.bf16.mxu1 %v14218_v59  ;;  %v14262_v59 = vld [vmem:[#allocation10 + $0x44] ss:$24 sps:$4 sm:$0xff]  }
 0x26f   : > { %1782 = vmatpush2.bf16.msra.mxu0 %v14215_v57  ;;  %v14259_v57 = vld [vmem:[#allocation10 + $0x74] ss:$24 sps:$4 sm:$0xff]  }
 0x270   : > { %1783 = vmatprep.subr.bf16.mxu0 %v14223_v60  ;;  %1741 = vmatpush2.bf16.msra.mxu1 %v14220_v61  ;;  %v14260_v60 = vld [vmem:[#allocation10 + $0x40] ss:$24 sps:$4 sm:$0xff]   ;;  %v14265_v61 = vld [vmem:[#allocation10 + $0x14] ss:$24 sps:$4 sm:$0xff]  }
 0x271   : > { %1742 = vmatprep.subr.bf16.mxu1 %v14224_v63  ;;  %v14268_v63 = vld [vmem:[#allocation10 + $0x2e4] ss:$24 sps:$4 sm:$0xff]  }
 0x273   : > { %1784 = vmatpush2.bf16.msra.mxu0 %v14221_v62  ;;  %v14263_v62 = vld [vmem:[#allocation10 + $0x10] ss:$24 sps:$4 sm:$0xff]  }
 0x274   : > { %1785 = vmatprep.subr.bf16.mxu0 %v14229_v0  ;;  %1743 = vmatpush2.bf16.msra.mxu1 %v14226_v1  ;;  %v14266_v0 = vld [vmem:[#allocation10 + $0x2e0] ss:$24 sps:$4 sm:$0xff]   ;;  %v14271_v1 = vld [vmem:[#allocation10 + $0x2b4] ss:$24 sps:$4 sm:$0xff]  }
 0x275   : > { %1744 = vmatprep.subr.bf16.mxu1 %v14230_v3  ;;  %v14274_v3 = vld [vmem:[#allocation10 + $0x284] ss:$24 sps:$4 sm:$0xff]  }
 0x277   : > { %1786 = vmatpush2.bf16.msra.mxu0 %v14227_v2  ;;  %v14269_v2 = vld [vmem:[#allocation10 + $0x2b0] ss:$24 sps:$4 sm:$0xff]  }
 0x278   : > { %1787 = vmatprep.subr.bf16.mxu0 %v14235_v4  ;;  %1745 = vmatpush2.bf16.msra.mxu1 %v14232_v5  ;;  %v14272_v4 = vld [vmem:[#allocation10 + $0x280] ss:$24 sps:$4 sm:$0xff]   ;;  %v14277_v5 = vld [vmem:[#allocation10 + $0x254] ss:$24 sps:$4 sm:$0xff]  }
 0x279   : > { %1746 = vmatprep.subr.bf16.mxu1 %v14236_v7  ;;  %v14280_v7 = vld [vmem:[#allocation10 + $0x224] ss:$24 sps:$4 sm:$0xff]  }
 0x27b   : > { %1788 = vmatpush2.bf16.msra.mxu0 %v14233_v6  ;;  %v14275_v6 = vld [vmem:[#allocation10 + $0x250] ss:$24 sps:$4 sm:$0xff]  }
 0x27c   : > { %1789 = vmatprep.subr.bf16.mxu0 %v14241_v8  ;;  %1747 = vmatpush2.bf16.msra.mxu1 %v14238_v9  ;;  %v14278_v8 = vld [vmem:[#allocation10 + $0x220] ss:$24 sps:$4 sm:$0xff]   ;;  %v14283_v9 = vld [vmem:[#allocation10 + $0x1f4] ss:$24 sps:$4 sm:$0xff]  }
 0x27d   : > { %1802 = vmatprep.subr.bf16.mxu1 %v14244_v11  ;;  %v14286_v11 = vld [vmem:[#allocation10 + $0x1c4] ss:$24 sps:$4 sm:$0xff]  }
 0x27f   : > { %1790 = vmatpush2.bf16.msra.mxu0 %v14239_v10  ;;  %v14281_v10 = vld [vmem:[#allocation10 + $0x1f0] ss:$24 sps:$4 sm:$0xff]  }
 0x2ef   : > { %v1077_v27 = vpop.xlane.xlu1 %1076 }
 0x2f0   : > { %v1082_v28 = vmul.f32 0.00390625, %v1077_v27  ;;  %v1112_v27 = vrot.slane %v1073_v21, %v16422_v19 }
 0x2f2   : > { %v16399_v29 = vsub.f32 %v16386_v45, %v1082_v28  ;;  %v16402_v30 = vsub.f32 %v16388_v46, %v1082_v28 }
 0x2f3   : > { %v1080_v31 = vpop.xlane.xlu1 %1079 }
 0x2f4   : > { %v1083_v32 = vmul.f32 0.00390625, %v1080_v31  ;;  %v1088_v33 = vmul.f32 %v16399_v29, %v16399_v29  ;;  %v1089_v34 = vmul.f32 %v16402_v30, %v16402_v30  ;;  %v1127_v31 = vrot.slane %v1074_v23, %v16422_v19 }
 0x2f6   : > { %v16409_v37 = vsub.f32 %v16392_v52, %v1083_v32  ;;  %v16412_v38 = vsub.f32 %v16394_v53, %v1083_v32  ;;  %v1092_v39 = vadd.f32 %v1089_v34, %v1088_v33 }
 0x2f8   : > { %1093 = vadd.xlane.f32.xlu0 %v1092_v39  ;;  %v1090_v40 = vmul.f32 %v16409_v37, %v16409_v37  ;;  %v1091_v41 = vmul.f32 %v16412_v38, %v16412_v38 }
 0x2fa   : > { %v1095_v42 = vadd.f32 %v1091_v41, %v1090_v40 }
 0x2fc   : > { %1096 = vadd.xlane.f32.xlu1 %v1095_v42 }
 0x381   : > { %v1094_v12 = vpop.xlane.xlu0 %1093 }
 0x382   : > { %v1098_v13 = vmul.f32 0.00390625, %v1094_v12  ;;  %v14284_v12 = vld [vmem:[#allocation10 + $0x1c0] ss:$24 sps:$4 sm:$0xff]  }
 0x384   : > { %v1100_v14 = vadd.f32 1e-05, %v1098_v13  ;;  %v14289_v13 = vld [vmem:[#allocation10 + $0x194] ss:$24 sps:$4 sm:$0xff]  }
 0x385   : > { %v1097_v15 = vpop.xlane.xlu1 %1096 }
 0x386   : > { %15346 = vrsqrt.f32 %v1100_v14  ;;  %v1099_v16 = vmul.f32 0.00390625, %v1097_v15  ;;  %v14287_v14 = vld [vmem:[#allocation10 + $0x190] ss:$24 sps:$4 sm:$0xff]   ;;  %v16037_v15 = vmov 0.0  }
 0x387   : > { %13697 = vmatprep.subr.bf16.mxu0 %v16037_v15 }
 0x388   : > { %v1101_v17 = vadd.f32 1e-05, %v1099_v16 }
 0x38a   : > { %15348 = vrsqrt.f32 %v1101_v17 }
 0x393   : > { %v15347_v22 = vpop.eup %15346 }
 0x394   : > { %v1105_v24 = vmul.f32 %v15347_v22, %v16402_v30  ;;  %v1104_v26 = vmul.f32 %v15347_v22, %v16399_v29 }
 0x396   : > { %v1120_v33 = vmul.f32 %v1116_v25, %v1105_v24  ;;  %v1119_v39 = vmul.f32 %v1112_v27, %v1104_v26 }
 0x397   : > { %v15349_v28 = vpop.eup %15348 }
 0x398   : > { %v1107_v32 = vmul.f32 %v15349_v28, %v16412_v38  ;;  %v1106_v34 = vmul.f32 %v15349_v28, %v16409_v37  ;;  %v1135_v30 = vadd.f32 %v1131_v35, %v1120_v33  ;;  %v1134_v43 = vadd.f32 %v1127_v31, %v1119_v39  ;;  %v14245_v37 = vld [vmem:[#allocation10 + $0x130] ss:$24 sps:$4 sm:$0xff]   ;;  %v14250_v38 = vld [vmem:[#allocation10 + $0x104] ss:$24 sps:$4 sm:$0xff]  }
 0x39a   : > { %v1122_v40 = vmul.f32 %v1116_v25, %v1107_v32  ;;  %v1121_v41 = vmul.f32 %v1112_v27, %v1106_v34 }
 0x39c   : > { %v1137_v42 = vadd.f32 %v1131_v35, %v1122_v40  ;;  %v1136_v44 = vadd.f32 %v1127_v31, %v1121_v41 }
 0x39e   : > { %v1139_v29 = vpack.c.bf16 %v1137_v42, %v1135_v30  ;;  %v16435_v48 = vpack.c.bf16 %v1136_v44, %v1134_v43 }
 0x3a0   : > { %1748 = vmatprep.mubr.bf16.mxu1 %v1139_v29  ;;  %1791 = vmatprep.mubr.bf16.mxu0 %v1139_v29 }
 0x3a1   : > { %1749 = vmatmul.mubr.bf16.vlgmr.msra.gmra.mxu1 %v16435_v48  ;;  %1792 = vmatmul.mubr.bf16.vlgmr.msra.gmra.mxu0 %v16435_v48 }
 0x3a2   : > { %1803 = vmatpush1.bf16.msra.mxu1 %v14242_v47  ;;  %1834 = vmatprep.mubr.bf16.mxu1 %v1139_v29 }
 0x3a3   : > { %1804 = vmatprep.subr.bf16.mxu1 %v14247_v49  ;;  %13699 = vmatprep.mubr.msk.bf16.mxu0 %vm16038_vm6, %v16037_v15 }
 0x3a6   : > { %1805 = vmatpush1.bf16.msra.mxu1 %v14245_v37 }
 0x3a7   : > { %1806 = vmatprep.subr.bf16.mxu1 %v14250_v38 }
 0x3aa   : > { %1807 = vmatpush1.bf16.msra.mxu1 %v14248_v50  ;;  %v1068_v50 = vadd.s32 8, %v16419_v18 }
 0x3ab   : > { %1808 = vmatprep.subr.bf16.mxu1 %v14253_v51  ;;  %v16040_v51 = vmov -1e+30  }
 0x3ac   : > { %vm1070_vm9 = vcmp.le.s32.totalorder %v16381_v36, %v1068_v50 }
 0x3ae   : > { %1809 = vmatpush1.bf16.msra.mxu1 %v14251_v54  ;;  %v16476_v54 = vsel %vm1069_vm8, 0.0, %v16040_v51 }
 0x3af   : > { %1810 = vmatprep.subr.bf16.mxu1 %v14256_v55 }
 0x3b2   : > { %1811 = vmatpush1.bf16.msra.mxu1 %v14254_v56 }
 0x3b3   : > { %1812 = vmatprep.subr.bf16.mxu1 %v14259_v57  ;;  %v16480_v57 = vsel %vm1070_vm9, 0.0, %v16040_v51 }
 0x3b6   : > { %1813 = vmatpush1.bf16.msra.mxu1 %v14257_v58 }
 0x3b7   : > { %1814 = vmatprep.subr.bf16.mxu1 %v14262_v59 }
 0x3ba   : > { %1815 = vmatpush1.bf16.msra.mxu1 %v14260_v60 }
 0x3bb   : > { %1816 = vmatprep.subr.bf16.mxu1 %v14265_v61 }
 0x3be   : > { %1817 = vmatpush1.bf16.msra.mxu1 %v14263_v62 }
 0x3bf   : > { %1818 = vmatprep.subr.bf16.mxu1 %v14268_v63 }
 0x3c2   : > { %1819 = vmatpush2.bf16.msra.mxu1 %v14266_v0 }
 0x3c3   : > { %1820 = vmatprep.subr.bf16.mxu1 %v14271_v1 }
 0x3c6   : > { %1821 = vmatpush2.bf16.msra.mxu1 %v14269_v2 }
 0x3c7   : > { %1822 = vmatprep.subr.bf16.mxu1 %v14274_v3 }
 0x3ca   : > { %1823 = vmatpush2.bf16.msra.mxu1 %v14272_v4 }
 0x3cb   : > { %1824 = vmatprep.subr.bf16.mxu1 %v14277_v5 }
 0x3ce   : > { %1825 = vmatpush2.bf16.msra.mxu1 %v14275_v6 }
 0x3cf   : > { %1826 = vmatprep.subr.bf16.mxu1 %v14280_v7 }
 0x3d2   : > { %1827 = vmatpush2.bf16.msra.mxu1 %v14278_v8 }
 0x3d3   : > { %1828 = vmatprep.subr.bf16.mxu1 %v14283_v9 }
 0x3d6   : > { %1829 = vmatpush2.bf16.msra.mxu1 %v14281_v10 }
 0x3d7   : > { %1830 = vmatprep.subr.bf16.mxu1 %v14286_v11 }
 0x3da   : > { %1831 = vmatpush2.bf16.msra.mxu1 %v14284_v12 }
 0x3db   : > { %1832 = vmatprep.subr.bf16.mxu1 %v14289_v13 }
 0x3de   : > { %1833 = vmatpush2.bf16.msra.mxu1 %v14287_v14 }
 0x3df   : > { %13703 = vmatprep.subr.bf16.mxu1 %v16037_v15 }
 0x3e1   : > { %1835 = vmatmul.mubr.bf16.vlgmr.msra.gmra.mxu1 %v16435_v48 }
 0x3e2   : > { %13705 = vmatprep.mubr.msk.bf16.mxu1 %vm16038_vm6, %v16037_v15 }
 0x461   : > { %v1750_v16 = vpop.f32.mrf.mxu1  ;;  %v1793_v17 = vpop.f32.mrf.mxu0 }
 0x462   : > { %v1845_v27 = vmul.f32 0.0625, %v1750_v16 }
 0x463   : > { %v1752_v21 = vpop.f32.mrf.mxu1  ;;  %v1795_v22 = vpop.f32.mrf.mxu0 }
 0x464   : > { %v2090_v39 = vmul.f32 0.0625, %v1752_v21 }
 0x465   : > { %v1754_v23 = vpop.f32.mrf.mxu1  ;;  %v1797_v24 = vpop.f32.mrf.mxu0 }
 0x466   : > { %v1846_v25 = vmul.f32 0.0625, %v1754_v23  ;;  %v1848_v26 = vpack.c.bf16 %v1797_v24, %v1793_v17 }
 0x467   : > { %v1756_v31 = vpop.f32.mrf.mxu1  ;;  %v1799_v32 = vpop.f32.mrf.mxu0 }
 0x468   : > { %v1855_v28 = vsel %vm1850_vm7, %v1848_v26, 0  ;;  %1970 = vrot.lane.b32.xlu1 %v1848_v26, %s16039_s25  ;;  %v1847_v35 = vpack.c.bf16 %v1846_v25, %v1845_v27  ;;  %v2091_v33 = vmul.f32 0.0625, %v1756_v31  ;;  %v2093_v34 = vpack.c.bf16 %v1799_v32, %v1795_v22 }
 0x469   : > { %13698 = vmatpush3.bf16.xpose.msra.mxu0 %v1855_v28 }
 0x46a   : > { %13709 = vmatprep.subr.bf16.mxu0 %v16037_v15  ;;  %v2092_v40 = vpack.c.bf16 %v2091_v33, %v2090_v39  ;;  %v2099_v48 = vsel %vm1850_vm7, %v2093_v34, 0 }
 0x46c   : > { %1967 = vrot.lane.b32.xlu1 %v1847_v35, %s16039_s25 }
 0x470   : > { %2213 = vrot.lane.b32.xlu1 %v2093_v34, %s16039_s25  ;;  %13700 = vmatmul.mubr.msk.bf16.vlgmr.msra.gmra.mxu0 %vm1850_vm7, %v1847_v35 }
 0x471   : > { %13711 = vmatprep.mubr.msk.bf16.mxu0 %vm16038_vm6, %v16037_v15 }
 0x474   : > { %2210 = vrot.lane.b32.xlu1 %v2092_v40, %s16039_s25 }
 0x4a1   : > { %v1836_v41 = vpop.f32.mrf.mxu1 }
 0x4a3   : > { %v16455_v30 = vpop.f32.mrf.mxu1 }
 0x4a5   : > { %v1840_v42 = vpop.f32.mrf.mxu1 }
 0x4a6   : > { %v16457_v43 = vpack.c.bf16 %v1840_v42, %v1836_v41 }
 0x4a8   : > { %13704 = vmatpush3.bf16.msra.mxu1 %v16457_v43 }
 0x4a9   : > { %13715 = vmatprep.subr.bf16.mxu1 %v16037_v15 }
 0x4da   : > { %v1971_v44 = vpop.permute.xlu1 %1970 }
 0x4db   : > { %v1976_v29 = vsel %vm1850_vm7, %v1971_v44, 0 }
 0x4dc   : > { %13710 = vmatpush3.bf16.xpose.msra.mxu0 %v1976_v29 }
 0x4dd   : > { %13721 = vmatprep.subr.bf16.mxu0 %v16037_v15 }
 0x4de   : > { %v1968_v47 = vpop.permute.xlu1 %1967 }
 0x4e2   : > { %v2214_v49 = vpop.permute.xlu1 %2213 }
 0x4e3   : > { %13712 = vmatmul.mubr.msk.bf16.vlgmr.msra.gmra.mxu0 %vm1850_vm7, %v1968_v47  ;;  %v2219_v37 = vsel %vm1850_vm7, %v2214_v49, 0 }
 0x4e4   : > { %13722 = vmatpush3.bf16.xpose.msra.mxu0 %v2099_v48  ;;  %13723 = vmatprep.mubr.msk.bf16.mxu0 %vm16038_vm6, %v16037_v15 }
 0x4e5   : > { %13733 = vmatprep.subr.bf16.mxu0 %v16037_v15 }
 0x4e6   : > { %v2211_v38 = vpop.permute.xlu1 %2210 }
 0x4eb   : > { %13724 = vmatmul.mubr.msk.bf16.vlgmr.msra.gmra.mxu0 %vm1850_vm7, %v2092_v40 }
 0x4ec   : > { %13734 = vmatpush3.bf16.xpose.msra.mxu0 %v2219_v37  ;;  %13735 = vmatprep.mubr.msk.bf16.mxu0 %vm16038_vm6, %v16037_v15 }
 0x4f3   : > { %13736 = vmatmul.mubr.msk.bf16.vlgmr.msra.gmra.mxu0 %vm1850_vm7, %v2211_v38 }
 0x530   : > { %v1891_v55 = vpop.f32.mrf.mxu0 }
 0x531   : > { %v1892_v56 = vadd.f32 %v1891_v55, %v16476_v54 }
 0x532   : > { %v13701_v58 = vpop.f32.mrf.mxu0 }
 0x533   : > { %v1899_v59 = vsel %vm1898_vm10, %v1892_v56, -inf }
 0x534   : > { %1900 = vmax.xlane.f32.xlu0 %v1899_v59  ;;  %v1894_v60 = vpop.f32.mrf.mxu0 }
 0x535   : > { %v1895_v61 = vadd.f32 %v1894_v60, %v16480_v57 }
 0x536   : > { %v13702_v62 = vpop.f32.mrf.mxu0 }
 0x537   : > { %v1902_v63 = vsel %vm1898_vm10, %v1895_v61, -inf }
 0x538   : > { %1903 = vmax.xlane.f32.xlu1 %v1902_v63 }
 0x5a3   : > { %v2012_v0 = vpop.f32.mrf.mxu0 }
 0x5a4   : > { %v2013_v36 = vadd.f32 %v2012_v0, %v16476_v54 }
 0x5a5   : > { %v13713_v1 = vpop.f32.mrf.mxu0 }
 0x5a6   : > { %v2019_v2 = vsel %vm1898_vm10, %v2013_v36, -inf }
 0x5a7   : > { %2020 = vmax.xlane.f32.xlu0 %v2019_v2  ;;  %v2015_v3 = vpop.f32.mrf.mxu0 }
 0x5a8   : > { %v2016_v4 = vadd.f32 %v2015_v3, %v16480_v57 }
 0x5a9   : > { %v13714_v5 = vpop.f32.mrf.mxu0 }
 0x5aa   : > { %v2022_v6 = vsel %vm1898_vm10, %v2016_v4, -inf }
 0x5ab   : > { %2023 = vmax.xlane.f32.xlu0 %v2022_v6  ;;  %v2135_v7 = vpop.f32.mrf.mxu0 }
 0x5ac   : > { %v2136_v8 = vadd.f32 %v2135_v7, %v16476_v54 }
 0x5ad   : > { %v13725_v9 = vpop.f32.mrf.mxu0 }
 0x5ae   : > { %v2142_v10 = vsel %vm1898_vm10, %v2136_v8, -inf }
 0x5af   : > { %2143 = vmax.xlane.f32.xlu0 %v2142_v10  ;;  %v2138_v11 = vpop.f32.mrf.mxu0 }
 0x5b0   : > { %v2139_v12 = vadd.f32 %v2138_v11, %v16480_v57 }
 0x5b1   : > { %v13726_v13 = vpop.f32.mrf.mxu0 }
 0x5b2   : > { %v2145_v14 = vsel %vm1898_vm10, %v2139_v12, -inf  ;;  %v1842_v13 = vpop.f32.mrf.mxu1 }
 0x5b3   : > { %2146 = vmax.xlane.f32.xlu0 %v2145_v14  ;;  %v2255_v16 = vpop.f32.mrf.mxu0  ;;  %v2094_v14 = vpack.c.bf16 %v1842_v13, %v16455_v30  ;;  %v14322_v13 = vld [vmem:[#allocation11 + $0xd4] ss:$8 sps:$4 sm:$0xff]  }
 0x5b4   : > { %v2256_v17 = vadd.f32 %v2255_v16, %v16476_v54 }
 0x5b5   : > { %v13737_v21 = vpop.f32.mrf.mxu0 }
 0x5b6   : > { %v2262_v22 = vsel %vm1898_vm10, %v2256_v17, -inf }
 0x5b7   : > { %2263 = vmax.xlane.f32.xlu0 %v2262_v22  ;;  %v2258_v23 = vpop.f32.mrf.mxu0 }
 0x5b8   : > { %v2259_v24 = vadd.f32 %v2258_v23, %v16480_v57 }
 0x5b9   : > { %v13738_v25 = vpop.f32.mrf.mxu0 }
 0x5ba   : > { %v2265_v26 = vsel %vm1898_vm10, %v2259_v24, -inf }
 0x5bb   : > { %2266 = vmax.xlane.f32.xlu0 %v2265_v26 }
 0x5bd   : > { %v1901_v27 = vpop.xlane.xlu0 %1900 }
 0x5be   : > { %v1905_v28 = vsub.f32 %v1892_v56, %v1901_v27 }
 0x5c0   : > { %v1907_v35 = vmul.f32 1.442695, %v1905_v28 }
 0x5c1   : > { %v1904_v31 = vpop.xlane.xlu1 %1903 }
 0x5c2   : > { %15350 = vpow2.f32 %v1907_v35  ;;  %v1906_v32 = vsub.f32 %v1895_v61, %v1904_v31 }
 0x5c4   : > { %v1909_v33 = vmul.f32 1.442695, %v1906_v32 }
 0x5c6   : > { %15352 = vpow2.f32 %v1909_v33 }
 0x5cf   : > { %v15351_v34 = vpop.eup %15350 }
 0x5d0   : > { %v1911_v39 = vsel %vm1898_vm10, %v15351_v34, 0.0 }
 0x5d1   : > { %1912 = vadd.xlane.f32.xlu0 %v1911_v39 }
 0x5d3   : > { %v15353_v40 = vpop.eup %15352 }
 0x5d4   : > { %v1914_v41 = vsel %vm1898_vm10, %v15353_v40, 0.0 }
 0x5d5   : > { %1915 = vadd.xlane.f32.xlu0 %v1914_v41 }
 0x630   : > { %v2021_v42 = vpop.xlane.xlu0 %2020 }
 0x631   : > { %v2025_v44 = vsub.f32 %v2013_v36, %v2021_v42 }
 0x633   : > { %v2027_v29 = vmul.f32 1.442695, %v2025_v44 }
 0x634   : > { %v2024_v47 = vpop.xlane.xlu0 %2023 }
 0x635   : > { %15354 = vpow2.f32 %v2027_v29  ;;  %v2026_v48 = vsub.f32 %v2016_v4, %v2024_v47 }
 0x637   : > { %v2029_v49 = vmul.f32 1.442695, %v2026_v48 }
 0x638   : > { %v2144_v37 = vpop.xlane.xlu0 %2143 }
 0x639   : > { %15356 = vpow2.f32 %v2029_v49  ;;  %v2148_v38 = vsub.f32 %v2136_v8, %v2144_v37 }
 0x63b   : > { %v2150_v50 = vmul.f32 1.442695, %v2148_v38 }
 0x63c   : > { %v2147_v51 = vpop.xlane.xlu0 %2146 }
 0x63d   : > { %15358 = vpow2.f32 %v2150_v50  ;;  %v2149_v55 = vsub.f32 %v2139_v12, %v2147_v51 }
 0x63f   : > { %v2152_v56 = vmul.f32 1.442695, %v2149_v55 }
 0x640   : > { %v2264_v58 = vpop.xlane.xlu0 %2263 }
 0x641   : > { %15360 = vpow2.f32 %v2152_v56  ;;  %v2268_v59 = vsub.f32 %v2256_v17, %v2264_v58  ;;  %v14290_v58 = vld [vmem:[#allocation11 + $0x70] ss:$8 sps:$4 sm:$0xff]  }
 0x642   : > { %v15355_v60 = vpop.eup %15354 }
 0x643   : > { %v2270_v61 = vmul.f32 1.442695, %v2268_v59  ;;  %v2031_v62 = vsel %vm1898_vm10, %v15355_v60, 0.0  ;;  %v14292_v59 = vld [vmem:[#allocation11 + $0x74] ss:$8 sps:$4 sm:$0xff]  }
 0x644   : > { %2032 = vadd.xlane.f32.xlu0 %v2031_v62  ;;  %v2267_v63 = vpop.xlane.xlu0 %2266  ;;  %2547 = vmatprep.subr.bf16.mxu0 %v14292_v59  ;;  %v14298_v62 = vld [vmem:[#allocation11 + $0x54] ss:$8 sps:$4 sm:$0xff]  }
 0x645   : > { %15362 = vpow2.f32 %v2270_v61  ;;  %v2269_v0 = vsub.f32 %v2259_v24, %v2267_v63  ;;  %2548 = vmatpush1.bf16.msra.mxu0 %v14290_v58  ;;  %v14293_v61 = vld [vmem:[#allocation11 + $0x60] ss:$8 sps:$4 sm:$0xff]   ;;  %v14296_v63 = vld [vmem:[#allocation11 + $0x50] ss:$8 sps:$4 sm:$0xff]  }
 0x646   : > { %v15357_v36 = vpop.eup %15356 }
 0x647   : > { %v2272_v1 = vmul.f32 1.442695, %v2269_v0  ;;  %v2034_v2 = vsel %vm1898_vm10, %v15357_v36, 0.0  ;;  %v14301_v0 = vld [vmem:[#allocation11 + $0x44] ss:$8 sps:$4 sm:$0xff]  }
 0x648   : > { %2035 = vadd.xlane.f32.xlu1 %v2034_v2  ;;  %v14302_v2 = vld [vmem:[#allocation11 + $0x30] ss:$8 sps:$4 sm:$0xff]  }
 0x649   : > { %15364 = vpow2.f32 %v2272_v1  ;;  %v14304_v1 = vld [vmem:[#allocation11 + $0x34] ss:$8 sps:$4 sm:$0xff]  }
 0x64a   : > { %v15359_v3 = vpop.eup %15358 }
 0x64b   : > { %v2154_v4 = vsel %vm1898_vm10, %v15359_v3, 0.0 }
 0x64c   : > { %2155 = vadd.xlane.f32.xlu0 %v2154_v4  ;;  %v14305_v4 = vld [vmem:[#allocation11 + $0x20] ss:$8 sps:$4 sm:$0xff]  }
 0x64e   : > { %v15361_v5 = vpop.eup %15360 }
 0x64f   : > { %v2157_v6 = vsel %vm1898_vm10, %v15361_v5, 0.0 }
 0x650   : > { %2158 = vadd.xlane.f32.xlu1 %v2157_v6  ;;  %v14308_v6 = vld [vmem:[#allocation11 + $0x10] ss:$8 sps:$4 sm:$0xff]  }
 0x652   : > { %v15363_v7 = vpop.eup %15362 }
 0x653   : > { %v2274_v8 = vsel %vm1898_vm10, %v15363_v7, 0.0 }
 0x654   : > { %2275 = vadd.xlane.f32.xlu0 %v2274_v8  ;;  %v14311_v8 = vld [vmem:[#allocation11] ss:$8 sps:$4 sm:$0xff]  }
 0x656   : > { %v15365_v9 = vpop.eup %15364 }
 0x657   : > { %v2277_v10 = vsel %vm1898_vm10, %v15365_v9, 0.0 }
 0x658   : > { %2278 = vadd.xlane.f32.xlu1 %v2277_v10  ;;  %v14314_v10 = vld [vmem:[#allocation11 + $0xf0] ss:$8 sps:$4 sm:$0xff]  }
 0x65a   : > { %v1913_v11 = vpop.xlane.xlu0 %1912 }
 0x65b   : > { %15366 = vrcp.f32 %v1913_v11  ;;  %v14319_v11 = vld [vmem:[#allocation11 + $0xe4] ss:$8 sps:$4 sm:$0xff]  }
 0x65e   : > { %v1916_v12 = vpop.xlane.xlu0 %1915 }
 0x65f   : > { %15368 = vrcp.f32 %v1916_v12  ;;  %v14317_v12 = vld [vmem:[#allocation11 + $0xe0] ss:$8 sps:$4 sm:$0xff]  }
 0x668   : > { %v15367_v16 = vpop.eup %15366 }
 0x669   : > { %2286 = vrot.lane.b32.xlu1 %v2094_v14, %s16039_s25  ;;  %v1918_v21 = vmul.f32 %v15367_v16, %v15351_v34  ;;  %v14325_v16 = vld [vmem:[#allocation11 + $0xc4] ss:$8 sps:$4 sm:$0xff]  }
 0x66a   : > { %2043 = vrot.lane.b32.xlu0 %v16457_v43, %s16039_s25 }
 0x66c   : > { %v15369_v17 = vpop.eup %15368 }
 0x66d   : > { %v1920_v22 = vmul.f32 %v15369_v17, %v15353_v40  ;;  %v14323_v17 = vld [vmem:[#allocation11 + $0xc0] ss:$8 sps:$4 sm:$0xff]  }
 0x66f   : > { %v1921_v23 = vpack.c.bf16 %v1920_v22, %v1918_v21  ;;  %v14328_v21 = vld [vmem:[#allocation11 + $0xb4] ss:$8 sps:$4 sm:$0xff]   ;;  %v14326_v22 = vld [vmem:[#allocation11 + $0xb0] ss:$8 sps:$4 sm:$0xff]  }
 0x671   : > { %13706 = vmatmul.mubr.msk.bf16.vlgmr.msra.gmra.mxu1 %vm1898_vm10, %v1921_v23  ;;  %v14331_v23 = vld [vmem:[#allocation11 + $0xa4] ss:$8 sps:$4 sm:$0xff]  }
 0x672   : > { %13717 = vmatprep.mubr.msk.bf16.mxu1 %vm16038_vm6, %v16037_v15 }
 0x6cd   : > { %v2033_v24 = vpop.xlane.xlu0 %2032 }
 0x6ce   : > { %15370 = vrcp.f32 %v2033_v24 }
 0x6d1   : > { %v2036_v25 = vpop.xlane.xlu1 %2035 }
 0x6d2   : > { %15372 = vrcp.f32 %v2036_v25 }
 0x6d5   : > { %v2156_v30 = vpop.xlane.xlu0 %2155 }
 0x6d6   : > { %15374 = vrcp.f32 %v2156_v30  ;;  %v14329_v30 = vld [vmem:[#allocation11 + $0xa0] ss:$8 sps:$4 sm:$0xff]  }
 0x6d9   : > { %v2159_v26 = vpop.xlane.xlu1 %2158 }
 0x6da   : > { %15376 = vrcp.f32 %v2159_v26  ;;  %v14334_v26 = vld [vmem:[#allocation11 + $0x94] ss:$8 sps:$4 sm:$0xff]  }
 0x6db   : > { %v15371_v27 = vpop.eup %15370 }
 0x6dc   : > { %v2038_v35 = vmul.f32 %v15371_v27, %v15355_v60  ;;  %v14295_v60 = vld [vmem:[#allocation11 + $0x64] ss:$8 sps:$4 sm:$0xff]  }
 0x6dd   : > { %v2276_v28 = vpop.xlane.xlu0 %2275  ;;  %2549 = vmatprep.subr.bf16.mxu0 %v14295_v60 }
 0x6de   : > { %15378 = vrcp.f32 %v2276_v28  ;;  %2550 = vmatpush1.bf16.msra.mxu0 %v14293_v61 }
 0x6df   : > { %v15373_v43 = vpop.eup %15372  ;;  %2551 = vmatprep.subr.bf16.mxu0 %v14298_v62 }
 0x6e0   : > { %v2040_v31 = vmul.f32 %v15373_v43, %v15357_v36  ;;  %v14299_v36 = vld [vmem:[#allocation11 + $0x40] ss:$8 sps:$4 sm:$0xff]  }
 0x6e1   : > { %v2279_v32 = vpop.xlane.xlu1 %2278  ;;  %v2044_v33 = vpop.permute.xlu0 %2043 }
 0x6e2   : > { %15380 = vrcp.f32 %v2279_v32  ;;  %13716 = vmatpush3.bf16.msra.mxu1 %v2044_v33  ;;  %v2041_v34 = vpack.c.bf16 %v2040_v31, %v2038_v35  ;;  %2552 = vmatpush1.bf16.msra.mxu0 %v14296_v63  ;;  %v14332_v35 = vld [vmem:[#allocation11 + $0x90] ss:$8 sps:$4 sm:$0xff]   ;;  %v14335_v33 = vld [vmem:[#allocation11 + $0x80] ss:$8 sps:$4 sm:$0xff]  }
 0x6e3   : > { %13727 = vmatprep.subr.bf16.mxu1 %v16037_v15  ;;  %v15375_v39 = vpop.eup %15374  ;;  %2553 = vmatprep.subr.bf16.mxu0 %v14301_v0  ;;  %v2594_v0 = vld [vmem:[#allocation13] ss:$4 sm:$0x3] }
 0x6e4   : > { %v2161_v41 = vmul.f32 %v15375_v39, %v15359_v3  ;;  %v14307_v3 = vld [vmem:[#allocation11 + $0x24] ss:$8 sps:$4 sm:$0xff]  }
 0x6e5   : > { %13718 = vmatmul.mubr.msk.bf16.vlgmr.msra.gmra.mxu1 %vm1898_vm10, %v2041_v34  ;;  %v2287_v47 = vpop.permute.xlu1 %2286  ;;  %v14337_v34 = vld [vmem:[#allocation11 + $0x84] ss:$8 sps:$4 sm:$0xff]  }
 0x6e6   : > { %13728 = vmatpush3.bf16.msra.mxu1 %v2094_v14  ;;  %13729 = vmatprep.mubr.msk.bf16.mxu1 %vm16038_vm6, %v16037_v15  ;;  %v14320_v14 = vld [vmem:[#allocation11 + $0xd0] ss:$8 sps:$4 sm:$0xff]  }
 0x6e7   : > { %v15377_v40 = vpop.eup %15376  ;;  %13739 = vmatprep.subr.bf16.mxu1 %v16037_v15  ;;  %2554 = vmatpush1.bf16.msra.mxu0 %v14299_v36 }
 0x6e8   : > { %v2163_v42 = vmul.f32 %v15377_v40, %v15361_v5  ;;  %2555 = vmatprep.subr.bf16.mxu0 %v14304_v1  ;;  %v14310_v5 = vld [vmem:[#allocation11 + $0x14] ss:$8 sps:$4 sm:$0xff]  }
 0x6ea   : > { %v2164_v44 = vpack.c.bf16 %v2163_v42, %v2161_v41 }
 0x6eb   : > { %v15379_v29 = vpop.eup %15378  ;;  %2556 = vmatpush1.bf16.msra.mxu0 %v14302_v2  ;;  %v2599_v2 = vrot.slane %v2594_v0, %v16422_v19 }
 0x6ec   : > { %v2281_v49 = vmul.f32 %v15379_v29, %v15363_v7  ;;  %2557 = vmatprep.subr.bf16.mxu0 %v14307_v3  ;;  %v14313_v7 = vld [vmem:[#allocation11 + $0x4] ss:$8 sps:$4 sm:$0xff]   ;;  %v2603_v3 = vrot.slane %v2594_v0, %v16425_v20 }
 0x6ed   : > { %13730 = vmatmul.mubr.msk.bf16.vlgmr.msra.gmra.mxu1 %vm1898_vm10, %v2164_v44  ;;  %v2697_v0 = vld [vmem:[#allocation17 + $0xa8] sm:$0xff] }
 0x6ee   : > { %13740 = vmatpush3.bf16.msra.mxu1 %v2287_v47  ;;  %13741 = vmatprep.mubr.msk.bf16.mxu1 %vm16038_vm6, %v16037_v15 }
 0x6ef   : > { %v15381_v48 = vpop.eup %15380  ;;  %2558 = vmatpush1.bf16.msra.mxu0 %v14305_v4 }
 0x6f0   : > { %v2283_v37 = vmul.f32 %v15381_v48, %v15365_v9  ;;  %2559 = vmatprep.subr.bf16.mxu0 %v14310_v5  ;;  %v14316_v9 = vld [vmem:[#allocation11 + $0xf4] ss:$8 sps:$4 sm:$0xff]  }
 0x6f2   : > { %v2284_v38 = vpack.c.bf16 %v2283_v37, %v2281_v49 }
 0x6f3   : > { %2560 = vmatpush1.bf16.msra.mxu0 %v14308_v6 }
 0x6f4   : > { %2561 = vmatprep.subr.bf16.mxu0 %v14313_v7 }
 0x6f5   : > { %13742 = vmatmul.mubr.msk.bf16.vlgmr.msra.gmra.mxu1 %vm1898_vm10, %v2284_v38 }
 0x6f7   : > { %2562 = vmatpush1.bf16.msra.mxu0 %v14311_v8 }
 0x6f8   : > { %2563 = vmatprep.subr.bf16.mxu0 %v14316_v9 }
 0x6fb   : > { %2564 = vmatpush2.bf16.msra.mxu0 %v14314_v10 }
 0x6fc   : > { %2565 = vmatprep.subr.bf16.mxu0 %v14319_v11 }
 0x6ff   : > { %2566 = vmatpush2.bf16.msra.mxu0 %v14317_v12  ;;  %v2732_v12 = vld [vmem:[#allocation17 + $0x1c0] sm:$0xff] }
 0x700   : > { %2567 = vmatprep.subr.bf16.mxu0 %v14322_v13  ;;  %v2736_v13 = vld [vmem:[#allocation17 + $0x1e0] sm:$0xff] }
 0x703   : > { %2568 = vmatpush2.bf16.msra.mxu0 %v14320_v14  ;;  %v2733_v14 = vld [vmem:[#allocation17 + $0x1c8] sm:$0xff] }
 0x704   : > { %2569 = vmatprep.subr.bf16.mxu0 %v14325_v16  ;;  %v12626_v16 = vcombine.low %v2732_v12, %v2736_v13 }
 0x707   : > { %2570 = vmatpush2.bf16.msra.mxu0 %v14323_v17  ;;  %v2737_v17 = vld [vmem:[#allocation17 + $0x1e8] sm:$0xff] }
 0x708   : > { %2571 = vmatprep.subr.bf16.mxu0 %v14328_v21  ;;  %v2724_v21 = vld [vmem:[#allocation17 + $0x180] sm:$0xff] }
 0x70b   : > { %2572 = vmatpush2.bf16.msra.mxu0 %v14326_v22  ;;  %v12628_v22 = vcombine.low %v2733_v14, %v2737_v17 }
 0x70c   : > { %2573 = vmatprep.subr.bf16.mxu0 %v14331_v23  ;;  %v12629_v23 = vcombine.high %v2733_v14, %v2737_v17  ;;  %v2677_v14 = vld [vmem:[#allocation17 + $0x8] sm:$0xff] }
 0x70f   : > { %2574 = vmatpush2.bf16.msra.mxu0 %v14329_v30  ;;  %v2729_v30 = vld [vmem:[#allocation17 + $0x1a8] sm:$0xff] }
 0x710   : > { %2575 = vmatprep.subr.bf16.mxu0 %v14334_v26  ;;  %v2716_v26 = vld [vmem:[#allocation17 + $0x140] sm:$0xff] }
 0x713   : > { %2576 = vmatpush2.bf16.msra.mxu0 %v14332_v35  ;;  %v2721_v35 = vld [vmem:[#allocation17 + $0x168] sm:$0xff] }
 0x714   : > { %2577 = vmatprep.subr.bf16.mxu0 %v14337_v34 }
 0x717   : > { %2578 = vmatpush2.bf16.msra.mxu0 %v14335_v33 }
 0x718   : > { %3529 = vmatprep.subr.bf16.mxu0 %v12629_v23  ;;  %v2800_v23 = vld [vmem:[#allocation17 + $0x3e0] sm:$0xff] }
 0x731   : > { %v16521_v50 = vpop.f32.mrf.mxu1 }
 0x733   : > { %v13707_v51 = vpop.f32.mrf.mxu1 }
 0x735   : > { %v16523_v55 = vpop.f32.mrf.mxu1 }
 0x737   : > { %v13708_v56 = vpop.f32.mrf.mxu1 }
 0x7a5   : > { %v2083_v24 = vpop.f32.mrf.mxu1 }
 0x7a7   : > { %v13719_v25 = vpop.f32.mrf.mxu1 }
 0x7a8   : > { %v2725_v25 = vld [vmem:[#allocation17 + $0x188] sm:$0xff] }
 0x7a9   : > { %v2086_v27 = vpop.f32.mrf.mxu1 }
 0x7aa   : > { %v14073_v28 = vpack.i.bf16 %v2086_v27, %v2083_v24  ;;  %v12621_v27 = vcombine.high %v2725_v25, %v2729_v30 }
 0x7ab   : > { %v13720_v43 = vpop.f32.mrf.mxu1 }
 0x7ac   : > { %14074 = vrot.lane.b32.xlu0 %v14073_v28, %s16039_s25  ;;  %v2720_v28 = vld [vmem:[#allocation17 + $0x160] sm:$0xff]  ;;  %v2717_v43 = vld [vmem:[#allocation17 + $0x148] sm:$0xff] }
 0x7ad   : > { %v2202_v31 = vpop.f32.mrf.mxu1  ;;  %v12611_v33 = vcombine.high %v2716_v26, %v2720_v28  ;;  %v12613_v34 = vcombine.high %v2717_v43, %v2721_v35 }
 0x7af   : > { %v13731_v32 = vpop.f32.mrf.mxu1 }
 0x7b0   : > { %v12620_v32 = vcombine.low %v2725_v25, %v2729_v30  ;;  %v2801_v25 = vld [vmem:[#allocation17 + $0x3e8] sm:$0xff] }
 0x7b1   : > { %v2205_v39 = vpop.f32.mrf.mxu1 }
 0x7b3   : > { %v13732_v40 = vpop.f32.mrf.mxu1 }
 0x7b4   : > { %v2712_v40 = vld [vmem:[#allocation17 + $0x120] sm:$0xff] }
 0x7b5   : > { %v2326_v41 = vpop.f32.mrf.mxu1 }
 0x7b7   : > { %v13743_v42 = vpop.f32.mrf.mxu1 }
 0x7b8   : > { %v2713_v42 = vld [vmem:[#allocation17 + $0x128] sm:$0xff] }
 0x7b9   : > { %v2329_v44 = vpop.f32.mrf.mxu1 }
 0x7ba   : > { %v14068_v29 = vpack.i.bf16 %v2329_v44, %v2326_v41  ;;  %v2709_v41 = vld [vmem:[#allocation17 + $0x108] sm:$0xff]  ;;  %v12610_v44 = vcombine.low %v2716_v26, %v2720_v28 }
 0x7bb   : > { %v13744_v47 = vpop.f32.mrf.mxu1 }
 0x7bc   : > { %14069 = vrot.lane.b32.xlu1 %v14068_v29, %s16039_s25  ;;  %v12612_v29 = vcombine.low %v2717_v43, %v2721_v35 }
 0x81e   : > { %v14075_v48 = vpop.permute.xlu0 %14074 }
 0x81f   : > { %v14077_v49 = vunpack.i.h.bf16 %v14075_v48  ;;  %v14076_v37 = vunpack.i.l.bf16 %v14075_v48  ;;  %v12605_v48 = vcombine.high %v2709_v41, %v2713_v42 }
 0x821   : > { %v2350_v58 = vsel %vm1850_vm7, %v16523_v55, %v14077_v49  ;;  %v2349_v59 = vsel %vm1850_vm7, %v16521_v50, %v14076_v37  ;;  %v2700_v49 = vld [vmem:[#allocation17 + $0xc0] sm:$0xff] }
 0x822   : > { %v2353_v63 = vpack.c.bf16 %v2350_v58, %v2349_v59  ;;  %v2704_v37 = vld [vmem:[#allocation17 + $0xe0] sm:$0xff]  ;;  %v12604_v58 = vcombine.low %v2709_v41, %v2713_v42 }
 0x823   : > { %v12595_v59 = vcombine.high %v2700_v49, %v2704_v37 }
 0x82e   : > { %v14070_v38 = vpop.permute.xlu1 %14069 }
 0x82f   : > { %v14072_v51 = vunpack.i.h.bf16 %v14070_v38  ;;  %v14071_v56 = vunpack.i.l.bf16 %v14070_v38  ;;  %v2701_v38 = vld [vmem:[#allocation17 + $0xc8] sm:$0xff] }
 0x831   : > { %v2351_v60 = vsel %vm1850_vm7, %v2202_v31, %v14071_v56  ;;  %v2352_v61 = vsel %vm1850_vm7, %v2205_v39, %v14072_v51  ;;  %v2708_v39 = vld [vmem:[#allocation17 + $0x100] sm:$0xff]  ;;  %v2705_v51 = vld [vmem:[#allocation17 + $0xe8] sm:$0xff] }
 0x832   : > { %v2354_v62 = vpack.c.bf16 %v2352_v61, %v2351_v60  ;;  %v12603_v47 = vcombine.high %v2708_v39, %v2712_v40  ;;  %v12602_v56 = vcombine.low %v2708_v39, %v2712_v40  ;;  %v12597_v60 = vcombine.high %v2701_v38, %v2705_v51  ;;  %v2692_v61 = vld [vmem:[#allocation17 + $0x80] sm:$0xff] }
 0x834   : > { %2579 = vmatprep.mubr.bf16.mxu0 %v2354_v62  ;;  %v2696_v62 = vld [vmem:[#allocation17 + $0xa0] sm:$0xff] }
 0x835   : > { %2580 = vmatmul.mubr.bf16.vlgmr.msra.gmra.mxu0 %v2353_v63  ;;  %v2693_v63 = vld [vmem:[#allocation17 + $0x88] sm:$0xff] }
 0x836   : > { %3530 = vmatpush1.bf16.msra.mxu0 %v12628_v22  ;;  %v2796_v22 = vld [vmem:[#allocation17 + $0x3c0] sm:$0xff] }
 0x837   : > { %3531 = vmatprep.subr.bf16.mxu0 %v12621_v27  ;;  %v12691_v27 = vcombine.high %v2796_v22, %v2800_v23  ;;  %v12690_v43 = vcombine.low %v2796_v22, %v2800_v23  ;;  %v2760_v23 = vld [vmem:[#allocation17 + $0x2a0] sm:$0xff] }
 0x83a   : > { %3532 = vmatpush1.bf16.msra.mxu0 %v12620_v32 }
 0x83b   : > { %3533 = vmatprep.subr.bf16.mxu0 %v12613_v34 }
 0x83e   : > { %3534 = vmatpush1.bf16.msra.mxu0 %v12612_v29 }
 0x83f   : > { %3535 = vmatprep.subr.bf16.mxu0 %v12605_v48 }
 0x842   : > { %3536 = vmatpush1.bf16.msra.mxu0 %v12604_v58 }
 0x843   : > { %3537 = vmatprep.subr.bf16.mxu0 %v12597_v60 }
 0x8f5   : > { %v2581_v36 = vpop.f32.mrf.mxu0 }
 0x8f6   : > { %v2590_v1 = vadd.f32 %v2581_v36, %v16386_v45  ;;  %v12594_v36 = vcombine.low %v2700_v49, %v2704_v37 }
 0x8f7   : > { %v2583_v55 = vpop.f32.mrf.mxu0 }
 0x8f8   : > { %v2591_v4 = vadd.f32 %v2583_v55, %v16388_v46  ;;  %v16537_v5 = vadd.f32 %v2599_v2, %v2590_v1  ;;  %v12596_v1 = vcombine.low %v2701_v38, %v2705_v51  ;;  %v2684_v55 = vld [vmem:[#allocation17 + $0x40] sm:$0xff] }
 0x8f9   : > { %v2585_v50 = vpop.f32.mrf.mxu0  ;;  %v2788_v38 = vld [vmem:[#allocation17 + $0x380] sm:$0xff] }
 0x8fa   : > { %v16539_v6 = vadd.f32 %v2603_v3, %v2591_v4  ;;  %v2592_v7 = vadd.f32 %v2585_v50, %v16392_v52  ;;  %v12627_v52 = vcombine.high %v2732_v12, %v2736_v13  ;;  %v2688_v4 = vld [vmem:[#allocation17 + $0x60] sm:$0xff]  ;;  %v2685_v50 = vld [vmem:[#allocation17 + $0x48] sm:$0xff]  ;;  %3538 = vmatpush1.bf16.msra.mxu0 %v12596_v1 }
 0x8fb   : > { %v2587_v8 = vpop.f32.mrf.mxu0  ;;  %v2676_v12 = vld [vmem:[#allocation17] sm:$0xff] }
 0x8fc   : > { %v2593_v9 = vadd.f32 %v2587_v8, %v16394_v53  ;;  %v2612_v45 = vadd.f32 %v16539_v6, %v16537_v5  ;;  %v16545_v10 = vadd.f32 %v2599_v2, %v2592_v7  ;;  %v2728_v53 = vld [vmem:[#allocation17 + $0x1a0] sm:$0xff]  ;;  %3486 = vmatprep.subr.bf16.mxu1 %v12627_v52  ;;  %v12587_v2 = vcombine.high %v2692_v61, %v2696_v62  ;;  %v2689_v7 = vld [vmem:[#allocation17 + $0x68] sm:$0xff] }
 0x8fd   : > { %v12619_v24 = vcombine.high %v2724_v21, %v2728_v53  ;;  %3487 = vmatpush1.bf16.msra.mxu1 %v12626_v16  ;;  %v12618_v31 = vcombine.low %v2724_v21, %v2728_v53  ;;  %v12586_v8 = vcombine.low %v2692_v61, %v2696_v62  ;;  %v2680_v13 = vld [vmem:[#allocation17 + $0x20] sm:$0xff]  ;;  %v2681_v16 = vld [vmem:[#allocation17 + $0x28] sm:$0xff]  ;;  %v12578_v52 = vcombine.low %v2684_v55, %v2688_v4 }
 0x8fe   : > { %v16547_v11 = vadd.f32 %v2603_v3, %v2593_v9  ;;  %2613 = vadd.xlane.f32.xlu1 %v2612_v45  ;;  %v12589_v3 = vcombine.high %v2693_v63, %v2697_v0  ;;  %v12588_v9 = vcombine.low %v2693_v63, %v2697_v0  ;;  %v12579_v45 = vcombine.high %v2684_v55, %v2688_v4  ;;  %v2792_v51 = vld [vmem:[#allocation17 + $0x3a0] sm:$0xff] }
 0x8ff   : > { %3488 = vmatprep.subr.bf16.mxu1 %v12619_v24  ;;  %v12580_v17 = vcombine.low %v2685_v50, %v2689_v7  ;;  %v12571_v21 = vcombine.high %v2676_v12, %v2680_v13  ;;  %v12573_v53 = vcombine.high %v2677_v14, %v2681_v16  ;;  %v2797_v24 = vld [vmem:[#allocation17 + $0x3c8] sm:$0xff]  ;;  %v12570_v30 = vcombine.low %v2676_v12, %v2680_v13  ;;  %v2780_v63 = vld [vmem:[#allocation17 + $0x340] sm:$0xff] }
 0x900   : > { %v2615_v46 = vadd.f32 %v16547_v11, %v16545_v10  ;;  %3539 = vmatprep.subr.bf16.mxu0 %v12589_v3  ;;  %v12572_v26 = vcombine.low %v2677_v14, %v2681_v16  ;;  %v12693_v28 = vcombine.high %v2797_v24, %v2801_v25  ;;  %v12692_v35 = vcombine.low %v2797_v24, %v2801_v25  ;;  %v2784_v0 = vld [vmem:[#allocation17 + $0x360] sm:$0xff]  ;;  %v2757_v24 = vld [vmem:[#allocation17 + $0x288] sm:$0xff] }
 0x901   : > { %3489 = vmatpush1.bf16.msra.mxu1 %v12618_v31  ;;  %3540 = vmatpush1.bf16.msra.mxu0 %v12588_v9  ;;  %v12683_v58 = vcombine.high %v2788_v38, %v2792_v51  ;;  %v12682_v60 = vcombine.low %v2788_v38, %v2792_v51  ;;  %v12675_v1 = vcombine.high %v2780_v63, %v2784_v0  ;;  %v2764_v12 = vld [vmem:[#allocation17 + $0x2c0] sm:$0xff]  ;;  %v2761_v25 = vld [vmem:[#allocation17 + $0x2a8] sm:$0xff] }
 0x902   : > { %2616 = vadd.xlane.f32.xlu0 %v2615_v46  ;;  %3490 = vmatprep.subr.bf16.mxu1 %v12611_v33  ;;  %v12581_v46 = vcombine.high %v2685_v50, %v2689_v7  ;;  %v12674_v3 = vcombine.low %v2780_v63, %v2784_v0  ;;  %v2772_v50 = vld [vmem:[#allocation17 + $0x300] sm:$0xff]  ;;  %v2735_v63 = vld [vmem:[#allocation17 + $0x1d8] sm:$0xff] }
 0x903   : > { %v2776_v7 = vld [vmem:[#allocation17 + $0x320] sm:$0xff] }
 0x904   : > { %3541 = vmatprep.subr.bf16.mxu0 %v12581_v46  ;;  %v12666_v9 = vcombine.low %v2772_v50, %v2776_v7  ;;  %v2777_v46 = vld [vmem:[#allocation17 + $0x328] sm:$0xff]  ;;  %v2768_v13 = vld [vmem:[#allocation17 + $0x2e0] sm:$0xff] }
 0x905   : > { %3491 = vmatpush1.bf16.msra.mxu1 %v12610_v44  ;;  %3542 = vmatpush1.bf16.msra.mxu0 %v12580_v17  ;;  %v2765_v17 = vld [vmem:[#allocation17 + $0x2c8] sm:$0xff] }
 0x906   : > { %3492 = vmatprep.subr.bf16.mxu1 %v12603_v47  ;;  %3543 = vmatprep.subr.bf16.mxu0 %v12573_v53  ;;  %v2756_v53 = vld [vmem:[#allocation17 + $0x280] sm:$0xff] }
 0x909   : > { %3493 = vmatpush1.bf16.msra.mxu1 %v12602_v56  ;;  %3544 = vmatpush1.bf16.msra.mxu0 %v12572_v26  ;;  %v2789_v56 = vld [vmem:[#allocation17 + $0x388] sm:$0xff] }
 0x90a   : > { %3494 = vmatprep.subr.bf16.mxu1 %v12595_v59  ;;  %3545 = vmatprep.subr.bf16.mxu0 %v12693_v28  ;;  %v2793_v59 = vld [vmem:[#allocation17 + $0x3a8] sm:$0xff]  ;;  %v12653_v28 = vcombine.high %v2757_v24, %v2761_v25 }
 0x90b   : > { %v12684_v61 = vcombine.low %v2789_v56, %v2793_v59  ;;  %v12685_v62 = vcombine.high %v2789_v56, %v2793_v59 }
 0x90d   : > { %3495 = vmatpush1.bf16.msra.mxu1 %v12594_v36  ;;  %3546 = vmatpush2.bf16.msra.mxu0 %v12692_v35  ;;  %v2781_v36 = vld [vmem:[#allocation17 + $0x348] sm:$0xff]  ;;  %v2752_v35 = vld [vmem:[#allocation17 + $0x260] sm:$0xff] }
 0x90e   : > { %3496 = vmatprep.subr.bf16.mxu1 %v12587_v2  ;;  %3547 = vmatprep.subr.bf16.mxu0 %v12685_v62  ;;  %v2785_v2 = vld [vmem:[#allocation17 + $0x368] sm:$0xff]  ;;  %v2738_v62 = vld [vmem:[#allocation17 + $0x1f0] sm:$0xff] }
 0x90f   : > { %v12676_v55 = vcombine.low %v2781_v36, %v2785_v2  ;;  %v12677_v4 = vcombine.high %v2781_v36, %v2785_v2  ;;  %v2739_v36 = vld [vmem:[#allocation17 + $0x1f8] sm:$0xff] }
 0x910   : > { %v12632_v2 = vcombine.low %v2735_v63, %v2739_v36 }
 0x911   : > { %3497 = vmatpush1.bf16.msra.mxu1 %v12586_v8  ;;  %3548 = vmatpush2.bf16.msra.mxu0 %v12684_v61  ;;  %v2773_v8 = vld [vmem:[#allocation17 + $0x308] sm:$0xff]  ;;  %v2734_v61 = vld [vmem:[#allocation17 + $0x1d0] sm:$0xff] }
 0x912   : > { %3498 = vmatprep.subr.bf16.mxu1 %v12579_v45  ;;  %3549 = vmatprep.subr.bf16.mxu0 %v12677_v4  ;;  %v12667_v45 = vcombine.high %v2772_v50, %v2776_v7  ;;  %v12668_v14 = vcombine.low %v2773_v8, %v2777_v46  ;;  %v12669_v16 = vcombine.high %v2773_v8, %v2777_v46 }
 0x913   : > { %v12631_v0 = vcombine.high %v2734_v61, %v2738_v62 }
 0x915   : > { %3499 = vmatpush1.bf16.msra.mxu1 %v12578_v52  ;;  %3550 = vmatpush2.bf16.msra.mxu0 %v12676_v55  ;;  %v12659_v52 = vcombine.high %v2764_v12, %v2768_v13 }
 0x916   : > { %3500 = vmatprep.subr.bf16.mxu1 %v12571_v21  ;;  %v2769_v21 = vld [vmem:[#allocation17 + $0x2e8] sm:$0xff]  ;;  %3551 = vmatprep.subr.bf16.mxu0 %v12669_v16 }
 0x917   : > { %v12661_v22 = vcombine.high %v2765_v17, %v2769_v21  ;;  %v12660_v26 = vcombine.low %v2765_v17, %v2769_v21 }
 0x919   : > { %3501 = vmatpush1.bf16.msra.mxu1 %v12570_v30  ;;  %v12658_v30 = vcombine.low %v2764_v12, %v2768_v13  ;;  %3552 = vmatpush2.bf16.msra.mxu0 %v12668_v14  ;;  %v2611_v12 = vld [vmem:[#allocation16] ss:$4 sm:$0x3] }
 0x91a   : > { %3502 = vmatprep.subr.bf16.mxu1 %v12691_v27  ;;  %v12651_v27 = vcombine.high %v2756_v53, %v2760_v23  ;;  %3553 = vmatprep.subr.bf16.mxu0 %v12661_v22  ;;  %v2667_v21 = vrot.slane %v2611_v12, %v16425_v20 }
 0x91d   : > { %3503 = vmatpush2.bf16.msra.mxu1 %v12690_v43  ;;  %v2748_v43 = vld [vmem:[#allocation17 + $0x240] sm:$0xff]  ;;  %3554 = vmatpush2.bf16.msra.mxu0 %v12660_v26 }
 0x91e   : > { %3504 = vmatprep.subr.bf16.mxu1 %v12683_v58  ;;  %3555 = vmatprep.subr.bf16.mxu0 %v12653_v28  ;;  %v12642_v38 = vcombine.low %v2748_v43, %v2752_v35 }
 0x921   : > { %3505 = vmatpush2.bf16.msra.mxu1 %v12682_v60 }
 0x922   : > { %3506 = vmatprep.subr.bf16.mxu1 %v12675_v1  ;;  %v12630_v1 = vcombine.low %v2734_v61, %v2738_v62 }
 0x925   : > { %3507 = vmatpush2.bf16.msra.mxu1 %v12674_v3  ;;  %v12633_v3 = vcombine.high %v2735_v63, %v2739_v36  ;;  %v2702_v36 = vld [vmem:[#allocation17 + $0xd0] sm:$0xff] }
 0x926   : > { %3508 = vmatprep.subr.bf16.mxu1 %v12667_v45  ;;  %v2610_v45 = vld [vmem:[#allocation14] ss:$4 sm:$0x3] }
 0x927   : > { %v2652_v14 = vrot.slane %v2610_v45, %v16425_v20 }
 0x929   : > { %3509 = vmatpush2.bf16.msra.mxu1 %v12666_v9 }
 0x92a   : > { %3510 = vmatprep.subr.bf16.mxu1 %v12659_v52  ;;  %v2648_v52 = vrot.slane %v2610_v45, %v16422_v19  ;;  %v2695_v45 = vld [vmem:[#allocation17 + $0x98] sm:$0xff] }
 0x92d   : > { %3511 = vmatpush2.bf16.msra.mxu1 %v12658_v30 }
 0x92e   : > { %3512 = vmatprep.subr.bf16.mxu1 %v12651_v27 }
 0x987   : > { %v2614_v31 = vpop.xlane.xlu1 %2613 }
 0x988   : > { %v2618_v32 = vmul.f32 0.00390625, %v2614_v31  ;;  %v2749_v31 = vld [vmem:[#allocation17 + $0x248] sm:$0xff] }
 0x98a   : > { %v16552_v33 = vsub.f32 %v16537_v5, %v2618_v32  ;;  %v16555_v34 = vsub.f32 %v16539_v6, %v2618_v32  ;;  %v2753_v32 = vld [vmem:[#allocation17 + $0x268] sm:$0xff] }
 0x98b   : > { %v2617_v39 = vpop.xlane.xlu0 %2616  ;;  %v12644_v51 = vcombine.low %v2749_v31, %v2753_v32 }
 0x98c   : > { %v2619_v40 = vmul.f32 0.00390625, %v2617_v39  ;;  %v2624_v41 = vmul.f32 %v16552_v33, %v16552_v33  ;;  %v2625_v42 = vmul.f32 %v16555_v34, %v16555_v34  ;;  %v12650_v39 = vcombine.low %v2756_v53, %v2760_v23 }
 0x98d   : > { %v2663_v53 = vrot.slane %v2611_v12, %v16422_v19 }
 0x98e   : > { %v16562_v44 = vsub.f32 %v16545_v10, %v2619_v40  ;;  %v16565_v29 = vsub.f32 %v16547_v11, %v2619_v40  ;;  %v2628_v47 = vadd.f32 %v2625_v42, %v2624_v41  ;;  %v12652_v40 = vcombine.low %v2757_v24, %v2761_v25  ;;  %3513 = vmatpush2.bf16.msra.mxu1 %v12650_v39 }
 0x98f   : > { %v12643_v41 = vcombine.high %v2748_v43, %v2752_v35  ;;  %v12645_v42 = vcombine.high %v2749_v31, %v2753_v32  ;;  %v2730_v35 = vld [vmem:[#allocation17 + $0x1b0] sm:$0xff]  ;;  %v2727_v31 = vld [vmem:[#allocation17 + $0x198] sm:$0xff] }
 0x990   : > { %2629 = vadd.xlane.f32.xlu0 %v2628_v47  ;;  %v2626_v48 = vmul.f32 %v16562_v44, %v16562_v44  ;;  %v2627_v49 = vmul.f32 %v16565_v29, %v16565_v29  ;;  %v2740_v47 = vld [vmem:[#allocation17 + $0x200] sm:$0xff]  ;;  %3556 = vmatpush2.bf16.msra.mxu0 %v12652_v40  ;;  %v2731_v32 = vld [vmem:[#allocation17 + $0x1b8] sm:$0xff] }
 0x991   : > { %3514 = vmatprep.subr.bf16.mxu1 %v12643_v41  ;;  %3557 = vmatprep.subr.bf16.mxu0 %v12645_v42  ;;  %v2718_v41 = vld [vmem:[#allocation17 + $0x150] sm:$0xff]  ;;  %v12625_v42 = vcombine.high %v2727_v31, %v2731_v32 }
 0x992   : > { %v2631_v37 = vadd.f32 %v2627_v49, %v2626_v48  ;;  %v2744_v48 = vld [vmem:[#allocation17 + $0x220] sm:$0xff]  ;;  %v2741_v49 = vld [vmem:[#allocation17 + $0x208] sm:$0xff]  ;;  %3515 = vmatpush2.bf16.msra.mxu1 %v12642_v38 }
 0x993   : > { %v12635_v56 = vcombine.high %v2740_v47, %v2744_v48  ;;  %v12634_v59 = vcombine.low %v2740_v47, %v2744_v48  ;;  %v2719_v47 = vld [vmem:[#allocation17 + $0x158] sm:$0xff] }
 0x994   : > { %2632 = vadd.xlane.f32.xlu1 %v2631_v37  ;;  %v2745_v37 = vld [vmem:[#allocation17 + $0x228] sm:$0xff]  ;;  %3558 = vmatpush2.bf16.msra.mxu0 %v12644_v51  ;;  %v2723_v48 = vld [vmem:[#allocation17 + $0x178] sm:$0xff] }
 0x995   : > { %v12637_v58 = vcombine.high %v2741_v49, %v2745_v37  ;;  %3516 = vmatprep.subr.bf16.mxu1 %v12635_v56  ;;  %v12636_v60 = vcombine.low %v2741_v49, %v2745_v37  ;;  %v12624_v37 = vcombine.low %v2727_v31, %v2731_v32  ;;  %v12617_v51 = vcombine.high %v2719_v47, %v2723_v48  ;;  %v2710_v56 = vld [vmem:[#allocation17 + $0x110] sm:$0xff] }
 0x996   : > { %3517 = vmatpush2.bf16.msra.mxu1 %v12634_v59  ;;  %v2711_v59 = vld [vmem:[#allocation17 + $0x118] sm:$0xff]  ;;  %v12616_v62 = vcombine.low %v2719_v47, %v2723_v48  ;;  %v2798_v31 = vld [vmem:[#allocation17 + $0x3d0] sm:$0xff] }
 0x997   : > { %3559 = vmatprep.subr.bf16.mxu0 %v12637_v58  ;;  %3572 = vmatprep.subr.bf16.mxu1 %v12631_v0  ;;  %v2714_v58 = vld [vmem:[#allocation17 + $0x130] sm:$0xff] }
 0x998   : > { %3560 = vmatpush2.bf16.msra.mxu0 %v12636_v60  ;;  %v2715_v60 = vld [vmem:[#allocation17 + $0x138] sm:$0xff]  ;;  %v12607_v63 = vcombine.high %v2710_v56, %v2714_v58  ;;  %v2802_v32 = vld [vmem:[#allocation17 + $0x3f0] sm:$0xff] }
 0x999   : > { %3615 = vmatprep.subr.bf16.mxu0 %v12633_v3  ;;  %v12609_v0 = vcombine.high %v2711_v59, %v2715_v60  ;;  %v2707_v3 = vld [vmem:[#allocation17 + $0xf8] sm:$0xff]  ;;  %v2790_v48 = vld [vmem:[#allocation17 + $0x390] sm:$0xff] }
 0xa19   : > { %v2630_v55 = vpop.xlane.xlu0 %2629 }
 0xa1a   : > { %v2634_v4 = vmul.f32 0.00390625, %v2630_v55  ;;  %v12606_v55 = vcombine.low %v2710_v56, %v2714_v58 }
 0xa1c   : > { %v2636_v50 = vadd.f32 1e-05, %v2634_v4  ;;  %v12608_v4 = vcombine.low %v2711_v59, %v2715_v60  ;;  %v2782_v60 = vld [vmem:[#allocation17 + $0x350] sm:$0xff] }
 0xa1d   : > { %v2633_v7 = vpop.xlane.xlu1 %2632 }
 0xa1e   : > { %15382 = vrsqrt.f32 %v2636_v50  ;;  %v2635_v8 = vmul.f32 0.00390625, %v2633_v7 }
 0xa20   : > { %v2637_v9 = vadd.f32 1e-05, %v2635_v8  ;;  %v2694_v8 = vld [vmem:[#allocation17 + $0x90] sm:$0xff] }
 0xa22   : > { %15384 = vrsqrt.f32 %v2637_v9  ;;  %v2698_v9 = vld [vmem:[#allocation17 + $0xb0] sm:$0xff] }
 0xa2b   : > { %v15383_v46 = vpop.eup %15382 }
 0xa2c   : > { %v2641_v13 = vmul.f32 %v15383_v46, %v16555_v34  ;;  %v2640_v16 = vmul.f32 %v15383_v46, %v16552_v33  ;;  %v2726_v33 = vld [vmem:[#allocation17 + $0x190] sm:$0xff]  ;;  %v2699_v46 = vld [vmem:[#allocation17 + $0xb8] sm:$0xff] }
 0xa2d   : > { %v12622_v49 = vcombine.low %v2726_v33, %v2730_v35 }
 0xa2e   : > { %v2656_v23 = vmul.f32 %v2652_v14, %v2641_v13  ;;  %v2655_v25 = vmul.f32 %v2648_v52, %v2640_v16  ;;  %v12593_v16 = vcombine.high %v2695_v45, %v2699_v46 }
 0xa2f   : > { %v15385_v17 = vpop.eup %15384 }
 0xa30   : > { %v2643_v22 = vmul.f32 %v15385_v17, %v16565_v29  ;;  %v2642_v24 = vmul.f32 %v15385_v17, %v16562_v44  ;;  %v2671_v34 = vadd.f32 %v2667_v21, %v2656_v23  ;;  %v2670_v28 = vadd.f32 %v2663_v53, %v2655_v25  ;;  %v2722_v44 = vld [vmem:[#allocation17 + $0x170] sm:$0xff] }
 0xa31   : > { %v12623_v29 = vcombine.high %v2726_v33, %v2730_v35  ;;  %v12615_v38 = vcombine.high %v2718_v41, %v2722_v44  ;;  %v12614_v61 = vcombine.low %v2718_v41, %v2722_v44  ;;  %v2690_v17 = vld [vmem:[#allocation17 + $0x70] sm:$0xff]  ;;  %v12592_v23 = vcombine.low %v2695_v45, %v2699_v46  ;;  %v2803_v41 = vld [vmem:[#allocation17 + $0x3f8] sm:$0xff] }
 0xa32   : > { %v2658_v30 = vmul.f32 %v2652_v14, %v2643_v22  ;;  %v2657_v26 = vmul.f32 %v2648_v52, %v2642_v24  ;;  %v12591_v14 = vcombine.high %v2694_v8, %v2698_v9  ;;  %v2686_v52 = vld [vmem:[#allocation17 + $0x50] sm:$0xff]  ;;  %v12590_v22 = vcombine.low %v2694_v8, %v2698_v9 }
 0xa33   : > { %v12583_v24 = vcombine.high %v2686_v52, %v2690_v17  ;;  %v12695_v44 = vcombine.high %v2798_v31, %v2802_v32  ;;  %v2766_v46 = vld [vmem:[#allocation17 + $0x2d0] sm:$0xff] }
 0xa34   : > { %v2673_v27 = vadd.f32 %v2667_v21, %v2658_v30  ;;  %v2672_v43 = vadd.f32 %v2663_v53, %v2657_v26  ;;  %v2687_v21 = vld [vmem:[#allocation17 + $0x58] sm:$0xff]  ;;  %v2678_v30 = vld [vmem:[#allocation17 + $0x10] sm:$0xff] }
 0xa35   : > { %v2691_v53 = vld [vmem:[#allocation17 + $0x78] sm:$0xff]  ;;  %v2682_v26 = vld [vmem:[#allocation17 + $0x30] sm:$0xff] }
 0xa36   : > { %v2675_v39 = vpack.c.bf16 %v2673_v27, %v2671_v34  ;;  %v16579_v40 = vpack.c.bf16 %v2672_v43, %v2670_v28  ;;  %v12585_v25 = vcombine.high %v2687_v21, %v2691_v53  ;;  %v2679_v34 = vld [vmem:[#allocation17 + $0x18] sm:$0xff]  ;;  %v12582_v28 = vcombine.low %v2686_v52, %v2690_v17 }
 0xa37   : > { %v2683_v27 = vld [vmem:[#allocation17 + $0x38] sm:$0xff]  ;;  %v12584_v43 = vcombine.low %v2687_v21, %v2691_v53  ;;  %v12575_v33 = vcombine.high %v2678_v30, %v2682_v26  ;;  %v2758_v53 = vld [vmem:[#allocation17 + $0x290] sm:$0xff] }
 0xa38   : > { %3518 = vmatprep.mubr.bf16.mxu1 %v2675_v39  ;;  %3561 = vmatprep.mubr.bf16.mxu0 %v2675_v39  ;;  %v12577_v35 = vcombine.high %v2679_v34, %v2683_v27 }
 0xa39   : > { %3519 = vmatmul.mubr.bf16.vlgmr.msra.gmra.mxu1 %v16579_v40  ;;  %3562 = vmatmul.mubr.bf16.vlgmr.msra.gmra.mxu0 %v16579_v40 }
 0xa3a   : > { %3573 = vmatpush1.bf16.msra.mxu1 %v12630_v1  ;;  %3616 = vmatpush1.bf16.msra.mxu0 %v12632_v2  ;;  %v2706_v1 = vld [vmem:[#allocation17 + $0xf0] sm:$0xff]  ;;  %v2703_v2 = vld [vmem:[#allocation17 + $0xd8] sm:$0xff] }
 0xa3b   : > { %3604 = vmatprep.mubr.bf16.mxu1 %v2675_v39  ;;  %3647 = vmatprep.mubr.bf16.mxu0 %v2675_v39  ;;  %v12599_v50 = vcombine.high %v2702_v36, %v2706_v1  ;;  %v12601_v7 = vcombine.high %v2703_v2, %v2707_v3  ;;  %v12598_v12 = vcombine.low %v2702_v36, %v2706_v1  ;;  %v2799_v39 = vld [vmem:[#allocation17 + $0x3d8] sm:$0xff] }
 0xa3c   : > { %3574 = vmatprep.subr.bf16.mxu1 %v12623_v29  ;;  %3617 = vmatprep.subr.bf16.mxu0 %v12625_v42  ;;  %v12600_v13 = vcombine.low %v2703_v2, %v2707_v3  ;;  %v12574_v29 = vcombine.low %v2678_v30, %v2682_v26  ;;  %v12576_v42 = vcombine.low %v2679_v34, %v2683_v27  ;;  %v2774_v3 = vld [vmem:[#allocation17 + $0x310] sm:$0xff] }
 0xa3d   : > { %v12697_v47 = vcombine.high %v2799_v39, %v2803_v41  ;;  %v12696_v56 = vcombine.low %v2799_v39, %v2803_v41  ;;  %v2750_v27 = vld [vmem:[#allocation17 + $0x250] sm:$0xff] }
 0xa3e   : > { %3575 = vmatpush1.bf16.msra.mxu1 %v12622_v49  ;;  %3618 = vmatpush1.bf16.msra.mxu0 %v12624_v37  ;;  %v2794_v49 = vld [vmem:[#allocation17 + $0x3b0] sm:$0xff]  ;;  %v2791_v37 = vld [vmem:[#allocation17 + $0x398] sm:$0xff] }
 0xa3f   : > { %3576 = vmatprep.subr.bf16.mxu1 %v12615_v38  ;;  %3619 = vmatprep.subr.bf16.mxu0 %v12617_v51  ;;  %v2795_v38 = vld [vmem:[#allocation17 + $0x3b8] sm:$0xff]  ;;  %v12694_v51 = vcombine.low %v2798_v31, %v2802_v32  ;;  %v12687_v58 = vcombine.high %v2790_v48, %v2794_v49  ;;  %v2742_v41 = vld [vmem:[#allocation17 + $0x210] sm:$0xff] }
 0xa40   : > { %v12689_v59 = vcombine.high %v2791_v37, %v2795_v38  ;;  %v12688_v36 = vcombine.low %v2791_v37, %v2795_v38 }
 0xa42   : > { %3577 = vmatpush1.bf16.msra.mxu1 %v12614_v61  ;;  %3620 = vmatpush1.bf16.msra.mxu0 %v12616_v62  ;;  %v2786_v61 = vld [vmem:[#allocation17 + $0x370] sm:$0xff]  ;;  %v2783_v62 = vld [vmem:[#allocation17 + $0x358] sm:$0xff] }
 0xa43   : > { %3578 = vmatprep.subr.bf16.mxu1 %v12607_v63  ;;  %3621 = vmatprep.subr.bf16.mxu0 %v12609_v0  ;;  %v2787_v63 = vld [vmem:[#allocation17 + $0x378] sm:$0xff]  ;;  %v12686_v0 = vcombine.low %v2790_v48, %v2794_v49  ;;  %v12679_v1 = vcombine.high %v2782_v60, %v2786_v61 }
 0xa44   : > { %v12681_v2 = vcombine.high %v2783_v62, %v2787_v63  ;;  %v12680_v8 = vcombine.low %v2783_v62, %v2787_v63  ;;  %v14349_v62 = vld [vmem:[#allocation20 + $0x164] ss:$8 sps:$4 sm:$0xff]   ;;  %v14344_v63 = vld [vmem:[#allocation20 + $0x60] ss:$8 sps:$4 sm:$0xff]  }
 0xa46   : > { %3579 = vmatpush1.bf16.msra.mxu1 %v12606_v55  ;;  %3622 = vmatpush1.bf16.msra.mxu0 %v12608_v4  ;;  %v2778_v55 = vld [vmem:[#allocation17 + $0x330] sm:$0xff]  ;;  %v2775_v4 = vld [vmem:[#allocation17 + $0x318] sm:$0xff] }
 0xa47   : > { %3580 = vmatprep.subr.bf16.mxu1 %v12599_v50  ;;  %3623 = vmatprep.subr.bf16.mxu0 %v12601_v7  ;;  %v2779_v50 = vld [vmem:[#allocation17 + $0x338] sm:$0xff]  ;;  %v12678_v7 = vcombine.low %v2782_v60, %v2786_v61  ;;  %v12671_v9 = vcombine.high %v2774_v3, %v2778_v55  ;;  %v14346_v61 = vld [vmem:[#allocation20 + $0x64] ss:$8 sps:$4 sm:$0xff]  }
 0xa48   : > { %v12673_v45 = vcombine.high %v2775_v4, %v2779_v50  ;;  %v12672_v52 = vcombine.low %v2775_v4, %v2779_v50  ;;  %v14341_v60 = vld [vmem:[#allocation20 + $0x170] ss:$8 sps:$4 sm:$0xff]   ;;  %v14361_v4 = vld [vmem:[#allocation20 + $0x144] ss:$8 sps:$4 sm:$0xff]   ;;  %v14356_v50 = vld [vmem:[#allocation20 + $0x40] ss:$8 sps:$4 sm:$0xff]  }
 0xa4a   : > { %3581 = vmatpush1.bf16.msra.mxu1 %v12598_v12  ;;  %3624 = vmatpush1.bf16.msra.mxu0 %v12600_v13  ;;  %v2770_v12 = vld [vmem:[#allocation17 + $0x2f0] sm:$0xff]  ;;  %v2767_v13 = vld [vmem:[#allocation17 + $0x2d8] sm:$0xff] }
 0xa4b   : > { %3582 = vmatprep.subr.bf16.mxu1 %v12591_v14  ;;  %3625 = vmatprep.subr.bf16.mxu0 %v12593_v16  ;;  %v2771_v14 = vld [vmem:[#allocation17 + $0x2f8] sm:$0xff]  ;;  %v12670_v16 = vcombine.low %v2774_v3, %v2778_v55  ;;  %v12663_v17 = vcombine.high %v2766_v46, %v2770_v12  ;;  %v14358_v55 = vld [vmem:[#allocation20 + $0x44] ss:$8 sps:$4 sm:$0xff]  }
 0xa4c   : > { %v12665_v21 = vcombine.high %v2767_v13, %v2771_v14  ;;  %v12664_v30 = vcombine.low %v2767_v13, %v2771_v14  ;;  %v14353_v3 = vld [vmem:[#allocation20 + $0x150] ss:$8 sps:$4 sm:$0xff]   ;;  %v14368_v13 = vld [vmem:[#allocation20 + $0x20] ss:$8 sps:$4 sm:$0xff]  }
 0xa4d   : > { %v14371_v14 = vld [vmem:[#allocation20 + $0x120] ss:$8 sps:$4 sm:$0xff]  }
 0xa4e   : > { %3583 = vmatpush1.bf16.msra.mxu1 %v12590_v22  ;;  %3626 = vmatpush1.bf16.msra.mxu0 %v12592_v23  ;;  %v2762_v22 = vld [vmem:[#allocation17 + $0x2b0] sm:$0xff]  ;;  %v2759_v23 = vld [vmem:[#allocation17 + $0x298] sm:$0xff] }
 0xa4f   : > { %3584 = vmatprep.subr.bf16.mxu1 %v12583_v24  ;;  %3627 = vmatprep.subr.bf16.mxu0 %v12585_v25  ;;  %v2763_v24 = vld [vmem:[#allocation17 + $0x2b8] sm:$0xff]  ;;  %v12662_v25 = vcombine.low %v2766_v46, %v2770_v12  ;;  %v12655_v26 = vcombine.high %v2758_v53, %v2762_v22  ;;  %v14370_v46 = vld [vmem:[#allocation20 + $0x24] ss:$8 sps:$4 sm:$0xff]  }
 0xa50   : > { %v12657_v34 = vcombine.high %v2759_v23, %v2763_v24  ;;  %v12656_v31 = vcombine.low %v2759_v23, %v2763_v24  ;;  %v14373_v12 = vld [vmem:[#allocation20 + $0x124] ss:$8 sps:$4 sm:$0xff]   ;;  %v14380_v23 = vld [vmem:[#allocation20] ss:$8 sps:$4 sm:$0xff]  }
 0xa51   : > { %v14383_v24 = vld [vmem:[#allocation20 + $0x100] ss:$8 sps:$4 sm:$0xff]  }
 0xa52   : > { %3585 = vmatpush1.bf16.msra.mxu1 %v12582_v28  ;;  %3628 = vmatpush1.bf16.msra.mxu0 %v12584_v43  ;;  %v2754_v28 = vld [vmem:[#allocation17 + $0x270] sm:$0xff]  ;;  %v2751_v43 = vld [vmem:[#allocation17 + $0x258] sm:$0xff] }
 0xa53   : > { %3586 = vmatprep.subr.bf16.mxu1 %v12575_v33  ;;  %3629 = vmatprep.subr.bf16.mxu0 %v12577_v35  ;;  %v2755_v33 = vld [vmem:[#allocation17 + $0x278] sm:$0xff]  ;;  %v12654_v35 = vcombine.low %v2758_v53, %v2762_v22  ;;  %v12647_v32 = vcombine.high %v2750_v27, %v2754_v28  ;;  %v14382_v53 = vld [vmem:[#allocation20 + $0x4] ss:$8 sps:$4 sm:$0xff]  }
 0xa54   : > { %v12649_v39 = vcombine.high %v2751_v43, %v2755_v33  ;;  %v12648_v48 = vcombine.low %v2751_v43, %v2755_v33  ;;  %v14385_v22 = vld [vmem:[#allocation20 + $0x104] ss:$8 sps:$4 sm:$0xff]   ;;  %v14392_v43 = vld [vmem:[#allocation20 + $0xe0] ss:$8 sps:$4 sm:$0xff]  }
 0xa55   : > { %v14395_v33 = vld [vmem:[#allocation20 + $0x1e0] ss:$8 sps:$4 sm:$0xff]  }
 0xa56   : > { %3587 = vmatpush1.bf16.msra.mxu1 %v12574_v29  ;;  %3630 = vmatpush1.bf16.msra.mxu0 %v12576_v42  ;;  %v2746_v29 = vld [vmem:[#allocation17 + $0x230] sm:$0xff]  ;;  %v2743_v42 = vld [vmem:[#allocation17 + $0x218] sm:$0xff] }
 0xa57   : > { %3588 = vmatprep.subr.bf16.mxu1 %v12695_v44  ;;  %3631 = vmatprep.subr.bf16.mxu0 %v12697_v47  ;;  %v2747_v44 = vld [vmem:[#allocation17 + $0x238] sm:$0xff]  ;;  %v12646_v47 = vcombine.low %v2750_v27, %v2754_v28  ;;  %v12639_v49 = vcombine.high %v2742_v41, %v2746_v29  ;;  %v12638_v38 = vcombine.low %v2742_v41, %v2746_v29  ;;  %v14394_v27 = vld [vmem:[#allocation20 + $0xe4] ss:$8 sps:$4 sm:$0xff]  }
 0xa58   : > { %v12641_v37 = vcombine.high %v2743_v42, %v2747_v44  ;;  %v14397_v28 = vld [vmem:[#allocation20 + $0x1e4] ss:$8 sps:$4 sm:$0xff]  }
 0xa59   : > { %v14406_v41 = vld [vmem:[#allocation20 + $0xc4] ss:$8 sps:$4 sm:$0xff]  }
 0xa5a   : > { %3589 = vmatpush2.bf16.msra.mxu1 %v12694_v51  ;;  %3632 = vmatpush2.bf16.msra.mxu0 %v12696_v56  ;;  %v12640_v51 = vcombine.low %v2743_v42, %v2747_v44  ;;  %v14340_v56 = vld [vmem:[#allocation20 + $0x74] ss:$8 sps:$4 sm:$0xff]   ;;  %v14409_v29 = vld [vmem:[#allocation20 + $0x1c4] ss:$8 sps:$4 sm:$0xff]   ;;  %v14404_v42 = vld [vmem:[#allocation20 + $0xc0] ss:$8 sps:$4 sm:$0xff]  }
 0xa5b   : > { %3590 = vmatprep.subr.bf16.mxu1 %v12687_v58  ;;  %3633 = vmatprep.subr.bf16.mxu0 %v12689_v59  ;;  %v14343_v58 = vld [vmem:[#allocation20 + $0x174] ss:$8 sps:$4 sm:$0xff]   ;;  %v14338_v59 = vld [vmem:[#allocation20 + $0x70] ss:$8 sps:$4 sm:$0xff]   ;;  %v14407_v44 = vld [vmem:[#allocation20 + $0x1c0] ss:$8 sps:$4 sm:$0xff]  }
 0xa5e   : > { %3591 = vmatpush2.bf16.msra.mxu1 %v12686_v0  ;;  %3634 = vmatpush2.bf16.msra.mxu0 %v12688_v36  ;;  %v14347_v0 = vld [vmem:[#allocation20 + $0x160] ss:$8 sps:$4 sm:$0xff]   ;;  %v14352_v36 = vld [vmem:[#allocation20 + $0x54] ss:$8 sps:$4 sm:$0xff]  }
 0xa5f   : > { %3592 = vmatprep.subr.bf16.mxu1 %v12679_v1  ;;  %3635 = vmatprep.subr.bf16.mxu0 %v12681_v2  ;;  %v14355_v1 = vld [vmem:[#allocation20 + $0x154] ss:$8 sps:$4 sm:$0xff]   ;;  %v14350_v2 = vld [vmem:[#allocation20 + $0x50] ss:$8 sps:$4 sm:$0xff]  }
 0xa62   : > { %3593 = vmatpush2.bf16.msra.mxu1 %v12678_v7  ;;  %3636 = vmatpush2.bf16.msra.mxu0 %v12680_v8  ;;  %v14364_v7 = vld [vmem:[#allocation20 + $0x34] ss:$8 sps:$4 sm:$0xff]  }
 0xa63   : > { %3594 = vmatprep.subr.bf16.mxu1 %v12671_v9  ;;  %3637 = vmatprep.subr.bf16.mxu0 %v12673_v45  ;;  %v14367_v8 = vld [vmem:[#allocation20 + $0x134] ss:$8 sps:$4 sm:$0xff]   ;;  %v14362_v9 = vld [vmem:[#allocation20 + $0x30] ss:$8 sps:$4 sm:$0xff]  }
 0xa64   : > { %v14365_v45 = vld [vmem:[#allocation20 + $0x130] ss:$8 sps:$4 sm:$0xff]  }
 0xa66   : > { %3595 = vmatpush2.bf16.msra.mxu1 %v12670_v16  ;;  %3638 = vmatpush2.bf16.msra.mxu0 %v12672_v52  ;;  %v14376_v16 = vld [vmem:[#allocation20 + $0x14] ss:$8 sps:$4 sm:$0xff]  }
 0xa67   : > { %3596 = vmatprep.subr.bf16.mxu1 %v12663_v17  ;;  %3639 = vmatprep.subr.bf16.mxu0 %v12665_v21  ;;  %v14379_v52 = vld [vmem:[#allocation20 + $0x114] ss:$8 sps:$4 sm:$0xff]   ;;  %v14374_v17 = vld [vmem:[#allocation20 + $0x10] ss:$8 sps:$4 sm:$0xff]  }
 0xa68   : > { %v14377_v21 = vld [vmem:[#allocation20 + $0x110] ss:$8 sps:$4 sm:$0xff]  }
 0xa6a   : > { %3597 = vmatpush2.bf16.msra.mxu1 %v12662_v25  ;;  %3640 = vmatpush2.bf16.msra.mxu0 %v12664_v30  ;;  %v14388_v25 = vld [vmem:[#allocation20 + $0xf4] ss:$8 sps:$4 sm:$0xff]  }
 0xa6b   : > { %3598 = vmatprep.subr.bf16.mxu1 %v12655_v26  ;;  %3641 = vmatprep.subr.bf16.mxu0 %v12657_v34  ;;  %v14391_v30 = vld [vmem:[#allocation20 + $0x1f4] ss:$8 sps:$4 sm:$0xff]   ;;  %v14386_v26 = vld [vmem:[#allocation20 + $0xf0] ss:$8 sps:$4 sm:$0xff]  }
 0xa6c   : > { %v14389_v34 = vld [vmem:[#allocation20 + $0x1f0] ss:$8 sps:$4 sm:$0xff]  }
 0xa6e   : > { %3599 = vmatpush2.bf16.msra.mxu1 %v12654_v35  ;;  %3642 = vmatpush2.bf16.msra.mxu0 %v12656_v31  ;;  %v14400_v35 = vld [vmem:[#allocation20 + $0xd4] ss:$8 sps:$4 sm:$0xff]  }
 0xa6f   : > { %3600 = vmatprep.subr.bf16.mxu1 %v12647_v32  ;;  %3643 = vmatprep.subr.bf16.mxu0 %v12649_v39  ;;  %v14403_v31 = vld [vmem:[#allocation20 + $0x1d4] ss:$8 sps:$4 sm:$0xff]   ;;  %v14398_v32 = vld [vmem:[#allocation20 + $0xd0] ss:$8 sps:$4 sm:$0xff]  }
 0xa70   : > { %v14401_v39 = vld [vmem:[#allocation20 + $0x1d0] ss:$8 sps:$4 sm:$0xff]  }
 0xa72   : > { %3601 = vmatpush2.bf16.msra.mxu1 %v12646_v47  ;;  %3644 = vmatpush2.bf16.msra.mxu0 %v12648_v48  ;;  %v14412_v47 = vld [vmem:[#allocation20 + $0xb4] ss:$8 sps:$4 sm:$0xff]  }
 0xa73   : > { %3602 = vmatprep.subr.bf16.mxu1 %v12639_v49  ;;  %3645 = vmatprep.subr.bf16.mxu0 %v12641_v37  ;;  %v14415_v48 = vld [vmem:[#allocation20 + $0x1b4] ss:$8 sps:$4 sm:$0xff]   ;;  %v14410_v49 = vld [vmem:[#allocation20 + $0xb0] ss:$8 sps:$4 sm:$0xff]  }
 0xa74   : > { %v14413_v37 = vld [vmem:[#allocation20 + $0x1b0] ss:$8 sps:$4 sm:$0xff]  }
 0xa76   : > { %3603 = vmatpush2.bf16.msra.mxu1 %v12638_v38  ;;  %3646 = vmatpush2.bf16.msra.mxu0 %v12640_v51  ;;  %v14418_v38 = vld [vmem:[#allocation20 + $0xa4] ss:$8 sps:$4 sm:$0xff]  }
 0xa77   : > { %4450 = vmatprep.subr.bf16.mxu1 %v14340_v56  ;;  %4493 = vmatprep.subr.bf16.mxu0 %v14343_v58  ;;  %v14421_v51 = vld [vmem:[#allocation20 + $0x1a4] ss:$8 sps:$4 sm:$0xff]   ;;  %v14416_v56 = vld [vmem:[#allocation20 + $0xa0] ss:$8 sps:$4 sm:$0xff]  }
 0xa78   : > { %v14419_v58 = vld [vmem:[#allocation20 + $0x1a0] ss:$8 sps:$4 sm:$0xff]  }
 0xa79   : > { %3605 = vmatmul.mubr.bf16.vlgmr.msra.gmra.mxu1 %v16579_v40  ;;  %3648 = vmatmul.mubr.bf16.vlgmr.msra.gmra.mxu0 %v16579_v40  ;;  %v14359_v40 = vld [vmem:[#allocation20 + $0x140] ss:$8 sps:$4 sm:$0xff]  }
 0xa7a   : > { %4451 = vmatpush1.bf16.msra.mxu1 %v14338_v59  ;;  %4494 = vmatpush1.bf16.msra.mxu0 %v14341_v60  ;;  %v14424_v59 = vld [vmem:[#allocation20 + $0x94] ss:$8 sps:$4 sm:$0xff]  }
 0xa7b   : > { %4452 = vmatprep.subr.bf16.mxu1 %v14346_v61  ;;  %4495 = vmatprep.subr.bf16.mxu0 %v14349_v62  ;;  %v14427_v60 = vld [vmem:[#allocation20 + $0x194] ss:$8 sps:$4 sm:$0xff]   ;;  %v14422_v61 = vld [vmem:[#allocation20 + $0x90] ss:$8 sps:$4 sm:$0xff]  }
 0xa7c   : > { %v14425_v62 = vld [vmem:[#allocation20 + $0x190] ss:$8 sps:$4 sm:$0xff]  }
 0xa7e   : > { %4453 = vmatpush1.bf16.msra.mxu1 %v14344_v63  ;;  %4496 = vmatpush1.bf16.msra.mxu0 %v14347_v0  ;;  %v14430_v63 = vld [vmem:[#allocation20 + $0x84] ss:$8 sps:$4 sm:$0xff]  }
 0xa7f   : > { %4454 = vmatprep.subr.bf16.mxu1 %v14352_v36  ;;  %4497 = vmatprep.subr.bf16.mxu0 %v14355_v1  ;;  %v14433_v0 = vld [vmem:[#allocation20 + $0x184] ss:$8 sps:$4 sm:$0xff]   ;;  %v14428_v36 = vld [vmem:[#allocation20 + $0x80] ss:$8 sps:$4 sm:$0xff]  }
 0xa80   : > { %v14431_v1 = vld [vmem:[#allocation20 + $0x180] ss:$8 sps:$4 sm:$0xff]  }
 0xa82   : > { %4455 = vmatpush1.bf16.msra.mxu1 %v14350_v2  ;;  %4498 = vmatpush1.bf16.msra.mxu0 %v14353_v3  ;;  %v14436_v2 = vld [vmem:[#allocation20 + $0x274] ss:$8 sps:$4 sm:$0xff]  }
 0xa83   : > { %4456 = vmatprep.subr.bf16.mxu1 %v14358_v55  ;;  %4499 = vmatprep.subr.bf16.mxu0 %v14361_v4  ;;  %v14439_v3 = vld [vmem:[#allocation20 + $0x374] ss:$8 sps:$4 sm:$0xff]   ;;  %v16586_v55 = vsub.s32 3, %v16419_v18  ;;  %v16589_v4 = vsub.s32 2, %v16419_v18 }
 0xa86   : > { %4457 = vmatpush1.bf16.msra.mxu1 %v14356_v50  ;;  %4500 = vmatpush1.bf16.msra.mxu0 %v14359_v40  ;;  %v16591_v50 = vld [vmem:[#allocation19] ss:$4 sm:$0xff] }
 0xa87   : > { %4458 = vmatprep.subr.bf16.mxu1 %v14364_v7  ;;  %4501 = vmatprep.subr.bf16.mxu0 %v14367_v8  ;;  %v2813_v8 = vrot.slane %v16591_v50, %v16425_v20 }
 0xa8a   : > { %4459 = vmatpush1.bf16.msra.mxu1 %v14362_v9  ;;  %4502 = vmatpush1.bf16.msra.mxu0 %v14365_v45  ;;  %v2821_v9 = vrot.slane %v16591_v50, %v16586_v55  ;;  %v2809_v45 = vrot.slane %v16591_v50, %v16422_v19 }
 0xa8b   : > { %4460 = vmatprep.subr.bf16.mxu1 %v14370_v46  ;;  %4503 = vmatprep.subr.bf16.mxu0 %v14373_v12  ;;  %v2817_v46 = vrot.slane %v16591_v50, %v16589_v4 }
 0xa8e   : > { %4461 = vmatpush1.bf16.msra.mxu1 %v14368_v13  ;;  %4504 = vmatpush1.bf16.msra.mxu0 %v14371_v14 }
 0xa8f   : > { %4462 = vmatprep.subr.bf16.mxu1 %v14376_v16  ;;  %4505 = vmatprep.subr.bf16.mxu0 %v14379_v52 }
 0xa92   : > { %4463 = vmatpush1.bf16.msra.mxu1 %v14374_v17  ;;  %4506 = vmatpush1.bf16.msra.mxu0 %v14377_v21 }
 0xa93   : > { %4464 = vmatprep.subr.bf16.mxu1 %v14382_v53  ;;  %4507 = vmatprep.subr.bf16.mxu0 %v14385_v22 }
 0xa96   : > { %4465 = vmatpush1.bf16.msra.mxu1 %v14380_v23  ;;  %4508 = vmatpush1.bf16.msra.mxu0 %v14383_v24 }
 0xa97   : > { %4466 = vmatprep.subr.bf16.mxu1 %v14388_v25  ;;  %4509 = vmatprep.subr.bf16.mxu0 %v14391_v30 }
 0xa9a   : > { %4467 = vmatpush2.bf16.msra.mxu1 %v14386_v26  ;;  %4510 = vmatpush2.bf16.msra.mxu0 %v14389_v34 }
 0xa9b   : > { %4468 = vmatprep.subr.bf16.mxu1 %v14394_v27  ;;  %4511 = vmatprep.subr.bf16.mxu0 %v14397_v28 }
 0xa9e   : > { %4469 = vmatpush2.bf16.msra.mxu1 %v14392_v43  ;;  %4512 = vmatpush2.bf16.msra.mxu0 %v14395_v33 }
 0xa9f   : > { %4470 = vmatprep.subr.bf16.mxu1 %v14400_v35  ;;  %4513 = vmatprep.subr.bf16.mxu0 %v14403_v31 }
 0xaa2   : > { %4471 = vmatpush2.bf16.msra.mxu1 %v14398_v32  ;;  %4514 = vmatpush2.bf16.msra.mxu0 %v14401_v39 }
 0xaa3   : > { %4472 = vmatprep.subr.bf16.mxu1 %v14406_v41  ;;  %4515 = vmatprep.subr.bf16.mxu0 %v14409_v29  ;;  %v14434_v29 = vld [vmem:[#allocation20 + $0x270] ss:$8 sps:$4 sm:$0xff]  }
 0xaa6   : > { %4473 = vmatpush2.bf16.msra.mxu1 %v14404_v42  ;;  %4516 = vmatpush2.bf16.msra.mxu0 %v14407_v44  ;;  %v14437_v42 = vld [vmem:[#allocation20 + $0x370] ss:$8 sps:$4 sm:$0xff]  }
 0xaa7   : > { %4474 = vmatprep.subr.bf16.mxu1 %v14412_v47  ;;  %4517 = vmatprep.subr.bf16.mxu0 %v14415_v48  ;;  %v14442_v48 = vld [vmem:[#allocation20 + $0x264] ss:$8 sps:$4 sm:$0xff]  }
 0xaaa   : > { %4475 = vmatpush2.bf16.msra.mxu1 %v14410_v49  ;;  %4518 = vmatpush2.bf16.msra.mxu0 %v14413_v37  ;;  %v14445_v49 = vld [vmem:[#allocation20 + $0x364] ss:$8 sps:$4 sm:$0xff]   ;;  %v14440_v37 = vld [vmem:[#allocation20 + $0x260] ss:$8 sps:$4 sm:$0xff]  }
 0xaab   : > { %4476 = vmatprep.subr.bf16.mxu1 %v14418_v38  ;;  %4519 = vmatprep.subr.bf16.mxu0 %v14421_v51  ;;  %v14443_v38 = vld [vmem:[#allocation20 + $0x360] ss:$8 sps:$4 sm:$0xff]   ;;  %v14448_v51 = vld [vmem:[#allocation20 + $0x254] ss:$8 sps:$4 sm:$0xff]  }
 0xaae   : > { %4477 = vmatpush2.bf16.msra.mxu1 %v14416_v56  ;;  %4520 = vmatpush2.bf16.msra.mxu0 %v14419_v58  ;;  %v14451_v56 = vld [vmem:[#allocation20 + $0x354] ss:$8 sps:$4 sm:$0xff]   ;;  %v14446_v58 = vld [vmem:[#allocation20 + $0x250] ss:$8 sps:$4 sm:$0xff]  }
 0xaaf   : > { %4478 = vmatprep.subr.bf16.mxu1 %v14424_v59  ;;  %4521 = vmatprep.subr.bf16.mxu0 %v14427_v60  ;;  %v14449_v59 = vld [vmem:[#allocation20 + $0x350] ss:$8 sps:$4 sm:$0xff]   ;;  %v14454_v60 = vld [vmem:[#allocation20 + $0x244] ss:$8 sps:$4 sm:$0xff]  }
 0xab2   : > { %4479 = vmatpush2.bf16.msra.mxu1 %v14422_v61  ;;  %4522 = vmatpush2.bf16.msra.mxu0 %v14425_v62  ;;  %v14457_v61 = vld [vmem:[#allocation20 + $0x344] ss:$8 sps:$4 sm:$0xff]   ;;  %v14452_v62 = vld [vmem:[#allocation20 + $0x240] ss:$8 sps:$4 sm:$0xff]  }
 0xab3   : > { %4480 = vmatprep.subr.bf16.mxu1 %v14430_v63  ;;  %4523 = vmatprep.subr.bf16.mxu0 %v14433_v0  ;;  %v14455_v63 = vld [vmem:[#allocation20 + $0x340] ss:$8 sps:$4 sm:$0xff]   ;;  %v14460_v0 = vld [vmem:[#allocation20 + $0x234] ss:$8 sps:$4 sm:$0xff]  }
 0xab6   : > { %4481 = vmatpush2.bf16.msra.mxu1 %v14428_v36  ;;  %4524 = vmatpush2.bf16.msra.mxu0 %v14431_v1  ;;  %v14463_v36 = vld [vmem:[#allocation20 + $0x334] ss:$8 sps:$4 sm:$0xff]   ;;  %v14458_v1 = vld [vmem:[#allocation20 + $0x230] ss:$8 sps:$4 sm:$0xff]  }
 0xab7   : > { %4536 = vmatprep.subr.bf16.mxu1 %v14436_v2  ;;  %4579 = vmatprep.subr.bf16.mxu0 %v14439_v3  ;;  %v14461_v2 = vld [vmem:[#allocation20 + $0x330] ss:$8 sps:$4 sm:$0xff]   ;;  %v14466_v3 = vld [vmem:[#allocation20 + $0x224] ss:$8 sps:$4 sm:$0xff]  }
 0xaf9   : > { %v3520_v40 = vpop.f32.mrf.mxu1  ;;  %v3563_v7 = vpop.f32.mrf.mxu0 }
 0xafa   : > { %v3521_v22 = vadd.f32 %v3520_v40, %v2809_v45  ;;  %v3564_v23 = vadd.f32 %v3563_v7, %v2817_v46  ;;  %v14469_v40 = vld [vmem:[#allocation20 + $0x324] ss:$8 sps:$4 sm:$0xff]   ;;  %v14464_v7 = vld [vmem:[#allocation20 + $0x220] ss:$8 sps:$4 sm:$0xff]  }
 0xafb   : > { %v3522_v12 = vpop.f32.mrf.mxu1  ;;  %v3565_v13 = vpop.f32.mrf.mxu0 }
 0xafc   : > { %v3523_v52 = vadd.f32 %v3522_v12, %v2813_v8  ;;  %v3566_v17 = vadd.f32 %v3565_v13, %v2821_v9  ;;  %v3658_v31 = vmax.f32 %v3521_v22, 0.0  ;;  %v3660_v32 = vmax.f32 %v3564_v23, 0.0  ;;  %v14473_v12 = vld [vmem:[#allocation20 + $0x310] ss:$8 sps:$4 sm:$0xff]   ;;  %v14478_v13 = vld [vmem:[#allocation20 + $0x204] ss:$8 sps:$4 sm:$0xff]  }
 0xafd   : > { %v3524_v14 = vpop.f32.mrf.mxu1  ;;  %v3567_v16 = vpop.f32.mrf.mxu0  ;;  %v14485_v22 = vld [vmem:[#allocation20 + $0x3f0] ss:$8 sps:$4 sm:$0xff]   ;;  %v14490_v23 = vld [vmem:[#allocation20 + $0x2e4] ss:$8 sps:$4 sm:$0xff]  }
 0xafe   : > { %v3525_v21 = vadd.f32 %v3524_v14, %v2809_v45  ;;  %v3568_v53 = vadd.f32 %v3567_v16, %v2817_v46  ;;  %v3659_v28 = vmax.f32 %v3523_v52, 0.0  ;;  %v3661_v43 = vmax.f32 %v3566_v17, 0.0  ;;  %v14475_v45 = vld [vmem:[#allocation20 + $0x314] ss:$8 sps:$4 sm:$0xff]   ;;  %v14470_v46 = vld [vmem:[#allocation20 + $0x210] ss:$8 sps:$4 sm:$0xff]  }
 0xaff   : > { %v3526_v24 = vpop.f32.mrf.mxu1  ;;  %v3569_v25 = vpop.f32.mrf.mxu0  ;;  %v14481_v14 = vld [vmem:[#allocation20 + $0x304] ss:$8 sps:$4 sm:$0xff]   ;;  %v14476_v16 = vld [vmem:[#allocation20 + $0x200] ss:$8 sps:$4 sm:$0xff]   ;;  %v14484_v17 = vld [vmem:[#allocation20 + $0x2f4] ss:$8 sps:$4 sm:$0xff]  }
 0xb00   : > { %v3527_v30 = vadd.f32 %v3526_v24, %v2813_v8  ;;  %v3570_v26 = vadd.f32 %v3569_v25, %v2821_v9  ;;  %v3666_v34 = vmax.f32 %v3525_v21, 0.0  ;;  %v3668_v27 = vmax.f32 %v3568_v53, 0.0  ;;  %v14467_v8 = vld [vmem:[#allocation20 + $0x320] ss:$8 sps:$4 sm:$0xff]   ;;  %v14472_v9 = vld [vmem:[#allocation20 + $0x214] ss:$8 sps:$4 sm:$0xff]  }
 0xb01   : > { %v14479_v52 = vld [vmem:[#allocation20 + $0x300] ss:$8 sps:$4 sm:$0xff]   ;;  %v14487_v21 = vld [vmem:[#allocation20 + $0x3f4] ss:$8 sps:$4 sm:$0xff]   ;;  %v14482_v53 = vld [vmem:[#allocation20 + $0x2f0] ss:$8 sps:$4 sm:$0xff]  }
 0xb02   : > { %v3667_v33 = vmax.f32 %v3527_v30, 0.0  ;;  %v3669_v35 = vmax.f32 %v3570_v26, 0.0  ;;  %v3674_v44 = vpack.c.bf16 %v3666_v34, %v3658_v31  ;;  %v3676_v47 = vpack.c.bf16 %v3668_v27, %v3660_v32  ;;  %v14493_v24 = vld [vmem:[#allocation20 + $0x3e4] ss:$8 sps:$4 sm:$0xff]   ;;  %v14488_v25 = vld [vmem:[#allocation20 + $0x2e0] ss:$8 sps:$4 sm:$0xff]  }
 0xb03   : > { %v14491_v30 = vld [vmem:[#allocation20 + $0x3e0] ss:$8 sps:$4 sm:$0xff]   ;;  %v14496_v26 = vld [vmem:[#allocation20 + $0x2d4] ss:$8 sps:$4 sm:$0xff]   ;;  %v14494_v27 = vld [vmem:[#allocation20 + $0x2d0] ss:$8 sps:$4 sm:$0xff]  }
 0xb04   : > { %v3675_v39 = vpack.c.bf16 %v3667_v33, %v3659_v28  ;;  %v3677_v41 = vpack.c.bf16 %v3669_v35, %v3661_v43  ;;  %v14499_v34 = vld [vmem:[#allocation20 + $0x3d4] ss:$8 sps:$4 sm:$0xff]   ;;  %v14497_v28 = vld [vmem:[#allocation20 + $0x3d0] ss:$8 sps:$4 sm:$0xff]   ;;  %v14502_v43 = vld [vmem:[#allocation20 + $0x2c4] ss:$8 sps:$4 sm:$0xff]  }
 0xb05   : > { %v14505_v33 = vld [vmem:[#allocation20 + $0x3c4] ss:$8 sps:$4 sm:$0xff]   ;;  %v14500_v35 = vld [vmem:[#allocation20 + $0x2c0] ss:$8 sps:$4 sm:$0xff]   ;;  %v14508_v32 = vld [vmem:[#allocation20 + $0x2b4] ss:$8 sps:$4 sm:$0xff]  }
 0xb06   : > { %4482 = vmatprep.mubr.bf16.mxu1 %v3675_v39  ;;  %4525 = vmatprep.mubr.bf16.mxu0 %v3677_v41  ;;  %v14503_v31 = vld [vmem:[#allocation20 + $0x3c0] ss:$8 sps:$4 sm:$0xff]   ;;  %v14511_v39 = vld [vmem:[#allocation20 + $0x3b4] ss:$8 sps:$4 sm:$0xff]   ;;  %v14506_v41 = vld [vmem:[#allocation20 + $0x2b0] ss:$8 sps:$4 sm:$0xff]  }
 0xb07   : > { %4483 = vmatmul.mubr.bf16.vlgmr.msra.gmra.mxu1 %v3674_v44  ;;  %4526 = vmatmul.mubr.bf16.vlgmr.msra.gmra.mxu0 %v3676_v47  ;;  %v14517_v44 = vld [vmem:[#allocation20 + $0x3a4] ss:$8 sps:$4 sm:$0xff]   ;;  %v16602_v47 = vsub.s32 5, %v16419_v18 }
 0xb08   : > { %4537 = vmatpush1.bf16.msra.mxu1 %v14434_v29  ;;  %4580 = vmatpush1.bf16.msra.mxu0 %v14437_v42  ;;  %v14509_v29 = vld [vmem:[#allocation20 + $0x3b0] ss:$8 sps:$4 sm:$0xff]   ;;  %v14514_v42 = vld [vmem:[#allocation20 + $0x2a4] ss:$8 sps:$4 sm:$0xff]  }
 0xb09   : > { %4538 = vmatprep.subr.bf16.mxu1 %v14442_v48  ;;  %4581 = vmatprep.subr.bf16.mxu0 %v14445_v49  ;;  %v16605_v48 = vsub.s32 7, %v16419_v18  ;;  %v16608_v49 = vsub.s32 4, %v16419_v18 }
 0xb0c   : > { %4539 = vmatpush1.bf16.msra.mxu1 %v14440_v37  ;;  %4582 = vmatpush1.bf16.msra.mxu0 %v14443_v38  ;;  %v16611_v37 = vsub.s32 6, %v16419_v18  ;;  %v14512_v38 = vld [vmem:[#allocation20 + $0x2a0] ss:$8 sps:$4 sm:$0xff]   ;;  %v2825_v18 = vrot.slane %v16591_v50, %v16608_v49 }
 0xb0d   : > { %4540 = vmatprep.subr.bf16.mxu1 %v14448_v51  ;;  %4583 = vmatprep.subr.bf16.mxu0 %v14451_v56  ;;  %v14515_v51 = vld [vmem:[#allocation20 + $0x3a0] ss:$8 sps:$4 sm:$0xff]  }
 0xb10   : > { %4541 = vmatpush1.bf16.msra.mxu1 %v14446_v58  ;;  %4584 = vmatpush1.bf16.msra.mxu0 %v14449_v59  ;;  %v14520_v59 = vld [vmem:[#allocation20 + $0x294] ss:$8 sps:$4 sm:$0xff]  }
 0xb11   : > { %4542 = vmatprep.subr.bf16.mxu1 %v14454_v60  ;;  %4585 = vmatprep.subr.bf16.mxu0 %v14457_v61  ;;  %v14523_v60 = vld [vmem:[#allocation20 + $0x394] ss:$8 sps:$4 sm:$0xff]   ;;  %v2829_v61 = vrot.slane %v16591_v50, %v16602_v47 }
 0xb14   : > { %4543 = vmatpush1.bf16.msra.mxu1 %v14452_v62  ;;  %4586 = vmatpush1.bf16.msra.mxu0 %v14455_v63  ;;  %v2837_v62 = vrot.slane %v16591_v50, %v16605_v48  ;;  %v2833_v63 = vrot.slane %v16591_v50, %v16611_v37 }
 0xb15   : > { %4544 = vmatprep.subr.bf16.mxu1 %v14460_v0  ;;  %4587 = vmatprep.subr.bf16.mxu0 %v14463_v36 }
 0xb18   : > { %4545 = vmatpush1.bf16.msra.mxu1 %v14458_v1  ;;  %4588 = vmatpush1.bf16.msra.mxu0 %v14461_v2  ;;  %v14518_v1 = vld [vmem:[#allocation20 + $0x290] ss:$8 sps:$4 sm:$0xff]  }
 0xb19   : > { %4546 = vmatprep.subr.bf16.mxu1 %v14466_v3  ;;  %4589 = vmatprep.subr.bf16.mxu0 %v14469_v40  ;;  %v14521_v2 = vld [vmem:[#allocation20 + $0x390] ss:$8 sps:$4 sm:$0xff]  }
 0xb1c   : > { %4547 = vmatpush1.bf16.msra.mxu1 %v14464_v7  ;;  %4590 = vmatpush1.bf16.msra.mxu0 %v14467_v8  ;;  %v14526_v7 = vld [vmem:[#allocation20 + $0x284] ss:$8 sps:$4 sm:$0xff]  }
 0xb1d   : > { %4548 = vmatprep.subr.bf16.mxu1 %v14472_v9  ;;  %4591 = vmatprep.subr.bf16.mxu0 %v14475_v45  ;;  %v14529_v8 = vld [vmem:[#allocation20 + $0x384] ss:$8 sps:$4 sm:$0xff]  }
 0xb20   : > { %4549 = vmatpush1.bf16.msra.mxu1 %v14470_v46  ;;  %4592 = vmatpush1.bf16.msra.mxu0 %v14473_v12 }
 0xb21   : > { %4550 = vmatprep.subr.bf16.mxu1 %v14478_v13  ;;  %4593 = vmatprep.subr.bf16.mxu0 %v14481_v14 }
 0xb24   : > { %4551 = vmatpush1.bf16.msra.mxu1 %v14476_v16  ;;  %4594 = vmatpush1.bf16.msra.mxu0 %v14479_v52 }
 0xb25   : > { %4552 = vmatprep.subr.bf16.mxu1 %v14484_v17  ;;  %4595 = vmatprep.subr.bf16.mxu0 %v14487_v21  ;;  %v14524_v21 = vld [vmem:[#allocation20 + $0x280] ss:$8 sps:$4 sm:$0xff]  }
 0xb28   : > { %4553 = vmatpush2.bf16.msra.mxu1 %v14482_v53  ;;  %4596 = vmatpush2.bf16.msra.mxu0 %v14485_v22  ;;  %v14527_v53 = vld [vmem:[#allocation20 + $0x380] ss:$8 sps:$4 sm:$0xff]  }
 0xb29   : > { %4554 = vmatprep.subr.bf16.mxu1 %v14490_v23  ;;  %4597 = vmatprep.subr.bf16.mxu0 %v14493_v24 }
 0xb2c   : > { %4555 = vmatpush2.bf16.msra.mxu1 %v14488_v25  ;;  %4598 = vmatpush2.bf16.msra.mxu0 %v14491_v30 }
 0xb2d   : > { %4556 = vmatprep.subr.bf16.mxu1 %v14496_v26  ;;  %4599 = vmatprep.subr.bf16.mxu0 %v14499_v34 }
 0xb30   : > { %4557 = vmatpush2.bf16.msra.mxu1 %v14494_v27  ;;  %4600 = vmatpush2.bf16.msra.mxu0 %v14497_v28 }
 0xb31   : > { %4558 = vmatprep.subr.bf16.mxu1 %v14502_v43  ;;  %4601 = vmatprep.subr.bf16.mxu0 %v14505_v33 }
 0xb34   : > { %4559 = vmatpush2.bf16.msra.mxu1 %v14500_v35  ;;  %4602 = vmatpush2.bf16.msra.mxu0 %v14503_v31 }
 0xb35   : > { %4560 = vmatprep.subr.bf16.mxu1 %v14508_v32  ;;  %4603 = vmatprep.subr.bf16.mxu0 %v14511_v39 }
 0xb38   : > { %4561 = vmatpush2.bf16.msra.mxu1 %v14506_v41  ;;  %4604 = vmatpush2.bf16.msra.mxu0 %v14509_v29 }
 0xb39   : > { %v3606_v56 = vpop.f32.mrf.mxu1  ;;  %v3649_v58 = vpop.f32.mrf.mxu0  ;;  %4562 = vmatprep.subr.bf16.mxu1 %v14514_v42  ;;  %4605 = vmatprep.subr.bf16.mxu0 %v14517_v44 }
 0xb3a   : > { %v3607_v13 = vadd.f32 %v3606_v56, %v2825_v18  ;;  %v3650_v14 = vadd.f32 %v3649_v58, %v2833_v63 }
 0xb3b   : > { %v3608_v0 = vpop.f32.mrf.mxu1  ;;  %v3651_v36 = vpop.f32.mrf.mxu0 }
 0xb3c   : > { %4563 = vmatpush2.bf16.msra.mxu1 %v14512_v38  ;;  %4606 = vmatpush2.bf16.msra.mxu0 %v14515_v51  ;;  %v3609_v9 = vadd.f32 %v3608_v0, %v2829_v61  ;;  %v3652_v45 = vadd.f32 %v3651_v36, %v2837_v62  ;;  %v3662_v34 = vmax.f32 %v3607_v13, 0.0  ;;  %v3664_v27 = vmax.f32 %v3650_v14, 0.0 }
 0xb3d   : > { %v3610_v3 = vpop.f32.mrf.mxu1  ;;  %v3653_v40 = vpop.f32.mrf.mxu0  ;;  %4564 = vmatprep.subr.bf16.mxu1 %v14520_v59  ;;  %4607 = vmatprep.subr.bf16.mxu0 %v14523_v60 }
 0xb3e   : > { %v3611_v46 = vadd.f32 %v3610_v3, %v2825_v18  ;;  %v3654_v12 = vadd.f32 %v3653_v40, %v2833_v63  ;;  %v3663_v24 = vmax.f32 %v3609_v9, 0.0  ;;  %v3665_v25 = vmax.f32 %v3652_v45, 0.0 }
 0xb3f   : > { %v3612_v16 = vpop.f32.mrf.mxu1  ;;  %v3655_v50 = vpop.f32.mrf.mxu0 }
 0xb40   : > { %v3613_v52 = vadd.f32 %v3612_v16, %v2829_v61  ;;  %v3656_v17 = vadd.f32 %v3655_v50, %v2837_v62  ;;  %4565 = vmatpush2.bf16.msra.mxu1 %v14518_v1  ;;  %4608 = vmatpush2.bf16.msra.mxu0 %v14521_v2  ;;  %v3670_v22 = vmax.f32 %v3611_v46, 0.0  ;;  %v3672_v23 = vmax.f32 %v3654_v12, 0.0  ;;  %v4626_v61 = vld [vmem:[#allocation22] ss:$4 sm:$0x3] }
 0xb41   : > { %4566 = vmatprep.subr.bf16.mxu1 %v14526_v7  ;;  %4609 = vmatprep.subr.bf16.mxu0 %v14529_v8  ;;  %v4631_v1 = vrot.slane %v4626_v61, %v16422_v19  ;;  %v4635_v2 = vrot.slane %v4626_v61, %v16425_v20  ;;  %v14571_v61 = vld [vmem:[#allocation10 + $0x33c] ss:$24 sps:$4 sm:$0xff]  }
 0xb42   : > { %v3671_v30 = vmax.f32 %v3613_v52, 0.0  ;;  %v3673_v26 = vmax.f32 %v3656_v17, 0.0  ;;  %v3678_v33 = vpack.c.bf16 %v3670_v22, %v3662_v34  ;;  %v3680_v35 = vpack.c.bf16 %v3672_v23, %v3664_v27  ;;  %v14541_v34 = vld [vmem:[#allocation10 + $0x42c] ss:$24 sps:$4 sm:$0xff]   ;;  %v14539_v27 = vld [vmem:[#allocation10 + $0x428] ss:$24 sps:$4 sm:$0xff]  }
 0xb44   : > { %v3679_v28 = vpack.c.bf16 %v3671_v30, %v3663_v24  ;;  %v3681_v43 = vpack.c.bf16 %v3673_v26, %v3665_v25  ;;  %4567 = vmatpush2.bf16.msra.mxu1 %v14524_v21  ;;  %4610 = vmatpush2.bf16.msra.mxu0 %v14527_v53  ;;  %v14530_v24 = vld [vmem:[#allocation10 + $0x450] ss:$24 sps:$4 sm:$0xff]   ;;  %v14532_v25 = vld [vmem:[#allocation10 + $0x454] ss:$24 sps:$4 sm:$0xff]  }
 0xb45   : > { %v14533_v30 = vld [vmem:[#allocation10 + $0x458] ss:$24 sps:$4 sm:$0xff]   ;;  %v14535_v26 = vld [vmem:[#allocation10 + $0x45c] ss:$24 sps:$4 sm:$0xff]   ;;  %5287 = vmatprep.subr.bf16.mxu1 %v14532_v25 }
 0xb46   : > { %4568 = vmatprep.mubr.bf16.mxu1 %v3679_v28  ;;  %4611 = vmatprep.mubr.bf16.mxu0 %v3681_v43  ;;  %v14544_v28 = vld [vmem:[#allocation10 + $0x3f4] ss:$24 sps:$4 sm:$0xff]   ;;  %v14586_v25 = vld [vmem:[#allocation10 + $0x5a4] ss:$24 sps:$4 sm:$0xff]  }
 0xb47   : > { %4569 = vmatmul.mubr.bf16.vlgmr.msra.gmra.mxu1 %v3678_v33  ;;  %4612 = vmatmul.mubr.bf16.vlgmr.msra.gmra.mxu0 %v3680_v35  ;;  %v14547_v43 = vld [vmem:[#allocation10 + $0x3fc] ss:$24 sps:$4 sm:$0xff]   ;;  %v14542_v33 = vld [vmem:[#allocation10 + $0x3f0] ss:$24 sps:$4 sm:$0xff]  }
 0xb48   : > { %5288 = vmatpush1.bf16.msra.mxu1 %v14530_v24  ;;  %5330 = vmatprep.subr.bf16.mxu0 %v14535_v26  ;;  %v14545_v35 = vld [vmem:[#allocation10 + $0x3f8] ss:$24 sps:$4 sm:$0xff]   ;;  %v14589_v26 = vld [vmem:[#allocation10 + $0x5ac] ss:$24 sps:$4 sm:$0xff]  }
 0xb49   : > { %5331 = vmatpush1.bf16.msra.mxu0 %v14533_v30  ;;  %v14584_v30 = vld [vmem:[#allocation10 + $0x5a0] ss:$24 sps:$4 sm:$0xff]  }
 0xb4a   : > { %5332 = vmatprep.subr.bf16.mxu0 %v14541_v34  ;;  %v14592_v34 = vld [vmem:[#allocation10 + $0x574] ss:$24 sps:$4 sm:$0xff]  }
 0xb4d   : > { %5333 = vmatpush1.bf16.msra.mxu0 %v14539_v27  ;;  %v14595_v27 = vld [vmem:[#allocation10 + $0x57c] ss:$24 sps:$4 sm:$0xff]  }
 0xb4e   : > { %5334 = vmatprep.subr.bf16.mxu0 %v14547_v43  ;;  %v14596_v43 = vld [vmem:[#allocation10 + $0x540] ss:$24 sps:$4 sm:$0xff]  }
 0xb51   : > { %5335 = vmatpush1.bf16.msra.mxu0 %v14545_v35  ;;  %v14599_v35 = vld [vmem:[#allocation10 + $0x548] ss:$24 sps:$4 sm:$0xff]  }
 0xbc7   : > { %v4484_v31 = vpop.f32.mrf.mxu1  ;;  %v4527_v32 = vpop.f32.mrf.mxu0 }
 0xbc8   : > { %v4528_v51 = vadd.f32 %v4527_v32, %v4484_v31  ;;  %v14550_v31 = vld [vmem:[#allocation10 + $0x3c4] ss:$24 sps:$4 sm:$0xff]  }
 0xbc9   : > { %v4486_v39 = vpop.f32.mrf.mxu1  ;;  %v4529_v41 = vpop.f32.mrf.mxu0  ;;  %v14553_v32 = vld [vmem:[#allocation10 + $0x3cc] ss:$24 sps:$4 sm:$0xff]  }
 0xbca   : > { %v4530_v59 = vadd.f32 %v4529_v41, %v4486_v39  ;;  %v14548_v39 = vld [vmem:[#allocation10 + $0x3c0] ss:$24 sps:$4 sm:$0xff]   ;;  %5336 = vmatprep.subr.bf16.mxu0 %v14553_v32  ;;  %v14604_v32 = vld [vmem:[#allocation10 + $0x514] ss:$24 sps:$4 sm:$0xff]  }
 0xbcb   : > { %v4488_v29 = vpop.f32.mrf.mxu1  ;;  %v4531_v42 = vpop.f32.mrf.mxu0  ;;  %v14551_v41 = vld [vmem:[#allocation10 + $0x3c8] ss:$24 sps:$4 sm:$0xff]  }
 0xbcc   : > { %v4532_v63 = vadd.f32 %v4531_v42, %v4488_v29  ;;  %v14556_v29 = vld [vmem:[#allocation10 + $0x394] ss:$24 sps:$4 sm:$0xff]   ;;  %5337 = vmatpush1.bf16.msra.mxu0 %v14551_v41  ;;  %v14602_v41 = vld [vmem:[#allocation10 + $0x510] ss:$24 sps:$4 sm:$0xff]  }
 0xbcd   : > { %v4490_v44 = vpop.f32.mrf.mxu1  ;;  %v4533_v38 = vpop.f32.mrf.mxu0  ;;  %v14559_v42 = vld [vmem:[#allocation10 + $0x39c] ss:$24 sps:$4 sm:$0xff]  }
 0xbce   : > { %v4534_v7 = vadd.f32 %v4533_v38, %v4490_v44  ;;  %v14554_v44 = vld [vmem:[#allocation10 + $0x390] ss:$24 sps:$4 sm:$0xff]   ;;  %5338 = vmatprep.subr.bf16.mxu0 %v14559_v42  ;;  %v14610_v42 = vld [vmem:[#allocation10 + $0x4e4] ss:$24 sps:$4 sm:$0xff]  }
 0xbcf   : > { %v14557_v38 = vld [vmem:[#allocation10 + $0x398] ss:$24 sps:$4 sm:$0xff]  }
 0xbd0   : > { %5339 = vmatpush1.bf16.msra.mxu0 %v14557_v38  ;;  %v14608_v38 = vld [vmem:[#allocation10 + $0x4e0] ss:$24 sps:$4 sm:$0xff]  }
 0xc07   : > { %v4570_v56 = vpop.f32.mrf.mxu1  ;;  %v4613_v58 = vpop.f32.mrf.mxu0 }
 0xc08   : > { %v4571_v60 = vadd.f32 %v4570_v56, %v4528_v51  ;;  %v14562_v51 = vld [vmem:[#allocation10 + $0x364] ss:$24 sps:$4 sm:$0xff]  }
 0xc09   : > { %v4572_v62 = vpop.f32.mrf.mxu1  ;;  %v4615_v18 = vpop.f32.mrf.mxu0  ;;  %v14565_v56 = vld [vmem:[#allocation10 + $0x36c] ss:$24 sps:$4 sm:$0xff]  }
 0xc0a   : > { %v4614_v0 = vadd.f32 %v4613_v58, %v4571_v60  ;;  %v4573_v36 = vadd.f32 %v4572_v62, %v4530_v59  ;;  %v14560_v58 = vld [vmem:[#allocation10 + $0x360] ss:$24 sps:$4 sm:$0xff]   ;;  %v14568_v60 = vld [vmem:[#allocation10 + $0x334] ss:$24 sps:$4 sm:$0xff]   ;;  %5340 = vmatprep.subr.bf16.mxu0 %v14565_v56  ;;  %v14566_v62 = vld [vmem:[#allocation10 + $0x330] ss:$24 sps:$4 sm:$0xff]  }
 0xc0b   : > { %v4574_v3 = vpop.f32.mrf.mxu1  ;;  %v4617_v40 = vpop.f32.mrf.mxu0  ;;  %v14563_v59 = vld [vmem:[#allocation10 + $0x368] ss:$24 sps:$4 sm:$0xff]   ;;  %v14616_v56 = vld [vmem:[#allocation10 + $0x4b4] ss:$24 sps:$4 sm:$0xff]  }
 0xc0c   : > { %v4622_v8 = vadd.f32 %v4614_v0, %v16537_v5  ;;  %v4616_v9 = vadd.f32 %v4615_v18, %v4573_v36  ;;  %v4575_v45 = vadd.f32 %v4574_v3, %v4532_v63  ;;  %5341 = vmatpush1.bf16.msra.mxu0 %v14563_v59  ;;  %v14569_v18 = vld [vmem:[#allocation10 + $0x338] ss:$24 sps:$4 sm:$0xff]   ;;  %v14574_v63 = vld [vmem:[#allocation10 + $0x304] ss:$24 sps:$4 sm:$0xff]  }
 0xc0d   : > { %v4576_v46 = vpop.f32.mrf.mxu1  ;;  %v4619_v16 = vpop.f32.mrf.mxu0  ;;  %5342 = vmatprep.subr.bf16.mxu0 %v14571_v61  ;;  %v14577_v0 = vld [vmem:[#allocation10 + $0x30c] ss:$24 sps:$4 sm:$0xff]   ;;  %v14572_v36 = vld [vmem:[#allocation10 + $0x300] ss:$24 sps:$4 sm:$0xff]   ;;  %v14583_v3 = vld [vmem:[#allocation10 + $0x5dc] ss:$24 sps:$4 sm:$0xff]  }
 0xc0e   : > { %v4623_v12 = vadd.f32 %v4616_v9, %v16539_v6  ;;  %v4618_v13 = vadd.f32 %v4617_v40, %v4575_v45  ;;  %v4577_v14 = vadd.f32 %v4576_v46, %v4534_v7  ;;  %v16625_v50 = vadd.f32 %v4631_v1, %v4622_v8  ;;  %v14578_v40 = vld [vmem:[#allocation10 + $0x5d0] ss:$24 sps:$4 sm:$0xff]   ;;  %v14622_v61 = vld [vmem:[#allocation10 + $0x484] ss:$24 sps:$4 sm:$0xff]  }
 0xc0f   : > { %v14581_v7 = vld [vmem:[#allocation10 + $0x5d8] ss:$24 sps:$4 sm:$0xff]  }
 0xc10   : > { %v16627_v52 = vadd.f32 %v4635_v2, %v4623_v12  ;;  %v4624_v17 = vadd.f32 %v4618_v13, %v16545_v10  ;;  %v4620_v21 = vadd.f32 %v4619_v16, %v4577_v14  ;;  %v14538_v10 = vld [vmem:[#allocation10 + $0x424] ss:$24 sps:$4 sm:$0xff]   ;;  %5343 = vmatpush1.bf16.msra.mxu0 %v14569_v18  ;;  %v14614_v59 = vld [vmem:[#allocation10 + $0x4b0] ss:$24 sps:$4 sm:$0xff]   ;;  %v14620_v18 = vld [vmem:[#allocation10 + $0x480] ss:$24 sps:$4 sm:$0xff]  }
 0xc11   : > { %5289 = vmatprep.subr.bf16.mxu1 %v14538_v10  ;;  %5344 = vmatprep.subr.bf16.mxu0 %v14577_v0  ;;  %v14587_v10 = vld [vmem:[#allocation10 + $0x5a8] ss:$24 sps:$4 sm:$0xff]   ;;  %v14628_v0 = vld [vmem:[#allocation10 + $0x464] ss:$24 sps:$4 sm:$0xff]  }
 0xc12   : > { %v4625_v53 = vadd.f32 %v4620_v21, %v16547_v11  ;;  %v4646_v5 = vadd.f32 %v16627_v52, %v16625_v50  ;;  %v16633_v22 = vadd.f32 %v4631_v1, %v4624_v17  ;;  %v14536_v11 = vld [vmem:[#allocation10 + $0x420] ss:$24 sps:$4 sm:$0xff]  }
 0xc13   : > { %5290 = vmatpush1.bf16.msra.mxu1 %v14536_v11  ;;  %v14575_v1 = vld [vmem:[#allocation10 + $0x308] ss:$24 sps:$4 sm:$0xff]  }
 0xc14   : > { %v16635_v23 = vadd.f32 %v4635_v2, %v4625_v53  ;;  %4647 = vadd.xlane.f32.xlu0 %v4646_v5  ;;  %5291 = vmatprep.subr.bf16.mxu1 %v14544_v28  ;;  %v14580_v2 = vld [vmem:[#allocation10 + $0x5d4] ss:$24 sps:$4 sm:$0xff]   ;;  %v14590_v11 = vld [vmem:[#allocation10 + $0x570] ss:$24 sps:$4 sm:$0xff]  }
 0xc15   : > { %5345 = vmatpush1.bf16.msra.mxu0 %v14575_v1  ;;  %v14593_v28 = vld [vmem:[#allocation10 + $0x578] ss:$24 sps:$4 sm:$0xff]  }
 0xc16   : > { %v4649_v6 = vadd.f32 %v16635_v23, %v16633_v22  ;;  %5346 = vmatprep.subr.bf16.mxu0 %v14583_v3 }
 0xc17   : > { %5292 = vmatpush1.bf16.msra.mxu1 %v14542_v33  ;;  %v14598_v33 = vld [vmem:[#allocation10 + $0x544] ss:$24 sps:$4 sm:$0xff]  }
 0xc18   : > { %4650 = vadd.xlane.f32.xlu1 %v4649_v6  ;;  %5293 = vmatprep.subr.bf16.mxu1 %v14550_v31  ;;  %v14601_v31 = vld [vmem:[#allocation10 + $0x54c] ss:$24 sps:$4 sm:$0xff]  }
 0xc19   : > { %5347 = vmatpush2.bf16.msra.mxu0 %v14581_v7 }
 0xc1a   : > { %5348 = vmatprep.subr.bf16.mxu0 %v14589_v26 }
 0xc1b   : > { %5294 = vmatpush1.bf16.msra.mxu1 %v14548_v39  ;;  %v14607_v39 = vld [vmem:[#allocation10 + $0x51c] ss:$24 sps:$4 sm:$0xff]  }
 0xc1c   : > { %5295 = vmatprep.subr.bf16.mxu1 %v14556_v29  ;;  %v14605_v29 = vld [vmem:[#allocation10 + $0x518] ss:$24 sps:$4 sm:$0xff]  }
 0xc1d   : > { %5349 = vmatpush2.bf16.msra.mxu0 %v14587_v10 }
 0xc1e   : > { %5350 = vmatprep.subr.bf16.mxu0 %v14595_v27 }
 0xc1f   : > { %5296 = vmatpush1.bf16.msra.mxu1 %v14554_v44  ;;  %v14613_v44 = vld [vmem:[#allocation10 + $0x4ec] ss:$24 sps:$4 sm:$0xff]  }
 0xc20   : > { %5297 = vmatprep.subr.bf16.mxu1 %v14562_v51  ;;  %v14611_v51 = vld [vmem:[#allocation10 + $0x4e8] ss:$24 sps:$4 sm:$0xff]  }
 0xc21   : > { %5351 = vmatpush2.bf16.msra.mxu0 %v14593_v28 }
 0xc22   : > { %5352 = vmatprep.subr.bf16.mxu0 %v14601_v31  ;;  %v14631_v31 = vld [vmem:[#allocation10 + $0x434] ss:$24 sps:$4 sm:$0xff]  }
 0xc23   : > { %5298 = vmatpush1.bf16.msra.mxu1 %v14560_v58  ;;  %v14619_v58 = vld [vmem:[#allocation10 + $0x4bc] ss:$24 sps:$4 sm:$0xff]  }
 0xc24   : > { %5299 = vmatprep.subr.bf16.mxu1 %v14568_v60  ;;  %v14617_v60 = vld [vmem:[#allocation10 + $0x4b8] ss:$24 sps:$4 sm:$0xff]  }
 0xc25   : > { %5353 = vmatpush2.bf16.msra.mxu0 %v14599_v35  ;;  %v14626_v35 = vld [vmem:[#allocation10 + $0x460] ss:$24 sps:$4 sm:$0xff]  }
 0xc26   : > { %5354 = vmatprep.subr.bf16.mxu0 %v14607_v39  ;;  %v14637_v39 = vld [vmem:[#allocation10 + $0x3d4] ss:$24 sps:$4 sm:$0xff]  }
 0xc27   : > { %5300 = vmatpush1.bf16.msra.mxu1 %v14566_v62  ;;  %v14625_v62 = vld [vmem:[#allocation10 + $0x48c] ss:$24 sps:$4 sm:$0xff]  }
 0xc28   : > { %5301 = vmatprep.subr.bf16.mxu1 %v14574_v63  ;;  %v14623_v63 = vld [vmem:[#allocation10 + $0x488] ss:$24 sps:$4 sm:$0xff]  }
 0xc29   : > { %5355 = vmatpush2.bf16.msra.mxu0 %v14605_v29  ;;  %v14640_v29 = vld [vmem:[#allocation10 + $0x3a4] ss:$24 sps:$4 sm:$0xff]  }
 0xc2a   : > { %5356 = vmatprep.subr.bf16.mxu0 %v14613_v44  ;;  %v14643_v44 = vld [vmem:[#allocation10 + $0x374] ss:$24 sps:$4 sm:$0xff]  }
 0xc2b   : > { %5302 = vmatpush1.bf16.msra.mxu1 %v14572_v36 }
 0xc2c   : > { %5303 = vmatprep.subr.bf16.mxu1 %v14580_v2 }
 0xc2d   : > { %5357 = vmatpush2.bf16.msra.mxu0 %v14611_v51  ;;  %v14646_v51 = vld [vmem:[#allocation10 + $0x344] ss:$24 sps:$4 sm:$0xff]  }
 0xc2e   : > { %5358 = vmatprep.subr.bf16.mxu0 %v14619_v58  ;;  %v14649_v58 = vld [vmem:[#allocation10 + $0x314] ss:$24 sps:$4 sm:$0xff]  }
 0xc2f   : > { %5304 = vmatpush2.bf16.msra.mxu1 %v14578_v40 }
 0xc30   : > { %5305 = vmatprep.subr.bf16.mxu1 %v14586_v25 }
 0xc31   : > { %5359 = vmatpush2.bf16.msra.mxu0 %v14617_v60  ;;  %v14652_v60 = vld [vmem:[#allocation10 + $0x5e4] ss:$24 sps:$4 sm:$0xff]  }
 0xc32   : > { %5360 = vmatprep.subr.bf16.mxu0 %v14625_v62  ;;  %v14655_v62 = vld [vmem:[#allocation10 + $0x5b4] ss:$24 sps:$4 sm:$0xff]  }
 0xc33   : > { %5306 = vmatpush2.bf16.msra.mxu1 %v14584_v30 }
 0xc34   : > { %5307 = vmatprep.subr.bf16.mxu1 %v14592_v34 }
 0xc35   : > { %5361 = vmatpush2.bf16.msra.mxu0 %v14623_v63  ;;  %v14658_v63 = vld [vmem:[#allocation10 + $0x584] ss:$24 sps:$4 sm:$0xff]  }
 0xc36   : > { %13745 = vmatprep.subr.bf16.mxu0 %v16037_v15 }
 0xc37   : > { %5308 = vmatpush2.bf16.msra.mxu1 %v14590_v11 }
 0xc38   : > { %5309 = vmatprep.subr.bf16.mxu1 %v14598_v33 }
 0xc3b   : > { %5310 = vmatpush2.bf16.msra.mxu1 %v14596_v43 }
 0xc3c   : > { %5311 = vmatprep.subr.bf16.mxu1 %v14604_v32  ;;  %v14632_v32 = vld [vmem:[#allocation10 + $0x400] ss:$24 sps:$4 sm:$0xff]  }
 0xc3f   : > { %5312 = vmatpush2.bf16.msra.mxu1 %v14602_v41  ;;  %v14635_v41 = vld [vmem:[#allocation10 + $0x3d0] ss:$24 sps:$4 sm:$0xff]  }
 0xc40   : > { %5313 = vmatprep.subr.bf16.mxu1 %v14610_v42  ;;  %v14638_v42 = vld [vmem:[#allocation10 + $0x3a0] ss:$24 sps:$4 sm:$0xff]  }
 0xc43   : > { %5314 = vmatpush2.bf16.msra.mxu1 %v14608_v38  ;;  %v14641_v38 = vld [vmem:[#allocation10 + $0x370] ss:$24 sps:$4 sm:$0xff]  }
 0xc44   : > { %5315 = vmatprep.subr.bf16.mxu1 %v14616_v56  ;;  %v14644_v56 = vld [vmem:[#allocation10 + $0x340] ss:$24 sps:$4 sm:$0xff]  }
 0xc47   : > { %5316 = vmatpush2.bf16.msra.mxu1 %v14614_v59  ;;  %v14647_v59 = vld [vmem:[#allocation10 + $0x310] ss:$24 sps:$4 sm:$0xff]  }
 0xc48   : > { %5317 = vmatprep.subr.bf16.mxu1 %v14622_v61  ;;  %v14650_v61 = vld [vmem:[#allocation10 + $0x5e0] ss:$24 sps:$4 sm:$0xff]  }
 0xc4b   : > { %5318 = vmatpush2.bf16.msra.mxu1 %v14620_v18  ;;  %v14653_v18 = vld [vmem:[#allocation10 + $0x5b0] ss:$24 sps:$4 sm:$0xff]  }
 0xc4c   : > { %5373 = vmatprep.subr.bf16.mxu1 %v14628_v0  ;;  %v14656_v0 = vld [vmem:[#allocation10 + $0x580] ss:$24 sps:$4 sm:$0xff]  }
 0xc9d   : > { %v4648_v8 = vpop.xlane.xlu0 %4647 }
 0xc9e   : > { %v4652_v9 = vmul.f32 0.00390625, %v4648_v8  ;;  %v4643_v8 = vld [vmem:[#allocation7 + $0x1] ss:$4 sm:$0x3] }
 0xca0   : > { %v16640_v45 = vsub.f32 %v16625_v50, %v4652_v9  ;;  %v16643_v46 = vsub.f32 %v16627_v52, %v4652_v9 }
 0xca1   : > { %v4651_v12 = vpop.xlane.xlu1 %4650 }
 0xca2   : > { %v4653_v13 = vmul.f32 0.00390625, %v4651_v12  ;;  %v4658_v14 = vmul.f32 %v16640_v45, %v16640_v45  ;;  %v4659_v16 = vmul.f32 %v16643_v46, %v16643_v46  ;;  %v4645_v12 = vld [vmem:[#allocation8 + $0x1] ss:$4 sm:$0x3] }
 0xca4   : > { %v16650_v17 = vsub.f32 %v16633_v22, %v4653_v13  ;;  %v16653_v21 = vsub.f32 %v16635_v23, %v4653_v13  ;;  %v4662_v53 = vadd.f32 %v4659_v16, %v4658_v14  ;;  %v4682_v14 = vrot.slane %v4643_v8, %v16422_v19 }
 0xca5   : > { %v4686_v16 = vrot.slane %v4643_v8, %v16425_v20  ;;  %v14670_v8 = vld [vmem:[#allocation10 + $0x4c4] ss:$24 sps:$4 sm:$0xff]  }
 0xca6   : > { %4663 = vadd.xlane.f32.xlu0 %v4662_v53  ;;  %v4660_v5 = vmul.f32 %v16650_v17, %v16650_v17  ;;  %v4661_v6 = vmul.f32 %v16653_v21, %v16653_v21 }
 0xca8   : > { %v4665_v24 = vadd.f32 %v4661_v6, %v4660_v5  ;;  %v4697_v6 = vrot.slane %v4645_v12, %v16422_v19 }
 0xcaa   : > { %4666 = vadd.xlane.f32.xlu1 %v4665_v24  ;;  %v4701_v24 = vrot.slane %v4645_v12, %v16425_v20  ;;  %v14673_v12 = vld [vmem:[#allocation10 + $0x494] ss:$24 sps:$4 sm:$0xff]  }
 0xd2f   : > { %v4664_v36 = vpop.xlane.xlu0 %4663 }
 0xd30   : > { %v4668_v1 = vmul.f32 0.00390625, %v4664_v36  ;;  %v14661_v36 = vld [vmem:[#allocation10 + $0x554] ss:$24 sps:$4 sm:$0xff]  }
 0xd32   : > { %v4670_v2 = vadd.f32 1e-05, %v4668_v1  ;;  %v14659_v1 = vld [vmem:[#allocation10 + $0x550] ss:$24 sps:$4 sm:$0xff]  }
 0xd33   : > { %v4667_v3 = vpop.xlane.xlu1 %4666 }
 0xd34   : > { %15386 = vrsqrt.f32 %v4670_v2  ;;  %v4669_v40 = vmul.f32 0.00390625, %v4667_v3  ;;  %v14664_v2 = vld [vmem:[#allocation10 + $0x524] ss:$24 sps:$4 sm:$0xff]   ;;  %v14662_v3 = vld [vmem:[#allocation10 + $0x520] ss:$24 sps:$4 sm:$0xff]  }
 0xd36   : > { %v4671_v7 = vadd.f32 1e-05, %v4669_v40  ;;  %v14667_v40 = vld [vmem:[#allocation10 + $0x4f4] ss:$24 sps:$4 sm:$0xff]  }
 0xd38   : > { %15388 = vrsqrt.f32 %v4671_v7  ;;  %v14665_v7 = vld [vmem:[#allocation10 + $0x4f0] ss:$24 sps:$4 sm:$0xff]  }
 0xd41   : > { %v15387_v9 = vpop.eup %15386 }
 0xd42   : > { %v4675_v13 = vmul.f32 %v15387_v9, %v16643_v46  ;;  %v4674_v53 = vmul.f32 %v15387_v9, %v16640_v45  ;;  %v14668_v9 = vld [vmem:[#allocation10 + $0x4c0] ss:$24 sps:$4 sm:$0xff]  }
 0xd44   : > { %v4690_v30 = vmul.f32 %v4686_v16, %v4675_v13  ;;  %v4689_v10 = vmul.f32 %v4682_v14, %v4674_v53  ;;  %v14671_v13 = vld [vmem:[#allocation10 + $0x490] ss:$24 sps:$4 sm:$0xff]  }
 0xd45   : > { %v15389_v5 = vpop.eup %15388 }
 0xd46   : > { %v4677_v25 = vmul.f32 %v15389_v5, %v16653_v21  ;;  %v4676_v26 = vmul.f32 %v15389_v5, %v16650_v17  ;;  %v4705_v46 = vadd.f32 %v4701_v24, %v4690_v30  ;;  %v4704_v28 = vadd.f32 %v4697_v6, %v4689_v10  ;;  %v14629_v17 = vld [vmem:[#allocation10 + $0x430] ss:$24 sps:$4 sm:$0xff]   ;;  %v14634_v21 = vld [vmem:[#allocation10 + $0x404] ss:$24 sps:$4 sm:$0xff]  }
 0xd48   : > { %v4692_v34 = vmul.f32 %v4686_v16, %v4677_v25  ;;  %v4691_v11 = vmul.f32 %v4682_v14, %v4676_v26 }
 0xd4a   : > { %v4707_v27 = vadd.f32 %v4701_v24, %v4692_v34  ;;  %v4706_v43 = vadd.f32 %v4697_v6, %v4691_v11 }
 0xd4c   : > { %v4709_v33 = vpack.c.bf16 %v4707_v27, %v4705_v46  ;;  %v16668_v45 = vpack.c.bf16 %v4706_v43, %v4704_v28 }
 0xd4e   : > { %5319 = vmatprep.mubr.bf16.mxu1 %v4709_v33  ;;  %5362 = vmatprep.mubr.bf16.mxu0 %v4709_v33 }
 0xd4f   : > { %5320 = vmatmul.mubr.bf16.vlgmr.msra.gmra.mxu1 %v16668_v45  ;;  %5363 = vmatmul.mubr.bf16.vlgmr.msra.gmra.mxu0 %v16668_v45 }
 0xd50   : > { %5374 = vmatpush1.bf16.msra.mxu1 %v14626_v35  ;;  %5405 = vmatprep.mubr.bf16.mxu1 %v4709_v33 }
 0xd51   : > { %5375 = vmatprep.subr.bf16.mxu1 %v14631_v31  ;;  %13747 = vmatprep.mubr.msk.bf16.mxu0 %vm16038_vm6, %v16037_v15 }
 0xd54   : > { %5376 = vmatpush1.bf16.msra.mxu1 %v14629_v17 }
 0xd55   : > { %5377 = vmatprep.subr.bf16.mxu1 %v14634_v21 }
 0xd58   : > { %5378 = vmatpush1.bf16.msra.mxu1 %v14632_v32 }
 0xd59   : > { %5379 = vmatprep.subr.bf16.mxu1 %v14637_v39 }
 0xd5c   : > { %5380 = vmatpush1.bf16.msra.mxu1 %v14635_v41 }
 0xd5d   : > { %5381 = vmatprep.subr.bf16.mxu1 %v14640_v29 }
 0xd60   : > { %5382 = vmatpush1.bf16.msra.mxu1 %v14638_v42 }
 0xd61   : > { %5383 = vmatprep.subr.bf16.mxu1 %v14643_v44 }
 0xd64   : > { %5384 = vmatpush1.bf16.msra.mxu1 %v14641_v38 }
 0xd65   : > { %5385 = vmatprep.subr.bf16.mxu1 %v14646_v51 }
 0xd68   : > { %5386 = vmatpush1.bf16.msra.mxu1 %v14644_v56 }
 0xd69   : > { %5387 = vmatprep.subr.bf16.mxu1 %v14649_v58 }
 0xd6c   : > { %5388 = vmatpush1.bf16.msra.mxu1 %v14647_v59 }
 0xd6d   : > { %5389 = vmatprep.subr.bf16.mxu1 %v14652_v60 }
 0xd70   : > { %5390 = vmatpush2.bf16.msra.mxu1 %v14650_v61 }
 0xd71   : > { %5391 = vmatprep.subr.bf16.mxu1 %v14655_v62 }
 0xd74   : > { %5392 = vmatpush2.bf16.msra.mxu1 %v14653_v18 }
 0xd75   : > { %5393 = vmatprep.subr.bf16.mxu1 %v14658_v63 }
 0xd78   : > { %5394 = vmatpush2.bf16.msra.mxu1 %v14656_v0 }
 0xd79   : > { %5395 = vmatprep.subr.bf16.mxu1 %v14661_v36 }
 0xd7c   : > { %5396 = vmatpush2.bf16.msra.mxu1 %v14659_v1 }
 0xd7d   : > { %5397 = vmatprep.subr.bf16.mxu1 %v14664_v2 }
 0xd80   : > { %5398 = vmatpush2.bf16.msra.mxu1 %v14662_v3 }
 0xd81   : > { %5399 = vmatprep.subr.bf16.mxu1 %v14667_v40 }
 0xd84   : > { %5400 = vmatpush2.bf16.msra.mxu1 %v14665_v7 }
 0xd85   : > { %5401 = vmatprep.subr.bf16.mxu1 %v14670_v8 }
 0xd88   : > { %5402 = vmatpush2.bf16.msra.mxu1 %v14668_v9 }
 0xd89   : > { %5403 = vmatprep.subr.bf16.mxu1 %v14673_v12 }
 0xd8c   : > { %5404 = vmatpush2.bf16.msra.mxu1 %v14671_v13 }
 0xd8d   : > { %13751 = vmatprep.subr.bf16.mxu1 %v16037_v15 }
 0xd8f   : > { %5406 = vmatmul.mubr.bf16.vlgmr.msra.gmra.mxu1 %v16668_v45 }
 0xd90   : > { %13753 = vmatprep.mubr.msk.bf16.mxu1 %vm16038_vm6, %v16037_v15 }
 0xe0f   : > { %v5321_v14 = vpop.f32.mrf.mxu1  ;;  %v5364_v16 = vpop.f32.mrf.mxu0 }
 0xe10   : > { %v5416_v25 = vmul.f32 0.0625, %v5321_v14 }
 0xe11   : > { %v5323_v53 = vpop.f32.mrf.mxu1  ;;  %v5366_v5 = vpop.f32.mrf.mxu0 }
 0xe12   : > { %v5659_v34 = vmul.f32 0.0625, %v5323_v53 }
 0xe13   : > { %v5325_v6 = vpop.f32.mrf.mxu1  ;;  %v5368_v24 = vpop.f32.mrf.mxu0 }
 0xe14   : > { %v5417_v30 = vmul.f32 0.0625, %v5325_v6  ;;  %v5419_v26 = vpack.c.bf16 %v5368_v24, %v5364_v16 }
 0xe15   : > { %v5327_v10 = vpop.f32.mrf.mxu1  ;;  %v5370_v28 = vpop.f32.mrf.mxu0 }
 0xe16   : > { %v5418_v11 = vpack.c.bf16 %v5417_v30, %v5416_v25  ;;  %v5425_v46 = vsel %vm1850_vm7, %v5419_v26, 0  ;;  %v5660_v27 = vmul.f32 0.0625, %v5327_v10  ;;  %5539 = vrot.lane.b32.xlu0 %v5419_v26, %s16039_s25  ;;  %v5662_v33 = vpack.c.bf16 %v5370_v28, %v5366_v5 }
 0xe17   : > { %13746 = vmatpush3.bf16.xpose.msra.mxu0 %v5425_v46 }
 0xe18   : > { %v5661_v43 = vpack.c.bf16 %v5660_v27, %v5659_v34  ;;  %5536 = vrot.lane.b32.xlu1 %v5418_v11, %s16039_s25  ;;  %13757 = vmatprep.subr.bf16.mxu0 %v16037_v15  ;;  %v5668_v41 = vsel %vm1850_vm7, %v5662_v33, 0 }
 0xe1a   : > { %5779 = vrot.lane.b32.xlu0 %v5661_v43, %s16039_s25 }
 0xe1c   : > { %5782 = vrot.lane.b32.xlu1 %v5662_v33, %s16039_s25 }
 0xe1e   : > { %13748 = vmatmul.mubr.msk.bf16.vlgmr.msra.gmra.mxu0 %vm1850_vm7, %v5418_v11 }
 0xe1f   : > { %13759 = vmatprep.mubr.msk.bf16.mxu0 %vm16038_vm6, %v16037_v15 }
 0xe4f   : > { %v5407_v35 = vpop.f32.mrf.mxu1 }
 0xe51   : > { %v16687_v45 = vpop.f32.mrf.mxu1 }
 0xe53   : > { %v5411_v31 = vpop.f32.mrf.mxu1 }
 0xe54   : > { %v16689_v17 = vpack.c.bf16 %v5411_v31, %v5407_v35 }
 0xe56   : > { %13752 = vmatpush3.bf16.msra.mxu1 %v16689_v17 }
 0xe57   : > { %13763 = vmatprep.subr.bf16.mxu1 %v16037_v15 }
 0xe88   : > { %v5540_v21 = vpop.permute.xlu0 %5539 }
 0xe89   : > { %v5545_v32 = vsel %vm1850_vm7, %v5540_v21, 0 }
 0xe8a   : > { %13758 = vmatpush3.bf16.xpose.msra.mxu0 %v5545_v32  ;;  %v5537_v39 = vpop.permute.xlu1 %5536 }
 0xe8b   : > { %13769 = vmatprep.subr.bf16.mxu0 %v16037_v15 }
 0xe8c   : > { %v5780_v44 = vpop.permute.xlu0 %5779 }
 0xe8e   : > { %v5783_v29 = vpop.permute.xlu1 %5782 }
 0xe8f   : > { %v5788_v42 = vsel %vm1850_vm7, %v5783_v29, 0 }
 0xe91   : > { %13760 = vmatmul.mubr.msk.bf16.vlgmr.msra.gmra.mxu0 %vm1850_vm7, %v5537_v39 }
 0xe92   : > { %13770 = vmatpush3.bf16.xpose.msra.mxu0 %v5668_v41  ;;  %13771 = vmatprep.mubr.msk.bf16.mxu0 %vm16038_vm6, %v16037_v15 }
 0xe93   : > { %13781 = vmatprep.subr.bf16.mxu0 %v16037_v15 }
 0xe99   : > { %13772 = vmatmul.mubr.msk.bf16.vlgmr.msra.gmra.mxu0 %vm1850_vm7, %v5661_v43 }
 0xe9a   : > { %13782 = vmatpush3.bf16.xpose.msra.mxu0 %v5788_v42  ;;  %13783 = vmatprep.mubr.msk.bf16.mxu0 %vm16038_vm6, %v16037_v15 }
 0xea1   : > { %13784 = vmatmul.mubr.msk.bf16.vlgmr.msra.gmra.mxu0 %vm1850_vm7, %v5780_v44 }
 0xede   : > { %v5461_v38 = vpop.f32.mrf.mxu0 }
 0xedf   : > { %v5462_v51 = vadd.f32 %v5461_v38, %v16476_v54 }
 0xee0   : > { %v13749_v56 = vpop.f32.mrf.mxu0 }
 0xee1   : > { %v5468_v58 = vsel %vm1898_vm10, %v5462_v51, -inf }
 0xee2   : > { %5469 = vmax.xlane.f32.xlu1 %v5468_v58  ;;  %v5464_v59 = vpop.f32.mrf.mxu0 }
 0xee3   : > { %v5465_v60 = vadd.f32 %v5464_v59, %v16480_v57 }
 0xee4   : > { %v13750_v61 = vpop.f32.mrf.mxu0 }
 0xee5   : > { %v5471_v62 = vsel %vm1898_vm10, %v5465_v60, -inf }
 0xee6   : > { %5472 = vmax.xlane.f32.xlu0 %v5471_v62 }
 0xf51   : > { %v5581_v18 = vpop.f32.mrf.mxu0 }
 0xf52   : > { %v5582_v63 = vadd.f32 %v5581_v18, %v16476_v54 }
 0xf53   : > { %v13761_v0 = vpop.f32.mrf.mxu0 }
 0xf54   : > { %v5588_v36 = vsel %vm1898_vm10, %v5582_v63, -inf }
 0xf55   : > { %v5584_v1 = vpop.f32.mrf.mxu0  ;;  %5589 = vmax.xlane.f32.xlu0 %v5588_v36 }
 0xf56   : > { %v5585_v2 = vadd.f32 %v5584_v1, %v16480_v57 }
 0xf57   : > { %v13762_v3 = vpop.f32.mrf.mxu0 }
 0xf58   : > { %v5591_v40 = vsel %vm1898_vm10, %v5585_v2, -inf }
 0xf59   : > { %5592 = vmax.xlane.f32.xlu1 %v5591_v40  ;;  %v5704_v7 = vpop.f32.mrf.mxu0 }
 0xf5a   : > { %v5705_v8 = vadd.f32 %v5704_v7, %v16476_v54 }
 0xf5b   : > { %v13773_v9 = vpop.f32.mrf.mxu0 }
 0xf5c   : > { %v5711_v12 = vsel %vm1898_vm10, %v5705_v8, -inf }
 0xf5d   : > { %5712 = vmax.xlane.f32.xlu0 %v5711_v12  ;;  %v5707_v13 = vpop.f32.mrf.mxu0 }
 0xf5e   : > { %v5708_v14 = vadd.f32 %v5707_v13, %v16480_v57 }
 0xf5f   : > { %v13774_v16 = vpop.f32.mrf.mxu0 }
 0xf60   : > { %v5714_v53 = vsel %vm1898_vm10, %v5708_v14, -inf }
 0xf61   : > { %5715 = vmax.xlane.f32.xlu1 %v5714_v53  ;;  %v5824_v5 = vpop.f32.mrf.mxu0 }
 0xf62   : > { %v5825_v6 = vadd.f32 %v5824_v5, %v16476_v54 }
 0xf63   : > { %v13785_v24 = vpop.f32.mrf.mxu0 }
 0xf64   : > { %v5831_v25 = vsel %vm1898_vm10, %v5825_v6, -inf }
 0xf65   : > { %5832 = vmax.xlane.f32.xlu0 %v5831_v25  ;;  %v5827_v30 = vpop.f32.mrf.mxu0  ;;  %v5413_v25 = vpop.f32.mrf.mxu1 }
 0xf66   : > { %v5828_v26 = vadd.f32 %v5827_v30, %v16480_v57  ;;  %v5663_v30 = vpack.c.bf16 %v5413_v25, %v16687_v45  ;;  %v14695_v25 = vld [vmem:[#allocation11 + $0x100] ss:$8 sps:$4 sm:$0xff]  }
 0xf67   : > { %v13786_v10 = vpop.f32.mrf.mxu0 }
 0xf68   : > { %v5834_v34 = vsel %vm1898_vm10, %v5828_v26, -inf }
 0xf69   : > { %5835 = vmax.xlane.f32.xlu1 %v5834_v34 }
 0xf6b   : > { %v5470_v11 = vpop.xlane.xlu1 %5469 }
 0xf6c   : > { %v5474_v46 = vsub.f32 %v5462_v51, %v5470_v11 }
 0xf6e   : > { %v5476_v27 = vmul.f32 1.442695, %v5474_v46 }
 0xf6f   : > { %v5473_v28 = vpop.xlane.xlu0 %5472 }
 0xf70   : > { %15390 = vpow2.f32 %v5476_v27  ;;  %v5475_v43 = vsub.f32 %v5465_v60, %v5473_v28 }
 0xf72   : > { %v5478_v33 = vmul.f32 1.442695, %v5475_v43 }
 0xf74   : > { %15392 = vpow2.f32 %v5478_v33 }
 0xf7d   : > { %v15391_v35 = vpop.eup %15390 }
 0xf7e   : > { %v5480_v31 = vsel %vm1898_vm10, %v15391_v35, 0.0 }
 0xf7f   : > { %5481 = vadd.xlane.f32.xlu0 %v5480_v31 }
 0xf81   : > { %v15393_v21 = vpop.eup %15392 }
 0xf82   : > { %v5483_v32 = vsel %vm1898_vm10, %v15393_v21, 0.0 }
 0xf83   : > { %5484 = vadd.xlane.f32.xlu1 %v5483_v32 }
 0xfde   : > { %v5590_v39 = vpop.xlane.xlu0 %5589 }
 0xfdf   : > { %v5594_v41 = vsub.f32 %v5582_v63, %v5590_v39 }
 0xfe1   : > { %v5596_v29 = vmul.f32 1.442695, %v5594_v41 }
 0xfe2   : > { %v5593_v42 = vpop.xlane.xlu1 %5592 }
 0xfe3   : > { %15394 = vpow2.f32 %v5596_v29  ;;  %v5595_v44 = vsub.f32 %v5585_v2, %v5593_v42 }
 0xfe5   : > { %v5598_v38 = vmul.f32 1.442695, %v5595_v44 }
 0xfe6   : > { %v5713_v51 = vpop.xlane.xlu0 %5712 }
 0xfe7   : > { %15396 = vpow2.f32 %v5598_v38  ;;  %v5717_v56 = vsub.f32 %v5705_v8, %v5713_v51 }
 0xfe9   : > { %v5719_v58 = vmul.f32 1.442695, %v5717_v56 }
 0xfea   : > { %v5716_v59 = vpop.xlane.xlu1 %5715 }
 0xfeb   : > { %15398 = vpow2.f32 %v5719_v58  ;;  %v5718_v60 = vsub.f32 %v5708_v14, %v5716_v59 }
 0xfed   : > { %v5721_v61 = vmul.f32 1.442695, %v5718_v60 }
 0xfee   : > { %v5833_v62 = vpop.xlane.xlu0 %5832 }
 0xfef   : > { %15400 = vpow2.f32 %v5721_v61  ;;  %v5837_v18 = vsub.f32 %v5825_v6, %v5833_v62 }
 0xff0   : > { %v15395_v0 = vpop.eup %15394 }
 0xff1   : > { %v5839_v36 = vmul.f32 1.442695, %v5837_v18  ;;  %v5600_v63 = vsel %vm1898_vm10, %v15395_v0, 0.0 }
 0xff2   : > { %5601 = vadd.xlane.f32.xlu0 %v5600_v63  ;;  %v5836_v1 = vpop.xlane.xlu1 %5835 }
 0xff3   : > { %15402 = vpow2.f32 %v5839_v36  ;;  %v5838_v2 = vsub.f32 %v5828_v26, %v5836_v1  ;;  %v14674_v1 = vld [vmem:[#allocation11 + $0x170] ss:$8 sps:$4 sm:$0xff]  }
 0xff4   : > { %v15397_v3 = vpop.eup %15396 }
 0xff5   : > { %v5841_v40 = vmul.f32 1.442695, %v5838_v2  ;;  %v5603_v7 = vsel %vm1898_vm10, %v15397_v3, 0.0  ;;  %v14676_v2 = vld [vmem:[#allocation11 + $0x174] ss:$8 sps:$4 sm:$0xff]  }
 0xff6   : > { %5604 = vadd.xlane.f32.xlu1 %v5603_v7  ;;  %6117 = vmatprep.subr.bf16.mxu0 %v14676_v2  ;;  %v14682_v7 = vld [vmem:[#allocation11 + $0x154] ss:$8 sps:$4 sm:$0xff]  }
 0xff7   : > { %15404 = vpow2.f32 %v5841_v40  ;;  %6118 = vmatpush1.bf16.msra.mxu0 %v14674_v1  ;;  %v14677_v40 = vld [vmem:[#allocation11 + $0x160] ss:$8 sps:$4 sm:$0xff]  }
 0xff8   : > { %v15399_v8 = vpop.eup %15398 }
 0xff9   : > { %v5723_v9 = vsel %vm1898_vm10, %v15399_v8, 0.0 }
 0xffa   : > { %5724 = vadd.xlane.f32.xlu0 %v5723_v9  ;;  %v14685_v9 = vld [vmem:[#allocation11 + $0x144] ss:$8 sps:$4 sm:$0xff]  }
 0xffc   : > { %v15401_v12 = vpop.eup %15400 }
 0xffd   : > { %v5726_v13 = vsel %vm1898_vm10, %v15401_v12, 0.0 }
 0xffe   : > { %5727 = vadd.xlane.f32.xlu1 %v5726_v13  ;;  %v14688_v13 = vld [vmem:[#allocation11 + $0x134] ss:$8 sps:$4 sm:$0xff]  }
0x1000   : > { %v15403_v14 = vpop.eup %15402 }
0x1001   : > { %v5843_v16 = vsel %vm1898_vm10, %v15403_v14, 0.0 }
0x1002   : > { %5844 = vadd.xlane.f32.xlu0 %v5843_v16  ;;  %v14691_v16 = vld [vmem:[#allocation11 + $0x124] ss:$8 sps:$4 sm:$0xff]  }
0x1004   : > { %v15405_v53 = vpop.eup %15404 }
0x1005   : > { %v5846_v5 = vsel %vm1898_vm10, %v15405_v53, 0.0 }
0x1006   : > { %5847 = vadd.xlane.f32.xlu1 %v5846_v5  ;;  %v14694_v5 = vld [vmem:[#allocation11 + $0x114] ss:$8 sps:$4 sm:$0xff]  }
0x1008   : > { %v5482_v6 = vpop.xlane.xlu0 %5481 }
0x1009   : > { %15406 = vrcp.f32 %v5482_v6  ;;  %v14692_v6 = vld [vmem:[#allocation11 + $0x110] ss:$8 sps:$4 sm:$0xff]  }
0x100c   : > { %v5485_v24 = vpop.xlane.xlu1 %5484 }
0x100d   : > { %15408 = vrcp.f32 %v5485_v24  ;;  %v14697_v24 = vld [vmem:[#allocation11 + $0x104] ss:$8 sps:$4 sm:$0xff]  }
0x1016   : > { %v15407_v26 = vpop.eup %15406 }
0x1017   : > { %5855 = vrot.lane.b32.xlu1 %v5663_v30, %s16039_s25  ;;  %v5487_v34 = vmul.f32 %v15407_v26, %v15391_v35  ;;  %v14698_v26 = vld [vmem:[#allocation11 + $0x1f0] ss:$8 sps:$4 sm:$0xff]  }
0x1018   : > { %5612 = vrot.lane.b32.xlu0 %v16689_v17, %s16039_s25 }
0x101a   : > { %v15409_v10 = vpop.eup %15408 }
0x101b   : > { %v5489_v11 = vmul.f32 %v15409_v10, %v15393_v21  ;;  %v14703_v10 = vld [vmem:[#allocation11 + $0x1e4] ss:$8 sps:$4 sm:$0xff]  }
0x101d   : > { %v5490_v46 = vpack.c.bf16 %v5489_v11, %v5487_v34  ;;  %v14701_v34 = vld [vmem:[#allocation11 + $0x1e0] ss:$8 sps:$4 sm:$0xff]   ;;  %v14706_v11 = vld [vmem:[#allocation11 + $0x1d4] ss:$8 sps:$4 sm:$0xff]  }
0x101f   : > { %13754 = vmatmul.mubr.msk.bf16.vlgmr.msra.gmra.mxu1 %vm1898_vm10, %v5490_v46  ;;  %v14704_v46 = vld [vmem:[#allocation11 + $0x1d0] ss:$8 sps:$4 sm:$0xff]  }
0x1020   : > { %13765 = vmatprep.mubr.msk.bf16.mxu1 %vm16038_vm6, %v16037_v15 }
0x107b   : > { %v5602_v27 = vpop.xlane.xlu0 %5601 }
0x107c   : > { %15410 = vrcp.f32 %v5602_v27  ;;  %v14709_v27 = vld [vmem:[#allocation11 + $0x1c4] ss:$8 sps:$4 sm:$0xff]  }
0x107f   : > { %v5605_v28 = vpop.xlane.xlu1 %5604 }
0x1080   : > { %15412 = vrcp.f32 %v5605_v28  ;;  %v14707_v28 = vld [vmem:[#allocation11 + $0x1c0] ss:$8 sps:$4 sm:$0xff]  }
0x1083   : > { %v5725_v45 = vpop.xlane.xlu0 %5724 }
0x1084   : > { %15414 = vrcp.f32 %v5725_v45  ;;  %v14712_v45 = vld [vmem:[#allocation11 + $0x1b4] ss:$8 sps:$4 sm:$0xff]  }
0x1087   : > { %v5728_v43 = vpop.xlane.xlu1 %5727 }
0x1088   : > { %15416 = vrcp.f32 %v5728_v43  ;;  %v14710_v43 = vld [vmem:[#allocation11 + $0x1b0] ss:$8 sps:$4 sm:$0xff]  }
0x1089   : > { %v15411_v33 = vpop.eup %15410 }
0x108a   : > { %v5607_v35 = vmul.f32 %v15411_v33, %v15395_v0  ;;  %v14715_v33 = vld [vmem:[#allocation11 + $0x1a4] ss:$8 sps:$4 sm:$0xff]  }
0x108b   : > { %v5845_v31 = vpop.xlane.xlu0 %5844 }
0x108c   : > { %15418 = vrcp.f32 %v5845_v31 }
0x108d   : > { %v15413_v17 = vpop.eup %15412 }
0x108e   : > { %v5609_v21 = vmul.f32 %v15413_v17, %v15397_v3  ;;  %v14679_v3 = vld [vmem:[#allocation11 + $0x164] ss:$8 sps:$4 sm:$0xff]  }
0x108f   : > { %v5848_v32 = vpop.xlane.xlu1 %5847  ;;  %v5613_v39 = vpop.permute.xlu0 %5612  ;;  %6119 = vmatprep.subr.bf16.mxu0 %v14679_v3 }
0x1090   : > { %15420 = vrcp.f32 %v5848_v32  ;;  %13764 = vmatpush3.bf16.msra.mxu1 %v5613_v39  ;;  %v5610_v41 = vpack.c.bf16 %v5609_v21, %v5607_v35  ;;  %6120 = vmatpush1.bf16.msra.mxu0 %v14677_v40  ;;  %v14713_v35 = vld [vmem:[#allocation11 + $0x1a0] ss:$8 sps:$4 sm:$0xff]   ;;  %v14718_v21 = vld [vmem:[#allocation11 + $0x194] ss:$8 sps:$4 sm:$0xff]  }
0x1091   : > { %13775 = vmatprep.subr.bf16.mxu1 %v16037_v15  ;;  %v15415_v29 = vpop.eup %15414  ;;  %6121 = vmatprep.subr.bf16.mxu0 %v14682_v7 }
0x1092   : > { %v5730_v44 = vmul.f32 %v15415_v29, %v15399_v8  ;;  %v14680_v8 = vld [vmem:[#allocation11 + $0x150] ss:$8 sps:$4 sm:$0xff]  }
0x1093   : > { %13766 = vmatmul.mubr.msk.bf16.vlgmr.msra.gmra.mxu1 %vm1898_vm10, %v5610_v41  ;;  %v5856_v58 = vpop.permute.xlu1 %5855  ;;  %v14716_v29 = vld [vmem:[#allocation11 + $0x190] ss:$8 sps:$4 sm:$0xff]  }
0x1094   : > { %13776 = vmatpush3.bf16.msra.mxu1 %v5663_v30  ;;  %13777 = vmatprep.mubr.msk.bf16.mxu1 %vm16038_vm6, %v16037_v15  ;;  %v14700_v30 = vld [vmem:[#allocation11 + $0x1f4] ss:$8 sps:$4 sm:$0xff]  }
0x1095   : > { %v15417_v42 = vpop.eup %15416  ;;  %13787 = vmatprep.subr.bf16.mxu1 %v16037_v15  ;;  %6122 = vmatpush1.bf16.msra.mxu0 %v14680_v8 }
0x1096   : > { %v5732_v38 = vmul.f32 %v15417_v42, %v15401_v12  ;;  %v14683_v12 = vld [vmem:[#allocation11 + $0x140] ss:$8 sps:$4 sm:$0xff]   ;;  %6123 = vmatprep.subr.bf16.mxu0 %v14685_v9 }
0x1098   : > { %v5733_v51 = vpack.c.bf16 %v5732_v38, %v5730_v44  ;;  %v14719_v38 = vld [vmem:[#allocation11 + $0x180] ss:$8 sps:$4 sm:$0xff]  }
0x1099   : > { %v15419_v56 = vpop.eup %15418  ;;  %6124 = vmatpush1.bf16.msra.mxu0 %v14683_v12 }
0x109a   : > { %v5850_v60 = vmul.f32 %v15419_v56, %v15403_v14  ;;  %v14686_v14 = vld [vmem:[#allocation11 + $0x130] ss:$8 sps:$4 sm:$0xff]   ;;  %6125 = vmatprep.subr.bf16.mxu0 %v14688_v13 }
0x109b   : > { %13778 = vmatmul.mubr.msk.bf16.vlgmr.msra.gmra.mxu1 %vm1898_vm10, %v5733_v51  ;;  %v14721_v51 = vld [vmem:[#allocation11 + $0x184] ss:$8 sps:$4 sm:$0xff]  }
0x109c   : > { %13788 = vmatpush3.bf16.msra.mxu1 %v5856_v58  ;;  %13789 = vmatprep.mubr.msk.bf16.mxu1 %vm16038_vm6, %v16037_v15 }
0x109d   : > { %v15421_v59 = vpop.eup %15420  ;;  %6126 = vmatpush1.bf16.msra.mxu0 %v14686_v14 }
0x109e   : > { %v5852_v61 = vmul.f32 %v15421_v59, %v15405_v53  ;;  %v14689_v53 = vld [vmem:[#allocation11 + $0x120] ss:$8 sps:$4 sm:$0xff]   ;;  %6127 = vmatprep.subr.bf16.mxu0 %v14691_v16 }
0x10a0   : > { %v5853_v62 = vpack.c.bf16 %v5852_v61, %v5850_v60 }
0x10a1   : > { %6128 = vmatpush1.bf16.msra.mxu0 %v14689_v53  ;;  %v6165_v53 = vld [vmem:[#allocation13 + $0x1] ss:$4 sm:$0x3] }
0x10a2   : > { %6129 = vmatprep.subr.bf16.mxu0 %v14694_v5 }
0x10a3   : > { %13790 = vmatmul.mubr.msk.bf16.vlgmr.msra.gmra.mxu1 %vm1898_vm10, %v5853_v62 }
0x10a5   : > { %6130 = vmatpush1.bf16.msra.mxu0 %v14692_v6 }
0x10a6   : > { %6131 = vmatprep.subr.bf16.mxu0 %v14697_v24  ;;  %v6170_v24 = vrot.slane %v6165_v53, %v16422_v19 }
0x10a9   : > { %6132 = vmatpush1.bf16.msra.mxu0 %v14695_v25  ;;  %v6174_v25 = vrot.slane %v6165_v53, %v16425_v20 }
0x10aa   : > { %6133 = vmatprep.subr.bf16.mxu0 %v14700_v30 }
0x10ad   : > { %6134 = vmatpush2.bf16.msra.mxu0 %v14698_v26 }
0x10ae   : > { %6135 = vmatprep.subr.bf16.mxu0 %v14703_v10 }
0x10b1   : > { %6136 = vmatpush2.bf16.msra.mxu0 %v14701_v34 }
0x10b2   : > { %6137 = vmatprep.subr.bf16.mxu0 %v14706_v11 }
0x10b5   : > { %6138 = vmatpush2.bf16.msra.mxu0 %v14704_v46 }
0x10b6   : > { %6139 = vmatprep.subr.bf16.mxu0 %v14709_v27 }
0x10b9   : > { %6140 = vmatpush2.bf16.msra.mxu0 %v14707_v28 }
0x10ba   : > { %6141 = vmatprep.subr.bf16.mxu0 %v14712_v45  ;;  %v6306_v45 = vld [vmem:[#allocation17 + $0x5c0] sm:$0xff] }
0x10bd   : > { %6142 = vmatpush2.bf16.msra.mxu0 %v14710_v43  ;;  %v6310_v43 = vld [vmem:[#allocation17 + $0x5e0] sm:$0xff] }
0x10be   : > { %6143 = vmatprep.subr.bf16.mxu0 %v14715_v33  ;;  %v6307_v33 = vld [vmem:[#allocation17 + $0x5c8] sm:$0xff] }
0x10c1   : > { %6144 = vmatpush2.bf16.msra.mxu0 %v14713_v35  ;;  %v6298_v35 = vld [vmem:[#allocation17 + $0x580] sm:$0xff] }
0x10c2   : > { %6145 = vmatprep.subr.bf16.mxu0 %v14718_v21 }
0x10c5   : > { %6146 = vmatpush2.bf16.msra.mxu0 %v14716_v29  ;;  %v6303_v29 = vld [vmem:[#allocation17 + $0x5a8] sm:$0xff] }
0x10c6   : > { %6147 = vmatprep.subr.bf16.mxu0 %v14721_v51  ;;  %v6291_v51 = vld [vmem:[#allocation17 + $0x548] sm:$0xff] }
0x10c9   : > { %6148 = vmatpush2.bf16.msra.mxu0 %v14719_v38  ;;  %v6294_v38 = vld [vmem:[#allocation17 + $0x560] sm:$0xff] }
0x10df   : > { %v16745_v18 = vpop.f32.mrf.mxu1 }
0x10e1   : > { %v13755_v0 = vpop.f32.mrf.mxu1 }
0x10e3   : > { %v16747_v36 = vpop.f32.mrf.mxu1 }
0x10e5   : > { %v13756_v63 = vpop.f32.mrf.mxu1 }
0x1153   : > { %v5652_v31 = vpop.f32.mrf.mxu1 }
0x1155   : > { %v13767_v17 = vpop.f32.mrf.mxu1 }
0x1156   : > { %v6311_v17 = vld [vmem:[#allocation17 + $0x5e8] sm:$0xff] }
0x1157   : > { %v5655_v32 = vpop.f32.mrf.mxu1  ;;  %v13020_v21 = vcombine.low %v6307_v33, %v6311_v17 }
0x1158   : > { %v14083_v39 = vpack.i.bf16 %v5655_v32, %v5652_v31  ;;  %v13018_v31 = vcombine.low %v6306_v45, %v6310_v43  ;;  %v13021_v32 = vcombine.high %v6307_v33, %v6311_v17  ;;  %v6250_v17 = vld [vmem:[#allocation17 + $0x400] sm:$0xff] }
0x1159   : > { %v13768_v41 = vpop.f32.mrf.mxu1 }
0x115a   : > { %14084 = vrot.lane.b32.xlu0 %v14083_v39, %s16039_s25  ;;  %v6299_v41 = vld [vmem:[#allocation17 + $0x588] sm:$0xff]  ;;  %7104 = vmatprep.subr.bf16.mxu0 %v13021_v32 }
0x115b   : > { %v5771_v42 = vpop.f32.mrf.mxu1 }
0x115d   : > { %v13779_v44 = vpop.f32.mrf.mxu1 }
0x115e   : > { %v13013_v44 = vcombine.high %v6299_v41, %v6303_v29 }
0x115f   : > { %v5774_v56 = vpop.f32.mrf.mxu1 }
0x1161   : > { %v13780_v58 = vpop.f32.mrf.mxu1 }
0x1163   : > { %v5895_v59 = vpop.f32.mrf.mxu1 }
0x1165   : > { %v13791_v60 = vpop.f32.mrf.mxu1 }
0x1167   : > { %v5898_v61 = vpop.f32.mrf.mxu1 }
0x1168   : > { %v14078_v62 = vpack.i.bf16 %v5898_v61, %v5895_v59  ;;  %v13012_v59 = vcombine.low %v6299_v41, %v6303_v29 }
0x1169   : > { %v13792_v0 = vpop.f32.mrf.mxu1 }
0x116a   : > { %14079 = vrot.lane.b32.xlu1 %v14078_v62, %s16039_s25  ;;  %v6282_v62 = vld [vmem:[#allocation17 + $0x500] sm:$0xff] }
0x116b   : > { %v6286_v0 = vld [vmem:[#allocation17 + $0x520] sm:$0xff] }
0x11cc   : > { %v14085_v63 = vpop.permute.xlu0 %14084 }
0x11cd   : > { %v14087_v1 = vunpack.i.h.bf16 %v14085_v63  ;;  %v14086_v2 = vunpack.i.l.bf16 %v14085_v63  ;;  %v6283_v63 = vld [vmem:[#allocation17 + $0x508] sm:$0xff] }
0x11cf   : > { %v5919_v8 = vsel %vm1850_vm7, %v16747_v36, %v14087_v1  ;;  %v5918_v9 = vsel %vm1850_vm7, %v16745_v18, %v14086_v2  ;;  %v6287_v1 = vld [vmem:[#allocation17 + $0x528] sm:$0xff] }
0x11d0   : > { %v5922_v16 = vpack.c.bf16 %v5919_v8, %v5918_v9  ;;  %v6274_v8 = vld [vmem:[#allocation17 + $0x4c0] sm:$0xff] }
0x11d1   : > { %v6278_v9 = vld [vmem:[#allocation17 + $0x4e0] sm:$0xff] }
0x11d2   : > { %v12987_v53 = vcombine.high %v6274_v8, %v6278_v9 }
0x11dc   : > { %v14080_v3 = vpop.permute.xlu1 %14079 }
0x11dd   : > { %v14082_v40 = vunpack.i.h.bf16 %v14080_v3  ;;  %v14081_v7 = vunpack.i.l.bf16 %v14080_v3 }
0x11df   : > { %v5920_v12 = vsel %vm1850_vm7, %v5771_v42, %v14081_v7  ;;  %v5921_v13 = vsel %vm1850_vm7, %v5774_v56, %v14082_v40  ;;  %v6290_v42 = vld [vmem:[#allocation17 + $0x540] sm:$0xff]  ;;  %v6295_v56 = vld [vmem:[#allocation17 + $0x568] sm:$0xff]  ;;  %v12995_v40 = vcombine.high %v6282_v62, %v6286_v0  ;;  %v12997_v7 = vcombine.high %v6283_v63, %v6287_v1 }
0x11e0   : > { %v5923_v14 = vpack.c.bf16 %v5921_v13, %v5920_v12  ;;  %v13003_v60 = vcombine.high %v6290_v42, %v6294_v38  ;;  %v13005_v61 = vcombine.high %v6291_v51, %v6295_v56  ;;  %v13002_v2 = vcombine.low %v6290_v42, %v6294_v38  ;;  %v6275_v12 = vld [vmem:[#allocation17 + $0x4c8] sm:$0xff]  ;;  %v6370_v42 = vld [vmem:[#allocation17 + $0x7c0] sm:$0xff] }
0x11e1   : > { %v13004_v3 = vcombine.low %v6291_v51, %v6295_v56  ;;  %v6279_v13 = vld [vmem:[#allocation17 + $0x4e8] sm:$0xff] }
0x11e2   : > { %6149 = vmatprep.mubr.bf16.mxu0 %v5923_v14  ;;  %v12994_v14 = vcombine.low %v6282_v62, %v6286_v0  ;;  %v6371_v38 = vld [vmem:[#allocation17 + $0x7c8] sm:$0xff] }
0x11e3   : > { %6150 = vmatmul.mubr.bf16.vlgmr.msra.gmra.mxu0 %v5922_v16  ;;  %v12996_v16 = vcombine.low %v6283_v63, %v6287_v1  ;;  %v6375_v51 = vld [vmem:[#allocation17 + $0x7e8] sm:$0xff] }
0x11e4   : > { %7105 = vmatpush1.bf16.msra.mxu0 %v13020_v21  ;;  %v6255_v21 = vld [vmem:[#allocation17 + $0x428] sm:$0xff]  ;;  %v13084_v62 = vcombine.low %v6371_v38, %v6375_v51 }
0x11e5   : > { %7106 = vmatprep.subr.bf16.mxu0 %v13013_v44  ;;  %v6374_v44 = vld [vmem:[#allocation17 + $0x7e0] sm:$0xff] }
0x11e8   : > { %7107 = vmatpush1.bf16.msra.mxu0 %v13012_v59  ;;  %v13083_v59 = vcombine.high %v6370_v42, %v6374_v44 }
0x11e9   : > { %7108 = vmatprep.subr.bf16.mxu0 %v13005_v61  ;;  %v13082_v61 = vcombine.low %v6370_v42, %v6374_v44 }
0x11ec   : > { %7109 = vmatpush1.bf16.msra.mxu0 %v13004_v3 }
0x11ed   : > { %7110 = vmatprep.subr.bf16.mxu0 %v12997_v7 }
0x11f0   : > { %7111 = vmatpush1.bf16.msra.mxu0 %v12996_v16 }
0x12a3   : > { %v6151_v5 = vpop.f32.mrf.mxu0 }
0x12a4   : > { %v6160_v6 = vadd.f32 %v6151_v5, %v16625_v50  ;;  %v12989_v5 = vcombine.high %v6275_v12, %v6279_v13 }
0x12a5   : > { %v6153_v36 = vpop.f32.mrf.mxu0 }
0x12a6   : > { %v6161_v30 = vadd.f32 %v6153_v36, %v16627_v52  ;;  %v16761_v26 = vadd.f32 %v6170_v24, %v6160_v6  ;;  %v6266_v6 = vld [vmem:[#allocation17 + $0x480] sm:$0xff]  ;;  %v6271_v36 = vld [vmem:[#allocation17 + $0x4a8] sm:$0xff]  ;;  %7112 = vmatprep.subr.bf16.mxu0 %v12989_v5 }
0x12a7   : > { %v6155_v18 = vpop.f32.mrf.mxu0  ;;  %v6362_v5 = vld [vmem:[#allocation17 + $0x780] sm:$0xff] }
0x12a8   : > { %v16763_v10 = vadd.f32 %v6174_v25, %v6161_v30  ;;  %v6162_v34 = vadd.f32 %v6155_v18, %v16633_v22  ;;  %v13019_v22 = vcombine.high %v6306_v45, %v6310_v43  ;;  %v12986_v30 = vcombine.low %v6274_v8, %v6278_v9  ;;  %v6263_v45 = vld [vmem:[#allocation17 + $0x468] sm:$0xff] }
0x12a9   : > { %v6157_v11 = vpop.f32.mrf.mxu0  ;;  %v12988_v18 = vcombine.low %v6275_v12, %v6279_v13 }
0x12aa   : > { %v6163_v46 = vadd.f32 %v6157_v11, %v16635_v23  ;;  %v6185_v50 = vadd.f32 %v16763_v10, %v16761_v26  ;;  %v16769_v27 = vadd.f32 %v6170_v24, %v6162_v34  ;;  %v6302_v23 = vld [vmem:[#allocation17 + $0x5a0] sm:$0xff]  ;;  %7061 = vmatprep.subr.bf16.mxu1 %v13019_v22 }
0x12ab   : > { %v13011_v39 = vcombine.high %v6298_v35, %v6302_v23  ;;  %7062 = vmatpush1.bf16.msra.mxu1 %v13018_v31  ;;  %v13010_v58 = vcombine.low %v6298_v35, %v6302_v23  ;;  %v6270_v24 = vld [vmem:[#allocation17 + $0x4a0] sm:$0xff]  ;;  %7113 = vmatpush1.bf16.msra.mxu0 %v12988_v18  ;;  %v6251_v23 = vld [vmem:[#allocation17 + $0x408] sm:$0xff] }
0x12ac   : > { %v16771_v28 = vadd.f32 %v6174_v25, %v6163_v46  ;;  %6186 = vadd.xlane.f32.xlu1 %v6185_v50  ;;  %v6267_v25 = vld [vmem:[#allocation17 + $0x488] sm:$0xff]  ;;  %v12979_v34 = vcombine.high %v6266_v6, %v6270_v24  ;;  %v6258_v46 = vld [vmem:[#allocation17 + $0x440] sm:$0xff]  ;;  %v12978_v43 = vcombine.low %v6266_v6, %v6270_v24  ;;  %v12965_v29 = vcombine.high %v6251_v23, %v6255_v21 }
0x12ad   : > { %7063 = vmatprep.subr.bf16.mxu1 %v13011_v39  ;;  %v12981_v11 = vcombine.high %v6267_v25, %v6271_v36  ;;  %v6262_v50 = vld [vmem:[#allocation17 + $0x460] sm:$0xff]  ;;  %v12980_v33 = vcombine.low %v6267_v25, %v6271_v36  ;;  %v6363_v24 = vld [vmem:[#allocation17 + $0x788] sm:$0xff] }
0x12ae   : > { %v6188_v52 = vadd.f32 %v16771_v28, %v16769_v27  ;;  %v12971_v31 = vcombine.high %v6258_v46, %v6262_v50  ;;  %v6254_v35 = vld [vmem:[#allocation17 + $0x420] sm:$0xff]  ;;  %v12970_v32 = vcombine.low %v6258_v46, %v6262_v50  ;;  %v6367_v36 = vld [vmem:[#allocation17 + $0x7a8] sm:$0xff] }
0x12af   : > { %7064 = vmatpush1.bf16.msra.mxu1 %v13010_v58  ;;  %7114 = vmatprep.subr.bf16.mxu0 %v12981_v11  ;;  %v12963_v41 = vcombine.high %v6250_v17, %v6254_v35  ;;  %v12962_v56 = vcombine.low %v6250_v17, %v6254_v35  ;;  %v12964_v58 = vcombine.low %v6251_v23, %v6255_v21  ;;  %v6366_v6 = vld [vmem:[#allocation17 + $0x7a0] sm:$0xff]  ;;  %v6355_v50 = vld [vmem:[#allocation17 + $0x748] sm:$0xff] }
0x12b0   : > { %6189 = vadd.xlane.f32.xlu0 %v6188_v52  ;;  %7065 = vmatprep.subr.bf16.mxu1 %v13003_v60  ;;  %v6259_v52 = vld [vmem:[#allocation17 + $0x448] sm:$0xff]  ;;  %v13085_v60 = vcombine.high %v6371_v38, %v6375_v51  ;;  %v13075_v25 = vcombine.high %v6362_v5, %v6366_v6  ;;  %v13076_v18 = vcombine.low %v6363_v24, %v6367_v36  ;;  %v6354_v11 = vld [vmem:[#allocation17 + $0x740] sm:$0xff] }
0x12b1   : > { %v12973_v22 = vcombine.high %v6259_v52, %v6263_v45  ;;  %7115 = vmatpush1.bf16.msra.mxu0 %v12980_v33  ;;  %v12972_v39 = vcombine.low %v6259_v52, %v6263_v45  ;;  %v6358_v46 = vld [vmem:[#allocation17 + $0x760] sm:$0xff]  ;;  %v6359_v45 = vld [vmem:[#allocation17 + $0x768] sm:$0xff] }
0x12b2   : > { %v13067_v52 = vcombine.high %v6354_v11, %v6358_v46  ;;  %v13068_v33 = vcombine.low %v6355_v50, %v6359_v45  ;;  %v6350_v17 = vld [vmem:[#allocation17 + $0x720] sm:$0xff]  ;;  %v6347_v35 = vld [vmem:[#allocation17 + $0x708] sm:$0xff] }
0x12b3   : > { %7066 = vmatpush1.bf16.msra.mxu1 %v13002_v2  ;;  %7116 = vmatprep.subr.bf16.mxu0 %v12973_v22  ;;  %v6346_v22 = vld [vmem:[#allocation17 + $0x700] sm:$0xff]  ;;  %v6339_v38 = vld [vmem:[#allocation17 + $0x6c8] sm:$0xff] }
0x12b4   : > { %7067 = vmatprep.subr.bf16.mxu1 %v12995_v40  ;;  %v13058_v23 = vcombine.low %v6346_v22, %v6350_v17  ;;  %v13059_v21 = vcombine.high %v6346_v22, %v6350_v17  ;;  %v6343_v51 = vld [vmem:[#allocation17 + $0x6e8] sm:$0xff] }
0x12b5   : > { %7117 = vmatpush1.bf16.msra.mxu0 %v12972_v39  ;;  %v6338_v39 = vld [vmem:[#allocation17 + $0x6c0] sm:$0xff] }
0x12b6   : > { %7118 = vmatprep.subr.bf16.mxu0 %v12965_v29 }
0x12b7   : > { %7068 = vmatpush1.bf16.msra.mxu1 %v12994_v14 }
0x12b8   : > { %7069 = vmatprep.subr.bf16.mxu1 %v12987_v53 }
0x12b9   : > { %7119 = vmatpush1.bf16.msra.mxu0 %v12964_v58  ;;  %v13053_v58 = vcombine.high %v6339_v38, %v6343_v51 }
0x12ba   : > { %7120 = vmatprep.subr.bf16.mxu0 %v13085_v60  ;;  %v6331_v60 = vld [vmem:[#allocation17 + $0x688] sm:$0xff] }
0x12bb   : > { %7070 = vmatpush1.bf16.msra.mxu1 %v12986_v30  ;;  %v13074_v30 = vcombine.low %v6362_v5, %v6366_v6  ;;  %v6314_v6 = vld [vmem:[#allocation17 + $0x600] sm:$0xff] }
0x12bc   : > { %7071 = vmatprep.subr.bf16.mxu1 %v12979_v34  ;;  %v13077_v34 = vcombine.high %v6363_v24, %v6367_v36  ;;  %v6318_v24 = vld [vmem:[#allocation17 + $0x620] sm:$0xff]  ;;  %v6319_v36 = vld [vmem:[#allocation17 + $0x628] sm:$0xff] }
0x12bd   : > { %7121 = vmatpush2.bf16.msra.mxu0 %v13084_v62 }
0x12be   : > { %7122 = vmatprep.subr.bf16.mxu0 %v13077_v34  ;;  %v13027_v34 = vcombine.high %v6314_v6, %v6318_v24 }
0x12bf   : > { %7072 = vmatpush1.bf16.msra.mxu1 %v12978_v43  ;;  %v13066_v43 = vcombine.low %v6354_v11, %v6358_v46  ;;  %v13026_v46 = vcombine.low %v6314_v6, %v6318_v24  ;;  %v6305_v6 = vld [vmem:[#allocation17 + $0x5b8] sm:$0xff] }
0x12c0   : > { %7073 = vmatprep.subr.bf16.mxu1 %v12971_v31  ;;  %v13069_v31 = vcombine.high %v6355_v50, %v6359_v45  ;;  %v6312_v45 = vld [vmem:[#allocation17 + $0x5f0] sm:$0xff] }
0x12c1   : > { %7123 = vmatpush2.bf16.msra.mxu0 %v13076_v18 }
0x12c2   : > { %7124 = vmatprep.subr.bf16.mxu0 %v13069_v31  ;;  %v6313_v31 = vld [vmem:[#allocation17 + $0x5f8] sm:$0xff] }
0x12c3   : > { %7074 = vmatpush1.bf16.msra.mxu1 %v12970_v32  ;;  %v6351_v32 = vld [vmem:[#allocation17 + $0x728] sm:$0xff] }
0x12c4   : > { %7075 = vmatprep.subr.bf16.mxu1 %v12963_v41  ;;  %v6342_v41 = vld [vmem:[#allocation17 + $0x6e0] sm:$0xff]  ;;  %v13060_v29 = vcombine.low %v6347_v35, %v6351_v32  ;;  %v13061_v42 = vcombine.high %v6347_v35, %v6351_v32 }
0x12c5   : > { %7125 = vmatpush2.bf16.msra.mxu0 %v13068_v33  ;;  %v13051_v44 = vcombine.high %v6338_v39, %v6342_v41  ;;  %v13050_v62 = vcombine.low %v6338_v39, %v6342_v41 }
0x12c6   : > { %7126 = vmatprep.subr.bf16.mxu0 %v13061_v42  ;;  %v6182_v42 = vld [vmem:[#allocation14 + $0x1] ss:$4 sm:$0x3] }
0x12c7   : > { %7076 = vmatpush1.bf16.msra.mxu1 %v12962_v56  ;;  %v6330_v56 = vld [vmem:[#allocation17 + $0x680] sm:$0xff] }
0x12c8   : > { %7077 = vmatprep.subr.bf16.mxu1 %v13083_v59  ;;  %v6334_v59 = vld [vmem:[#allocation17 + $0x6a0] sm:$0xff] }
0x12c9   : > { %7127 = vmatpush2.bf16.msra.mxu0 %v13060_v29 }
0x12ca   : > { %7128 = vmatprep.subr.bf16.mxu0 %v13053_v58 }
0x12cb   : > { %7078 = vmatpush2.bf16.msra.mxu1 %v13082_v61  ;;  %v6335_v61 = vld [vmem:[#allocation17 + $0x6a8] sm:$0xff] }
0x12cc   : > { %7079 = vmatprep.subr.bf16.mxu1 %v13075_v25  ;;  %v6315_v25 = vld [vmem:[#allocation17 + $0x608] sm:$0xff] }
0x12cd   : > { %v13029_v11 = vcombine.high %v6315_v25, %v6319_v36  ;;  %v13028_v50 = vcombine.low %v6315_v25, %v6319_v36  ;;  %v6292_v36 = vld [vmem:[#allocation17 + $0x550] sm:$0xff] }
0x12cf   : > { %7080 = vmatpush2.bf16.msra.mxu1 %v13074_v30 }
0x12d0   : > { %7081 = vmatprep.subr.bf16.mxu1 %v13067_v52  ;;  %v6308_v52 = vld [vmem:[#allocation17 + $0x5d0] sm:$0xff] }
0x12d1   : > { %v13023_v33 = vcombine.high %v6308_v52, %v6312_v45  ;;  %v13022_v22 = vcombine.low %v6308_v52, %v6312_v45  ;;  %v6284_v45 = vld [vmem:[#allocation17 + $0x510] sm:$0xff] }
0x12d3   : > { %7082 = vmatpush2.bf16.msra.mxu1 %v13066_v43  ;;  %v6309_v43 = vld [vmem:[#allocation17 + $0x5d8] sm:$0xff] }
0x12d4   : > { %7083 = vmatprep.subr.bf16.mxu1 %v13059_v21  ;;  %v13024_v17 = vcombine.low %v6309_v43, %v6313_v31  ;;  %v13025_v35 = vcombine.high %v6309_v43, %v6313_v31  ;;  %v6288_v43 = vld [vmem:[#allocation17 + $0x530] sm:$0xff]  ;;  %v6289_v31 = vld [vmem:[#allocation17 + $0x538] sm:$0xff] }
0x12d7   : > { %7084 = vmatpush2.bf16.msra.mxu1 %v13058_v23 }
0x12d8   : > { %7085 = vmatprep.subr.bf16.mxu1 %v13051_v44 }
0x12db   : > { %7086 = vmatpush2.bf16.msra.mxu1 %v13050_v62 }
0x1335   : > { %v6187_v0 = vpop.xlane.xlu1 %6186 }
0x1336   : > { %v6191_v63 = vmul.f32 0.00390625, %v6187_v0  ;;  %v13052_v0 = vcombine.low %v6339_v38, %v6343_v51  ;;  %v6184_v38 = vld [vmem:[#allocation16 + $0x1] ss:$4 sm:$0x3] }
0x1337   : > { %v6236_v62 = vrot.slane %v6184_v38, %v16422_v19 }
0x1338   : > { %v16776_v1 = vsub.f32 %v16761_v26, %v6191_v63  ;;  %v16779_v2 = vsub.f32 %v16763_v10, %v6191_v63  ;;  %v13043_v63 = vcombine.high %v6330_v56, %v6334_v59  ;;  %7129 = vmatpush2.bf16.msra.mxu0 %v13052_v0 }
0x1339   : > { %v6190_v3 = vpop.xlane.xlu0 %6189 }
0x133a   : > { %v6192_v40 = vmul.f32 0.00390625, %v6190_v3  ;;  %v6197_v7 = vmul.f32 %v16776_v1, %v16776_v1  ;;  %v6198_v8 = vmul.f32 %v16779_v2, %v16779_v2  ;;  %v13045_v3 = vcombine.high %v6331_v60, %v6335_v61  ;;  %7087 = vmatprep.subr.bf16.mxu1 %v13043_v63 }
0x133c   : > { %v16786_v9 = vsub.f32 %v16769_v27, %v6192_v40  ;;  %v16789_v12 = vsub.f32 %v16771_v28, %v6192_v40  ;;  %v6201_v13 = vadd.f32 %v6198_v8, %v6197_v7  ;;  %v6322_v40 = vld [vmem:[#allocation17 + $0x640] sm:$0xff]  ;;  %v6323_v8 = vld [vmem:[#allocation17 + $0x648] sm:$0xff]  ;;  %7130 = vmatprep.subr.bf16.mxu0 %v13045_v3 }
0x133d   : > { %v6326_v7 = vld [vmem:[#allocation17 + $0x660] sm:$0xff] }
0x133e   : > { %6202 = vadd.xlane.f32.xlu0 %v6201_v13  ;;  %v6199_v14 = vmul.f32 %v16786_v9, %v16786_v9  ;;  %v6200_v16 = vmul.f32 %v16789_v12, %v16789_v12  ;;  %v6327_v13 = vld [vmem:[#allocation17 + $0x668] sm:$0xff]  ;;  %v13034_v30 = vcombine.low %v6322_v40, %v6326_v7 }
0x133f   : > { %v13037_v5 = vcombine.high %v6323_v8, %v6327_v13  ;;  %v13036_v18 = vcombine.low %v6323_v8, %v6327_v13 }
0x1340   : > { %v6204_v53 = vadd.f32 %v6200_v16, %v6199_v14  ;;  %v13042_v14 = vcombine.low %v6330_v56, %v6334_v59  ;;  %v13044_v16 = vcombine.low %v6331_v60, %v6335_v61  ;;  %v6225_v56 = vrot.slane %v6182_v42, %v16425_v20 }
0x1341   : > { %v6221_v59 = vrot.slane %v6182_v42, %v16422_v19  ;;  %v6240_v61 = vrot.slane %v6184_v38, %v16425_v20 }
0x1342   : > { %6205 = vadd.xlane.f32.xlu1 %v6204_v53  ;;  %v13035_v53 = vcombine.high %v6322_v40, %v6326_v7  ;;  %7088 = vmatpush2.bf16.msra.mxu1 %v13042_v14 }
0x1343   : > { %7131 = vmatpush2.bf16.msra.mxu0 %v13044_v16 }
0x1344   : > { %7089 = vmatprep.subr.bf16.mxu1 %v13035_v53  ;;  %7132 = vmatprep.subr.bf16.mxu0 %v13037_v5  ;;  %v6304_v53 = vld [vmem:[#allocation17 + $0x5b0] sm:$0xff]  ;;  %v6301_v5 = vld [vmem:[#allocation17 + $0x598] sm:$0xff] }
0x1346   : > { %7090 = vmatpush2.bf16.msra.mxu1 %v13034_v30  ;;  %v13017_v30 = vcombine.high %v6301_v5, %v6305_v6 }
0x1347   : > { %7133 = vmatpush2.bf16.msra.mxu0 %v13036_v18  ;;  %7091 = vmatprep.subr.bf16.mxu1 %v13027_v34  ;;  %v6293_v18 = vld [vmem:[#allocation17 + $0x558] sm:$0xff] }
0x1348   : > { %7134 = vmatprep.subr.bf16.mxu0 %v13029_v11  ;;  %v6297_v34 = vld [vmem:[#allocation17 + $0x578] sm:$0xff] }
0x1349   : > { %v13009_v52 = vcombine.high %v6293_v18, %v6297_v34 }
0x134a   : > { %7092 = vmatpush2.bf16.msra.mxu1 %v13026_v46  ;;  %v13016_v46 = vcombine.low %v6301_v5, %v6305_v6  ;;  %v6257_v5 = vld [vmem:[#allocation17 + $0x438] sm:$0xff] }
0x134b   : > { %7135 = vmatpush2.bf16.msra.mxu0 %v13028_v50  ;;  %7147 = vmatprep.subr.bf16.mxu1 %v13023_v33  ;;  %v6285_v33 = vld [vmem:[#allocation17 + $0x518] sm:$0xff] }
0x134c   : > { %7190 = vmatprep.subr.bf16.mxu0 %v13025_v35  ;;  %v13000_v42 = vcombine.low %v6285_v33, %v6289_v31 }
0x13c7   : > { %v6203_v23 = vpop.xlane.xlu0 %6202 }
0x13c8   : > { %v6207_v21 = vmul.f32 0.00390625, %v6203_v23  ;;  %v13008_v23 = vcombine.low %v6293_v18, %v6297_v34  ;;  %v6373_v18 = vld [vmem:[#allocation17 + $0x7d8] sm:$0xff] }
0x13c9   : > { %v6377_v34 = vld [vmem:[#allocation17 + $0x7f8] sm:$0xff] }
0x13ca   : > { %v6209_v32 = vadd.f32 1e-05, %v6207_v21  ;;  %v6276_v21 = vld [vmem:[#allocation17 + $0x4d0] sm:$0xff] }
0x13cb   : > { %v6206_v39 = vpop.xlane.xlu1 %6205 }
0x13cc   : > { %15422 = vrsqrt.f32 %v6209_v32  ;;  %v6208_v41 = vmul.f32 0.00390625, %v6206_v39  ;;  %v6280_v32 = vld [vmem:[#allocation17 + $0x4f0] sm:$0xff]  ;;  %v6277_v39 = vld [vmem:[#allocation17 + $0x4d8] sm:$0xff] }
0x13ce   : > { %v6210_v29 = vadd.f32 1e-05, %v6208_v41  ;;  %v6281_v41 = vld [vmem:[#allocation17 + $0x4f8] sm:$0xff] }
0x13cf   : > { %v12993_v38 = vcombine.high %v6277_v39, %v6281_v41 }
0x13d0   : > { %15424 = vrsqrt.f32 %v6210_v29  ;;  %v12998_v29 = vcombine.low %v6284_v45, %v6288_v43 }
0x13d9   : > { %v15423_v44 = vpop.eup %15422 }
0x13da   : > { %v6214_v51 = vmul.f32 %v15423_v44, %v16779_v2  ;;  %v6213_v58 = vmul.f32 %v15423_v44, %v16776_v1  ;;  %v6300_v1 = vld [vmem:[#allocation17 + $0x590] sm:$0xff]  ;;  %v12991_v44 = vcombine.high %v6276_v21, %v6280_v32 }
0x13db   : > { %v13014_v11 = vcombine.low %v6300_v1, %v6304_v53 }
0x13dc   : > { %v6229_v63 = vmul.f32 %v6225_v56, %v6214_v51  ;;  %v6228_v40 = vmul.f32 %v6221_v59, %v6213_v58  ;;  %v6268_v51 = vld [vmem:[#allocation17 + $0x490] sm:$0xff]  ;;  %v6269_v58 = vld [vmem:[#allocation17 + $0x498] sm:$0xff] }
0x13dd   : > { %v15425_v60 = vpop.eup %15424 }
0x13de   : > { %v6216_v0 = vmul.f32 %v15425_v60, %v16789_v12  ;;  %v6215_v3 = vmul.f32 %v15425_v60, %v16786_v9  ;;  %v6244_v2 = vadd.f32 %v6240_v61, %v6229_v63  ;;  %v6243_v14 = vadd.f32 %v6236_v62, %v6228_v40  ;;  %v6296_v9 = vld [vmem:[#allocation17 + $0x570] sm:$0xff]  ;;  %v6261_v40 = vld [vmem:[#allocation17 + $0x458] sm:$0xff] }
0x13df   : > { %v13015_v12 = vcombine.high %v6300_v1, %v6304_v53  ;;  %v13007_v50 = vcombine.high %v6292_v36, %v6296_v9  ;;  %v13006_v35 = vcombine.low %v6292_v36, %v6296_v9  ;;  %v12990_v60 = vcombine.low %v6276_v21, %v6280_v32  ;;  %v6260_v63 = vld [vmem:[#allocation17 + $0x450] sm:$0xff]  ;;  %v6253_v53 = vld [vmem:[#allocation17 + $0x418] sm:$0xff] }
0x13e0   : > { %v6231_v7 = vmul.f32 %v6225_v56, %v6216_v0  ;;  %v6230_v8 = vmul.f32 %v6221_v59, %v6215_v3  ;;  %v6272_v56 = vld [vmem:[#allocation17 + $0x4b0] sm:$0xff]  ;;  %v6273_v59 = vld [vmem:[#allocation17 + $0x4b8] sm:$0xff] }
0x13e1   : > { %v12985_v0 = vcombine.high %v6269_v58, %v6273_v59  ;;  %v6264_v3 = vld [vmem:[#allocation17 + $0x470] sm:$0xff] }
0x13e2   : > { %v6246_v13 = vadd.f32 %v6240_v61, %v6231_v7  ;;  %v6245_v16 = vadd.f32 %v6236_v62, %v6230_v8  ;;  %v12992_v61 = vcombine.low %v6277_v39, %v6281_v41  ;;  %v12983_v62 = vcombine.high %v6268_v51, %v6272_v56  ;;  %v6265_v7 = vld [vmem:[#allocation17 + $0x478] sm:$0xff]  ;;  %v6256_v1 = vld [vmem:[#allocation17 + $0x430] sm:$0xff] }
0x13e3   : > { %v12982_v8 = vcombine.low %v6268_v51, %v6272_v56  ;;  %v12974_v6 = vcombine.low %v6260_v63, %v6264_v3  ;;  %v6376_v9 = vld [vmem:[#allocation17 + $0x7f0] sm:$0xff]  ;;  %v6357_v39 = vld [vmem:[#allocation17 + $0x758] sm:$0xff] }
0x13e4   : > { %v6248_v24 = vpack.c.bf16 %v6246_v13, %v6244_v2  ;;  %v16803_v25 = vpack.c.bf16 %v6245_v16, %v6243_v14  ;;  %v12984_v2 = vcombine.low %v6269_v58, %v6273_v59  ;;  %v12975_v13 = vcombine.high %v6260_v63, %v6264_v3  ;;  %v6252_v16 = vld [vmem:[#allocation17 + $0x410] sm:$0xff]  ;;  %v6361_v41 = vld [vmem:[#allocation17 + $0x778] sm:$0xff] }
0x13e5   : > { %v12977_v14 = vcombine.high %v6261_v40, %v6265_v7  ;;  %v12967_v36 = vcombine.high %v6252_v16, %v6256_v1  ;;  %v6356_v21 = vld [vmem:[#allocation17 + $0x750] sm:$0xff]  ;;  %v6349_v58 = vld [vmem:[#allocation17 + $0x718] sm:$0xff] }
0x13e6   : > { %7093 = vmatprep.mubr.bf16.mxu1 %v6248_v24  ;;  %7136 = vmatprep.mubr.bf16.mxu0 %v6248_v24  ;;  %v6360_v32 = vld [vmem:[#allocation17 + $0x770] sm:$0xff]  ;;  %v6353_v59 = vld [vmem:[#allocation17 + $0x738] sm:$0xff] }
0x13e7   : > { %7094 = vmatmul.mubr.bf16.vlgmr.msra.gmra.mxu1 %v16803_v25  ;;  %7137 = vmatmul.mubr.bf16.vlgmr.msra.gmra.mxu0 %v16803_v25  ;;  %v6348_v51 = vld [vmem:[#allocation17 + $0x710] sm:$0xff] }
0x13e8   : > { %7148 = vmatpush1.bf16.msra.mxu1 %v13022_v22  ;;  %7191 = vmatpush1.bf16.msra.mxu0 %v13024_v17  ;;  %v12999_v22 = vcombine.high %v6284_v45, %v6288_v43  ;;  %v13001_v17 = vcombine.high %v6285_v33, %v6289_v31  ;;  %v6364_v45 = vld [vmem:[#allocation17 + $0x790] sm:$0xff]  ;;  %v6365_v33 = vld [vmem:[#allocation17 + $0x798] sm:$0xff] }
0x13e9   : > { %7179 = vmatprep.mubr.bf16.mxu1 %v6248_v24  ;;  %7222 = vmatprep.mubr.bf16.mxu0 %v6248_v24  ;;  %v12976_v24 = vcombine.low %v6261_v40, %v6265_v7  ;;  %v6368_v43 = vld [vmem:[#allocation17 + $0x7b0] sm:$0xff]  ;;  %v6369_v31 = vld [vmem:[#allocation17 + $0x7b8] sm:$0xff] }
0x13ea   : > { %7149 = vmatprep.subr.bf16.mxu1 %v13015_v12  ;;  %7192 = vmatprep.subr.bf16.mxu0 %v13017_v30  ;;  %v12969_v12 = vcombine.high %v6253_v53, %v6257_v5  ;;  %v6372_v30 = vld [vmem:[#allocation17 + $0x7d0] sm:$0xff]  ;;  %v6341_v40 = vld [vmem:[#allocation17 + $0x6d8] sm:$0xff] }
0x13eb   : > { %v6352_v56 = vld [vmem:[#allocation17 + $0x730] sm:$0xff]  ;;  %v6345_v7 = vld [vmem:[#allocation17 + $0x6f8] sm:$0xff] }
0x13ec   : > { %7150 = vmatpush1.bf16.msra.mxu1 %v13014_v11  ;;  %7193 = vmatpush1.bf16.msra.mxu0 %v13016_v46  ;;  %v12966_v11 = vcombine.low %v6252_v16, %v6256_v1  ;;  %v12968_v46 = vcombine.low %v6253_v53, %v6257_v5  ;;  %v6340_v63 = vld [vmem:[#allocation17 + $0x6d0] sm:$0xff]  ;;  %v6333_v53 = vld [vmem:[#allocation17 + $0x698] sm:$0xff] }
0x13ed   : > { %7151 = vmatprep.subr.bf16.mxu1 %v13007_v50  ;;  %7194 = vmatprep.subr.bf16.mxu0 %v13009_v52  ;;  %v13087_v50 = vcombine.high %v6372_v30, %v6376_v9  ;;  %v13089_v52 = vcombine.high %v6373_v18, %v6377_v34  ;;  %v6344_v3 = vld [vmem:[#allocation17 + $0x6f0] sm:$0xff]  ;;  %v6337_v5 = vld [vmem:[#allocation17 + $0x6b8] sm:$0xff] }
0x13ee   : > { %v6332_v16 = vld [vmem:[#allocation17 + $0x690] sm:$0xff] }
0x13ef   : > { %v6336_v1 = vld [vmem:[#allocation17 + $0x6b0] sm:$0xff] }
0x13f0   : > { %7152 = vmatpush1.bf16.msra.mxu1 %v13006_v35  ;;  %7195 = vmatpush1.bf16.msra.mxu0 %v13008_v23  ;;  %v13086_v35 = vcombine.low %v6372_v30, %v6376_v9  ;;  %v13088_v23 = vcombine.low %v6373_v18, %v6377_v34  ;;  %v6324_v30 = vld [vmem:[#allocation17 + $0x650] sm:$0xff]  ;;  %v6325_v18 = vld [vmem:[#allocation17 + $0x658] sm:$0xff] }
0x13f1   : > { %7153 = vmatprep.subr.bf16.mxu1 %v12999_v22  ;;  %7196 = vmatprep.subr.bf16.mxu0 %v13001_v17  ;;  %v13079_v22 = vcombine.high %v6364_v45, %v6368_v43  ;;  %v13081_v17 = vcombine.high %v6365_v33, %v6369_v31  ;;  %v6328_v9 = vld [vmem:[#allocation17 + $0x670] sm:$0xff]  ;;  %v6329_v34 = vld [vmem:[#allocation17 + $0x678] sm:$0xff] }
0x13f4   : > { %7154 = vmatpush1.bf16.msra.mxu1 %v12998_v29  ;;  %7197 = vmatpush1.bf16.msra.mxu0 %v13000_v42  ;;  %v13078_v29 = vcombine.low %v6364_v45, %v6368_v43  ;;  %v13080_v42 = vcombine.low %v6365_v33, %v6369_v31  ;;  %v6316_v45 = vld [vmem:[#allocation17 + $0x610] sm:$0xff]  ;;  %v6317_v33 = vld [vmem:[#allocation17 + $0x618] sm:$0xff] }
0x13f5   : > { %7155 = vmatprep.subr.bf16.mxu1 %v12991_v44  ;;  %7198 = vmatprep.subr.bf16.mxu0 %v12993_v38  ;;  %v13071_v44 = vcombine.high %v6356_v21, %v6360_v32  ;;  %v13073_v38 = vcombine.high %v6357_v39, %v6361_v41  ;;  %v6320_v43 = vld [vmem:[#allocation17 + $0x630] sm:$0xff]  ;;  %v6321_v31 = vld [vmem:[#allocation17 + $0x638] sm:$0xff] }
0x13f8   : > { %7156 = vmatpush1.bf16.msra.mxu1 %v12990_v60  ;;  %7199 = vmatpush1.bf16.msra.mxu0 %v12992_v61  ;;  %v13070_v60 = vcombine.low %v6356_v21, %v6360_v32  ;;  %v13072_v61 = vcombine.low %v6357_v39, %v6361_v41  ;;  %v13030_v21 = vcombine.low %v6316_v45, %v6320_v43  ;;  %v14724_v39 = vld [vmem:[#allocation20 + $0x474] ss:$8 sps:$4 sm:$0xff]  }
0x13f9   : > { %7157 = vmatprep.subr.bf16.mxu1 %v12983_v62  ;;  %7200 = vmatprep.subr.bf16.mxu0 %v12985_v0  ;;  %v13063_v62 = vcombine.high %v6348_v51, %v6352_v56  ;;  %v13065_v0 = vcombine.high %v6349_v58, %v6353_v59  ;;  %v13032_v32 = vcombine.low %v6317_v33, %v6321_v31  ;;  %v14727_v41 = vld [vmem:[#allocation20 + $0x574] ss:$8 sps:$4 sm:$0xff]  }
0x13fc   : > { %7158 = vmatpush1.bf16.msra.mxu1 %v12982_v8  ;;  %7201 = vmatpush1.bf16.msra.mxu0 %v12984_v2  ;;  %v13062_v8 = vcombine.low %v6348_v51, %v6352_v56  ;;  %v13064_v2 = vcombine.low %v6349_v58, %v6353_v59  ;;  %v14728_v51 = vld [vmem:[#allocation20 + $0x460] ss:$8 sps:$4 sm:$0xff]   ;;  %v14736_v58 = vld [vmem:[#allocation20 + $0x454] ss:$8 sps:$4 sm:$0xff]  }
0x13fd   : > { %7159 = vmatprep.subr.bf16.mxu1 %v12975_v13  ;;  %7202 = vmatprep.subr.bf16.mxu0 %v12977_v14  ;;  %v13055_v13 = vcombine.high %v6340_v63, %v6344_v3  ;;  %v13057_v14 = vcombine.high %v6341_v40, %v6345_v7  ;;  %v14731_v56 = vld [vmem:[#allocation20 + $0x560] ss:$8 sps:$4 sm:$0xff]   ;;  %v14739_v59 = vld [vmem:[#allocation20 + $0x554] ss:$8 sps:$4 sm:$0xff]  }
0x1400   : > { %7160 = vmatpush1.bf16.msra.mxu1 %v12974_v6  ;;  %7203 = vmatpush1.bf16.msra.mxu0 %v12976_v24  ;;  %v13054_v6 = vcombine.low %v6340_v63, %v6344_v3  ;;  %v13056_v24 = vcombine.low %v6341_v40, %v6345_v7  ;;  %v14740_v63 = vld [vmem:[#allocation20 + $0x440] ss:$8 sps:$4 sm:$0xff]   ;;  %v14748_v3 = vld [vmem:[#allocation20 + $0x434] ss:$8 sps:$4 sm:$0xff]   ;;  %v14746_v7 = vld [vmem:[#allocation20 + $0x430] ss:$8 sps:$4 sm:$0xff]  }
0x1401   : > { %7161 = vmatprep.subr.bf16.mxu1 %v12967_v36  ;;  %7204 = vmatprep.subr.bf16.mxu0 %v12969_v12  ;;  %v13047_v36 = vcombine.high %v6332_v16, %v6336_v1  ;;  %v13049_v12 = vcombine.high %v6333_v53, %v6337_v5  ;;  %v14751_v40 = vld [vmem:[#allocation20 + $0x534] ss:$8 sps:$4 sm:$0xff]  }
0x1404   : > { %7162 = vmatpush1.bf16.msra.mxu1 %v12966_v11  ;;  %7205 = vmatpush1.bf16.msra.mxu0 %v12968_v46  ;;  %v13046_v11 = vcombine.low %v6332_v16, %v6336_v1  ;;  %v13048_v46 = vcombine.low %v6333_v53, %v6337_v5  ;;  %v14755_v16 = vld [vmem:[#allocation20 + $0x520] ss:$8 sps:$4 sm:$0xff]   ;;  %v14760_v1 = vld [vmem:[#allocation20 + $0x414] ss:$8 sps:$4 sm:$0xff]   ;;  %v14758_v5 = vld [vmem:[#allocation20 + $0x410] ss:$8 sps:$4 sm:$0xff]  }
0x1405   : > { %7163 = vmatprep.subr.bf16.mxu1 %v13087_v50  ;;  %7206 = vmatprep.subr.bf16.mxu0 %v13089_v52  ;;  %v13039_v50 = vcombine.high %v6324_v30, %v6328_v9  ;;  %v13041_v52 = vcombine.high %v6325_v18, %v6329_v34  ;;  %v14763_v53 = vld [vmem:[#allocation20 + $0x514] ss:$8 sps:$4 sm:$0xff]  }
0x1408   : > { %7164 = vmatpush2.bf16.msra.mxu1 %v13086_v35  ;;  %7207 = vmatpush2.bf16.msra.mxu0 %v13088_v23  ;;  %v13038_v35 = vcombine.low %v6324_v30, %v6328_v9  ;;  %v13040_v23 = vcombine.low %v6325_v18, %v6329_v34  ;;  %v14767_v30 = vld [vmem:[#allocation20 + $0x500] ss:$8 sps:$4 sm:$0xff]   ;;  %v14772_v9 = vld [vmem:[#allocation20 + $0x4f4] ss:$8 sps:$4 sm:$0xff]   ;;  %v14770_v34 = vld [vmem:[#allocation20 + $0x4f0] ss:$8 sps:$4 sm:$0xff]  }
0x1409   : > { %7165 = vmatprep.subr.bf16.mxu1 %v13079_v22  ;;  %7208 = vmatprep.subr.bf16.mxu0 %v13081_v17  ;;  %v13031_v22 = vcombine.high %v6316_v45, %v6320_v43  ;;  %v13033_v17 = vcombine.high %v6317_v33, %v6321_v31  ;;  %v14775_v18 = vld [vmem:[#allocation20 + $0x5f4] ss:$8 sps:$4 sm:$0xff]   ;;  %v14779_v45 = vld [vmem:[#allocation20 + $0x5e0] ss:$8 sps:$4 sm:$0xff]   ;;  %v14782_v31 = vld [vmem:[#allocation20 + $0x4d0] ss:$8 sps:$4 sm:$0xff]  }
0x140a   : > { %v14784_v43 = vld [vmem:[#allocation20 + $0x4d4] ss:$8 sps:$4 sm:$0xff]  }
0x140b   : > { %v14787_v33 = vld [vmem:[#allocation20 + $0x5d4] ss:$8 sps:$4 sm:$0xff]  }
0x140c   : > { %7166 = vmatpush2.bf16.msra.mxu1 %v13078_v29  ;;  %7209 = vmatpush2.bf16.msra.mxu0 %v13080_v42  ;;  %v14722_v29 = vld [vmem:[#allocation20 + $0x470] ss:$8 sps:$4 sm:$0xff]  }
0x140d   : > { %7167 = vmatprep.subr.bf16.mxu1 %v13071_v44  ;;  %7210 = vmatprep.subr.bf16.mxu0 %v13073_v38  ;;  %v14725_v42 = vld [vmem:[#allocation20 + $0x570] ss:$8 sps:$4 sm:$0xff]   ;;  %v14730_v44 = vld [vmem:[#allocation20 + $0x464] ss:$8 sps:$4 sm:$0xff]  }
0x140e   : > { %v14733_v38 = vld [vmem:[#allocation20 + $0x564] ss:$8 sps:$4 sm:$0xff]  }
0x1410   : > { %7168 = vmatpush2.bf16.msra.mxu1 %v13070_v60  ;;  %7211 = vmatpush2.bf16.msra.mxu0 %v13072_v61  ;;  %v14734_v60 = vld [vmem:[#allocation20 + $0x450] ss:$8 sps:$4 sm:$0xff]  }
0x1411   : > { %7169 = vmatprep.subr.bf16.mxu1 %v13063_v62  ;;  %7212 = vmatprep.subr.bf16.mxu0 %v13065_v0  ;;  %v14737_v61 = vld [vmem:[#allocation20 + $0x550] ss:$8 sps:$4 sm:$0xff]   ;;  %v14742_v62 = vld [vmem:[#allocation20 + $0x444] ss:$8 sps:$4 sm:$0xff]  }
0x1412   : > { %v14745_v0 = vld [vmem:[#allocation20 + $0x544] ss:$8 sps:$4 sm:$0xff]  }
0x1414   : > { %7170 = vmatpush2.bf16.msra.mxu1 %v13062_v8  ;;  %7213 = vmatpush2.bf16.msra.mxu0 %v13064_v2  ;;  %v14749_v8 = vld [vmem:[#allocation20 + $0x530] ss:$8 sps:$4 sm:$0xff]   ;;  %v14754_v2 = vld [vmem:[#allocation20 + $0x424] ss:$8 sps:$4 sm:$0xff]  }
0x1415   : > { %7171 = vmatprep.subr.bf16.mxu1 %v13055_v13  ;;  %7214 = vmatprep.subr.bf16.mxu0 %v13057_v14  ;;  %v14757_v13 = vld [vmem:[#allocation20 + $0x524] ss:$8 sps:$4 sm:$0xff]   ;;  %v14752_v14 = vld [vmem:[#allocation20 + $0x420] ss:$8 sps:$4 sm:$0xff]  }
0x1418   : > { %7172 = vmatpush2.bf16.msra.mxu1 %v13054_v6  ;;  %7215 = vmatpush2.bf16.msra.mxu0 %v13056_v24  ;;  %v14761_v6 = vld [vmem:[#allocation20 + $0x510] ss:$8 sps:$4 sm:$0xff]   ;;  %v14766_v24 = vld [vmem:[#allocation20 + $0x404] ss:$8 sps:$4 sm:$0xff]  }
0x1419   : > { %7173 = vmatprep.subr.bf16.mxu1 %v13047_v36  ;;  %7216 = vmatprep.subr.bf16.mxu0 %v13049_v12  ;;  %v14769_v36 = vld [vmem:[#allocation20 + $0x504] ss:$8 sps:$4 sm:$0xff]   ;;  %v14764_v12 = vld [vmem:[#allocation20 + $0x400] ss:$8 sps:$4 sm:$0xff]  }
0x141c   : > { %7174 = vmatpush2.bf16.msra.mxu1 %v13046_v11  ;;  %7217 = vmatpush2.bf16.msra.mxu0 %v13048_v46  ;;  %v14773_v11 = vld [vmem:[#allocation20 + $0x5f0] ss:$8 sps:$4 sm:$0xff]   ;;  %v14778_v46 = vld [vmem:[#allocation20 + $0x4e4] ss:$8 sps:$4 sm:$0xff]  }
0x141d   : > { %7175 = vmatprep.subr.bf16.mxu1 %v13039_v50  ;;  %7218 = vmatprep.subr.bf16.mxu0 %v13041_v52  ;;  %v14781_v50 = vld [vmem:[#allocation20 + $0x5e4] ss:$8 sps:$4 sm:$0xff]   ;;  %v14776_v52 = vld [vmem:[#allocation20 + $0x4e0] ss:$8 sps:$4 sm:$0xff]  }
0x1420   : > { %7176 = vmatpush2.bf16.msra.mxu1 %v13038_v35  ;;  %7219 = vmatpush2.bf16.msra.mxu0 %v13040_v23  ;;  %v14785_v35 = vld [vmem:[#allocation20 + $0x5d0] ss:$8 sps:$4 sm:$0xff]   ;;  %v14790_v23 = vld [vmem:[#allocation20 + $0x4c4] ss:$8 sps:$4 sm:$0xff]  }
0x1421   : > { %7177 = vmatprep.subr.bf16.mxu1 %v13031_v22  ;;  %7220 = vmatprep.subr.bf16.mxu0 %v13033_v17  ;;  %v14793_v22 = vld [vmem:[#allocation20 + $0x5c4] ss:$8 sps:$4 sm:$0xff]   ;;  %v14788_v17 = vld [vmem:[#allocation20 + $0x4c0] ss:$8 sps:$4 sm:$0xff]  }
0x1424   : > { %7178 = vmatpush2.bf16.msra.mxu1 %v13030_v21  ;;  %7221 = vmatpush2.bf16.msra.mxu0 %v13032_v32  ;;  %v14791_v21 = vld [vmem:[#allocation20 + $0x5c0] ss:$8 sps:$4 sm:$0xff]   ;;  %v14796_v32 = vld [vmem:[#allocation20 + $0x4b4] ss:$8 sps:$4 sm:$0xff]  }
0x1425   : > { %8026 = vmatprep.subr.bf16.mxu1 %v14724_v39  ;;  %8069 = vmatprep.subr.bf16.mxu0 %v14727_v41  ;;  %v14799_v39 = vld [vmem:[#allocation20 + $0x5b4] ss:$8 sps:$4 sm:$0xff]   ;;  %v14794_v41 = vld [vmem:[#allocation20 + $0x4b0] ss:$8 sps:$4 sm:$0xff]  }
0x1427   : > { %7180 = vmatmul.mubr.bf16.vlgmr.msra.gmra.mxu1 %v16803_v25  ;;  %7223 = vmatmul.mubr.bf16.vlgmr.msra.gmra.mxu0 %v16803_v25  ;;  %v14743_v25 = vld [vmem:[#allocation20 + $0x540] ss:$8 sps:$4 sm:$0xff]  }
0x1428   : > { %8027 = vmatpush1.bf16.msra.mxu1 %v14722_v29  ;;  %8070 = vmatpush1.bf16.msra.mxu0 %v14725_v42  ;;  %v14797_v29 = vld [vmem:[#allocation20 + $0x5b0] ss:$8 sps:$4 sm:$0xff]   ;;  %v14802_v42 = vld [vmem:[#allocation20 + $0x4a4] ss:$8 sps:$4 sm:$0xff]  }
0x1429   : > { %8028 = vmatprep.subr.bf16.mxu1 %v14730_v44  ;;  %8071 = vmatprep.subr.bf16.mxu0 %v14733_v38  ;;  %v14805_v44 = vld [vmem:[#allocation20 + $0x5a4] ss:$8 sps:$4 sm:$0xff]   ;;  %v14800_v38 = vld [vmem:[#allocation20 + $0x4a0] ss:$8 sps:$4 sm:$0xff]  }
0x142c   : > { %8029 = vmatpush1.bf16.msra.mxu1 %v14728_v51  ;;  %8072 = vmatpush1.bf16.msra.mxu0 %v14731_v56  ;;  %v14803_v51 = vld [vmem:[#allocation20 + $0x5a0] ss:$8 sps:$4 sm:$0xff]   ;;  %v14808_v56 = vld [vmem:[#allocation20 + $0x494] ss:$8 sps:$4 sm:$0xff]  }
0x142d   : > { %8030 = vmatprep.subr.bf16.mxu1 %v14736_v58  ;;  %8073 = vmatprep.subr.bf16.mxu0 %v14739_v59  ;;  %v14811_v58 = vld [vmem:[#allocation20 + $0x594] ss:$8 sps:$4 sm:$0xff]   ;;  %v14806_v59 = vld [vmem:[#allocation20 + $0x490] ss:$8 sps:$4 sm:$0xff]  }
0x1430   : > { %8031 = vmatpush1.bf16.msra.mxu1 %v14734_v60  ;;  %8074 = vmatpush1.bf16.msra.mxu0 %v14737_v61  ;;  %v14809_v60 = vld [vmem:[#allocation20 + $0x590] ss:$8 sps:$4 sm:$0xff]   ;;  %v14814_v61 = vld [vmem:[#allocation20 + $0x484] ss:$8 sps:$4 sm:$0xff]  }
0x1431   : > { %8032 = vmatprep.subr.bf16.mxu1 %v14742_v62  ;;  %8075 = vmatprep.subr.bf16.mxu0 %v14745_v0  ;;  %v14817_v62 = vld [vmem:[#allocation20 + $0x584] ss:$8 sps:$4 sm:$0xff]   ;;  %v14812_v0 = vld [vmem:[#allocation20 + $0x480] ss:$8 sps:$4 sm:$0xff]  }
0x1434   : > { %8033 = vmatpush1.bf16.msra.mxu1 %v14740_v63  ;;  %8076 = vmatpush1.bf16.msra.mxu0 %v14743_v25  ;;  %v14815_v63 = vld [vmem:[#allocation20 + $0x580] ss:$8 sps:$4 sm:$0xff]   ;;  %v14820_v25 = vld [vmem:[#allocation20 + $0x674] ss:$8 sps:$4 sm:$0xff]  }
0x1435   : > { %8034 = vmatprep.subr.bf16.mxu1 %v14748_v3  ;;  %8077 = vmatprep.subr.bf16.mxu0 %v14751_v40  ;;  %v14823_v3 = vld [vmem:[#allocation20 + $0x774] ss:$8 sps:$4 sm:$0xff]  }
0x1436   : > { %v16809_v40 = vld [vmem:[#allocation19 + $0x1] ss:$4 sm:$0xff] }
0x1438   : > { %8035 = vmatpush1.bf16.msra.mxu1 %v14746_v7  ;;  %8078 = vmatpush1.bf16.msra.mxu0 %v14749_v8 }
0x1439   : > { %8036 = vmatprep.subr.bf16.mxu1 %v14754_v2  ;;  %8079 = vmatprep.subr.bf16.mxu0 %v14757_v13  ;;  %v6388_v2 = vrot.slane %v16809_v40, %v16425_v20  ;;  %v6396_v13 = vrot.slane %v16809_v40, %v16586_v55 }
0x143c   : > { %8037 = vmatpush1.bf16.msra.mxu1 %v14752_v14  ;;  %8080 = vmatpush1.bf16.msra.mxu0 %v14755_v16  ;;  %v6384_v14 = vrot.slane %v16809_v40, %v16422_v19  ;;  %v6392_v16 = vrot.slane %v16809_v40, %v16589_v4 }
0x143d   : > { %8038 = vmatprep.subr.bf16.mxu1 %v14760_v1  ;;  %8081 = vmatprep.subr.bf16.mxu0 %v14763_v53 }
0x1440   : > { %8039 = vmatpush1.bf16.msra.mxu1 %v14758_v5  ;;  %8082 = vmatpush1.bf16.msra.mxu0 %v14761_v6 }
0x1441   : > { %8040 = vmatprep.subr.bf16.mxu1 %v14766_v24  ;;  %8083 = vmatprep.subr.bf16.mxu0 %v14769_v36 }
0x1444   : > { %8041 = vmatpush1.bf16.msra.mxu1 %v14764_v12  ;;  %8084 = vmatpush1.bf16.msra.mxu0 %v14767_v30 }
0x1445   : > { %8042 = vmatprep.subr.bf16.mxu1 %v14772_v9  ;;  %8085 = vmatprep.subr.bf16.mxu0 %v14775_v18 }
0x1448   : > { %8043 = vmatpush2.bf16.msra.mxu1 %v14770_v34  ;;  %8086 = vmatpush2.bf16.msra.mxu0 %v14773_v11 }
0x1449   : > { %8044 = vmatprep.subr.bf16.mxu1 %v14778_v46  ;;  %8087 = vmatprep.subr.bf16.mxu0 %v14781_v50 }
0x144c   : > { %8045 = vmatpush2.bf16.msra.mxu1 %v14776_v52  ;;  %8088 = vmatpush2.bf16.msra.mxu0 %v14779_v45 }
0x144d   : > { %8046 = vmatprep.subr.bf16.mxu1 %v14784_v43  ;;  %8089 = vmatprep.subr.bf16.mxu0 %v14787_v33 }
0x1450   : > { %8047 = vmatpush2.bf16.msra.mxu1 %v14782_v31  ;;  %8090 = vmatpush2.bf16.msra.mxu0 %v14785_v35 }
0x1451   : > { %8048 = vmatprep.subr.bf16.mxu1 %v14790_v23  ;;  %8091 = vmatprep.subr.bf16.mxu0 %v14793_v22 }
0x1454   : > { %8049 = vmatpush2.bf16.msra.mxu1 %v14788_v17  ;;  %8092 = vmatpush2.bf16.msra.mxu0 %v14791_v21 }
0x1455   : > { %8050 = vmatprep.subr.bf16.mxu1 %v14796_v32  ;;  %8093 = vmatprep.subr.bf16.mxu0 %v14799_v39  ;;  %v14818_v32 = vld [vmem:[#allocation20 + $0x670] ss:$8 sps:$4 sm:$0xff]  }
0x1456   : > { %v14821_v39 = vld [vmem:[#allocation20 + $0x770] ss:$8 sps:$4 sm:$0xff]  }
0x1458   : > { %8051 = vmatpush2.bf16.msra.mxu1 %v14794_v41  ;;  %8094 = vmatpush2.bf16.msra.mxu0 %v14797_v29 }
0x1459   : > { %8052 = vmatprep.subr.bf16.mxu1 %v14802_v42  ;;  %8095 = vmatprep.subr.bf16.mxu0 %v14805_v44  ;;  %v14826_v42 = vld [vmem:[#allocation20 + $0x664] ss:$8 sps:$4 sm:$0xff]  }
0x145a   : > { %v14829_v44 = vld [vmem:[#allocation20 + $0x764] ss:$8 sps:$4 sm:$0xff]  }
0x145c   : > { %8053 = vmatpush2.bf16.msra.mxu1 %v14800_v38  ;;  %8096 = vmatpush2.bf16.msra.mxu0 %v14803_v51  ;;  %v14824_v38 = vld [vmem:[#allocation20 + $0x660] ss:$8 sps:$4 sm:$0xff]  }
0x145d   : > { %8054 = vmatprep.subr.bf16.mxu1 %v14808_v56  ;;  %8097 = vmatprep.subr.bf16.mxu0 %v14811_v58  ;;  %v14827_v51 = vld [vmem:[#allocation20 + $0x760] ss:$8 sps:$4 sm:$0xff]   ;;  %v14832_v56 = vld [vmem:[#allocation20 + $0x654] ss:$8 sps:$4 sm:$0xff]  }
0x145e   : > { %v14835_v58 = vld [vmem:[#allocation20 + $0x754] ss:$8 sps:$4 sm:$0xff]  }
0x1460   : > { %8055 = vmatpush2.bf16.msra.mxu1 %v14806_v59  ;;  %8098 = vmatpush2.bf16.msra.mxu0 %v14809_v60  ;;  %v14830_v59 = vld [vmem:[#allocation20 + $0x650] ss:$8 sps:$4 sm:$0xff]  }
0x1461   : > { %8056 = vmatprep.subr.bf16.mxu1 %v14814_v61  ;;  %8099 = vmatprep.subr.bf16.mxu0 %v14817_v62  ;;  %v14833_v60 = vld [vmem:[#allocation20 + $0x750] ss:$8 sps:$4 sm:$0xff]   ;;  %v14838_v61 = vld [vmem:[#allocation20 + $0x644] ss:$8 sps:$4 sm:$0xff]  }
0x1462   : > { %v14841_v62 = vld [vmem:[#allocation20 + $0x744] ss:$8 sps:$4 sm:$0xff]  }
0x1464   : > { %8057 = vmatpush2.bf16.msra.mxu1 %v14812_v0  ;;  %8100 = vmatpush2.bf16.msra.mxu0 %v14815_v63  ;;  %v14836_v0 = vld [vmem:[#allocation20 + $0x640] ss:$8 sps:$4 sm:$0xff]  }
0x1465   : > { %8112 = vmatprep.subr.bf16.mxu1 %v14820_v25  ;;  %8155 = vmatprep.subr.bf16.mxu0 %v14823_v3  ;;  %v14839_v63 = vld [vmem:[#allocation20 + $0x740] ss:$8 sps:$4 sm:$0xff]   ;;  %v14844_v25 = vld [vmem:[#allocation20 + $0x634] ss:$8 sps:$4 sm:$0xff]  }
0x1466   : > { %v14847_v3 = vld [vmem:[#allocation20 + $0x734] ss:$8 sps:$4 sm:$0xff]  }
0x14a7   : > { %v7095_v7 = vpop.f32.mrf.mxu1  ;;  %v7138_v8 = vpop.f32.mrf.mxu0 }
0x14a8   : > { %v7096_v9 = vadd.f32 %v7095_v7, %v6384_v14  ;;  %v7139_v18 = vadd.f32 %v7138_v8, %v6392_v16  ;;  %v14842_v7 = vld [vmem:[#allocation20 + $0x630] ss:$8 sps:$4 sm:$0xff]  }
0x14a9   : > { %v7097_v1 = vpop.f32.mrf.mxu1  ;;  %v7140_v53 = vpop.f32.mrf.mxu0  ;;  %v14845_v8 = vld [vmem:[#allocation20 + $0x730] ss:$8 sps:$4 sm:$0xff]  }
0x14aa   : > { %v7098_v24 = vadd.f32 %v7097_v1, %v6388_v2  ;;  %v7141_v36 = vadd.f32 %v7140_v53, %v6396_v13  ;;  %v7233_v23 = vmax.f32 %v7096_v9, 0.0  ;;  %v7235_v22 = vmax.f32 %v7139_v18, 0.0  ;;  %v14856_v1 = vld [vmem:[#allocation20 + $0x614] ss:$8 sps:$4 sm:$0xff]  }
0x14ab   : > { %v7099_v5 = vpop.f32.mrf.mxu1  ;;  %v7142_v6 = vpop.f32.mrf.mxu0  ;;  %v14859_v53 = vld [vmem:[#allocation20 + $0x714] ss:$8 sps:$4 sm:$0xff]  }
0x14ac   : > { %v7100_v12 = vadd.f32 %v7099_v5, %v6384_v14  ;;  %v7143_v30 = vadd.f32 %v7142_v6, %v6392_v16  ;;  %v7234_v43 = vmax.f32 %v7098_v24, 0.0  ;;  %v7236_v33 = vmax.f32 %v7141_v36, 0.0  ;;  %v14848_v14 = vld [vmem:[#allocation20 + $0x620] ss:$8 sps:$4 sm:$0xff]   ;;  %v14854_v5 = vld [vmem:[#allocation20 + $0x610] ss:$8 sps:$4 sm:$0xff]  }
0x14ad   : > { %v7101_v34 = vpop.f32.mrf.mxu1  ;;  %v7144_v11 = vpop.f32.mrf.mxu0  ;;  %v14851_v16 = vld [vmem:[#allocation20 + $0x720] ss:$8 sps:$4 sm:$0xff]   ;;  %v14857_v6 = vld [vmem:[#allocation20 + $0x710] ss:$8 sps:$4 sm:$0xff]   ;;  %v14862_v24 = vld [vmem:[#allocation20 + $0x604] ss:$8 sps:$4 sm:$0xff]  }
0x14ae   : > { %v7102_v46 = vadd.f32 %v7101_v34, %v6388_v2  ;;  %v7145_v50 = vadd.f32 %v7144_v11, %v6396_v13  ;;  %v7241_v52 = vmax.f32 %v7100_v12, 0.0  ;;  %v7243_v45 = vmax.f32 %v7143_v30, 0.0  ;;  %v14850_v2 = vld [vmem:[#allocation20 + $0x624] ss:$8 sps:$4 sm:$0xff]   ;;  %v14860_v12 = vld [vmem:[#allocation20 + $0x600] ss:$8 sps:$4 sm:$0xff]  }
0x14af   : > { %v14853_v13 = vld [vmem:[#allocation20 + $0x724] ss:$8 sps:$4 sm:$0xff]   ;;  %v14863_v30 = vld [vmem:[#allocation20 + $0x700] ss:$8 sps:$4 sm:$0xff]   ;;  %v14868_v9 = vld [vmem:[#allocation20 + $0x6f4] ss:$8 sps:$4 sm:$0xff]  }
0x14b0   : > { %v7242_v31 = vmax.f32 %v7102_v46, 0.0  ;;  %v7244_v35 = vmax.f32 %v7145_v50, 0.0  ;;  %v7249_v41 = vpack.c.bf16 %v7241_v52, %v7233_v23  ;;  %v7251_v29 = vpack.c.bf16 %v7243_v45, %v7235_v22  ;;  %v14865_v36 = vld [vmem:[#allocation20 + $0x704] ss:$8 sps:$4 sm:$0xff]   ;;  %v14871_v18 = vld [vmem:[#allocation20 + $0x7f4] ss:$8 sps:$4 sm:$0xff]  }
0x14b1   : > { %v14866_v34 = vld [vmem:[#allocation20 + $0x6f0] ss:$8 sps:$4 sm:$0xff]   ;;  %v14874_v46 = vld [vmem:[#allocation20 + $0x6e4] ss:$8 sps:$4 sm:$0xff]   ;;  %v14872_v52 = vld [vmem:[#allocation20 + $0x6e0] ss:$8 sps:$4 sm:$0xff]  }
0x14b2   : > { %v7250_v17 = vpack.c.bf16 %v7242_v31, %v7234_v43  ;;  %v7252_v21 = vpack.c.bf16 %v7244_v35, %v7236_v33  ;;  %v14869_v11 = vld [vmem:[#allocation20 + $0x7f0] ss:$8 sps:$4 sm:$0xff]   ;;  %v14877_v50 = vld [vmem:[#allocation20 + $0x7e4] ss:$8 sps:$4 sm:$0xff]   ;;  %v14875_v45 = vld [vmem:[#allocation20 + $0x7e0] ss:$8 sps:$4 sm:$0xff]  }
0x14b3   : > { %v14880_v43 = vld [vmem:[#allocation20 + $0x6d4] ss:$8 sps:$4 sm:$0xff]   ;;  %v14878_v31 = vld [vmem:[#allocation20 + $0x6d0] ss:$8 sps:$4 sm:$0xff]   ;;  %v14886_v23 = vld [vmem:[#allocation20 + $0x6c4] ss:$8 sps:$4 sm:$0xff]  }
0x14b4   : > { %8058 = vmatprep.mubr.bf16.mxu1 %v7250_v17  ;;  %8101 = vmatprep.mubr.bf16.mxu0 %v7252_v21  ;;  %v14883_v33 = vld [vmem:[#allocation20 + $0x7d4] ss:$8 sps:$4 sm:$0xff]   ;;  %v14881_v35 = vld [vmem:[#allocation20 + $0x7d0] ss:$8 sps:$4 sm:$0xff]   ;;  %v14889_v22 = vld [vmem:[#allocation20 + $0x7c4] ss:$8 sps:$4 sm:$0xff]  }
0x14b5   : > { %8059 = vmatmul.mubr.bf16.vlgmr.msra.gmra.mxu1 %v7249_v41  ;;  %8102 = vmatmul.mubr.bf16.vlgmr.msra.gmra.mxu0 %v7251_v29  ;;  %v14884_v17 = vld [vmem:[#allocation20 + $0x6c0] ss:$8 sps:$4 sm:$0xff]   ;;  %v14890_v41 = vld [vmem:[#allocation20 + $0x6b0] ss:$8 sps:$4 sm:$0xff]  }
0x14b6   : > { %8113 = vmatpush1.bf16.msra.mxu1 %v14818_v32  ;;  %8156 = vmatpush1.bf16.msra.mxu0 %v14821_v39  ;;  %v14887_v21 = vld [vmem:[#allocation20 + $0x7c0] ss:$8 sps:$4 sm:$0xff]   ;;  %v14892_v32 = vld [vmem:[#allocation20 + $0x6b4] ss:$8 sps:$4 sm:$0xff]   ;;  %v14893_v29 = vld [vmem:[#allocation20 + $0x7b0] ss:$8 sps:$4 sm:$0xff]  }
0x14b7   : > { %8114 = vmatprep.subr.bf16.mxu1 %v14826_v42  ;;  %8157 = vmatprep.subr.bf16.mxu0 %v14829_v44  ;;  %v14895_v39 = vld [vmem:[#allocation20 + $0x7b4] ss:$8 sps:$4 sm:$0xff]   ;;  %v14898_v42 = vld [vmem:[#allocation20 + $0x6a4] ss:$8 sps:$4 sm:$0xff]  }
0x14b8   : > { %v14901_v44 = vld [vmem:[#allocation20 + $0x7a4] ss:$8 sps:$4 sm:$0xff]  }
0x14ba   : > { %8115 = vmatpush1.bf16.msra.mxu1 %v14824_v38  ;;  %8158 = vmatpush1.bf16.msra.mxu0 %v14827_v51  ;;  %v14896_v38 = vld [vmem:[#allocation20 + $0x6a0] ss:$8 sps:$4 sm:$0xff]  }
0x14bb   : > { %8116 = vmatprep.subr.bf16.mxu1 %v14832_v56  ;;  %8159 = vmatprep.subr.bf16.mxu0 %v14835_v58  ;;  %v14899_v51 = vld [vmem:[#allocation20 + $0x7a0] ss:$8 sps:$4 sm:$0xff]  }
0x14be   : > { %8117 = vmatpush1.bf16.msra.mxu1 %v14830_v59  ;;  %8160 = vmatpush1.bf16.msra.mxu0 %v14833_v60  ;;  %v14904_v59 = vld [vmem:[#allocation20 + $0x694] ss:$8 sps:$4 sm:$0xff]  }
0x14bf   : > { %8118 = vmatprep.subr.bf16.mxu1 %v14838_v61  ;;  %8161 = vmatprep.subr.bf16.mxu0 %v14841_v62  ;;  %v14907_v60 = vld [vmem:[#allocation20 + $0x794] ss:$8 sps:$4 sm:$0xff]   ;;  %v6404_v61 = vrot.slane %v16809_v40, %v16602_v47  ;;  %v6412_v62 = vrot.slane %v16809_v40, %v16605_v48 }
0x14c2   : > { %8119 = vmatpush1.bf16.msra.mxu1 %v14836_v0  ;;  %8162 = vmatpush1.bf16.msra.mxu0 %v14839_v63  ;;  %v6400_v0 = vrot.slane %v16809_v40, %v16608_v49  ;;  %v6408_v63 = vrot.slane %v16809_v40, %v16611_v37 }
0x14c3   : > { %8120 = vmatprep.subr.bf16.mxu1 %v14844_v25  ;;  %8163 = vmatprep.subr.bf16.mxu0 %v14847_v3 }
0x14c6   : > { %8121 = vmatpush1.bf16.msra.mxu1 %v14842_v7  ;;  %8164 = vmatpush1.bf16.msra.mxu0 %v14845_v8  ;;  %v14902_v7 = vld [vmem:[#allocation20 + $0x690] ss:$8 sps:$4 sm:$0xff]  }
0x14c7   : > { %8122 = vmatprep.subr.bf16.mxu1 %v14850_v2  ;;  %8165 = vmatprep.subr.bf16.mxu0 %v14853_v13  ;;  %v14905_v8 = vld [vmem:[#allocation20 + $0x790] ss:$8 sps:$4 sm:$0xff]  }
0x14ca   : > { %8123 = vmatpush1.bf16.msra.mxu1 %v14848_v14  ;;  %8166 = vmatpush1.bf16.msra.mxu0 %v14851_v16  ;;  %v14910_v14 = vld [vmem:[#allocation20 + $0x684] ss:$8 sps:$4 sm:$0xff]  }
0x14cb   : > { %8124 = vmatprep.subr.bf16.mxu1 %v14856_v1  ;;  %8167 = vmatprep.subr.bf16.mxu0 %v14859_v53  ;;  %v14913_v16 = vld [vmem:[#allocation20 + $0x784] ss:$8 sps:$4 sm:$0xff]  }
0x14ce   : > { %8125 = vmatpush1.bf16.msra.mxu1 %v14854_v5  ;;  %8168 = vmatpush1.bf16.msra.mxu0 %v14857_v6 }
0x14cf   : > { %8126 = vmatprep.subr.bf16.mxu1 %v14862_v24  ;;  %8169 = vmatprep.subr.bf16.mxu0 %v14865_v36 }
0x14d2   : > { %8127 = vmatpush1.bf16.msra.mxu1 %v14860_v12  ;;  %8170 = vmatpush1.bf16.msra.mxu0 %v14863_v30 }
0x14d3   : > { %8128 = vmatprep.subr.bf16.mxu1 %v14868_v9  ;;  %8171 = vmatprep.subr.bf16.mxu0 %v14871_v18  ;;  %v14908_v18 = vld [vmem:[#allocation20 + $0x680] ss:$8 sps:$4 sm:$0xff]  }
0x14d6   : > { %8129 = vmatpush2.bf16.msra.mxu1 %v14866_v34  ;;  %8172 = vmatpush2.bf16.msra.mxu0 %v14869_v11  ;;  %v14911_v34 = vld [vmem:[#allocation20 + $0x780] ss:$8 sps:$4 sm:$0xff]  }
0x14d7   : > { %8130 = vmatprep.subr.bf16.mxu1 %v14874_v46  ;;  %8173 = vmatprep.subr.bf16.mxu0 %v14877_v50 }
0x14da   : > { %8131 = vmatpush2.bf16.msra.mxu1 %v14872_v52  ;;  %8174 = vmatpush2.bf16.msra.mxu0 %v14875_v45 }
0x14db   : > { %8132 = vmatprep.subr.bf16.mxu1 %v14880_v43  ;;  %8175 = vmatprep.subr.bf16.mxu0 %v14883_v33 }
0x14de   : > { %8133 = vmatpush2.bf16.msra.mxu1 %v14878_v31  ;;  %8176 = vmatpush2.bf16.msra.mxu0 %v14881_v35 }
0x14df   : > { %8134 = vmatprep.subr.bf16.mxu1 %v14886_v23  ;;  %8177 = vmatprep.subr.bf16.mxu0 %v14889_v22 }
0x14e2   : > { %8135 = vmatpush2.bf16.msra.mxu1 %v14884_v17  ;;  %8178 = vmatpush2.bf16.msra.mxu0 %v14887_v21 }
0x14e3   : > { %8136 = vmatprep.subr.bf16.mxu1 %v14892_v32  ;;  %8179 = vmatprep.subr.bf16.mxu0 %v14895_v39 }
0x14e6   : > { %8137 = vmatpush2.bf16.msra.mxu1 %v14890_v41  ;;  %8180 = vmatpush2.bf16.msra.mxu0 %v14893_v29 }
0x14e7   : > { %v7181_v56 = vpop.f32.mrf.mxu1  ;;  %v7224_v58 = vpop.f32.mrf.mxu0  ;;  %8138 = vmatprep.subr.bf16.mxu1 %v14898_v42  ;;  %8181 = vmatprep.subr.bf16.mxu0 %v14901_v44 }
0x14e8   : > { %v7182_v24 = vadd.f32 %v7181_v56, %v6400_v0  ;;  %v7225_v36 = vadd.f32 %v7224_v58, %v6408_v63 }
0x14e9   : > { %v7183_v25 = vpop.f32.mrf.mxu1  ;;  %v7226_v3 = vpop.f32.mrf.mxu0 }
0x14ea   : > { %8139 = vmatpush2.bf16.msra.mxu1 %v14896_v38  ;;  %8182 = vmatpush2.bf16.msra.mxu0 %v14899_v51  ;;  %v7184_v1 = vadd.f32 %v7183_v25, %v6404_v61  ;;  %v7227_v53 = vadd.f32 %v7226_v3, %v6412_v62  ;;  %v7237_v33 = vmax.f32 %v7182_v24, 0.0  ;;  %v7239_v31 = vmax.f32 %v7225_v36, 0.0 }
0x14eb   : > { %v7185_v2 = vpop.f32.mrf.mxu1  ;;  %v7228_v13 = vpop.f32.mrf.mxu0  ;;  %8140 = vmatprep.subr.bf16.mxu1 %v14904_v59  ;;  %8183 = vmatprep.subr.bf16.mxu0 %v14907_v60 }
0x14ec   : > { %v7186_v5 = vadd.f32 %v7185_v2, %v6400_v0  ;;  %v7229_v6 = vadd.f32 %v7228_v13, %v6408_v63  ;;  %v7238_v50 = vmax.f32 %v7184_v1, 0.0  ;;  %v7240_v52 = vmax.f32 %v7227_v53, 0.0 }
0x14ed   : > { %v7187_v12 = vpop.f32.mrf.mxu1  ;;  %v7230_v40 = vpop.f32.mrf.mxu0 }
0x14ee   : > { %v7188_v30 = vadd.f32 %v7187_v12, %v6404_v61  ;;  %v7231_v9 = vadd.f32 %v7230_v40, %v6412_v62  ;;  %8141 = vmatpush2.bf16.msra.mxu1 %v14902_v7  ;;  %8184 = vmatpush2.bf16.msra.mxu0 %v14905_v8  ;;  %v7245_v11 = vmax.f32 %v7186_v5, 0.0  ;;  %v7247_v46 = vmax.f32 %v7229_v6, 0.0  ;;  %v8203_v61 = vld [vmem:[#allocation22 + $0x1] ss:$4 sm:$0x3] }
0x14ef   : > { %8142 = vmatprep.subr.bf16.mxu1 %v14910_v14  ;;  %8185 = vmatprep.subr.bf16.mxu0 %v14913_v16  ;;  %v8208_v7 = vrot.slane %v8203_v61, %v16422_v19  ;;  %v8212_v8 = vrot.slane %v8203_v61, %v16425_v20  ;;  %v14955_v61 = vld [vmem:[#allocation10 + $0x63c] ss:$24 sps:$4 sm:$0xff]  }
0x14f0   : > { %v7246_v45 = vmax.f32 %v7188_v30, 0.0  ;;  %v7248_v43 = vmax.f32 %v7231_v9, 0.0  ;;  %v7253_v22 = vpack.c.bf16 %v7245_v11, %v7237_v33  ;;  %v7255_v17 = vpack.c.bf16 %v7247_v46, %v7239_v31  ;;  %v14925_v33 = vld [vmem:[#allocation10 + $0x72c] ss:$24 sps:$4 sm:$0xff]   ;;  %v14923_v31 = vld [vmem:[#allocation10 + $0x728] ss:$24 sps:$4 sm:$0xff]  }
0x14f2   : > { %v7254_v35 = vpack.c.bf16 %v7246_v45, %v7238_v50  ;;  %v7256_v23 = vpack.c.bf16 %v7248_v43, %v7240_v52  ;;  %8143 = vmatpush2.bf16.msra.mxu1 %v14908_v18  ;;  %8186 = vmatpush2.bf16.msra.mxu0 %v14911_v34  ;;  %v14914_v50 = vld [vmem:[#allocation10 + $0x750] ss:$24 sps:$4 sm:$0xff]   ;;  %v14916_v52 = vld [vmem:[#allocation10 + $0x754] ss:$24 sps:$4 sm:$0xff]  }
0x14f3   : > { %v14917_v45 = vld [vmem:[#allocation10 + $0x758] ss:$24 sps:$4 sm:$0xff]   ;;  %v14919_v43 = vld [vmem:[#allocation10 + $0x75c] ss:$24 sps:$4 sm:$0xff]   ;;  %8864 = vmatprep.subr.bf16.mxu1 %v14916_v52 }
0x14f4   : > { %8144 = vmatprep.mubr.bf16.mxu1 %v7254_v35  ;;  %8187 = vmatprep.mubr.bf16.mxu0 %v7256_v23  ;;  %v14928_v35 = vld [vmem:[#allocation10 + $0x6f4] ss:$24 sps:$4 sm:$0xff]   ;;  %v14970_v52 = vld [vmem:[#allocation10 + $0x8a4] ss:$24 sps:$4 sm:$0xff]  }
0x14f5   : > { %8145 = vmatmul.mubr.bf16.vlgmr.msra.gmra.mxu1 %v7253_v22  ;;  %8188 = vmatmul.mubr.bf16.vlgmr.msra.gmra.mxu0 %v7255_v17  ;;  %v14931_v23 = vld [vmem:[#allocation10 + $0x6fc] ss:$24 sps:$4 sm:$0xff]   ;;  %v14926_v22 = vld [vmem:[#allocation10 + $0x6f0] ss:$24 sps:$4 sm:$0xff]  }
0x14f6   : > { %8865 = vmatpush1.bf16.msra.mxu1 %v14914_v50  ;;  %8907 = vmatprep.subr.bf16.mxu0 %v14919_v43  ;;  %v14929_v17 = vld [vmem:[#allocation10 + $0x6f8] ss:$24 sps:$4 sm:$0xff]   ;;  %v14973_v43 = vld [vmem:[#allocation10 + $0x8ac] ss:$24 sps:$4 sm:$0xff]  }
0x14f7   : > { %8908 = vmatpush1.bf16.msra.mxu0 %v14917_v45  ;;  %v14968_v45 = vld [vmem:[#allocation10 + $0x8a0] ss:$24 sps:$4 sm:$0xff]  }
0x14f8   : > { %8909 = vmatprep.subr.bf16.mxu0 %v14925_v33  ;;  %v14976_v33 = vld [vmem:[#allocation10 + $0x874] ss:$24 sps:$4 sm:$0xff]  }
0x14fb   : > { %8910 = vmatpush1.bf16.msra.mxu0 %v14923_v31  ;;  %v14979_v31 = vld [vmem:[#allocation10 + $0x87c] ss:$24 sps:$4 sm:$0xff]  }
0x14fc   : > { %8911 = vmatprep.subr.bf16.mxu0 %v14931_v23  ;;  %v14980_v23 = vld [vmem:[#allocation10 + $0x840] ss:$24 sps:$4 sm:$0xff]  }
0x14ff   : > { %8912 = vmatpush1.bf16.msra.mxu0 %v14929_v17  ;;  %v14983_v17 = vld [vmem:[#allocation10 + $0x848] ss:$24 sps:$4 sm:$0xff]  }
0x1575   : > { %v8060_v21 = vpop.f32.mrf.mxu1  ;;  %v8103_v32 = vpop.f32.mrf.mxu0 }
0x1576   : > { %v8104_v51 = vadd.f32 %v8103_v32, %v8060_v21  ;;  %v14934_v21 = vld [vmem:[#allocation10 + $0x6c4] ss:$24 sps:$4 sm:$0xff]  }
0x1577   : > { %v8062_v39 = vpop.f32.mrf.mxu1  ;;  %v8105_v41 = vpop.f32.mrf.mxu0  ;;  %v14937_v32 = vld [vmem:[#allocation10 + $0x6cc] ss:$24 sps:$4 sm:$0xff]  }
0x1578   : > { %v8106_v59 = vadd.f32 %v8105_v41, %v8062_v39  ;;  %v14932_v39 = vld [vmem:[#allocation10 + $0x6c0] ss:$24 sps:$4 sm:$0xff]   ;;  %8913 = vmatprep.subr.bf16.mxu0 %v14937_v32  ;;  %v14988_v32 = vld [vmem:[#allocation10 + $0x814] ss:$24 sps:$4 sm:$0xff]  }
0x1579   : > { %v8064_v29 = vpop.f32.mrf.mxu1  ;;  %v8107_v42 = vpop.f32.mrf.mxu0  ;;  %v14935_v41 = vld [vmem:[#allocation10 + $0x6c8] ss:$24 sps:$4 sm:$0xff]  }
0x157a   : > { %v8108_v63 = vadd.f32 %v8107_v42, %v8064_v29  ;;  %v14940_v29 = vld [vmem:[#allocation10 + $0x694] ss:$24 sps:$4 sm:$0xff]   ;;  %8914 = vmatpush1.bf16.msra.mxu0 %v14935_v41  ;;  %v14986_v41 = vld [vmem:[#allocation10 + $0x810] ss:$24 sps:$4 sm:$0xff]  }
0x157b   : > { %v8066_v44 = vpop.f32.mrf.mxu1  ;;  %v8109_v38 = vpop.f32.mrf.mxu0  ;;  %v14943_v42 = vld [vmem:[#allocation10 + $0x69c] ss:$24 sps:$4 sm:$0xff]  }
0x157c   : > { %v8110_v14 = vadd.f32 %v8109_v38, %v8066_v44  ;;  %v14938_v44 = vld [vmem:[#allocation10 + $0x690] ss:$24 sps:$4 sm:$0xff]   ;;  %8915 = vmatprep.subr.bf16.mxu0 %v14943_v42  ;;  %v14994_v42 = vld [vmem:[#allocation10 + $0x7e4] ss:$24 sps:$4 sm:$0xff]  }
0x157d   : > { %v14941_v38 = vld [vmem:[#allocation10 + $0x698] ss:$24 sps:$4 sm:$0xff]  }
0x157e   : > { %8916 = vmatpush1.bf16.msra.mxu0 %v14941_v38  ;;  %v14992_v38 = vld [vmem:[#allocation10 + $0x7e0] ss:$24 sps:$4 sm:$0xff]  }
0x15b5   : > { %v8146_v56 = vpop.f32.mrf.mxu1  ;;  %v8189_v58 = vpop.f32.mrf.mxu0 }
0x15b6   : > { %v8147_v60 = vadd.f32 %v8146_v56, %v8104_v51  ;;  %v14946_v51 = vld [vmem:[#allocation10 + $0x664] ss:$24 sps:$4 sm:$0xff]  }
0x15b7   : > { %v8148_v62 = vpop.f32.mrf.mxu1  ;;  %v8191_v0 = vpop.f32.mrf.mxu0  ;;  %v14949_v56 = vld [vmem:[#allocation10 + $0x66c] ss:$24 sps:$4 sm:$0xff]  }
0x15b8   : > { %v8190_v25 = vadd.f32 %v8189_v58, %v8147_v60  ;;  %v8149_v3 = vadd.f32 %v8148_v62, %v8106_v59  ;;  %v14944_v58 = vld [vmem:[#allocation10 + $0x660] ss:$24 sps:$4 sm:$0xff]   ;;  %v14952_v60 = vld [vmem:[#allocation10 + $0x634] ss:$24 sps:$4 sm:$0xff]   ;;  %8917 = vmatprep.subr.bf16.mxu0 %v14949_v56  ;;  %v14950_v62 = vld [vmem:[#allocation10 + $0x630] ss:$24 sps:$4 sm:$0xff]  }
0x15b9   : > { %v8150_v2 = vpop.f32.mrf.mxu1  ;;  %v8193_v13 = vpop.f32.mrf.mxu0  ;;  %v14947_v59 = vld [vmem:[#allocation10 + $0x668] ss:$24 sps:$4 sm:$0xff]   ;;  %v15000_v56 = vld [vmem:[#allocation10 + $0x7b4] ss:$24 sps:$4 sm:$0xff]  }
0x15ba   : > { %v8198_v16 = vadd.f32 %v8190_v25, %v16761_v26  ;;  %v8192_v1 = vadd.f32 %v8191_v0, %v8149_v3  ;;  %v8151_v53 = vadd.f32 %v8150_v2, %v8108_v63  ;;  %8918 = vmatpush1.bf16.msra.mxu0 %v14947_v59  ;;  %v14953_v0 = vld [vmem:[#allocation10 + $0x638] ss:$24 sps:$4 sm:$0xff]   ;;  %v14958_v63 = vld [vmem:[#allocation10 + $0x604] ss:$24 sps:$4 sm:$0xff]  }
0x15bb   : > { %v8152_v5 = vpop.f32.mrf.mxu1  ;;  %v8195_v12 = vpop.f32.mrf.mxu0  ;;  %8919 = vmatprep.subr.bf16.mxu0 %v14955_v61  ;;  %v14961_v25 = vld [vmem:[#allocation10 + $0x60c] ss:$24 sps:$4 sm:$0xff]   ;;  %v14956_v3 = vld [vmem:[#allocation10 + $0x600] ss:$24 sps:$4 sm:$0xff]   ;;  %v14967_v2 = vld [vmem:[#allocation10 + $0x8dc] ss:$24 sps:$4 sm:$0xff]  }
0x15bc   : > { %v8199_v6 = vadd.f32 %v8192_v1, %v16763_v10  ;;  %v8194_v24 = vadd.f32 %v8193_v13, %v8151_v53  ;;  %v8153_v36 = vadd.f32 %v8152_v5, %v8110_v14  ;;  %v16831_v40 = vadd.f32 %v8208_v7, %v8198_v16  ;;  %v14962_v13 = vld [vmem:[#allocation10 + $0x8d0] ss:$24 sps:$4 sm:$0xff]   ;;  %v15006_v61 = vld [vmem:[#allocation10 + $0x784] ss:$24 sps:$4 sm:$0xff]  }
0x15bd   : > { %v14965_v14 = vld [vmem:[#allocation10 + $0x8d8] ss:$24 sps:$4 sm:$0xff]  }
0x15be   : > { %v16833_v30 = vadd.f32 %v8212_v8, %v8199_v6  ;;  %v8200_v9 = vadd.f32 %v8194_v24, %v16769_v27  ;;  %v8196_v18 = vadd.f32 %v8195_v12, %v8153_v36  ;;  %v14922_v27 = vld [vmem:[#allocation10 + $0x724] ss:$24 sps:$4 sm:$0xff]   ;;  %8920 = vmatpush1.bf16.msra.mxu0 %v14953_v0  ;;  %v14998_v59 = vld [vmem:[#allocation10 + $0x7b0] ss:$24 sps:$4 sm:$0xff]   ;;  %v15004_v0 = vld [vmem:[#allocation10 + $0x780] ss:$24 sps:$4 sm:$0xff]  }
0x15bf   : > { %8866 = vmatprep.subr.bf16.mxu1 %v14922_v27  ;;  %8921 = vmatprep.subr.bf16.mxu0 %v14961_v25  ;;  %v14971_v27 = vld [vmem:[#allocation10 + $0x8a8] ss:$24 sps:$4 sm:$0xff]   ;;  %v15012_v25 = vld [vmem:[#allocation10 + $0x764] ss:$24 sps:$4 sm:$0xff]  }
0x15c0   : > { %v8201_v34 = vadd.f32 %v8196_v18, %v16771_v28  ;;  %v8223_v26 = vadd.f32 %v16833_v30, %v16831_v40  ;;  %v16839_v11 = vadd.f32 %v8208_v7, %v8200_v9  ;;  %v14920_v28 = vld [vmem:[#allocation10 + $0x720] ss:$24 sps:$4 sm:$0xff]  }
0x15c1   : > { %8867 = vmatpush1.bf16.msra.mxu1 %v14920_v28  ;;  %v14959_v7 = vld [vmem:[#allocation10 + $0x608] ss:$24 sps:$4 sm:$0xff]  }
0x15c2   : > { %v16841_v46 = vadd.f32 %v8212_v8, %v8201_v34  ;;  %8224 = vadd.xlane.f32.xlu0 %v8223_v26  ;;  %8868 = vmatprep.subr.bf16.mxu1 %v14928_v35  ;;  %v14964_v8 = vld [vmem:[#allocation10 + $0x8d4] ss:$24 sps:$4 sm:$0xff]   ;;  %v14974_v28 = vld [vmem:[#allocation10 + $0x870] ss:$24 sps:$4 sm:$0xff]  }
0x15c3   : > { %8922 = vmatpush1.bf16.msra.mxu0 %v14959_v7  ;;  %v14977_v35 = vld [vmem:[#allocation10 + $0x878] ss:$24 sps:$4 sm:$0xff]  }
0x15c4   : > { %v8226_v10 = vadd.f32 %v16841_v46, %v16839_v11  ;;  %8923 = vmatprep.subr.bf16.mxu0 %v14967_v2 }
0x15c5   : > { %8869 = vmatpush1.bf16.msra.mxu1 %v14926_v22  ;;  %v14982_v22 = vld [vmem:[#allocation10 + $0x844] ss:$24 sps:$4 sm:$0xff]  }
0x15c6   : > { %8227 = vadd.xlane.f32.xlu1 %v8226_v10  ;;  %8870 = vmatprep.subr.bf16.mxu1 %v14934_v21  ;;  %v14985_v21 = vld [vmem:[#allocation10 + $0x84c] ss:$24 sps:$4 sm:$0xff]  }
0x15c7   : > { %8924 = vmatpush2.bf16.msra.mxu0 %v14965_v14 }
0x15c8   : > { %8925 = vmatprep.subr.bf16.mxu0 %v14973_v43 }
0x15c9   : > { %8871 = vmatpush1.bf16.msra.mxu1 %v14932_v39  ;;  %v14991_v39 = vld [vmem:[#allocation10 + $0x81c] ss:$24 sps:$4 sm:$0xff]  }
0x15ca   : > { %8872 = vmatprep.subr.bf16.mxu1 %v14940_v29  ;;  %v14989_v29 = vld [vmem:[#allocation10 + $0x818] ss:$24 sps:$4 sm:$0xff]  }
0x15cb   : > { %8926 = vmatpush2.bf16.msra.mxu0 %v14971_v27 }
0x15cc   : > { %8927 = vmatprep.subr.bf16.mxu0 %v14979_v31 }
0x15cd   : > { %8873 = vmatpush1.bf16.msra.mxu1 %v14938_v44  ;;  %v14997_v44 = vld [vmem:[#allocation10 + $0x7ec] ss:$24 sps:$4 sm:$0xff]  }
0x15ce   : > { %8874 = vmatprep.subr.bf16.mxu1 %v14946_v51  ;;  %v14995_v51 = vld [vmem:[#allocation10 + $0x7e8] ss:$24 sps:$4 sm:$0xff]  }
0x15cf   : > { %8928 = vmatpush2.bf16.msra.mxu0 %v14977_v35 }
0x15d0   : > { %8929 = vmatprep.subr.bf16.mxu0 %v14985_v21  ;;  %v15015_v21 = vld [vmem:[#allocation10 + $0x734] ss:$24 sps:$4 sm:$0xff]  }
0x15d1   : > { %8875 = vmatpush1.bf16.msra.mxu1 %v14944_v58  ;;  %v15003_v58 = vld [vmem:[#allocation10 + $0x7bc] ss:$24 sps:$4 sm:$0xff]  }
0x15d2   : > { %8876 = vmatprep.subr.bf16.mxu1 %v14952_v60  ;;  %v15001_v60 = vld [vmem:[#allocation10 + $0x7b8] ss:$24 sps:$4 sm:$0xff]  }
0x15d3   : > { %8930 = vmatpush2.bf16.msra.mxu0 %v14983_v17  ;;  %v15010_v17 = vld [vmem:[#allocation10 + $0x760] ss:$24 sps:$4 sm:$0xff]  }
0x15d4   : > { %8931 = vmatprep.subr.bf16.mxu0 %v14991_v39  ;;  %v15021_v39 = vld [vmem:[#allocation10 + $0x6d4] ss:$24 sps:$4 sm:$0xff]  }
0x15d5   : > { %8877 = vmatpush1.bf16.msra.mxu1 %v14950_v62  ;;  %v15009_v62 = vld [vmem:[#allocation10 + $0x78c] ss:$24 sps:$4 sm:$0xff]  }
0x15d6   : > { %8878 = vmatprep.subr.bf16.mxu1 %v14958_v63  ;;  %v15007_v63 = vld [vmem:[#allocation10 + $0x788] ss:$24 sps:$4 sm:$0xff]  }
0x15d7   : > { %8932 = vmatpush2.bf16.msra.mxu0 %v14989_v29  ;;  %v15024_v29 = vld [vmem:[#allocation10 + $0x6a4] ss:$24 sps:$4 sm:$0xff]  }
0x15d8   : > { %8933 = vmatprep.subr.bf16.mxu0 %v14997_v44  ;;  %v15027_v44 = vld [vmem:[#allocation10 + $0x674] ss:$24 sps:$4 sm:$0xff]  }
0x15d9   : > { %8879 = vmatpush1.bf16.msra.mxu1 %v14956_v3 }
0x15da   : > { %8880 = vmatprep.subr.bf16.mxu1 %v14964_v8 }
0x15db   : > { %8934 = vmatpush2.bf16.msra.mxu0 %v14995_v51  ;;  %v15030_v51 = vld [vmem:[#allocation10 + $0x644] ss:$24 sps:$4 sm:$0xff]  }
0x15dc   : > { %8935 = vmatprep.subr.bf16.mxu0 %v15003_v58  ;;  %v15033_v58 = vld [vmem:[#allocation10 + $0x614] ss:$24 sps:$4 sm:$0xff]  }
0x15dd   : > { %8881 = vmatpush2.bf16.msra.mxu1 %v14962_v13 }
0x15de   : > { %8882 = vmatprep.subr.bf16.mxu1 %v14970_v52 }
0x15df   : > { %8936 = vmatpush2.bf16.msra.mxu0 %v15001_v60  ;;  %v15036_v60 = vld [vmem:[#allocation10 + $0x8e4] ss:$24 sps:$4 sm:$0xff]  }
0x15e0   : > { %8937 = vmatprep.subr.bf16.mxu0 %v15009_v62  ;;  %v15039_v62 = vld [vmem:[#allocation10 + $0x8b4] ss:$24 sps:$4 sm:$0xff]  }
0x15e1   : > { %8883 = vmatpush2.bf16.msra.mxu1 %v14968_v45 }
0x15e2   : > { %8884 = vmatprep.subr.bf16.mxu1 %v14976_v33 }
0x15e3   : > { %8938 = vmatpush2.bf16.msra.mxu0 %v15007_v63  ;;  %v15042_v63 = vld [vmem:[#allocation10 + $0x884] ss:$24 sps:$4 sm:$0xff]  }
0x15e4   : > { %13793 = vmatprep.subr.bf16.mxu0 %v16037_v15 }
0x15e5   : > { %8885 = vmatpush2.bf16.msra.mxu1 %v14974_v28 }
0x15e6   : > { %8886 = vmatprep.subr.bf16.mxu1 %v14982_v22 }
0x15e9   : > { %8887 = vmatpush2.bf16.msra.mxu1 %v14980_v23 }
0x15ea   : > { %8888 = vmatprep.subr.bf16.mxu1 %v14988_v32  ;;  %v15016_v32 = vld [vmem:[#allocation10 + $0x700] ss:$24 sps:$4 sm:$0xff]  }
0x15ed   : > { %8889 = vmatpush2.bf16.msra.mxu1 %v14986_v41  ;;  %v15019_v41 = vld [vmem:[#allocation10 + $0x6d0] ss:$24 sps:$4 sm:$0xff]  }
0x15ee   : > { %8890 = vmatprep.subr.bf16.mxu1 %v14994_v42  ;;  %v15022_v42 = vld [vmem:[#allocation10 + $0x6a0] ss:$24 sps:$4 sm:$0xff]  }
0x15f1   : > { %8891 = vmatpush2.bf16.msra.mxu1 %v14992_v38  ;;  %v15025_v38 = vld [vmem:[#allocation10 + $0x670] ss:$24 sps:$4 sm:$0xff]  }
0x15f2   : > { %8892 = vmatprep.subr.bf16.mxu1 %v15000_v56  ;;  %v15028_v56 = vld [vmem:[#allocation10 + $0x640] ss:$24 sps:$4 sm:$0xff]  }
0x15f5   : > { %8893 = vmatpush2.bf16.msra.mxu1 %v14998_v59  ;;  %v15031_v59 = vld [vmem:[#allocation10 + $0x610] ss:$24 sps:$4 sm:$0xff]  }
0x15f6   : > { %8894 = vmatprep.subr.bf16.mxu1 %v15006_v61  ;;  %v15034_v61 = vld [vmem:[#allocation10 + $0x8e0] ss:$24 sps:$4 sm:$0xff]  }
0x15f9   : > { %8895 = vmatpush2.bf16.msra.mxu1 %v15004_v0  ;;  %v15037_v0 = vld [vmem:[#allocation10 + $0x8b0] ss:$24 sps:$4 sm:$0xff]  }
0x15fa   : > { %8950 = vmatprep.subr.bf16.mxu1 %v15012_v25  ;;  %v15040_v25 = vld [vmem:[#allocation10 + $0x880] ss:$24 sps:$4 sm:$0xff]  }
0x164b   : > { %v8225_v16 = vpop.xlane.xlu0 %8224 }
0x164c   : > { %v8229_v1 = vmul.f32 0.00390625, %v8225_v16  ;;  %v8220_v16 = vld [vmem:[#allocation7 + $0x2] ss:$4 sm:$0x3] }
0x164e   : > { %v16846_v53 = vsub.f32 %v16831_v40, %v8229_v1  ;;  %v16849_v5 = vsub.f32 %v16833_v30, %v8229_v1 }
0x164f   : > { %v8228_v6 = vpop.xlane.xlu1 %8227 }
0x1650   : > { %v8230_v24 = vmul.f32 0.00390625, %v8228_v6  ;;  %v8235_v36 = vmul.f32 %v16846_v53, %v16846_v53  ;;  %v8236_v12 = vmul.f32 %v16849_v5, %v16849_v5  ;;  %v8222_v6 = vld [vmem:[#allocation8 + $0x2] ss:$4 sm:$0x3] }
0x1652   : > { %v16856_v9 = vsub.f32 %v16839_v11, %v8230_v24  ;;  %v16859_v18 = vsub.f32 %v16841_v46, %v8230_v24  ;;  %v8239_v34 = vadd.f32 %v8236_v12, %v8235_v36  ;;  %v8259_v36 = vrot.slane %v8220_v16, %v16422_v19 }
0x1653   : > { %v8263_v12 = vrot.slane %v8220_v16, %v16425_v20  ;;  %v15054_v16 = vld [vmem:[#allocation10 + $0x7c4] ss:$24 sps:$4 sm:$0xff]  }
0x1654   : > { %8240 = vadd.xlane.f32.xlu0 %v8239_v34  ;;  %v8237_v26 = vmul.f32 %v16856_v9, %v16856_v9  ;;  %v8238_v10 = vmul.f32 %v16859_v18, %v16859_v18 }
0x1656   : > { %v8242_v50 = vadd.f32 %v8238_v10, %v8237_v26  ;;  %v8274_v10 = vrot.slane %v8222_v6, %v16422_v19 }
0x1658   : > { %8243 = vadd.xlane.f32.xlu1 %v8242_v50  ;;  %v8278_v50 = vrot.slane %v8222_v6, %v16425_v20  ;;  %v15057_v6 = vld [vmem:[#allocation10 + $0x794] ss:$24 sps:$4 sm:$0xff]  }
0x16dd   : > { %v8241_v3 = vpop.xlane.xlu0 %8240 }
0x16de   : > { %v8245_v7 = vmul.f32 0.00390625, %v8241_v3  ;;  %v15045_v3 = vld [vmem:[#allocation10 + $0x854] ss:$24 sps:$4 sm:$0xff]  }
0x16e0   : > { %v8247_v8 = vadd.f32 1e-05, %v8245_v7  ;;  %v15043_v7 = vld [vmem:[#allocation10 + $0x850] ss:$24 sps:$4 sm:$0xff]  }
0x16e1   : > { %v8244_v2 = vpop.xlane.xlu1 %8243 }
0x16e2   : > { %15426 = vrsqrt.f32 %v8247_v8  ;;  %v8246_v13 = vmul.f32 0.00390625, %v8244_v2  ;;  %v15048_v8 = vld [vmem:[#allocation10 + $0x824] ss:$24 sps:$4 sm:$0xff]   ;;  %v15046_v2 = vld [vmem:[#allocation10 + $0x820] ss:$24 sps:$4 sm:$0xff]  }
0x16e4   : > { %v8248_v14 = vadd.f32 1e-05, %v8246_v13  ;;  %v15051_v13 = vld [vmem:[#allocation10 + $0x7f4] ss:$24 sps:$4 sm:$0xff]  }
0x16e6   : > { %15428 = vrsqrt.f32 %v8248_v14  ;;  %v15049_v14 = vld [vmem:[#allocation10 + $0x7f0] ss:$24 sps:$4 sm:$0xff]  }
0x16ef   : > { %v15427_v1 = vpop.eup %15426 }
0x16f0   : > { %v8252_v24 = vmul.f32 %v15427_v1, %v16849_v5  ;;  %v8251_v34 = vmul.f32 %v15427_v1, %v16846_v53  ;;  %v15052_v1 = vld [vmem:[#allocation10 + $0x7c0] ss:$24 sps:$4 sm:$0xff]  }
0x16f2   : > { %v8267_v45 = vmul.f32 %v8263_v12, %v8252_v24  ;;  %v8266_v27 = vmul.f32 %v8259_v36, %v8251_v34  ;;  %v15055_v24 = vld [vmem:[#allocation10 + $0x790] ss:$24 sps:$4 sm:$0xff]  }
0x16f3   : > { %v15429_v26 = vpop.eup %15428 }
0x16f4   : > { %v8254_v52 = vmul.f32 %v15429_v26, %v16859_v18  ;;  %v8253_v43 = vmul.f32 %v15429_v26, %v16856_v9  ;;  %v8282_v5 = vadd.f32 %v8278_v50, %v8267_v45  ;;  %v8281_v35 = vadd.f32 %v8274_v10, %v8266_v27  ;;  %v15013_v9 = vld [vmem:[#allocation10 + $0x730] ss:$24 sps:$4 sm:$0xff]   ;;  %v15018_v18 = vld [vmem:[#allocation10 + $0x704] ss:$24 sps:$4 sm:$0xff]  }
0x16f6   : > { %v8269_v33 = vmul.f32 %v8263_v12, %v8254_v52  ;;  %v8268_v28 = vmul.f32 %v8259_v36, %v8253_v43 }
0x16f8   : > { %v8284_v31 = vadd.f32 %v8278_v50, %v8269_v33  ;;  %v8283_v23 = vadd.f32 %v8274_v10, %v8268_v28 }
0x16fa   : > { %v8286_v22 = vpack.c.bf16 %v8284_v31, %v8282_v5  ;;  %v16874_v53 = vpack.c.bf16 %v8283_v23, %v8281_v35 }
0x16fc   : > { %8896 = vmatprep.mubr.bf16.mxu1 %v8286_v22  ;;  %8939 = vmatprep.mubr.bf16.mxu0 %v8286_v22 }
0x16fd   : > { %8897 = vmatmul.mubr.bf16.vlgmr.msra.gmra.mxu1 %v16874_v53  ;;  %8940 = vmatmul.mubr.bf16.vlgmr.msra.gmra.mxu0 %v16874_v53 }
0x16fe   : > { %8951 = vmatpush1.bf16.msra.mxu1 %v15010_v17  ;;  %8982 = vmatprep.mubr.bf16.mxu1 %v8286_v22 }
0x16ff   : > { %8952 = vmatprep.subr.bf16.mxu1 %v15015_v21  ;;  %13795 = vmatprep.mubr.msk.bf16.mxu0 %vm16038_vm6, %v16037_v15 }
0x1702   : > { %8953 = vmatpush1.bf16.msra.mxu1 %v15013_v9 }
0x1703   : > { %8954 = vmatprep.subr.bf16.mxu1 %v15018_v18 }
0x1706   : > { %8955 = vmatpush1.bf16.msra.mxu1 %v15016_v32 }
0x1707   : > { %8956 = vmatprep.subr.bf16.mxu1 %v15021_v39 }
0x170a   : > { %8957 = vmatpush1.bf16.msra.mxu1 %v15019_v41 }
0x170b   : > { %8958 = vmatprep.subr.bf16.mxu1 %v15024_v29 }
0x170e   : > { %8959 = vmatpush1.bf16.msra.mxu1 %v15022_v42 }
0x170f   : > { %8960 = vmatprep.subr.bf16.mxu1 %v15027_v44 }
0x1712   : > { %8961 = vmatpush1.bf16.msra.mxu1 %v15025_v38 }
0x1713   : > { %8962 = vmatprep.subr.bf16.mxu1 %v15030_v51 }
0x1716   : > { %8963 = vmatpush1.bf16.msra.mxu1 %v15028_v56 }
0x1717   : > { %8964 = vmatprep.subr.bf16.mxu1 %v15033_v58 }
0x171a   : > { %8965 = vmatpush1.bf16.msra.mxu1 %v15031_v59 }
0x171b   : > { %8966 = vmatprep.subr.bf16.mxu1 %v15036_v60 }
0x171e   : > { %8967 = vmatpush2.bf16.msra.mxu1 %v15034_v61 }
0x171f   : > { %8968 = vmatprep.subr.bf16.mxu1 %v15039_v62 }
0x1722   : > { %8969 = vmatpush2.bf16.msra.mxu1 %v15037_v0 }
0x1723   : > { %8970 = vmatprep.subr.bf16.mxu1 %v15042_v63 }
0x1726   : > { %8971 = vmatpush2.bf16.msra.mxu1 %v15040_v25 }
0x1727   : > { %8972 = vmatprep.subr.bf16.mxu1 %v15045_v3 }
0x172a   : > { %8973 = vmatpush2.bf16.msra.mxu1 %v15043_v7 }
0x172b   : > { %8974 = vmatprep.subr.bf16.mxu1 %v15048_v8 }
0x172e   : > { %8975 = vmatpush2.bf16.msra.mxu1 %v15046_v2 }
0x172f   : > { %8976 = vmatprep.subr.bf16.mxu1 %v15051_v13 }
0x1732   : > { %8977 = vmatpush2.bf16.msra.mxu1 %v15049_v14 }
0x1733   : > { %8978 = vmatprep.subr.bf16.mxu1 %v15054_v16 }
0x1736   : > { %8979 = vmatpush2.bf16.msra.mxu1 %v15052_v1 }
0x1737   : > { %8980 = vmatprep.subr.bf16.mxu1 %v15057_v6 }
0x173a   : > { %8981 = vmatpush2.bf16.msra.mxu1 %v15055_v24 }
0x173b   : > { %13799 = vmatprep.subr.bf16.mxu1 %v16037_v15 }
0x173d   : > { %8983 = vmatmul.mubr.bf16.vlgmr.msra.gmra.mxu1 %v16874_v53 }
0x173e   : > { %13801 = vmatprep.mubr.msk.bf16.mxu1 %vm16038_vm6, %v16037_v15 }
0x17bd   : > { %v8898_v36 = vpop.f32.mrf.mxu1  ;;  %v8941_v12 = vpop.f32.mrf.mxu0 }
0x17be   : > { %v8993_v52 = vmul.f32 0.0625, %v8898_v36 }
0x17bf   : > { %v8900_v34 = vpop.f32.mrf.mxu1  ;;  %v8943_v26 = vpop.f32.mrf.mxu0 }
0x17c0   : > { %v9236_v33 = vmul.f32 0.0625, %v8900_v34 }
0x17c1   : > { %v8902_v10 = vpop.f32.mrf.mxu1  ;;  %v8945_v50 = vpop.f32.mrf.mxu0 }
0x17c2   : > { %v8994_v45 = vmul.f32 0.0625, %v8902_v10  ;;  %v8996_v43 = vpack.c.bf16 %v8945_v50, %v8941_v12 }
0x17c3   : > { %v8904_v27 = vpop.f32.mrf.mxu1  ;;  %v8947_v35 = vpop.f32.mrf.mxu0 }
0x17c4   : > { %v8995_v28 = vpack.c.bf16 %v8994_v45, %v8993_v52  ;;  %v9002_v5 = vsel %vm1850_vm7, %v8996_v43, 0  ;;  %v9237_v31 = vmul.f32 0.0625, %v8904_v27  ;;  %9116 = vrot.lane.b32.xlu0 %v8996_v43, %s16039_s25  ;;  %v9239_v22 = vpack.c.bf16 %v8947_v35, %v8943_v26 }
0x17c5   : > { %13794 = vmatpush3.bf16.xpose.msra.mxu0 %v9002_v5 }
0x17c6   : > { %v9238_v23 = vpack.c.bf16 %v9237_v31, %v9236_v33  ;;  %9113 = vrot.lane.b32.xlu1 %v8995_v28, %s16039_s25  ;;  %13805 = vmatprep.subr.bf16.mxu0 %v16037_v15  ;;  %v9245_v41 = vsel %vm1850_vm7, %v9239_v22, 0 }
0x17c8   : > { %9356 = vrot.lane.b32.xlu0 %v9238_v23, %s16039_s25 }
0x17ca   : > { %9359 = vrot.lane.b32.xlu1 %v9239_v22, %s16039_s25 }
0x17cc   : > { %13796 = vmatmul.mubr.msk.bf16.vlgmr.msra.gmra.mxu0 %vm1850_vm7, %v8995_v28 }
0x17cd   : > { %13807 = vmatprep.mubr.msk.bf16.mxu0 %vm16038_vm6, %v16037_v15 }
0x17fd   : > { %v8984_v17 = vpop.f32.mrf.mxu1 }
0x17ff   : > { %v16893_v53 = vpop.f32.mrf.mxu1 }
0x1801   : > { %v8988_v21 = vpop.f32.mrf.mxu1 }
0x1802   : > { %v16895_v9 = vpack.c.bf16 %v8988_v21, %v8984_v17 }
0x1804   : > { %13800 = vmatpush3.bf16.msra.mxu1 %v16895_v9 }
0x1805   : > { %13811 = vmatprep.subr.bf16.mxu1 %v16037_v15 }
0x1836   : > { %v9117_v18 = vpop.permute.xlu0 %9116 }
0x1837   : > { %v9122_v32 = vsel %vm1850_vm7, %v9117_v18, 0 }
0x1838   : > { %13806 = vmatpush3.bf16.xpose.msra.mxu0 %v9122_v32  ;;  %v9114_v39 = vpop.permute.xlu1 %9113 }
0x1839   : > { %13817 = vmatprep.subr.bf16.mxu0 %v16037_v15 }
0x183a   : > { %v9357_v44 = vpop.permute.xlu0 %9356 }
0x183c   : > { %v9360_v29 = vpop.permute.xlu1 %9359 }
0x183d   : > { %v9365_v42 = vsel %vm1850_vm7, %v9360_v29, 0 }
0x183f   : > { %13808 = vmatmul.mubr.msk.bf16.vlgmr.msra.gmra.mxu0 %vm1850_vm7, %v9114_v39 }
0x1840   : > { %13818 = vmatpush3.bf16.xpose.msra.mxu0 %v9245_v41  ;;  %13819 = vmatprep.mubr.msk.bf16.mxu0 %vm16038_vm6, %v16037_v15 }
0x1841   : > { %13829 = vmatprep.subr.bf16.mxu0 %v16037_v15 }
0x1847   : > { %13820 = vmatmul.mubr.msk.bf16.vlgmr.msra.gmra.mxu0 %vm1850_vm7, %v9238_v23 }
0x1848   : > { %13830 = vmatpush3.bf16.xpose.msra.mxu0 %v9365_v42  ;;  %13831 = vmatprep.mubr.msk.bf16.mxu0 %vm16038_vm6, %v16037_v15 }
0x184f   : > { %13832 = vmatmul.mubr.msk.bf16.vlgmr.msra.gmra.mxu0 %vm1850_vm7, %v9357_v44 }
0x188c   : > { %v9038_v38 = vpop.f32.mrf.mxu0 }
0x188d   : > { %v9039_v51 = vadd.f32 %v9038_v38, %v16476_v54 }
0x188e   : > { %v13797_v56 = vpop.f32.mrf.mxu0 }
0x188f   : > { %v9045_v58 = vsel %vm1898_vm10, %v9039_v51, -inf }
0x1890   : > { %9046 = vmax.xlane.f32.xlu1 %v9045_v58  ;;  %v9041_v59 = vpop.f32.mrf.mxu0 }
0x1891   : > { %v9042_v60 = vadd.f32 %v9041_v59, %v16480_v57 }
0x1892   : > { %v13798_v61 = vpop.f32.mrf.mxu0 }
0x1893   : > { %v9048_v62 = vsel %vm1898_vm10, %v9042_v60, -inf }
0x1894   : > { %9049 = vmax.xlane.f32.xlu0 %v9048_v62 }
0x18ff   : > { %v9158_v0 = vpop.f32.mrf.mxu0 }
0x1900   : > { %v9159_v63 = vadd.f32 %v9158_v0, %v16476_v54 }
0x1901   : > { %v13809_v25 = vpop.f32.mrf.mxu0 }
0x1902   : > { %v9165_v3 = vsel %vm1898_vm10, %v9159_v63, -inf }
0x1903   : > { %v9161_v7 = vpop.f32.mrf.mxu0  ;;  %9166 = vmax.xlane.f32.xlu0 %v9165_v3 }
0x1904   : > { %v9162_v8 = vadd.f32 %v9161_v7, %v16480_v57 }
0x1905   : > { %v13810_v2 = vpop.f32.mrf.mxu0 }
0x1906   : > { %v9168_v13 = vsel %vm1898_vm10, %v9162_v8, -inf }
0x1907   : > { %9169 = vmax.xlane.f32.xlu1 %v9168_v13  ;;  %v9281_v14 = vpop.f32.mrf.mxu0 }
0x1908   : > { %v9282_v16 = vadd.f32 %v9281_v14, %v16476_v54 }
0x1909   : > { %v13821_v1 = vpop.f32.mrf.mxu0 }
0x190a   : > { %v9288_v6 = vsel %vm1898_vm10, %v9282_v16, -inf }
0x190b   : > { %9289 = vmax.xlane.f32.xlu0 %v9288_v6  ;;  %v9284_v24 = vpop.f32.mrf.mxu0 }
0x190c   : > { %v9285_v36 = vadd.f32 %v9284_v24, %v16480_v57 }
0x190d   : > { %v13822_v12 = vpop.f32.mrf.mxu0 }
0x190e   : > { %v9291_v34 = vsel %vm1898_vm10, %v9285_v36, -inf }
0x190f   : > { %9292 = vmax.xlane.f32.xlu1 %v9291_v34  ;;  %v9401_v26 = vpop.f32.mrf.mxu0 }
0x1910   : > { %v9402_v10 = vadd.f32 %v9401_v26, %v16476_v54 }
0x1911   : > { %v13833_v50 = vpop.f32.mrf.mxu0 }
0x1912   : > { %v9408_v52 = vsel %vm1898_vm10, %v9402_v10, -inf }
0x1913   : > { %9409 = vmax.xlane.f32.xlu0 %v9408_v52  ;;  %v9404_v45 = vpop.f32.mrf.mxu0 }
0x1914   : > { %v9405_v43 = vadd.f32 %v9404_v45, %v16480_v57 }
0x1915   : > { %v13834_v27 = vpop.f32.mrf.mxu0 }
0x1916   : > { %v9411_v33 = vsel %vm1898_vm10, %v9405_v43, -inf }
0x1917   : > { %9412 = vmax.xlane.f32.xlu1 %v9411_v33 }
0x1919   : > { %v9047_v28 = vpop.xlane.xlu1 %9046 }
0x191a   : > { %v9051_v5 = vsub.f32 %v9039_v51, %v9047_v28 }
0x191c   : > { %v9053_v31 = vmul.f32 1.442695, %v9051_v5 }
0x191d   : > { %v9050_v35 = vpop.xlane.xlu0 %9049 }
0x191e   : > { %15430 = vpow2.f32 %v9053_v31  ;;  %v9052_v23 = vsub.f32 %v9042_v60, %v9050_v35 }
0x1920   : > { %v9055_v22 = vmul.f32 1.442695, %v9052_v23 }
0x1922   : > { %15432 = vpow2.f32 %v9055_v22 }
0x192b   : > { %v15431_v54 = vpop.eup %15430 }
0x192c   : > { %v9057_v17 = vsel %vm1898_vm10, %v15431_v54, 0.0 }
0x192d   : > { %9058 = vadd.xlane.f32.xlu0 %v9057_v17 }
0x192f   : > { %v15433_v21 = vpop.eup %15432 }
0x1930   : > { %v9060_v18 = vsel %vm1898_vm10, %v15433_v21, 0.0 }
0x1931   : > { %9061 = vadd.xlane.f32.xlu1 %v9060_v18 }
0x198c   : > { %v9167_v57 = vpop.xlane.xlu0 %9166 }
0x198d   : > { %v9171_v32 = vsub.f32 %v9159_v63, %v9167_v57 }
0x198f   : > { %v9173_v39 = vmul.f32 1.442695, %v9171_v32 }
0x1990   : > { %v9170_v41 = vpop.xlane.xlu1 %9169 }
0x1991   : > { %15434 = vpow2.f32 %v9173_v39  ;;  %v9172_v29 = vsub.f32 %v9162_v8, %v9170_v41 }
0x1993   : > { %v9175_v42 = vmul.f32 1.442695, %v9172_v29 }
0x1994   : > { %v9290_v44 = vpop.xlane.xlu0 %9289 }
0x1995   : > { %15436 = vpow2.f32 %v9175_v42  ;;  %v9294_v38 = vsub.f32 %v9282_v16, %v9290_v44 }
0x1997   : > { %v9296_v51 = vmul.f32 1.442695, %v9294_v38 }
0x1998   : > { %v9293_v56 = vpop.xlane.xlu1 %9292 }
0x1999   : > { %15438 = vpow2.f32 %v9296_v51  ;;  %v9295_v58 = vsub.f32 %v9285_v36, %v9293_v56 }
0x199b   : > { %v9298_v59 = vmul.f32 1.442695, %v9295_v58 }
0x199c   : > { %v9410_v60 = vpop.xlane.xlu0 %9409 }
0x199d   : > { %15440 = vpow2.f32 %v9298_v59  ;;  %v9414_v61 = vsub.f32 %v9402_v10, %v9410_v60  ;;  %v8990_v10 = vpop.f32.mrf.mxu1 }
0x199e   : > { %v15435_v62 = vpop.eup %15434  ;;  %v9240_v50 = vpack.c.bf16 %v8990_v10, %v16893_v53  ;;  %v15087_v10 = vld [vmem:[#allocation11 + $0x2e4] ss:$8 sps:$4 sm:$0xff]  }
0x199f   : > { %v9416_v0 = vmul.f32 1.442695, %v9414_v61  ;;  %v9177_v63 = vsel %vm1898_vm10, %v15435_v62, 0.0 }
0x19a0   : > { %9178 = vadd.xlane.f32.xlu0 %v9177_v63  ;;  %v9413_v25 = vpop.xlane.xlu1 %9412  ;;  %v15060_v63 = vld [vmem:[#allocation11 + $0x274] ss:$8 sps:$4 sm:$0xff]  }
0x19a1   : > { %15442 = vpow2.f32 %v9416_v0  ;;  %v9415_v3 = vsub.f32 %v9405_v43, %v9413_v25  ;;  %v15058_v0 = vld [vmem:[#allocation11 + $0x270] ss:$8 sps:$4 sm:$0xff]   ;;  %v15063_v25 = vld [vmem:[#allocation11 + $0x264] ss:$8 sps:$4 sm:$0xff]   ;;  %9694 = vmatprep.subr.bf16.mxu0 %v15060_v63 }
0x19a2   : > { %v15437_v7 = vpop.eup %15436  ;;  %9695 = vmatpush1.bf16.msra.mxu0 %v15058_v0 }
0x19a3   : > { %v9418_v8 = vmul.f32 1.442695, %v9415_v3  ;;  %v9180_v2 = vsel %vm1898_vm10, %v15437_v7, 0.0  ;;  %v15061_v3 = vld [vmem:[#allocation11 + $0x260] ss:$8 sps:$4 sm:$0xff]   ;;  %9696 = vmatprep.subr.bf16.mxu0 %v15063_v25 }
0x19a4   : > { %9181 = vadd.xlane.f32.xlu1 %v9180_v2  ;;  %v15067_v2 = vld [vmem:[#allocation11 + $0x240] ss:$8 sps:$4 sm:$0xff]  }
0x19a5   : > { %15444 = vpow2.f32 %v9418_v8  ;;  %v15069_v8 = vld [vmem:[#allocation11 + $0x244] ss:$8 sps:$4 sm:$0xff]  }
0x19a6   : > { %v15439_v13 = vpop.eup %15438  ;;  %9697 = vmatpush1.bf16.msra.mxu0 %v15061_v3 }
0x19a7   : > { %v9300_v14 = vsel %vm1898_vm10, %v15439_v13, 0.0 }
0x19a8   : > { %9301 = vadd.xlane.f32.xlu0 %v9300_v14  ;;  %v15070_v14 = vld [vmem:[#allocation11 + $0x230] ss:$8 sps:$4 sm:$0xff]  }
0x19aa   : > { %v15441_v16 = vpop.eup %15440 }
0x19ab   : > { %v9303_v1 = vsel %vm1898_vm10, %v15441_v16, 0.0 }
0x19ac   : > { %9304 = vadd.xlane.f32.xlu1 %v9303_v1  ;;  %v15073_v1 = vld [vmem:[#allocation11 + $0x220] ss:$8 sps:$4 sm:$0xff]  }
0x19ae   : > { %v15443_v6 = vpop.eup %15442 }
0x19af   : > { %v9420_v24 = vsel %vm1898_vm10, %v15443_v6, 0.0 }
0x19b0   : > { %9421 = vadd.xlane.f32.xlu0 %v9420_v24  ;;  %v15076_v24 = vld [vmem:[#allocation11 + $0x210] ss:$8 sps:$4 sm:$0xff]  }
0x19b2   : > { %v15445_v36 = vpop.eup %15444 }
0x19b3   : > { %v9423_v12 = vsel %vm1898_vm10, %v15445_v36, 0.0 }
0x19b4   : > { %9424 = vadd.xlane.f32.xlu1 %v9423_v12  ;;  %v15079_v12 = vld [vmem:[#allocation11 + $0x200] ss:$8 sps:$4 sm:$0xff]  }
0x19b6   : > { %v9059_v34 = vpop.xlane.xlu0 %9058 }
0x19b7   : > { %15446 = vrcp.f32 %v9059_v34  ;;  %v15084_v34 = vld [vmem:[#allocation11 + $0x2f4] ss:$8 sps:$4 sm:$0xff]  }
0x19ba   : > { %v9062_v26 = vpop.xlane.xlu1 %9061 }
0x19bb   : > { %15448 = vrcp.f32 %v9062_v26  ;;  %v15082_v26 = vld [vmem:[#allocation11 + $0x2f0] ss:$8 sps:$4 sm:$0xff]  }
0x19c4   : > { %v15447_v52 = vpop.eup %15446 }
0x19c5   : > { %9432 = vrot.lane.b32.xlu1 %v9240_v50, %s16039_s25  ;;  %v9064_v43 = vmul.f32 %v15447_v52, %v15431_v54  ;;  %v15090_v52 = vld [vmem:[#allocation11 + $0x2d4] ss:$8 sps:$4 sm:$0xff]  }
0x19c6   : > { %9189 = vrot.lane.b32.xlu0 %v16895_v9, %s16039_s25 }
0x19c8   : > { %v15449_v45 = vpop.eup %15448 }
0x19c9   : > { %v9066_v27 = vmul.f32 %v15449_v45, %v15433_v21  ;;  %v15088_v45 = vld [vmem:[#allocation11 + $0x2d0] ss:$8 sps:$4 sm:$0xff]  }
0x19cb   : > { %v9067_v33 = vpack.c.bf16 %v9066_v27, %v9064_v43  ;;  %v15093_v43 = vld [vmem:[#allocation11 + $0x2c4] ss:$8 sps:$4 sm:$0xff]   ;;  %v15091_v27 = vld [vmem:[#allocation11 + $0x2c0] ss:$8 sps:$4 sm:$0xff]  }
0x19cd   : > { %13802 = vmatmul.mubr.msk.bf16.vlgmr.msra.gmra.mxu1 %vm1898_vm10, %v9067_v33  ;;  %v15096_v33 = vld [vmem:[#allocation11 + $0x2b4] ss:$8 sps:$4 sm:$0xff]  }
0x19ce   : > { %13813 = vmatprep.mubr.msk.bf16.mxu1 %vm16038_vm6, %v16037_v15 }
0x1a29   : > { %v9179_v28 = vpop.xlane.xlu0 %9178 }
0x1a2a   : > { %15450 = vrcp.f32 %v9179_v28  ;;  %v15094_v28 = vld [vmem:[#allocation11 + $0x2b0] ss:$8 sps:$4 sm:$0xff]  }
0x1a2d   : > { %v9182_v5 = vpop.xlane.xlu1 %9181 }
0x1a2e   : > { %15452 = vrcp.f32 %v9182_v5  ;;  %v15099_v5 = vld [vmem:[#allocation11 + $0x2a4] ss:$8 sps:$4 sm:$0xff]  }
0x1a31   : > { %v9302_v53 = vpop.xlane.xlu0 %9301 }
0x1a32   : > { %15454 = vrcp.f32 %v9302_v53 }
0x1a35   : > { %v9305_v31 = vpop.xlane.xlu1 %9304 }
0x1a36   : > { %15456 = vrcp.f32 %v9305_v31 }
0x1a37   : > { %v15451_v35 = vpop.eup %15450 }
0x1a38   : > { %v9184_v22 = vmul.f32 %v15451_v35, %v15435_v62  ;;  %v15097_v35 = vld [vmem:[#allocation11 + $0x2a0] ss:$8 sps:$4 sm:$0xff]  }
0x1a39   : > { %v9422_v23 = vpop.xlane.xlu0 %9421 }
0x1a3a   : > { %15458 = vrcp.f32 %v9422_v23  ;;  %v15102_v23 = vld [vmem:[#allocation11 + $0x294] ss:$8 sps:$4 sm:$0xff]  }
0x1a3b   : > { %v15453_v9 = vpop.eup %15452 }
0x1a3c   : > { %v9186_v54 = vmul.f32 %v15453_v9, %v15437_v7  ;;  %v15064_v7 = vld [vmem:[#allocation11 + $0x250] ss:$8 sps:$4 sm:$0xff]  }
0x1a3d   : > { %v9425_v17 = vpop.xlane.xlu1 %9424  ;;  %v9190_v21 = vpop.permute.xlu0 %9189 }
0x1a3e   : > { %15460 = vrcp.f32 %v9425_v17  ;;  %13812 = vmatpush3.bf16.msra.mxu1 %v9190_v21  ;;  %v9187_v18 = vpack.c.bf16 %v9186_v54, %v9184_v22  ;;  %v15100_v17 = vld [vmem:[#allocation11 + $0x290] ss:$8 sps:$4 sm:$0xff]  }
0x1a3f   : > { %13823 = vmatprep.subr.bf16.mxu1 %v16037_v15  ;;  %v15455_v57 = vpop.eup %15454 }
0x1a40   : > { %v9307_v39 = vmul.f32 %v15455_v57, %v15439_v13  ;;  %v15072_v13 = vld [vmem:[#allocation11 + $0x234] ss:$8 sps:$4 sm:$0xff]   ;;  %v15103_v57 = vld [vmem:[#allocation11 + $0x280] ss:$8 sps:$4 sm:$0xff]  }
0x1a41   : > { %13814 = vmatmul.mubr.msk.bf16.vlgmr.msra.gmra.mxu1 %vm1898_vm10, %v9187_v18  ;;  %v9433_v44 = vpop.permute.xlu1 %9432 }
0x1a42   : > { %13824 = vmatpush3.bf16.msra.mxu1 %v9240_v50  ;;  %13825 = vmatprep.mubr.msk.bf16.mxu1 %vm16038_vm6, %v16037_v15  ;;  %v15085_v50 = vld [vmem:[#allocation11 + $0x2e0] ss:$8 sps:$4 sm:$0xff]  }
0x1a43   : > { %v15457_v32 = vpop.eup %15456  ;;  %13835 = vmatprep.subr.bf16.mxu1 %v16037_v15 }
0x1a44   : > { %v9309_v41 = vmul.f32 %v15457_v32, %v15441_v16  ;;  %v15075_v16 = vld [vmem:[#allocation11 + $0x224] ss:$8 sps:$4 sm:$0xff]  }
0x1a45   : > { %v15105_v32 = vld [vmem:[#allocation11 + $0x284] ss:$8 sps:$4 sm:$0xff]  }
0x1a46   : > { %v9310_v29 = vpack.c.bf16 %v9309_v41, %v9307_v39 }
0x1a47   : > { %v15459_v42 = vpop.eup %15458 }
0x1a48   : > { %v9427_v51 = vmul.f32 %v15459_v42, %v15443_v6  ;;  %v15078_v6 = vld [vmem:[#allocation11 + $0x214] ss:$8 sps:$4 sm:$0xff]  }
0x1a49   : > { %13826 = vmatmul.mubr.msk.bf16.vlgmr.msra.gmra.mxu1 %vm1898_vm10, %v9310_v29 }
0x1a4a   : > { %13836 = vmatpush3.bf16.msra.mxu1 %v9433_v44  ;;  %13837 = vmatprep.mubr.msk.bf16.mxu1 %vm16038_vm6, %v16037_v15  ;;  %v15066_v15 = vld [vmem:[#allocation11 + $0x254] ss:$8 sps:$4 sm:$0xff]  }
0x1a4b   : > { %v15461_v38 = vpop.eup %15460  ;;  %9698 = vmatprep.subr.bf16.mxu0 %v15066_v15 }
0x1a4c   : > { %v9429_v56 = vmul.f32 %v15461_v38, %v15445_v36  ;;  %9699 = vmatpush1.bf16.msra.mxu0 %v15064_v7  ;;  %v15081_v36 = vld [vmem:[#allocation11 + $0x204] ss:$8 sps:$4 sm:$0xff]  }
0x1a4d   : > { %9700 = vmatprep.subr.bf16.mxu0 %v15069_v8 }
0x1a4e   : > { %v9430_v58 = vpack.c.bf16 %v9429_v56, %v9427_v51 }
0x1a50   : > { %9701 = vmatpush1.bf16.msra.mxu0 %v15067_v2 }
0x1a51   : > { %13838 = vmatmul.mubr.msk.bf16.vlgmr.msra.gmra.mxu1 %vm1898_vm10, %v9430_v58  ;;  %9702 = vmatprep.subr.bf16.mxu0 %v15072_v13  ;;  %v9742_v13 = vld [vmem:[#allocation13 + $0x2] ss:$4 sm:$0x3] }
0x1a54   : > { %9703 = vmatpush1.bf16.msra.mxu0 %v15070_v14 }
0x1a55   : > { %9704 = vmatprep.subr.bf16.mxu0 %v15075_v16 }
0x1a58   : > { %9705 = vmatpush1.bf16.msra.mxu0 %v15073_v1  ;;  %v9747_v1 = vrot.slane %v9742_v13, %v16422_v19 }
0x1a59   : > { %9706 = vmatprep.subr.bf16.mxu0 %v15078_v6  ;;  %v9751_v6 = vrot.slane %v9742_v13, %v16425_v20  ;;  %v9847_v13 = vld [vmem:[#allocation17 + $0x8a0] sm:$0xff] }
0x1a5c   : > { %9707 = vmatpush1.bf16.msra.mxu0 %v15076_v24 }
0x1a5d   : > { %9708 = vmatprep.subr.bf16.mxu0 %v15081_v36 }
0x1a60   : > { %9709 = vmatpush1.bf16.msra.mxu0 %v15079_v12 }
0x1a61   : > { %9710 = vmatprep.subr.bf16.mxu0 %v15084_v34 }
0x1a64   : > { %9711 = vmatpush2.bf16.msra.mxu0 %v15082_v26 }
0x1a65   : > { %9712 = vmatprep.subr.bf16.mxu0 %v15087_v10 }
0x1a68   : > { %9713 = vmatpush2.bf16.msra.mxu0 %v15085_v50 }
0x1a69   : > { %9714 = vmatprep.subr.bf16.mxu0 %v15090_v52 }
0x1a6c   : > { %9715 = vmatpush2.bf16.msra.mxu0 %v15088_v45  ;;  %v9883_v45 = vld [vmem:[#allocation17 + $0x9c0] sm:$0xff] }
0x1a6d   : > { %9716 = vmatprep.subr.bf16.mxu0 %v15093_v43  ;;  %v9887_v43 = vld [vmem:[#allocation17 + $0x9e0] sm:$0xff] }
0x1a70   : > { %9717 = vmatpush2.bf16.msra.mxu0 %v15091_v27  ;;  %v9884_v27 = vld [vmem:[#allocation17 + $0x9c8] sm:$0xff] }
0x1a71   : > { %9718 = vmatprep.subr.bf16.mxu0 %v15096_v33  ;;  %v13410_v33 = vcombine.low %v9883_v45, %v9887_v43 }
0x1a74   : > { %9719 = vmatpush2.bf16.msra.mxu0 %v15094_v28  ;;  %v9888_v28 = vld [vmem:[#allocation17 + $0x9e8] sm:$0xff] }
0x1a75   : > { %9720 = vmatprep.subr.bf16.mxu0 %v15099_v5  ;;  %v9875_v5 = vld [vmem:[#allocation17 + $0x980] sm:$0xff] }
0x1a78   : > { %9721 = vmatpush2.bf16.msra.mxu0 %v15097_v35 }
0x1a79   : > { %9722 = vmatprep.subr.bf16.mxu0 %v15102_v23  ;;  %v9876_v23 = vld [vmem:[#allocation17 + $0x988] sm:$0xff] }
0x1a7c   : > { %9723 = vmatpush2.bf16.msra.mxu0 %v15100_v17  ;;  %v9871_v17 = vld [vmem:[#allocation17 + $0x960] sm:$0xff] }
0x1a7d   : > { %9724 = vmatprep.subr.bf16.mxu0 %v15105_v32 }
0x1a80   : > { %9725 = vmatpush2.bf16.msra.mxu0 %v15103_v57 }
0x1a8d   : > { %v16951_v59 = vpop.f32.mrf.mxu1 }
0x1a8f   : > { %v13803_v60 = vpop.f32.mrf.mxu1 }
0x1a91   : > { %v16953_v61 = vpop.f32.mrf.mxu1 }
0x1a93   : > { %v13804_v62 = vpop.f32.mrf.mxu1 }
0x1b01   : > { %v9229_v53 = vpop.f32.mrf.mxu1 }
0x1b03   : > { %v13815_v31 = vpop.f32.mrf.mxu1 }
0x1b04   : > { %v13413_v31 = vcombine.high %v9884_v27, %v9888_v28 }
0x1b05   : > { %v9232_v9 = vpop.f32.mrf.mxu1 }
0x1b06   : > { %v14093_v22 = vpack.i.bf16 %v9232_v9, %v9229_v53  ;;  %v13412_v53 = vcombine.low %v9884_v27, %v9888_v28  ;;  %v9880_v9 = vld [vmem:[#allocation17 + $0x9a8] sm:$0xff]  ;;  %10681 = vmatprep.subr.bf16.mxu0 %v13413_v31  ;;  %v9827_v27 = vld [vmem:[#allocation17 + $0x800] sm:$0xff] }
0x1b07   : > { %v13816_v54 = vpop.f32.mrf.mxu1  ;;  %v13404_v32 = vcombine.low %v9876_v23, %v9880_v9  ;;  %v9832_v28 = vld [vmem:[#allocation17 + $0x828] sm:$0xff] }
0x1b08   : > { %14094 = vrot.lane.b32.xlu0 %v14093_v22, %s16039_s25  ;;  %v9867_v22 = vld [vmem:[#allocation17 + $0x940] sm:$0xff]  ;;  %v13405_v54 = vcombine.high %v9876_v23, %v9880_v9  ;;  %v9948_v9 = vld [vmem:[#allocation17 + $0xbc8] sm:$0xff] }
0x1b09   : > { %v9348_v21 = vpop.f32.mrf.mxu1  ;;  %v9951_v23 = vld [vmem:[#allocation17 + $0xbe0] sm:$0xff] }
0x1b0b   : > { %v13827_v18 = vpop.f32.mrf.mxu1 }
0x1b0c   : > { %v9872_v18 = vld [vmem:[#allocation17 + $0x968] sm:$0xff] }
0x1b0d   : > { %v9351_v39 = vpop.f32.mrf.mxu1 }
0x1b0f   : > { %v13828_v41 = vpop.f32.mrf.mxu1 }
0x1b11   : > { %v9472_v29 = vpop.f32.mrf.mxu1 }
0x1b13   : > { %v13839_v42 = vpop.f32.mrf.mxu1 }
0x1b14   : > { %v9863_v42 = vld [vmem:[#allocation17 + $0x920] sm:$0xff] }
0x1b15   : > { %v9475_v44 = vpop.f32.mrf.mxu1 }
0x1b16   : > { %v14088_v38 = vpack.i.bf16 %v9475_v44, %v9472_v29  ;;  %v9859_v29 = vld [vmem:[#allocation17 + $0x900] sm:$0xff]  ;;  %v9860_v44 = vld [vmem:[#allocation17 + $0x908] sm:$0xff] }
0x1b17   : > { %v13840_v51 = vpop.f32.mrf.mxu1 }
0x1b18   : > { %14089 = vrot.lane.b32.xlu1 %v14088_v38, %s16039_s25  ;;  %v9864_v38 = vld [vmem:[#allocation17 + $0x928] sm:$0xff]  ;;  %v13394_v51 = vcombine.low %v9867_v22, %v9871_v17 }
0x1b7a   : > { %v14095_v56 = vpop.permute.xlu0 %14094 }
0x1b7b   : > { %v14097_v58 = vunpack.i.h.bf16 %v14095_v56  ;;  %v14096_v60 = vunpack.i.l.bf16 %v14095_v56 }
0x1b7d   : > { %v9496_v25 = vsel %vm1850_vm7, %v16953_v61, %v14097_v58  ;;  %v9495_v3 = vsel %vm1850_vm7, %v16951_v59, %v14096_v60  ;;  %v13387_v58 = vcombine.high %v9859_v29, %v9863_v42  ;;  %v13389_v60 = vcombine.high %v9860_v44, %v9864_v38 }
0x1b7e   : > { %v9499_v2 = vpack.c.bf16 %v9496_v25, %v9495_v3  ;;  %v9856_v25 = vld [vmem:[#allocation17 + $0x8e8] sm:$0xff]  ;;  %v13386_v3 = vcombine.low %v9859_v29, %v9863_v42 }
0x1b8a   : > { %v14090_v62 = vpop.permute.xlu1 %14089 }
0x1b8b   : > { %v14092_v0 = vunpack.i.h.bf16 %v14090_v62  ;;  %v14091_v63 = vunpack.i.l.bf16 %v14090_v62  ;;  %v9851_v62 = vld [vmem:[#allocation17 + $0x8c0] sm:$0xff] }
0x1b8d   : > { %v9497_v15 = vsel %vm1850_vm7, %v9348_v21, %v14091_v63  ;;  %v9498_v7 = vsel %vm1850_vm7, %v9351_v39, %v14092_v0  ;;  %v9868_v21 = vld [vmem:[#allocation17 + $0x948] sm:$0xff]  ;;  %v13395_v39 = vcombine.high %v9867_v22, %v9871_v17  ;;  %v9855_v0 = vld [vmem:[#allocation17 + $0x8e0] sm:$0xff] }
0x1b8e   : > { %v9500_v8 = vpack.c.bf16 %v9498_v7, %v9497_v15  ;;  %v13397_v41 = vcombine.high %v9868_v21, %v9872_v18  ;;  %v13396_v56 = vcombine.low %v9868_v21, %v9872_v18  ;;  %v9852_v63 = vld [vmem:[#allocation17 + $0x8c8] sm:$0xff]  ;;  %v13388_v15 = vcombine.low %v9860_v44, %v9864_v38 }
0x1b8f   : > { %v13379_v7 = vcombine.high %v9851_v62, %v9855_v0  ;;  %v9952_v22 = vld [vmem:[#allocation17 + $0xbe8] sm:$0xff] }
0x1b90   : > { %9726 = vmatprep.mubr.bf16.mxu0 %v9500_v8  ;;  %v13381_v8 = vcombine.high %v9852_v63, %v9856_v25  ;;  %v13477_v18 = vcombine.high %v9948_v9, %v9952_v22 }
0x1b91   : > { %9727 = vmatmul.mubr.bf16.vlgmr.msra.gmra.mxu0 %v9499_v2  ;;  %v9843_v2 = vld [vmem:[#allocation17 + $0x880] sm:$0xff] }
0x1b92   : > { %10682 = vmatpush1.bf16.msra.mxu0 %v13412_v53 }
0x1b93   : > { %10683 = vmatprep.subr.bf16.mxu0 %v13405_v54 }
0x1b96   : > { %10684 = vmatpush1.bf16.msra.mxu0 %v13404_v32  ;;  %v13476_v32 = vcombine.low %v9948_v9, %v9952_v22  ;;  %v9911_v22 = vld [vmem:[#allocation17 + $0xaa0] sm:$0xff] }
0x1b97   : > { %10685 = vmatprep.subr.bf16.mxu0 %v13397_v41 }
0x1b9a   : > { %10686 = vmatpush1.bf16.msra.mxu0 %v13396_v56 }
0x1b9b   : > { %10687 = vmatprep.subr.bf16.mxu0 %v13389_v60 }
0x1b9e   : > { %10688 = vmatpush1.bf16.msra.mxu0 %v13388_v15  ;;  %v9943_v15 = vld [vmem:[#allocation17 + $0xba0] sm:$0xff] }
0x1b9f   : > { %10689 = vmatprep.subr.bf16.mxu0 %v13381_v8 }
0x1c51   : > { %v9728_v14 = vpop.f32.mrf.mxu0 }
0x1c52   : > { %v9737_v16 = vadd.f32 %v9728_v14, %v16831_v40  ;;  %v9844_v14 = vld [vmem:[#allocation17 + $0x888] sm:$0xff] }
0x1c53   : > { %v9730_v61 = vpop.f32.mrf.mxu0 }
0x1c54   : > { %v9738_v24 = vadd.f32 %v9730_v61, %v16833_v30  ;;  %v16967_v36 = vadd.f32 %v9747_v1, %v9737_v16  ;;  %v9848_v16 = vld [vmem:[#allocation17 + $0x8a8] sm:$0xff]  ;;  %v13371_v61 = vcombine.high %v9843_v2, %v9847_v13 }
0x1c55   : > { %v9732_v59 = vpop.f32.mrf.mxu0 }
0x1c56   : > { %v16969_v12 = vadd.f32 %v9751_v6, %v9738_v24  ;;  %v9739_v34 = vadd.f32 %v9732_v59, %v16839_v11  ;;  %v13411_v11 = vcombine.high %v9883_v45, %v9887_v43  ;;  %v13373_v24 = vcombine.high %v9844_v14, %v9848_v16  ;;  %v9835_v59 = vld [vmem:[#allocation17 + $0x840] sm:$0xff] }
0x1c57   : > { %v9734_v26 = vpop.f32.mrf.mxu0 }
0x1c58   : > { %v9740_v10 = vadd.f32 %v9734_v26, %v16841_v46  ;;  %v9762_v40 = vadd.f32 %v16969_v12, %v16967_v36  ;;  %v16975_v50 = vadd.f32 %v9747_v1, %v9739_v34  ;;  %v9879_v46 = vld [vmem:[#allocation17 + $0x9a0] sm:$0xff]  ;;  %10638 = vmatprep.subr.bf16.mxu1 %v13411_v11  ;;  %v13378_v1 = vcombine.low %v9851_v62, %v9855_v0  ;;  %v9836_v26 = vld [vmem:[#allocation17 + $0x848] sm:$0xff] }
0x1c59   : > { %v13403_v35 = vcombine.high %v9875_v5, %v9879_v46  ;;  %10639 = vmatpush1.bf16.msra.mxu1 %v13410_v33  ;;  %v13402_v57 = vcombine.low %v9875_v5, %v9879_v46  ;;  %v9839_v34 = vld [vmem:[#allocation17 + $0x860] sm:$0xff]  ;;  %v9828_v11 = vld [vmem:[#allocation17 + $0x808] sm:$0xff] }
0x1c5a   : > { %v16977_v52 = vadd.f32 %v9751_v6, %v9740_v10  ;;  %9763 = vadd.xlane.f32.xlu1 %v9762_v40  ;;  %v13380_v6 = vcombine.low %v9852_v63, %v9856_v25  ;;  %v9840_v10 = vld [vmem:[#allocation17 + $0x868] sm:$0xff]  ;;  %v13370_v40 = vcombine.low %v9843_v2, %v9847_v13  ;;  %v13363_v45 = vcombine.high %v9835_v59, %v9839_v34  ;;  %v9831_v33 = vld [vmem:[#allocation17 + $0x820] sm:$0xff] }
0x1c5b   : > { %10640 = vmatprep.subr.bf16.mxu1 %v13403_v35  ;;  %v13365_v43 = vcombine.high %v9836_v26, %v9840_v10  ;;  %v13362_v5 = vcombine.low %v9835_v59, %v9839_v34  ;;  %v13364_v46 = vcombine.low %v9836_v26, %v9840_v10  ;;  %v13355_v53 = vcombine.high %v9827_v27, %v9831_v33  ;;  %v9947_v35 = vld [vmem:[#allocation17 + $0xbc0] sm:$0xff]  ;;  %v9944_v2 = vld [vmem:[#allocation17 + $0xba8] sm:$0xff] }
0x1c5c   : > { %v9765_v30 = vadd.f32 %v16977_v52, %v16975_v50  ;;  %10690 = vmatpush1.bf16.msra.mxu0 %v13380_v6  ;;  %v13357_v31 = vcombine.high %v9828_v11, %v9832_v28  ;;  %v13354_v54 = vcombine.low %v9827_v27, %v9831_v33  ;;  %v13356_v17 = vcombine.low %v9828_v11, %v9832_v28  ;;  %v9935_v6 = vld [vmem:[#allocation17 + $0xb60] sm:$0xff]  ;;  %v9936_v59 = vld [vmem:[#allocation17 + $0xb68] sm:$0xff] }
0x1c5d   : > { %10641 = vmatpush1.bf16.msra.mxu1 %v13402_v57  ;;  %10691 = vmatprep.subr.bf16.mxu0 %v13373_v24  ;;  %v13475_v21 = vcombine.high %v9947_v35, %v9951_v23  ;;  %v13474_v57 = vcombine.low %v9947_v35, %v9951_v23  ;;  %v9928_v33 = vld [vmem:[#allocation17 + $0xb28] sm:$0xff]  ;;  %v9915_v11 = vld [vmem:[#allocation17 + $0xac0] sm:$0xff] }
0x1c5e   : > { %9766 = vadd.xlane.f32.xlu0 %v9765_v30  ;;  %10642 = vmatprep.subr.bf16.mxu1 %v13395_v39  ;;  %v13372_v30 = vcombine.low %v9844_v14, %v9848_v16  ;;  %v9919_v28 = vld [vmem:[#allocation17 + $0xae0] sm:$0xff]  ;;  %v9920_v35 = vld [vmem:[#allocation17 + $0xae8] sm:$0xff] }
0x1c5f   : > { %v9907_v23 = vld [vmem:[#allocation17 + $0xa80] sm:$0xff] }
0x1c60   : > { %10692 = vmatpush1.bf16.msra.mxu0 %v13372_v30  ;;  %v9927_v30 = vld [vmem:[#allocation17 + $0xb20] sm:$0xff] }
0x1c61   : > { %10643 = vmatpush1.bf16.msra.mxu1 %v13394_v51  ;;  %10693 = vmatprep.subr.bf16.mxu0 %v13365_v43 }
0x1c62   : > { %10644 = vmatprep.subr.bf16.mxu1 %v13387_v58 }
0x1c64   : > { %10694 = vmatpush1.bf16.msra.mxu0 %v13364_v46 }
0x1c65   : > { %10645 = vmatpush1.bf16.msra.mxu1 %v13386_v3  ;;  %10695 = vmatprep.subr.bf16.mxu0 %v13357_v31  ;;  %v9939_v3 = vld [vmem:[#allocation17 + $0xb80] sm:$0xff]  ;;  %v9916_v31 = vld [vmem:[#allocation17 + $0xac8] sm:$0xff] }
0x1c66   : > { %10646 = vmatprep.subr.bf16.mxu1 %v13379_v7  ;;  %v9940_v7 = vld [vmem:[#allocation17 + $0xb88] sm:$0xff]  ;;  %v13467_v8 = vcombine.high %v9939_v3, %v9943_v15  ;;  %v13466_v13 = vcombine.low %v9939_v3, %v9943_v15  ;;  %v13445_v9 = vcombine.high %v9916_v31, %v9920_v35 }
0x1c67   : > { %v13468_v14 = vcombine.low %v9940_v7, %v9944_v2  ;;  %v13469_v16 = vcombine.high %v9940_v7, %v9944_v2  ;;  %v9892_v3 = vld [vmem:[#allocation17 + $0xa08] sm:$0xff] }
0x1c68   : > { %10696 = vmatpush1.bf16.msra.mxu0 %v13356_v17  ;;  %v9912_v17 = vld [vmem:[#allocation17 + $0xaa8] sm:$0xff] }
0x1c69   : > { %10647 = vmatpush1.bf16.msra.mxu1 %v13378_v1  ;;  %10697 = vmatprep.subr.bf16.mxu0 %v13477_v18  ;;  %v9931_v1 = vld [vmem:[#allocation17 + $0xb40] sm:$0xff]  ;;  %v13444_v18 = vcombine.low %v9916_v31, %v9920_v35  ;;  %v9896_v15 = vld [vmem:[#allocation17 + $0xa28] sm:$0xff] }
0x1c6a   : > { %10648 = vmatprep.subr.bf16.mxu1 %v13371_v61  ;;  %v9932_v61 = vld [vmem:[#allocation17 + $0xb48] sm:$0xff]  ;;  %v13459_v24 = vcombine.high %v9931_v1, %v9935_v6  ;;  %v13458_v34 = vcombine.low %v9931_v1, %v9935_v6  ;;  %v9885_v1 = vld [vmem:[#allocation17 + $0x9d0] sm:$0xff] }
0x1c6b   : > { %v13460_v26 = vcombine.low %v9932_v61, %v9936_v59  ;;  %v13461_v10 = vcombine.high %v9932_v61, %v9936_v59  ;;  %v9889_v6 = vld [vmem:[#allocation17 + $0x9f0] sm:$0xff]  ;;  %v9886_v61 = vld [vmem:[#allocation17 + $0x9d8] sm:$0xff] }
0x1c6c   : > { %10698 = vmatpush2.bf16.msra.mxu0 %v13476_v32  ;;  %v9890_v59 = vld [vmem:[#allocation17 + $0x9f8] sm:$0xff] }
0x1c6d   : > { %10649 = vmatpush1.bf16.msra.mxu1 %v13370_v40  ;;  %10699 = vmatprep.subr.bf16.mxu0 %v13469_v16  ;;  %v9923_v40 = vld [vmem:[#allocation17 + $0xb00] sm:$0xff]  ;;  %v13420_v16 = vcombine.low %v9892_v3, %v9896_v15 }
0x1c6e   : > { %10650 = vmatprep.subr.bf16.mxu1 %v13363_v45  ;;  %v9924_v45 = vld [vmem:[#allocation17 + $0xb08] sm:$0xff]  ;;  %v13450_v43 = vcombine.low %v9923_v40, %v9927_v30  ;;  %v13451_v27 = vcombine.high %v9923_v40, %v9927_v30 }
0x1c6f   : > { %v13453_v46 = vcombine.high %v9924_v45, %v9928_v33 }
0x1c70   : > { %10700 = vmatpush2.bf16.msra.mxu0 %v13468_v14 }
0x1c71   : > { %10651 = vmatpush1.bf16.msra.mxu1 %v13362_v5  ;;  %10701 = vmatprep.subr.bf16.mxu0 %v13461_v10  ;;  %v13452_v5 = vcombine.low %v9924_v45, %v9928_v33  ;;  %v13417_v10 = vcombine.high %v9886_v61, %v9890_v59 }
0x1c72   : > { %10652 = vmatprep.subr.bf16.mxu1 %v13355_v53  ;;  %v13443_v53 = vcombine.high %v9915_v11, %v9919_v28 }
0x1c74   : > { %10702 = vmatpush2.bf16.msra.mxu0 %v13460_v26  ;;  %v13416_v26 = vcombine.low %v9886_v61, %v9890_v59 }
0x1c75   : > { %10653 = vmatpush1.bf16.msra.mxu1 %v13354_v54  ;;  %v9908_v54 = vld [vmem:[#allocation17 + $0xa88] sm:$0xff]  ;;  %10703 = vmatprep.subr.bf16.mxu0 %v13453_v46 }
0x1c76   : > { %10654 = vmatprep.subr.bf16.mxu1 %v13475_v21  ;;  %v13442_v21 = vcombine.low %v9915_v11, %v9919_v28  ;;  %v13437_v32 = vcombine.high %v9908_v54, %v9912_v17  ;;  %v9759_v11 = vld [vmem:[#allocation14 + $0x2] ss:$4 sm:$0x3] }
0x1c77   : > { %v9798_v35 = vrot.slane %v9759_v11, %v16422_v19 }
0x1c78   : > { %10704 = vmatpush2.bf16.msra.mxu0 %v13452_v5  ;;  %v9761_v5 = vld [vmem:[#allocation16 + $0x2] ss:$4 sm:$0x3] }
0x1c79   : > { %10655 = vmatpush2.bf16.msra.mxu1 %v13474_v57  ;;  %v13435_v57 = vcombine.high %v9907_v23, %v9911_v22  ;;  %10705 = vmatprep.subr.bf16.mxu0 %v13445_v9  ;;  %v9817_v9 = vrot.slane %v9761_v5, %v16425_v20 }
0x1c7a   : > { %10656 = vmatprep.subr.bf16.mxu1 %v13467_v8 }
0x1c7c   : > { %10706 = vmatpush2.bf16.msra.mxu0 %v13444_v18 }
0x1c7d   : > { %10657 = vmatpush2.bf16.msra.mxu1 %v13466_v13  ;;  %10707 = vmatprep.subr.bf16.mxu0 %v13437_v32  ;;  %v13421_v13 = vcombine.high %v9892_v3, %v9896_v15  ;;  %v9870_v3 = vld [vmem:[#allocation17 + $0x958] sm:$0xff] }
0x1c7e   : > { %10658 = vmatprep.subr.bf16.mxu1 %v13459_v24  ;;  %v13415_v24 = vcombine.high %v9885_v1, %v9889_v6  ;;  %v9874_v15 = vld [vmem:[#allocation17 + $0x978] sm:$0xff] }
0x1c81   : > { %10659 = vmatpush2.bf16.msra.mxu1 %v13458_v34  ;;  %v13414_v34 = vcombine.low %v9885_v1, %v9889_v6  ;;  %v9862_v1 = vld [vmem:[#allocation17 + $0x918] sm:$0xff] }
0x1c82   : > { %10660 = vmatprep.subr.bf16.mxu1 %v13451_v27  ;;  %v9866_v6 = vld [vmem:[#allocation17 + $0x938] sm:$0xff] }
0x1c85   : > { %10661 = vmatpush2.bf16.msra.mxu1 %v13450_v43 }
0x1c86   : > { %10662 = vmatprep.subr.bf16.mxu1 %v13443_v53  ;;  %v9802_v53 = vrot.slane %v9759_v11, %v16425_v20  ;;  %v9845_v11 = vld [vmem:[#allocation17 + $0x890] sm:$0xff] }
0x1c89   : > { %10663 = vmatpush2.bf16.msra.mxu1 %v13442_v21 }
0x1c8a   : > { %10664 = vmatprep.subr.bf16.mxu1 %v13435_v57 }
0x1ce3   : > { %v9764_v39 = vpop.xlane.xlu1 %9763 }
0x1ce4   : > { %v9768_v41 = vmul.f32 0.00390625, %v9764_v39  ;;  %v9899_v39 = vld [vmem:[#allocation17 + $0xa40] sm:$0xff] }
0x1ce6   : > { %v16982_v29 = vsub.f32 %v16967_v36, %v9768_v41  ;;  %v16985_v42 = vsub.f32 %v16969_v12, %v9768_v41  ;;  %v9903_v41 = vld [vmem:[#allocation17 + $0xa60] sm:$0xff] }
0x1ce7   : > { %v9767_v44 = vpop.xlane.xlu0 %9766  ;;  %v13426_v7 = vcombine.low %v9899_v39, %v9903_v41 }
0x1ce8   : > { %v9774_v38 = vmul.f32 %v16982_v29, %v16982_v29  ;;  %v9775_v51 = vmul.f32 %v16985_v42, %v16985_v42  ;;  %v9769_v56 = vmul.f32 0.00390625, %v9767_v44  ;;  %v9900_v44 = vld [vmem:[#allocation17 + $0xa48] sm:$0xff] }
0x1cea   : > { %v16992_v58 = vsub.f32 %v16975_v50, %v9769_v56  ;;  %v16995_v60 = vsub.f32 %v16977_v52, %v9769_v56  ;;  %v9778_v62 = vadd.f32 %v9775_v51, %v9774_v38  ;;  %v9904_v38 = vld [vmem:[#allocation17 + $0xa68] sm:$0xff]  ;;  %v13434_v51 = vcombine.low %v9907_v23, %v9911_v22 }
0x1ceb   : > { %v13436_v56 = vcombine.low %v9908_v54, %v9912_v17  ;;  %v13428_v8 = vcombine.low %v9900_v44, %v9904_v38  ;;  %v9813_v22 = vrot.slane %v9761_v5, %v16422_v19  ;;  %v9846_v5 = vld [vmem:[#allocation17 + $0x898] sm:$0xff] }
0x1cec   : > { %9779 = vadd.xlane.f32.xlu0 %v9778_v62  ;;  %v9776_v0 = vmul.f32 %v16992_v58, %v16992_v58  ;;  %v9777_v63 = vmul.f32 %v16995_v60, %v16995_v60  ;;  %v13427_v62 = vcombine.high %v9899_v39, %v9903_v41  ;;  %10665 = vmatpush2.bf16.msra.mxu1 %v13434_v51  ;;  %v9878_v51 = vld [vmem:[#allocation17 + $0x998] sm:$0xff] }
0x1ced   : > { %10708 = vmatpush2.bf16.msra.mxu0 %v13436_v56  ;;  %v9882_v56 = vld [vmem:[#allocation17 + $0x9b8] sm:$0xff] }
0x1cee   : > { %v9781_v25 = vadd.f32 %v9777_v63, %v9776_v0  ;;  %v13429_v0 = vcombine.high %v9900_v44, %v9904_v38  ;;  %v9891_v63 = vld [vmem:[#allocation17 + $0xa00] sm:$0xff]  ;;  %10666 = vmatprep.subr.bf16.mxu1 %v13427_v62  ;;  %v9881_v38 = vld [vmem:[#allocation17 + $0x9b0] sm:$0xff] }
0x1cf0   : > { %9782 = vadd.xlane.f32.xlu1 %v9781_v25  ;;  %v9895_v25 = vld [vmem:[#allocation17 + $0xa20] sm:$0xff]  ;;  %10709 = vmatprep.subr.bf16.mxu0 %v13429_v0 }
0x1cf1   : > { %v13419_v2 = vcombine.high %v9891_v63, %v9895_v25  ;;  %10667 = vmatpush2.bf16.msra.mxu1 %v13426_v7  ;;  %v13418_v14 = vcombine.low %v9891_v63, %v9895_v25  ;;  %10710 = vmatpush2.bf16.msra.mxu0 %v13428_v8  ;;  %v9869_v63 = vld [vmem:[#allocation17 + $0x950] sm:$0xff]  ;;  %v13409_v25 = vcombine.high %v9878_v51, %v9882_v56 }
0x1cf2   : > { %10711 = vmatprep.subr.bf16.mxu0 %v13421_v13  ;;  %v13408_v8 = vcombine.low %v9878_v51, %v9882_v56  ;;  %v13401_v13 = vcombine.high %v9870_v3, %v9874_v15 }
0x1cf3   : > { %10668 = vmatprep.subr.bf16.mxu1 %v13419_v2 }
0x1cf5   : > { %10669 = vmatpush2.bf16.msra.mxu1 %v13418_v14  ;;  %10712 = vmatpush2.bf16.msra.mxu0 %v13420_v16  ;;  %v9861_v14 = vld [vmem:[#allocation17 + $0x910] sm:$0xff] }
0x1cf6   : > { %10724 = vmatprep.subr.bf16.mxu1 %v13415_v24  ;;  %10767 = vmatprep.subr.bf16.mxu0 %v13417_v10  ;;  %v9865_v16 = vld [vmem:[#allocation17 + $0x930] sm:$0xff]  ;;  %v13400_v24 = vcombine.low %v9870_v3, %v9874_v15 }
0x1cf7   : > { %v13391_v59 = vcombine.high %v9861_v14, %v9865_v16  ;;  %v9857_v10 = vld [vmem:[#allocation17 + $0x8f0] sm:$0xff] }
0x1d75   : > { %v9780_v40 = vpop.xlane.xlu0 %9779 }
0x1d76   : > { %v9784_v30 = vmul.f32 0.00390625, %v9780_v40  ;;  %v9854_v40 = vld [vmem:[#allocation17 + $0x8d8] sm:$0xff] }
0x1d78   : > { %v9786_v45 = vadd.f32 1e-05, %v9784_v30  ;;  %v9858_v30 = vld [vmem:[#allocation17 + $0x8f8] sm:$0xff] }
0x1d79   : > { %v9783_v43 = vpop.xlane.xlu1 %9782 }
0x1d7a   : > { %15462 = vrsqrt.f32 %v9786_v45  ;;  %v9785_v27 = vmul.f32 0.00390625, %v9783_v43  ;;  %v13390_v45 = vcombine.low %v9861_v14, %v9865_v16  ;;  %v13392_v43 = vcombine.low %v9862_v1, %v9866_v6  ;;  %v9946_v14 = vld [vmem:[#allocation17 + $0xbb8] sm:$0xff] }
0x1d7c   : > { %v9787_v33 = vadd.f32 1e-05, %v9785_v27 }
0x1d7e   : > { %15464 = vrsqrt.f32 %v9787_v33  ;;  %v13385_v33 = vcombine.high %v9854_v40, %v9858_v30 }
0x1d87   : > { %v15463_v28 = vpop.eup %15462 }
0x1d88   : > { %v9791_v46 = vmul.f32 %v15463_v28, %v16985_v42  ;;  %v9790_v31 = vmul.f32 %v15463_v28, %v16982_v29  ;;  %v9877_v29 = vld [vmem:[#allocation17 + $0x990] sm:$0xff] }
0x1d89   : > { %v13406_v7 = vcombine.low %v9877_v29, %v9881_v38  ;;  %v9849_v28 = vld [vmem:[#allocation17 + $0x8b0] sm:$0xff] }
0x1d8a   : > { %v9806_v17 = vmul.f32 %v9802_v53, %v9791_v46  ;;  %v9805_v18 = vmul.f32 %v9798_v35, %v9790_v31  ;;  %v9850_v46 = vld [vmem:[#allocation17 + $0x8b8] sm:$0xff]  ;;  %v13384_v31 = vcombine.low %v9854_v40, %v9858_v30 }
0x1d8b   : > { %v15465_v23 = vpop.eup %15464 }
0x1d8c   : > { %v9793_v54 = vmul.f32 %v15465_v23, %v16995_v60  ;;  %v9792_v21 = vmul.f32 %v15465_v23, %v16992_v58  ;;  %v9821_v42 = vadd.f32 %v9817_v9, %v9806_v17  ;;  %v9820_v41 = vadd.f32 %v9813_v22, %v9805_v18  ;;  %v9873_v58 = vld [vmem:[#allocation17 + $0x970] sm:$0xff]  ;;  %v9842_v17 = vld [vmem:[#allocation17 + $0x878] sm:$0xff] }
0x1d8d   : > { %v13407_v60 = vcombine.high %v9877_v29, %v9881_v38  ;;  %v13399_v2 = vcombine.high %v9869_v63, %v9873_v58  ;;  %v13398_v61 = vcombine.low %v9869_v63, %v9873_v58  ;;  %v13377_v23 = vcombine.high %v9846_v5, %v9850_v46  ;;  %v9953_v63 = vld [vmem:[#allocation17 + $0xbf0] sm:$0xff] }
0x1d8e   : > { %v9808_v57 = vmul.f32 %v9802_v53, %v9793_v54  ;;  %v9807_v32 = vmul.f32 %v9798_v35, %v9792_v21  ;;  %v13375_v35 = vcombine.high %v9845_v11, %v9849_v28  ;;  %v9838_v54 = vld [vmem:[#allocation17 + $0x858] sm:$0xff]  ;;  %v13374_v21 = vcombine.low %v9845_v11, %v9849_v28 }
0x1d8f   : > { %v13376_v18 = vcombine.low %v9846_v5, %v9850_v46  ;;  %v13368_v38 = vcombine.low %v9838_v54, %v9842_v17  ;;  %v9930_v11 = vld [vmem:[#allocation17 + $0xb38] sm:$0xff] }
0x1d90   : > { %v9823_v39 = vadd.f32 %v9817_v9, %v9808_v57  ;;  %v9822_v44 = vadd.f32 %v9813_v22, %v9807_v32  ;;  %v9837_v9 = vld [vmem:[#allocation17 + $0x850] sm:$0xff]  ;;  %v13369_v32 = vcombine.high %v9838_v54, %v9842_v17 }
0x1d91   : > { %v9841_v22 = vld [vmem:[#allocation17 + $0x870] sm:$0xff] }
0x1d92   : > { %v9825_v62 = vpack.c.bf16 %v9823_v39, %v9821_v42  ;;  %v17009_v0 = vpack.c.bf16 %v9822_v44, %v9820_v41  ;;  %v13367_v57 = vcombine.high %v9837_v9, %v9841_v22  ;;  %v9829_v42 = vld [vmem:[#allocation17 + $0x810] sm:$0xff]  ;;  %v9830_v41 = vld [vmem:[#allocation17 + $0x818] sm:$0xff]  ;;  %v13366_v29 = vcombine.low %v9837_v9, %v9841_v22 }
0x1d93   : > { %v9833_v39 = vld [vmem:[#allocation17 + $0x830] sm:$0xff]  ;;  %v9834_v44 = vld [vmem:[#allocation17 + $0x838] sm:$0xff] }
0x1d94   : > { %10670 = vmatprep.mubr.bf16.mxu1 %v9825_v62  ;;  %10713 = vmatprep.mubr.bf16.mxu0 %v9825_v62  ;;  %v13359_v51 = vcombine.high %v9829_v42, %v9833_v39  ;;  %v13361_v56 = vcombine.high %v9830_v41, %v9834_v44  ;;  %v13358_v58 = vcombine.low %v9829_v42, %v9833_v39  ;;  %v9922_v9 = vld [vmem:[#allocation17 + $0xaf8] sm:$0xff] }
0x1d95   : > { %10671 = vmatmul.mubr.bf16.vlgmr.msra.gmra.mxu1 %v17009_v0  ;;  %10714 = vmatmul.mubr.bf16.vlgmr.msra.gmra.mxu0 %v17009_v0  ;;  %v13360_v3 = vcombine.low %v9830_v41, %v9834_v44  ;;  %v9914_v42 = vld [vmem:[#allocation17 + $0xab8] sm:$0xff] }
0x1d96   : > { %10725 = vmatpush1.bf16.msra.mxu1 %v13414_v34  ;;  %10768 = vmatpush1.bf16.msra.mxu0 %v13416_v26  ;;  %v13393_v34 = vcombine.high %v9862_v1, %v9866_v6  ;;  %v9853_v26 = vld [vmem:[#allocation17 + $0x8d0] sm:$0xff] }
0x1d97   : > { %10756 = vmatprep.mubr.bf16.mxu1 %v9825_v62  ;;  %10799 = vmatprep.mubr.bf16.mxu0 %v9825_v62  ;;  %v13383_v27 = vcombine.high %v9853_v26, %v9857_v10  ;;  %v13382_v53 = vcombine.low %v9853_v26, %v9857_v10  ;;  %v9949_v62 = vld [vmem:[#allocation17 + $0xbd0] sm:$0xff]  ;;  %v9938_v26 = vld [vmem:[#allocation17 + $0xb78] sm:$0xff] }
0x1d98   : > { %10726 = vmatprep.subr.bf16.mxu1 %v13407_v60  ;;  %10769 = vmatprep.subr.bf16.mxu0 %v13409_v25  ;;  %v9950_v60 = vld [vmem:[#allocation17 + $0xbd8] sm:$0xff]  ;;  %v13479_v15 = vcombine.high %v9949_v62, %v9953_v63  ;;  %v13478_v16 = vcombine.low %v9949_v62, %v9953_v63 }
0x1d99   : > { %v9954_v25 = vld [vmem:[#allocation17 + $0xbf8] sm:$0xff] }
0x1d9a   : > { %10727 = vmatpush1.bf16.msra.mxu1 %v13406_v7  ;;  %10770 = vmatpush1.bf16.msra.mxu0 %v13408_v8  ;;  %v13481_v7 = vcombine.high %v9950_v60, %v9954_v25  ;;  %v9941_v8 = vld [vmem:[#allocation17 + $0xb90] sm:$0xff]  ;;  %v13480_v1 = vcombine.low %v9950_v60, %v9954_v25  ;;  %v9906_v62 = vld [vmem:[#allocation17 + $0xa78] sm:$0xff] }
0x1d9b   : > { %10728 = vmatprep.subr.bf16.mxu1 %v13399_v2  ;;  %10771 = vmatprep.subr.bf16.mxu0 %v13401_v13  ;;  %v9945_v2 = vld [vmem:[#allocation17 + $0xbb0] sm:$0xff]  ;;  %v9942_v13 = vld [vmem:[#allocation17 + $0xb98] sm:$0xff] }
0x1d9c   : > { %v13471_v6 = vcombine.high %v9941_v8, %v9945_v2  ;;  %v13470_v10 = vcombine.low %v9941_v8, %v9945_v2  ;;  %v13472_v40 = vcombine.low %v9942_v13, %v9946_v14  ;;  %v9898_v8 = vld [vmem:[#allocation17 + $0xa38] sm:$0xff] }
0x1d9e   : > { %10729 = vmatpush1.bf16.msra.mxu1 %v13398_v61  ;;  %10772 = vmatpush1.bf16.msra.mxu0 %v13400_v24  ;;  %v13473_v61 = vcombine.high %v9942_v13, %v9946_v14  ;;  %v9933_v24 = vld [vmem:[#allocation17 + $0xb50] sm:$0xff] }
0x1d9f   : > { %10730 = vmatprep.subr.bf16.mxu1 %v13391_v59  ;;  %10773 = vmatprep.subr.bf16.mxu0 %v13393_v34  ;;  %v9937_v59 = vld [vmem:[#allocation17 + $0xb70] sm:$0xff]  ;;  %v9934_v34 = vld [vmem:[#allocation17 + $0xb58] sm:$0xff] }
0x1da0   : > { %v13463_v30 = vcombine.high %v9933_v24, %v9937_v59  ;;  %v13462_v28 = vcombine.low %v9933_v24, %v9937_v59  ;;  %v13464_v5 = vcombine.low %v9934_v34, %v9938_v26  ;;  %v15111_v24 = vld [vmem:[#allocation20 + $0x974] ss:$8 sps:$4 sm:$0xff]   ;;  %v15106_v59 = vld [vmem:[#allocation20 + $0x870] ss:$8 sps:$4 sm:$0xff]  }
0x1da2   : > { %10731 = vmatpush1.bf16.msra.mxu1 %v13390_v45  ;;  %10774 = vmatpush1.bf16.msra.mxu0 %v13392_v43  ;;  %v13465_v45 = vcombine.high %v9934_v34, %v9938_v26  ;;  %v9925_v43 = vld [vmem:[#allocation17 + $0xb10] sm:$0xff]  ;;  %v15114_v26 = vld [vmem:[#allocation20 + $0x864] ss:$8 sps:$4 sm:$0xff]  }
0x1da3   : > { %10732 = vmatprep.subr.bf16.mxu1 %v13383_v27  ;;  %10775 = vmatprep.subr.bf16.mxu0 %v13385_v33  ;;  %v9929_v27 = vld [vmem:[#allocation17 + $0xb30] sm:$0xff]  ;;  %v9926_v33 = vld [vmem:[#allocation17 + $0xb18] sm:$0xff] }
0x1da4   : > { %v13455_v46 = vcombine.high %v9925_v43, %v9929_v27  ;;  %v13454_v22 = vcombine.low %v9925_v43, %v9929_v27  ;;  %v13456_v54 = vcombine.low %v9926_v33, %v9930_v11  ;;  %v15109_v34 = vld [vmem:[#allocation20 + $0x970] ss:$8 sps:$4 sm:$0xff]   ;;  %v15123_v43 = vld [vmem:[#allocation20 + $0x954] ss:$8 sps:$4 sm:$0xff]  }
0x1da5   : > { %v15118_v27 = vld [vmem:[#allocation20 + $0x850] ss:$8 sps:$4 sm:$0xff]  }
0x1da6   : > { %10733 = vmatpush1.bf16.msra.mxu1 %v13382_v53  ;;  %10776 = vmatpush1.bf16.msra.mxu0 %v13384_v31  ;;  %v13457_v53 = vcombine.high %v9926_v33, %v9930_v11  ;;  %v9917_v31 = vld [vmem:[#allocation17 + $0xad0] sm:$0xff]  ;;  %v15126_v11 = vld [vmem:[#allocation20 + $0x844] ss:$8 sps:$4 sm:$0xff]  }
0x1da7   : > { %10734 = vmatprep.subr.bf16.mxu1 %v13375_v35  ;;  %10777 = vmatprep.subr.bf16.mxu0 %v13377_v23  ;;  %v9921_v35 = vld [vmem:[#allocation17 + $0xaf0] sm:$0xff]  ;;  %v9918_v23 = vld [vmem:[#allocation17 + $0xad8] sm:$0xff] }
0x1da8   : > { %v13447_v17 = vcombine.high %v9917_v31, %v9921_v35  ;;  %v13446_v39 = vcombine.low %v9917_v31, %v9921_v35  ;;  %v13448_v41 = vcombine.low %v9918_v23, %v9922_v9  ;;  %v15121_v33 = vld [vmem:[#allocation20 + $0x950] ss:$8 sps:$4 sm:$0xff]  }
0x1da9   : > { %v15130_v31 = vld [vmem:[#allocation20 + $0x830] ss:$8 sps:$4 sm:$0xff]  }
0x1daa   : > { %10735 = vmatpush1.bf16.msra.mxu1 %v13374_v21  ;;  %10778 = vmatpush1.bf16.msra.mxu0 %v13376_v18  ;;  %v13449_v21 = vcombine.high %v9918_v23, %v9922_v9  ;;  %v9909_v18 = vld [vmem:[#allocation17 + $0xa90] sm:$0xff]  ;;  %v15138_v23 = vld [vmem:[#allocation20 + $0x824] ss:$8 sps:$4 sm:$0xff]  }
0x1dab   : > { %10736 = vmatprep.subr.bf16.mxu1 %v13367_v57  ;;  %10779 = vmatprep.subr.bf16.mxu0 %v13369_v32  ;;  %v9913_v57 = vld [vmem:[#allocation17 + $0xab0] sm:$0xff]  ;;  %v9910_v32 = vld [vmem:[#allocation17 + $0xa98] sm:$0xff]  ;;  %v15141_v9 = vld [vmem:[#allocation20 + $0x924] ss:$8 sps:$4 sm:$0xff]  }
0x1dac   : > { %v13439_v44 = vcombine.high %v9909_v18, %v9913_v57  ;;  %v13438_v63 = vcombine.low %v9909_v18, %v9913_v57  ;;  %v13440_v60 = vcombine.low %v9910_v32, %v9914_v42  ;;  %v15133_v35 = vld [vmem:[#allocation20 + $0x930] ss:$8 sps:$4 sm:$0xff]  }
0x1dad   : > { %v15142_v18 = vld [vmem:[#allocation20 + $0x810] ss:$8 sps:$4 sm:$0xff]  }
0x1dae   : > { %10737 = vmatpush1.bf16.msra.mxu1 %v13366_v29  ;;  %10780 = vmatpush1.bf16.msra.mxu0 %v13368_v38  ;;  %v13441_v29 = vcombine.high %v9910_v32, %v9914_v42  ;;  %v9901_v38 = vld [vmem:[#allocation17 + $0xa50] sm:$0xff]  ;;  %v15150_v32 = vld [vmem:[#allocation20 + $0x804] ss:$8 sps:$4 sm:$0xff]  }
0x1daf   : > { %10738 = vmatprep.subr.bf16.mxu1 %v13359_v51  ;;  %10781 = vmatprep.subr.bf16.mxu0 %v13361_v56  ;;  %v9905_v51 = vld [vmem:[#allocation17 + $0xa70] sm:$0xff]  ;;  %v9902_v56 = vld [vmem:[#allocation17 + $0xa58] sm:$0xff]  ;;  %v15153_v42 = vld [vmem:[#allocation20 + $0x904] ss:$8 sps:$4 sm:$0xff]  }
0x1db0   : > { %v13431_v25 = vcombine.high %v9901_v38, %v9905_v51  ;;  %v13430_v2 = vcombine.low %v9901_v38, %v9905_v51  ;;  %v13432_v13 = vcombine.low %v9902_v56, %v9906_v62  ;;  %v15145_v57 = vld [vmem:[#allocation20 + $0x910] ss:$8 sps:$4 sm:$0xff]  }
0x1db1   : > { %v15154_v38 = vld [vmem:[#allocation20 + $0x8f0] ss:$8 sps:$4 sm:$0xff]  }
0x1db2   : > { %10739 = vmatpush1.bf16.msra.mxu1 %v13358_v58  ;;  %10782 = vmatpush1.bf16.msra.mxu0 %v13360_v3  ;;  %v13433_v58 = vcombine.high %v9902_v56, %v9906_v62  ;;  %v9893_v3 = vld [vmem:[#allocation17 + $0xa10] sm:$0xff]  ;;  %v15162_v56 = vld [vmem:[#allocation20 + $0x8e4] ss:$8 sps:$4 sm:$0xff]  }
0x1db3   : > { %10740 = vmatprep.subr.bf16.mxu1 %v13479_v15  ;;  %10783 = vmatprep.subr.bf16.mxu0 %v13481_v7  ;;  %v9897_v15 = vld [vmem:[#allocation17 + $0xa30] sm:$0xff]  ;;  %v9894_v7 = vld [vmem:[#allocation17 + $0xa18] sm:$0xff]  ;;  %v15165_v62 = vld [vmem:[#allocation20 + $0x9e4] ss:$8 sps:$4 sm:$0xff]  }
0x1db4   : > { %v13423_v14 = vcombine.high %v9893_v3, %v9897_v15  ;;  %v15157_v51 = vld [vmem:[#allocation20 + $0x9f0] ss:$8 sps:$4 sm:$0xff]  }
0x1db6   : > { %10741 = vmatpush2.bf16.msra.mxu1 %v13478_v16  ;;  %10784 = vmatpush2.bf16.msra.mxu0 %v13480_v1  ;;  %v13425_v16 = vcombine.high %v9894_v7, %v9898_v8  ;;  %v13422_v1 = vcombine.low %v9893_v3, %v9897_v15  ;;  %v15166_v3 = vld [vmem:[#allocation20 + $0x8d0] ss:$8 sps:$4 sm:$0xff]  }
0x1db7   : > { %10742 = vmatprep.subr.bf16.mxu1 %v13471_v6  ;;  %10785 = vmatprep.subr.bf16.mxu0 %v13473_v61  ;;  %v13424_v6 = vcombine.low %v9894_v7, %v9898_v8  ;;  %v15108_v61 = vld [vmem:[#allocation20 + $0x874] ss:$8 sps:$4 sm:$0xff]   ;;  %v15169_v15 = vld [vmem:[#allocation20 + $0x9d0] ss:$8 sps:$4 sm:$0xff]   ;;  %v15174_v7 = vld [vmem:[#allocation20 + $0x8c4] ss:$8 sps:$4 sm:$0xff]  }
0x1db8   : > { %v15177_v8 = vld [vmem:[#allocation20 + $0x9c4] ss:$8 sps:$4 sm:$0xff]  }
0x1dba   : > { %10743 = vmatpush2.bf16.msra.mxu1 %v13470_v10  ;;  %10786 = vmatpush2.bf16.msra.mxu0 %v13472_v40  ;;  %v15117_v10 = vld [vmem:[#allocation20 + $0x964] ss:$8 sps:$4 sm:$0xff]   ;;  %v15112_v40 = vld [vmem:[#allocation20 + $0x860] ss:$8 sps:$4 sm:$0xff]  }
0x1dbb   : > { %10744 = vmatprep.subr.bf16.mxu1 %v13463_v30  ;;  %10787 = vmatprep.subr.bf16.mxu0 %v13465_v45  ;;  %v15115_v30 = vld [vmem:[#allocation20 + $0x960] ss:$8 sps:$4 sm:$0xff]   ;;  %v15120_v45 = vld [vmem:[#allocation20 + $0x854] ss:$8 sps:$4 sm:$0xff]  }
0x1dbe   : > { %10745 = vmatpush2.bf16.msra.mxu1 %v13462_v28  ;;  %10788 = vmatpush2.bf16.msra.mxu0 %v13464_v5  ;;  %v15129_v28 = vld [vmem:[#allocation20 + $0x944] ss:$8 sps:$4 sm:$0xff]   ;;  %v15124_v5 = vld [vmem:[#allocation20 + $0x840] ss:$8 sps:$4 sm:$0xff]  }
0x1dbf   : > { %10746 = vmatprep.subr.bf16.mxu1 %v13455_v46  ;;  %10789 = vmatprep.subr.bf16.mxu0 %v13457_v53  ;;  %v15132_v46 = vld [vmem:[#allocation20 + $0x834] ss:$8 sps:$4 sm:$0xff]  }
0x1dc0   : > { %v15135_v53 = vld [vmem:[#allocation20 + $0x934] ss:$8 sps:$4 sm:$0xff]  }
0x1dc2   : > { %10747 = vmatpush2.bf16.msra.mxu1 %v13454_v22  ;;  %10790 = vmatpush2.bf16.msra.mxu0 %v13456_v54  ;;  %v15136_v22 = vld [vmem:[#allocation20 + $0x820] ss:$8 sps:$4 sm:$0xff]  }
0x1dc3   : > { %10748 = vmatprep.subr.bf16.mxu1 %v13447_v17  ;;  %10791 = vmatprep.subr.bf16.mxu0 %v13449_v21  ;;  %v15139_v54 = vld [vmem:[#allocation20 + $0x920] ss:$8 sps:$4 sm:$0xff]   ;;  %v15144_v17 = vld [vmem:[#allocation20 + $0x814] ss:$8 sps:$4 sm:$0xff]  }
0x1dc4   : > { %v15147_v21 = vld [vmem:[#allocation20 + $0x914] ss:$8 sps:$4 sm:$0xff]  }
0x1dc6   : > { %10749 = vmatpush2.bf16.msra.mxu1 %v13446_v39  ;;  %10792 = vmatpush2.bf16.msra.mxu0 %v13448_v41  ;;  %v15148_v39 = vld [vmem:[#allocation20 + $0x800] ss:$8 sps:$4 sm:$0xff]  }
0x1dc7   : > { %10750 = vmatprep.subr.bf16.mxu1 %v13439_v44  ;;  %10793 = vmatprep.subr.bf16.mxu0 %v13441_v29  ;;  %v15151_v41 = vld [vmem:[#allocation20 + $0x900] ss:$8 sps:$4 sm:$0xff]   ;;  %v15156_v44 = vld [vmem:[#allocation20 + $0x8f4] ss:$8 sps:$4 sm:$0xff]  }
0x1dc8   : > { %v15159_v29 = vld [vmem:[#allocation20 + $0x9f4] ss:$8 sps:$4 sm:$0xff]  }
0x1dca   : > { %10751 = vmatpush2.bf16.msra.mxu1 %v13438_v63  ;;  %10794 = vmatpush2.bf16.msra.mxu0 %v13440_v60  ;;  %v15160_v63 = vld [vmem:[#allocation20 + $0x8e0] ss:$8 sps:$4 sm:$0xff]  }
0x1dcb   : > { %10752 = vmatprep.subr.bf16.mxu1 %v13431_v25  ;;  %10795 = vmatprep.subr.bf16.mxu0 %v13433_v58  ;;  %v15163_v60 = vld [vmem:[#allocation20 + $0x9e0] ss:$8 sps:$4 sm:$0xff]   ;;  %v15168_v25 = vld [vmem:[#allocation20 + $0x8d4] ss:$8 sps:$4 sm:$0xff]  }
0x1dcc   : > { %v15171_v58 = vld [vmem:[#allocation20 + $0x9d4] ss:$8 sps:$4 sm:$0xff]  }
0x1dce   : > { %10753 = vmatpush2.bf16.msra.mxu1 %v13430_v2  ;;  %10796 = vmatpush2.bf16.msra.mxu0 %v13432_v13  ;;  %v15172_v2 = vld [vmem:[#allocation20 + $0x8c0] ss:$8 sps:$4 sm:$0xff]  }
0x1dcf   : > { %10754 = vmatprep.subr.bf16.mxu1 %v13423_v14  ;;  %10797 = vmatprep.subr.bf16.mxu0 %v13425_v16  ;;  %v15175_v13 = vld [vmem:[#allocation20 + $0x9c0] ss:$8 sps:$4 sm:$0xff]   ;;  %v15180_v14 = vld [vmem:[#allocation20 + $0x8b4] ss:$8 sps:$4 sm:$0xff]  }
0x1dd0   : > { %v15183_v16 = vld [vmem:[#allocation20 + $0x9b4] ss:$8 sps:$4 sm:$0xff]  }
0x1dd2   : > { %10755 = vmatpush2.bf16.msra.mxu1 %v13422_v1  ;;  %10798 = vmatpush2.bf16.msra.mxu0 %v13424_v6  ;;  %v15178_v1 = vld [vmem:[#allocation20 + $0x8b0] ss:$8 sps:$4 sm:$0xff]  }
0x1dd3   : > { %11603 = vmatprep.subr.bf16.mxu1 %v15108_v61  ;;  %11646 = vmatprep.subr.bf16.mxu0 %v15111_v24  ;;  %v15181_v6 = vld [vmem:[#allocation20 + $0x9b0] ss:$8 sps:$4 sm:$0xff]   ;;  %v15186_v61 = vld [vmem:[#allocation20 + $0x8a4] ss:$8 sps:$4 sm:$0xff]  }
0x1dd4   : > { %v15189_v24 = vld [vmem:[#allocation20 + $0x9a4] ss:$8 sps:$4 sm:$0xff]  }
0x1dd5   : > { %10757 = vmatmul.mubr.bf16.vlgmr.msra.gmra.mxu1 %v17009_v0  ;;  %10800 = vmatmul.mubr.bf16.vlgmr.msra.gmra.mxu0 %v17009_v0  ;;  %v15127_v0 = vld [vmem:[#allocation20 + $0x940] ss:$8 sps:$4 sm:$0xff]  }
0x1dd6   : > { %11604 = vmatpush1.bf16.msra.mxu1 %v15106_v59  ;;  %11647 = vmatpush1.bf16.msra.mxu0 %v15109_v34  ;;  %v15184_v59 = vld [vmem:[#allocation20 + $0x8a0] ss:$8 sps:$4 sm:$0xff]  }
0x1dd7   : > { %11605 = vmatprep.subr.bf16.mxu1 %v15114_v26  ;;  %11648 = vmatprep.subr.bf16.mxu0 %v15117_v10  ;;  %v15187_v34 = vld [vmem:[#allocation20 + $0x9a0] ss:$8 sps:$4 sm:$0xff]   ;;  %v15192_v26 = vld [vmem:[#allocation20 + $0x894] ss:$8 sps:$4 sm:$0xff]  }
0x1dd8   : > { %v15195_v10 = vld [vmem:[#allocation20 + $0x994] ss:$8 sps:$4 sm:$0xff]  }
0x1dda   : > { %11606 = vmatpush1.bf16.msra.mxu1 %v15112_v40  ;;  %11649 = vmatpush1.bf16.msra.mxu0 %v15115_v30  ;;  %v15190_v40 = vld [vmem:[#allocation20 + $0x890] ss:$8 sps:$4 sm:$0xff]  }
0x1ddb   : > { %11607 = vmatprep.subr.bf16.mxu1 %v15120_v45  ;;  %11650 = vmatprep.subr.bf16.mxu0 %v15123_v43  ;;  %v15193_v30 = vld [vmem:[#allocation20 + $0x990] ss:$8 sps:$4 sm:$0xff]   ;;  %v15198_v45 = vld [vmem:[#allocation20 + $0x884] ss:$8 sps:$4 sm:$0xff]  }
0x1ddc   : > { %v15201_v43 = vld [vmem:[#allocation20 + $0x984] ss:$8 sps:$4 sm:$0xff]  }
0x1dde   : > { %11608 = vmatpush1.bf16.msra.mxu1 %v15118_v27  ;;  %11651 = vmatpush1.bf16.msra.mxu0 %v15121_v33  ;;  %v15196_v27 = vld [vmem:[#allocation20 + $0x880] ss:$8 sps:$4 sm:$0xff]  }
0x1ddf   : > { %11609 = vmatprep.subr.bf16.mxu1 %v15126_v11  ;;  %11652 = vmatprep.subr.bf16.mxu0 %v15129_v28  ;;  %v15199_v33 = vld [vmem:[#allocation20 + $0x980] ss:$8 sps:$4 sm:$0xff]   ;;  %v15204_v11 = vld [vmem:[#allocation20 + $0xa74] ss:$8 sps:$4 sm:$0xff]  }
0x1de0   : > { %v15207_v28 = vld [vmem:[#allocation20 + $0xb74] ss:$8 sps:$4 sm:$0xff]  }
0x1de2   : > { %11610 = vmatpush1.bf16.msra.mxu1 %v15124_v5  ;;  %11653 = vmatpush1.bf16.msra.mxu0 %v15127_v0  ;;  %v17015_v5 = vld [vmem:[#allocation19 + $0x2] ss:$4 sm:$0xff] }
0x1de3   : > { %11611 = vmatprep.subr.bf16.mxu1 %v15132_v46  ;;  %11654 = vmatprep.subr.bf16.mxu0 %v15135_v53  ;;  %v9965_v53 = vrot.slane %v17015_v5, %v16425_v20 }
0x1de6   : > { %11612 = vmatpush1.bf16.msra.mxu1 %v15130_v31  ;;  %11655 = vmatpush1.bf16.msra.mxu0 %v15133_v35  ;;  %v9973_v31 = vrot.slane %v17015_v5, %v16586_v55  ;;  %v9961_v35 = vrot.slane %v17015_v5, %v16422_v19 }
0x1de7   : > { %11613 = vmatprep.subr.bf16.mxu1 %v15138_v23  ;;  %11656 = vmatprep.subr.bf16.mxu0 %v15141_v9  ;;  %v9969_v23 = vrot.slane %v17015_v5, %v16589_v4 }
0x1dea   : > { %11614 = vmatpush1.bf16.msra.mxu1 %v15136_v22  ;;  %11657 = vmatpush1.bf16.msra.mxu0 %v15139_v54 }
0x1deb   : > { %11615 = vmatprep.subr.bf16.mxu1 %v15144_v17  ;;  %11658 = vmatprep.subr.bf16.mxu0 %v15147_v21 }
0x1dee   : > { %11616 = vmatpush1.bf16.msra.mxu1 %v15142_v18  ;;  %11659 = vmatpush1.bf16.msra.mxu0 %v15145_v57 }
0x1def   : > { %11617 = vmatprep.subr.bf16.mxu1 %v15150_v32  ;;  %11660 = vmatprep.subr.bf16.mxu0 %v15153_v42 }
0x1df2   : > { %11618 = vmatpush1.bf16.msra.mxu1 %v15148_v39  ;;  %11661 = vmatpush1.bf16.msra.mxu0 %v15151_v41 }
0x1df3   : > { %11619 = vmatprep.subr.bf16.mxu1 %v15156_v44  ;;  %11662 = vmatprep.subr.bf16.mxu0 %v15159_v29 }
0x1df6   : > { %11620 = vmatpush2.bf16.msra.mxu1 %v15154_v38  ;;  %11663 = vmatpush2.bf16.msra.mxu0 %v15157_v51 }
0x1df7   : > { %11621 = vmatprep.subr.bf16.mxu1 %v15162_v56  ;;  %11664 = vmatprep.subr.bf16.mxu0 %v15165_v62 }
0x1dfa   : > { %11622 = vmatpush2.bf16.msra.mxu1 %v15160_v63  ;;  %11665 = vmatpush2.bf16.msra.mxu0 %v15163_v60 }
0x1dfb   : > { %11623 = vmatprep.subr.bf16.mxu1 %v15168_v25  ;;  %11666 = vmatprep.subr.bf16.mxu0 %v15171_v58 }
0x1dfe   : > { %11624 = vmatpush2.bf16.msra.mxu1 %v15166_v3  ;;  %11667 = vmatpush2.bf16.msra.mxu0 %v15169_v15  ;;  %v15202_v15 = vld [vmem:[#allocation20 + $0xa70] ss:$8 sps:$4 sm:$0xff]  }
0x1dff   : > { %11625 = vmatprep.subr.bf16.mxu1 %v15174_v7  ;;  %11668 = vmatprep.subr.bf16.mxu0 %v15177_v8  ;;  %v15205_v7 = vld [vmem:[#allocation20 + $0xb70] ss:$8 sps:$4 sm:$0xff]  }
0x1e02   : > { %11626 = vmatpush2.bf16.msra.mxu1 %v15172_v2  ;;  %11669 = vmatpush2.bf16.msra.mxu0 %v15175_v13  ;;  %v15210_v13 = vld [vmem:[#allocation20 + $0xa64] ss:$8 sps:$4 sm:$0xff]  }
0x1e03   : > { %11627 = vmatprep.subr.bf16.mxu1 %v15180_v14  ;;  %11670 = vmatprep.subr.bf16.mxu0 %v15183_v16  ;;  %v15213_v14 = vld [vmem:[#allocation20 + $0xb64] ss:$8 sps:$4 sm:$0xff]   ;;  %v15208_v16 = vld [vmem:[#allocation20 + $0xa60] ss:$8 sps:$4 sm:$0xff]  }
0x1e06   : > { %11628 = vmatpush2.bf16.msra.mxu1 %v15178_v1  ;;  %11671 = vmatpush2.bf16.msra.mxu0 %v15181_v6  ;;  %v15211_v1 = vld [vmem:[#allocation20 + $0xb60] ss:$8 sps:$4 sm:$0xff]   ;;  %v15216_v6 = vld [vmem:[#allocation20 + $0xa54] ss:$8 sps:$4 sm:$0xff]  }
0x1e07   : > { %11629 = vmatprep.subr.bf16.mxu1 %v15186_v61  ;;  %11672 = vmatprep.subr.bf16.mxu0 %v15189_v24  ;;  %v15219_v61 = vld [vmem:[#allocation20 + $0xb54] ss:$8 sps:$4 sm:$0xff]   ;;  %v15214_v24 = vld [vmem:[#allocation20 + $0xa50] ss:$8 sps:$4 sm:$0xff]  }
0x1e0a   : > { %11630 = vmatpush2.bf16.msra.mxu1 %v15184_v59  ;;  %11673 = vmatpush2.bf16.msra.mxu0 %v15187_v34  ;;  %v15217_v59 = vld [vmem:[#allocation20 + $0xb50] ss:$8 sps:$4 sm:$0xff]   ;;  %v15222_v34 = vld [vmem:[#allocation20 + $0xa44] ss:$8 sps:$4 sm:$0xff]  }
0x1e0b   : > { %11631 = vmatprep.subr.bf16.mxu1 %v15192_v26  ;;  %11674 = vmatprep.subr.bf16.mxu0 %v15195_v10  ;;  %v15225_v26 = vld [vmem:[#allocation20 + $0xb44] ss:$8 sps:$4 sm:$0xff]   ;;  %v15220_v10 = vld [vmem:[#allocation20 + $0xa40] ss:$8 sps:$4 sm:$0xff]  }
0x1e0e   : > { %11632 = vmatpush2.bf16.msra.mxu1 %v15190_v40  ;;  %11675 = vmatpush2.bf16.msra.mxu0 %v15193_v30  ;;  %v15223_v40 = vld [vmem:[#allocation20 + $0xb40] ss:$8 sps:$4 sm:$0xff]   ;;  %v15228_v30 = vld [vmem:[#allocation20 + $0xa34] ss:$8 sps:$4 sm:$0xff]  }
0x1e0f   : > { %11633 = vmatprep.subr.bf16.mxu1 %v15198_v45  ;;  %11676 = vmatprep.subr.bf16.mxu0 %v15201_v43  ;;  %v15231_v45 = vld [vmem:[#allocation20 + $0xb34] ss:$8 sps:$4 sm:$0xff]   ;;  %v15226_v43 = vld [vmem:[#allocation20 + $0xa30] ss:$8 sps:$4 sm:$0xff]  }
0x1e12   : > { %11634 = vmatpush2.bf16.msra.mxu1 %v15196_v27  ;;  %11677 = vmatpush2.bf16.msra.mxu0 %v15199_v33  ;;  %v15229_v27 = vld [vmem:[#allocation20 + $0xb30] ss:$8 sps:$4 sm:$0xff]   ;;  %v15234_v33 = vld [vmem:[#allocation20 + $0xa24] ss:$8 sps:$4 sm:$0xff]  }
0x1e13   : > { %11689 = vmatprep.subr.bf16.mxu1 %v15204_v11  ;;  %11732 = vmatprep.subr.bf16.mxu0 %v15207_v28  ;;  %v15237_v11 = vld [vmem:[#allocation20 + $0xb24] ss:$8 sps:$4 sm:$0xff]   ;;  %v15232_v28 = vld [vmem:[#allocation20 + $0xa20] ss:$8 sps:$4 sm:$0xff]  }
0x1e55   : > { %v10672_v0 = vpop.f32.mrf.mxu1  ;;  %v10715_v46 = vpop.f32.mrf.mxu0 }
0x1e56   : > { %v10673_v42 = vadd.f32 %v10672_v0, %v9961_v35  ;;  %v10716_v39 = vadd.f32 %v10715_v46, %v9969_v23  ;;  %v15235_v0 = vld [vmem:[#allocation20 + $0xb20] ss:$8 sps:$4 sm:$0xff]   ;;  %v15240_v46 = vld [vmem:[#allocation20 + $0xa14] ss:$8 sps:$4 sm:$0xff]  }
0x1e57   : > { %v10674_v9 = vpop.f32.mrf.mxu1  ;;  %v10717_v22 = vpop.f32.mrf.mxu0 }
0x1e58   : > { %v10675_v21 = vadd.f32 %v10674_v9, %v9965_v53  ;;  %v10718_v18 = vadd.f32 %v10717_v22, %v9973_v31  ;;  %v10810_v60 = vmax.f32 %v10673_v42, 0.0  ;;  %v10812_v25 = vmax.f32 %v10716_v39, 0.0  ;;  %v15249_v9 = vld [vmem:[#allocation20 + $0xb04] ss:$8 sps:$4 sm:$0xff]   ;;  %v15244_v22 = vld [vmem:[#allocation20 + $0xa00] ss:$8 sps:$4 sm:$0xff]  }
0x1e59   : > { %v10676_v54 = vpop.f32.mrf.mxu1  ;;  %v10719_v17 = vpop.f32.mrf.mxu0  ;;  %v15261_v42 = vld [vmem:[#allocation20 + $0xbe4] ss:$8 sps:$4 sm:$0xff]   ;;  %v15256_v39 = vld [vmem:[#allocation20 + $0xae0] ss:$8 sps:$4 sm:$0xff]  }
0x1e5a   : > { %v10677_v57 = vadd.f32 %v10676_v54, %v9961_v35  ;;  %v10720_v32 = vadd.f32 %v10719_v17, %v9969_v23  ;;  %v10811_v56 = vmax.f32 %v10675_v21, 0.0  ;;  %v10813_v62 = vmax.f32 %v10718_v18, 0.0  ;;  %v15241_v35 = vld [vmem:[#allocation20 + $0xb10] ss:$8 sps:$4 sm:$0xff]   ;;  %v15246_v23 = vld [vmem:[#allocation20 + $0xa04] ss:$8 sps:$4 sm:$0xff]  }
0x1e5b   : > { %v10678_v41 = vpop.f32.mrf.mxu1  ;;  %v10721_v44 = vpop.f32.mrf.mxu0  ;;  %v15247_v54 = vld [vmem:[#allocation20 + $0xb00] ss:$8 sps:$4 sm:$0xff]   ;;  %v15252_v17 = vld [vmem:[#allocation20 + $0xaf4] ss:$8 sps:$4 sm:$0xff]   ;;  %v15250_v18 = vld [vmem:[#allocation20 + $0xaf0] ss:$8 sps:$4 sm:$0xff]  }
0x1e5c   : > { %v10679_v29 = vadd.f32 %v10678_v41, %v9965_v53  ;;  %v10722_v55 = vadd.f32 %v10721_v44, %v9973_v31  ;;  %v10818_v38 = vmax.f32 %v10677_v57, 0.0  ;;  %v10820_v51 = vmax.f32 %v10720_v32, 0.0  ;;  %v15243_v53 = vld [vmem:[#allocation20 + $0xb14] ss:$8 sps:$4 sm:$0xff]   ;;  %v15238_v31 = vld [vmem:[#allocation20 + $0xa10] ss:$8 sps:$4 sm:$0xff]  }
0x1e5d   : > { %v15255_v21 = vld [vmem:[#allocation20 + $0xbf4] ss:$8 sps:$4 sm:$0xff]   ;;  %v15253_v57 = vld [vmem:[#allocation20 + $0xbf0] ss:$8 sps:$4 sm:$0xff]   ;;  %v15258_v32 = vld [vmem:[#allocation20 + $0xae4] ss:$8 sps:$4 sm:$0xff]  }
0x1e5e   : > { %v10819_v63 = vmax.f32 %v10679_v29, 0.0  ;;  %v10821_v4 = vmax.f32 %v10722_v55, 0.0  ;;  %v10826_v8 = vpack.c.bf16 %v10818_v38, %v10810_v60  ;;  %v10828_v2 = vpack.c.bf16 %v10820_v51, %v10812_v25  ;;  %v15259_v41 = vld [vmem:[#allocation20 + $0xbe0] ss:$8 sps:$4 sm:$0xff]   ;;  %v15264_v44 = vld [vmem:[#allocation20 + $0xad4] ss:$8 sps:$4 sm:$0xff]  }
0x1e5f   : > { %v15267_v29 = vld [vmem:[#allocation20 + $0xbd4] ss:$8 sps:$4 sm:$0xff]   ;;  %v15262_v55 = vld [vmem:[#allocation20 + $0xad0] ss:$8 sps:$4 sm:$0xff]   ;;  %v15270_v51 = vld [vmem:[#allocation20 + $0xac4] ss:$8 sps:$4 sm:$0xff]  }
0x1e60   : > { %v10827_v58 = vpack.c.bf16 %v10819_v63, %v10811_v56  ;;  %v10829_v3 = vpack.c.bf16 %v10821_v4, %v10813_v62  ;;  %v15265_v38 = vld [vmem:[#allocation20 + $0xbd0] ss:$8 sps:$4 sm:$0xff]   ;;  %v15273_v56 = vld [vmem:[#allocation20 + $0xbc4] ss:$8 sps:$4 sm:$0xff]   ;;  %v15268_v62 = vld [vmem:[#allocation20 + $0xac0] ss:$8 sps:$4 sm:$0xff]  }
0x1e61   : > { %v15271_v63 = vld [vmem:[#allocation20 + $0xbc0] ss:$8 sps:$4 sm:$0xff]   ;;  %v15276_v4 = vld [vmem:[#allocation20 + $0xab4] ss:$8 sps:$4 sm:$0xff]   ;;  %v15274_v25 = vld [vmem:[#allocation20 + $0xab0] ss:$8 sps:$4 sm:$0xff]  }
0x1e62   : > { %11635 = vmatprep.mubr.bf16.mxu1 %v10827_v58  ;;  %11678 = vmatprep.mubr.bf16.mxu0 %v10829_v3  ;;  %v15279_v60 = vld [vmem:[#allocation20 + $0xbb4] ss:$8 sps:$4 sm:$0xff]   ;;  %v15277_v58 = vld [vmem:[#allocation20 + $0xbb0] ss:$8 sps:$4 sm:$0xff]   ;;  %v15282_v3 = vld [vmem:[#allocation20 + $0xaa4] ss:$8 sps:$4 sm:$0xff]  }
0x1e63   : > { %11636 = vmatmul.mubr.bf16.vlgmr.msra.gmra.mxu1 %v10826_v8  ;;  %11679 = vmatmul.mubr.bf16.vlgmr.msra.gmra.mxu0 %v10828_v2  ;;  %v15283_v8 = vld [vmem:[#allocation20 + $0xba0] ss:$8 sps:$4 sm:$0xff]  }
0x1e64   : > { %11690 = vmatpush1.bf16.msra.mxu1 %v15202_v15  ;;  %11733 = vmatpush1.bf16.msra.mxu0 %v15205_v7  ;;  %v15285_v15 = vld [vmem:[#allocation20 + $0xba4] ss:$8 sps:$4 sm:$0xff]   ;;  %v15280_v7 = vld [vmem:[#allocation20 + $0xaa0] ss:$8 sps:$4 sm:$0xff]  }
0x1e65   : > { %11691 = vmatprep.subr.bf16.mxu1 %v15210_v13  ;;  %11734 = vmatprep.subr.bf16.mxu0 %v15213_v14  ;;  %v15288_v14 = vld [vmem:[#allocation20 + $0xa94] ss:$8 sps:$4 sm:$0xff]  }
0x1e68   : > { %11692 = vmatpush1.bf16.msra.mxu1 %v15208_v16  ;;  %11735 = vmatpush1.bf16.msra.mxu0 %v15211_v1  ;;  %v15291_v16 = vld [vmem:[#allocation20 + $0xb94] ss:$8 sps:$4 sm:$0xff]   ;;  %v9981_v1 = vrot.slane %v17015_v5, %v16602_v47  ;;  %v15294_v47 = vld [vmem:[#allocation20 + $0xa84] ss:$8 sps:$4 sm:$0xff]  }
0x1e69   : > { %11693 = vmatprep.subr.bf16.mxu1 %v15216_v6  ;;  %11736 = vmatprep.subr.bf16.mxu0 %v15219_v61  ;;  %v9989_v6 = vrot.slane %v17015_v5, %v16605_v48  ;;  %v9977_v61 = vrot.slane %v17015_v5, %v16608_v49 }
0x1e6c   : > { %11694 = vmatpush1.bf16.msra.mxu1 %v15214_v24  ;;  %11737 = vmatpush1.bf16.msra.mxu0 %v15217_v59  ;;  %v9985_v24 = vrot.slane %v17015_v5, %v16611_v37 }
0x1e6d   : > { %11695 = vmatprep.subr.bf16.mxu1 %v15222_v34  ;;  %11738 = vmatprep.subr.bf16.mxu0 %v15225_v26  ;;  %v15286_v26 = vld [vmem:[#allocation20 + $0xa90] ss:$8 sps:$4 sm:$0xff]  }
0x1e70   : > { %11696 = vmatpush1.bf16.msra.mxu1 %v15220_v10  ;;  %11739 = vmatpush1.bf16.msra.mxu0 %v15223_v40  ;;  %v15289_v10 = vld [vmem:[#allocation20 + $0xb90] ss:$8 sps:$4 sm:$0xff]  }
0x1e71   : > { %11697 = vmatprep.subr.bf16.mxu1 %v15228_v30  ;;  %11740 = vmatprep.subr.bf16.mxu0 %v15231_v45  ;;  %v15297_v45 = vld [vmem:[#allocation20 + $0xb84] ss:$8 sps:$4 sm:$0xff]  }
0x1e74   : > { %11698 = vmatpush1.bf16.msra.mxu1 %v15226_v43  ;;  %11741 = vmatpush1.bf16.msra.mxu0 %v15229_v27 }
0x1e75   : > { %11699 = vmatprep.subr.bf16.mxu1 %v15234_v33  ;;  %11742 = vmatprep.subr.bf16.mxu0 %v15237_v11 }
0x1e78   : > { %11700 = vmatpush1.bf16.msra.mxu1 %v15232_v28  ;;  %11743 = vmatpush1.bf16.msra.mxu0 %v15235_v0 }
0x1e79   : > { %11701 = vmatprep.subr.bf16.mxu1 %v15240_v46  ;;  %11744 = vmatprep.subr.bf16.mxu0 %v15243_v53  ;;  %v15292_v46 = vld [vmem:[#allocation20 + $0xa80] ss:$8 sps:$4 sm:$0xff]  }
0x1e7a   : > { %v15295_v53 = vld [vmem:[#allocation20 + $0xb80] ss:$8 sps:$4 sm:$0xff]  }
0x1e7c   : > { %11702 = vmatpush1.bf16.msra.mxu1 %v15238_v31  ;;  %11745 = vmatpush1.bf16.msra.mxu0 %v15241_v35 }
0x1e7d   : > { %11703 = vmatprep.subr.bf16.mxu1 %v15246_v23  ;;  %11746 = vmatprep.subr.bf16.mxu0 %v15249_v9 }
0x1e80   : > { %11704 = vmatpush1.bf16.msra.mxu1 %v15244_v22  ;;  %11747 = vmatpush1.bf16.msra.mxu0 %v15247_v54 }
0x1e81   : > { %11705 = vmatprep.subr.bf16.mxu1 %v15252_v17  ;;  %11748 = vmatprep.subr.bf16.mxu0 %v15255_v21 }
0x1e84   : > { %11706 = vmatpush2.bf16.msra.mxu1 %v15250_v18  ;;  %11749 = vmatpush2.bf16.msra.mxu0 %v15253_v57 }
0x1e85   : > { %11707 = vmatprep.subr.bf16.mxu1 %v15258_v32  ;;  %11750 = vmatprep.subr.bf16.mxu0 %v15261_v42 }
0x1e88   : > { %11708 = vmatpush2.bf16.msra.mxu1 %v15256_v39  ;;  %11751 = vmatpush2.bf16.msra.mxu0 %v15259_v41 }
0x1e89   : > { %11709 = vmatprep.subr.bf16.mxu1 %v15264_v44  ;;  %11752 = vmatprep.subr.bf16.mxu0 %v15267_v29 }
0x1e8c   : > { %11710 = vmatpush2.bf16.msra.mxu1 %v15262_v55  ;;  %11753 = vmatpush2.bf16.msra.mxu0 %v15265_v38 }
0x1e8d   : > { %11711 = vmatprep.subr.bf16.mxu1 %v15270_v51  ;;  %11754 = vmatprep.subr.bf16.mxu0 %v15273_v56 }
0x1e90   : > { %11712 = vmatpush2.bf16.msra.mxu1 %v15268_v62  ;;  %11755 = vmatpush2.bf16.msra.mxu0 %v15271_v63 }
0x1e91   : > { %11713 = vmatprep.subr.bf16.mxu1 %v15276_v4  ;;  %11756 = vmatprep.subr.bf16.mxu0 %v15279_v60 }
0x1e94   : > { %11714 = vmatpush2.bf16.msra.mxu1 %v15274_v25  ;;  %11757 = vmatpush2.bf16.msra.mxu0 %v15277_v58  ;;  %v11780_v58 = vld [vmem:[#allocation22 + $0x2] ss:$4 sm:$0x3] }
0x1e95   : > { %v10758_v2 = vpop.f32.mrf.mxu1  ;;  %v10801_v13 = vpop.f32.mrf.mxu0  ;;  %11715 = vmatprep.subr.bf16.mxu1 %v15282_v3  ;;  %11758 = vmatprep.subr.bf16.mxu0 %v15285_v15 }
0x1e96   : > { %v10759_v49 = vadd.f32 %v10758_v2, %v9977_v61  ;;  %v10802_v11 = vadd.f32 %v10801_v13, %v9985_v24  ;;  %v11785_v13 = vrot.slane %v11780_v58, %v16422_v19 }
0x1e97   : > { %v10760_v59 = vpop.f32.mrf.mxu1  ;;  %v10803_v34 = vpop.f32.mrf.mxu0 }
0x1e98   : > { %11716 = vmatpush2.bf16.msra.mxu1 %v15280_v7  ;;  %11759 = vmatpush2.bf16.msra.mxu0 %v15283_v8  ;;  %v10761_v43 = vadd.f32 %v10760_v59, %v9981_v1  ;;  %v10804_v48 = vadd.f32 %v10803_v34, %v9989_v6  ;;  %v10814_v17 = vmax.f32 %v10759_v49, 0.0  ;;  %v10816_v21 = vmax.f32 %v10802_v11, 0.0 }
0x1e99   : > { %v10762_v40 = vpop.f32.mrf.mxu1  ;;  %v10805_v30 = vpop.f32.mrf.mxu0  ;;  %11717 = vmatprep.subr.bf16.mxu1 %v15288_v14  ;;  %11760 = vmatprep.subr.bf16.mxu0 %v15291_v16  ;;  %v11789_v14 = vrot.slane %v11780_v58, %v16425_v20  ;;  %v15330_v58 = vld [vmem:[#allocation26 + $0xd4] ss:$8 sps:$4 sm:$0xff]  }
0x1e9a   : > { %v10763_v27 = vadd.f32 %v10762_v40, %v9977_v61  ;;  %v10806_v33 = vadd.f32 %v10805_v30, %v9985_v24  ;;  %v10815_v23 = vmax.f32 %v10761_v43, 0.0  ;;  %v10817_v9 = vmax.f32 %v10804_v48, 0.0 }
0x1e9b   : > { %v10764_v28 = vpop.f32.mrf.mxu1  ;;  %v10807_v37 = vpop.f32.mrf.mxu0 }
0x1e9c   : > { %v10765_v5 = vadd.f32 %v10764_v28, %v9981_v1  ;;  %v10808_v0 = vadd.f32 %v10807_v37, %v9989_v6  ;;  %11718 = vmatpush2.bf16.msra.mxu1 %v15286_v26  ;;  %11761 = vmatpush2.bf16.msra.mxu0 %v15289_v10  ;;  %v10822_v31 = vmax.f32 %v10763_v27, 0.0  ;;  %v10824_v35 = vmax.f32 %v10806_v33, 0.0  ;;  %v15298_v28 = vld [vmem:[#allocation26 + $0x70] ss:$8 sps:$4 sm:$0xff]   ;;  %v15300_v37 = vld [vmem:[#allocation26 + $0x74] ss:$8 sps:$4 sm:$0xff]  }
0x1e9d   : > { %11719 = vmatprep.subr.bf16.mxu1 %v15294_v47  ;;  %11762 = vmatprep.subr.bf16.mxu0 %v15297_v45 }
0x1e9e   : > { %v10823_v22 = vmax.f32 %v10765_v5, 0.0  ;;  %v10825_v54 = vmax.f32 %v10808_v0, 0.0  ;;  %v10830_v32 = vpack.c.bf16 %v10822_v31, %v10814_v17  ;;  %v10832_v42 = vpack.c.bf16 %v10824_v35, %v10816_v21  ;;  %v15303_v5 = vld [vmem:[#allocation26 + $0x64] ss:$8 sps:$4 sm:$0xff]   ;;  %v15306_v0 = vld [vmem:[#allocation26 + $0x54] ss:$8 sps:$4 sm:$0xff]  }
0x1e9f   : > { %v15310_v31 = vld [vmem:[#allocation26 + $0x30] ss:$8 sps:$4 sm:$0xff]   ;;  %v15315_v35 = vld [vmem:[#allocation26 + $0x24] ss:$8 sps:$4 sm:$0xff]   ;;  %v15319_v17 = vld [vmem:[#allocation26] ss:$8 sps:$4 sm:$0xff]  }
0x1ea0   : > { %v10831_v18 = vpack.c.bf16 %v10823_v22, %v10815_v23  ;;  %v10833_v57 = vpack.c.bf16 %v10825_v54, %v10817_v9  ;;  %11720 = vmatpush2.bf16.msra.mxu1 %v15292_v46  ;;  %11763 = vmatpush2.bf16.msra.mxu0 %v15295_v53  ;;  %v15304_v46 = vld [vmem:[#allocation26 + $0x50] ss:$8 sps:$4 sm:$0xff]   ;;  %v15312_v53 = vld [vmem:[#allocation26 + $0x34] ss:$8 sps:$4 sm:$0xff]   ;;  %v15313_v23 = vld [vmem:[#allocation26 + $0x20] ss:$8 sps:$4 sm:$0xff]  }
0x1ea1   : > { %12066 = vmatprep.subr.bf16.mxu1 %v15300_v37  ;;  %v15318_v9 = vld [vmem:[#allocation26 + $0x14] ss:$8 sps:$4 sm:$0xff]   ;;  %v15316_v22 = vld [vmem:[#allocation26 + $0x10] ss:$8 sps:$4 sm:$0xff]   ;;  %v15321_v54 = vld [vmem:[#allocation26 + $0x4] ss:$8 sps:$4 sm:$0xff]  }
0x1ea2   : > { %11721 = vmatprep.mubr.bf16.mxu1 %v10831_v18  ;;  %11764 = vmatprep.mubr.bf16.mxu0 %v10833_v57  ;;  %v15324_v21 = vld [vmem:[#allocation26 + $0xf4] ss:$8 sps:$4 sm:$0xff]   ;;  %v15322_v18 = vld [vmem:[#allocation26 + $0xf0] ss:$8 sps:$4 sm:$0xff]  }
0x1ea3   : > { %11722 = vmatmul.mubr.bf16.vlgmr.msra.gmra.mxu1 %v10830_v32  ;;  %11765 = vmatmul.mubr.bf16.vlgmr.msra.gmra.mxu0 %v10832_v42 }
0x1ea4   : > { %12067 = vmatpush1.bf16.msra.mxu1 %v15298_v28 }
0x1ea5   : > { %12068 = vmatprep.subr.bf16.mxu1 %v15303_v5 }
0x1f23   : > { %v11637_v39 = vpop.f32.mrf.mxu1  ;;  %v11680_v41 = vpop.f32.mrf.mxu0 }
0x1f24   : > { %v11681_v62 = vadd.f32 %v11680_v41, %v11637_v39 }
0x1f25   : > { %v11639_v44 = vpop.f32.mrf.mxu1  ;;  %v11682_v29 = vpop.f32.mrf.mxu0 }
0x1f26   : > { %v11683_v60 = vadd.f32 %v11682_v29, %v11639_v44 }
0x1f27   : > { %v11641_v55 = vpop.f32.mrf.mxu1  ;;  %v11684_v38 = vpop.f32.mrf.mxu0 }
0x1f28   : > { %v11685_v7 = vadd.f32 %v11684_v38, %v11641_v55 }
0x1f29   : > { %v11643_v51 = vpop.f32.mrf.mxu1  ;;  %v11686_v56 = vpop.f32.mrf.mxu0 }
0x1f2a   : > { %v11687_v6 = vadd.f32 %v11686_v56, %v11643_v51 }
0x1f63   : > { %v11723_v63 = vpop.f32.mrf.mxu1  ;;  %v11766_v4 = vpop.f32.mrf.mxu0 }
0x1f64   : > { %v11724_v25 = vadd.f32 %v11723_v63, %v11681_v62 }
0x1f65   : > { %v11725_v3 = vpop.f32.mrf.mxu1  ;;  %v11768_v15 = vpop.f32.mrf.mxu0 }
0x1f66   : > { %v11767_v8 = vadd.f32 %v11766_v4, %v11724_v25  ;;  %v11726_v2 = vadd.f32 %v11725_v3, %v11683_v60  ;;  %v15327_v60 = vld [vmem:[#allocation26 + $0xe4] ss:$8 sps:$4 sm:$0xff]   ;;  %v15325_v25 = vld [vmem:[#allocation26 + $0xe0] ss:$8 sps:$4 sm:$0xff]   ;;  %v15328_v3 = vld [vmem:[#allocation26 + $0xd0] ss:$8 sps:$4 sm:$0xff]  }
0x1f67   : > { %v11727_v16 = vpop.f32.mrf.mxu1  ;;  %v11770_v1 = vpop.f32.mrf.mxu0 }
0x1f68   : > { %v11775_v61 = vadd.f32 %v11767_v8, %v16967_v36  ;;  %v11769_v24 = vadd.f32 %v11768_v15, %v11726_v2  ;;  %v11728_v59 = vadd.f32 %v11727_v16, %v11685_v7  ;;  %v15333_v15 = vld [vmem:[#allocation26 + $0xc4] ss:$8 sps:$4 sm:$0xff]   ;;  %v15331_v7 = vld [vmem:[#allocation26 + $0xc0] ss:$8 sps:$4 sm:$0xff]   ;;  %v15336_v8 = vld [vmem:[#allocation26 + $0xb4] ss:$8 sps:$4 sm:$0xff]  }
0x1f69   : > { %v11729_v34 = vpop.f32.mrf.mxu1  ;;  %v11772_v30 = vpop.f32.mrf.mxu0  ;;  %v15334_v2 = vld [vmem:[#allocation26 + $0xb0] ss:$8 sps:$4 sm:$0xff]   ;;  %v15342_v16 = vld [vmem:[#allocation26 + $0x94] ss:$8 sps:$4 sm:$0xff]  }
0x1f6a   : > { %v11776_v26 = vadd.f32 %v11769_v24, %v16969_v12  ;;  %v11771_v10 = vadd.f32 %v11770_v1, %v11728_v59  ;;  %v11730_v40 = vadd.f32 %v11729_v34, %v11687_v6  ;;  %v11792_v47 = vadd.f32 %v11785_v13, %v11775_v61  ;;  %v15301_v12 = vld [vmem:[#allocation26 + $0x60] ss:$8 sps:$4 sm:$0xff]   ;;  %v15340_v1 = vld [vmem:[#allocation26 + $0x90] ss:$8 sps:$4 sm:$0xff]   ;;  %v15345_v6 = vld [vmem:[#allocation26 + $0x84] ss:$8 sps:$4 sm:$0xff]  }
0x1f6b   : > { %12069 = vmatpush1.bf16.msra.mxu1 %v15301_v12  ;;  %v15343_v61 = vld [vmem:[#allocation26 + $0x80] ss:$8 sps:$4 sm:$0xff]  }
0x1f6c   : > { %v11793_v45 = vadd.f32 %v11789_v14, %v11776_v26  ;;  %v11777_v43 = vadd.f32 %v11771_v10, %v16975_v50  ;;  %v11773_v48 = vadd.f32 %v11772_v30, %v11730_v40  ;;  %12070 = vmatprep.subr.bf16.mxu1 %v15306_v0  ;;  %v15309_v50 = vld [vmem:[#allocation26 + $0x44] ss:$8 sps:$4 sm:$0xff]   ;;  %v11796_v30 = vld [vmem:[#allocation23] sm:$0x3] }
0x1f6e   : > { %v11778_v27 = vadd.f32 %v11773_v48, %v16977_v52  ;;  %v11798_v33 = vadd.f32 %v11793_v45, %v11792_v47  ;;  %v11794_v49 = vadd.f32 %v11785_v13, %v11777_v43  ;;  %v15307_v52 = vld [vmem:[#allocation26 + $0x40] ss:$8 sps:$4 sm:$0xff]   ;;  %v15339_v13 = vld [vmem:[#allocation26 + $0xa4] ss:$8 sps:$4 sm:$0xff]   ;;  %v11797_v43 = vld [vmem:[#allocation25] sm:$0x3] }
0x1f6f   : > { %12071 = vmatpush1.bf16.msra.mxu1 %v15304_v46 }
0x1f70   : > { %11799 = vadd.xlane.f32.xlu0 %v11798_v33  ;;  %v11795_v11 = vadd.f32 %v11789_v14, %v11778_v27  ;;  %12072 = vmatprep.subr.bf16.mxu1 %v15309_v50  ;;  %v15337_v14 = vld [vmem:[#allocation26 + $0xa0] ss:$8 sps:$4 sm:$0xff]   ;;  %v11834_v27 = vrot.slane %v11796_v30, %v16422_v19  ;;  %v11838_v33 = vrot.slane %v11796_v30, %v16425_v20 }
0x1f72   : > { %v11801_v36 = vadd.f32 %v11795_v11, %v11794_v49 }
0x1f73   : > { %12073 = vmatpush1.bf16.msra.mxu1 %v15307_v52 }
0x1f74   : > { %11802 = vadd.xlane.f32.xlu1 %v11801_v36  ;;  %12074 = vmatprep.subr.bf16.mxu1 %v15312_v53  ;;  %v11853_v36 = vrot.slane %v11797_v43, %v16425_v20 }
0x1f77   : > { %12075 = vmatpush1.bf16.msra.mxu1 %v15310_v31 }
0x1f78   : > { %12076 = vmatprep.subr.bf16.mxu1 %v15315_v35 }
0x1f7b   : > { %12077 = vmatpush1.bf16.msra.mxu1 %v15313_v23 }
0x1f7c   : > { %12078 = vmatprep.subr.bf16.mxu1 %v15318_v9  ;;  %v11894_v9 = vld [vmem:[#allocation28] sm:$0x3] }
0x1f7f   : > { %12079 = vmatpush1.bf16.msra.mxu1 %v15316_v22  ;;  %v11899_v22 = vrot.slane %v11894_v9, %v16422_v19 }
0x1f80   : > { %12080 = vmatprep.subr.bf16.mxu1 %v15321_v54  ;;  %v11903_v54 = vrot.slane %v11894_v9, %v16425_v20 }
0x1f83   : > { %12081 = vmatpush1.bf16.msra.mxu1 %v15319_v17 }
0x1f84   : > { %12082 = vmatprep.subr.bf16.mxu1 %v15324_v21 }
0x1f87   : > { %12083 = vmatpush2.bf16.msra.mxu1 %v15322_v18 }
0x1f88   : > { %12084 = vmatprep.subr.bf16.mxu1 %v15327_v60 }
0x1f8b   : > { %12085 = vmatpush2.bf16.msra.mxu1 %v15325_v25 }
0x1f8c   : > { %12086 = vmatprep.subr.bf16.mxu1 %v15330_v58 }
0x1f8f   : > { %12087 = vmatpush2.bf16.msra.mxu1 %v15328_v3 }
0x1f90   : > { %12088 = vmatprep.subr.bf16.mxu1 %v15333_v15 }
0x1f93   : > { %12089 = vmatpush2.bf16.msra.mxu1 %v15331_v7 }
0x1f94   : > { %12090 = vmatprep.subr.bf16.mxu1 %v15336_v8 }
0x1f97   : > { %12091 = vmatpush2.bf16.msra.mxu1 %v15334_v2 }
0x1f98   : > { %12092 = vmatprep.subr.bf16.mxu1 %v15339_v13 }
0x1f9b   : > { %12093 = vmatpush2.bf16.msra.mxu1 %v15337_v14 }
0x1f9c   : > { %12094 = vmatprep.subr.bf16.mxu1 %v15342_v16 }
0x1f9f   : > { %12095 = vmatpush2.bf16.msra.mxu1 %v15340_v1 }
0x1fa0   : > { %12096 = vmatprep.subr.bf16.mxu1 %v15345_v6 }
0x1fa3   : > { %12097 = vmatpush2.bf16.msra.mxu1 %v15343_v61 }
0x1ff9   : > { %v11800_v57 = vpop.xlane.xlu0 %11799 }
0x1ffa   : > { %v11804_v32 = vmul.f32 0.00390625, %v11800_v57 }
0x1ffc   : > { %v11806_v42 = vsub.f32 %v11792_v47, %v11804_v32  ;;  %v11807_v39 = vsub.f32 %v11793_v45, %v11804_v32 }
0x1ffd   : > { %v11803_v41 = vpop.xlane.xlu1 %11802 }
0x1ffe   : > { %v11810_v44 = vmul.f32 %v11806_v42, %v11806_v42  ;;  %v11811_v29 = vmul.f32 %v11807_v39, %v11807_v39  ;;  %v11805_v55 = vmul.f32 0.00390625, %v11803_v41 }
0x2000   : > { %v11808_v38 = vsub.f32 %v11794_v49, %v11805_v55  ;;  %v11809_v51 = vsub.f32 %v11795_v11, %v11805_v55  ;;  %v11814_v56 = vadd.f32 %v11811_v29, %v11810_v44  ;;  %v11849_v11 = vrot.slane %v11797_v43, %v16422_v19 }
0x2002   : > { %11815 = vadd.xlane.f32.xlu0 %v11814_v56  ;;  %v11812_v62 = vmul.f32 %v11808_v38, %v11808_v38  ;;  %v11813_v63 = vmul.f32 %v11809_v51, %v11809_v51 }
0x2004   : > { %v11817_v4 = vadd.f32 %v11813_v63, %v11812_v62 }
0x2006   : > { %11818 = vadd.xlane.f32.xlu1 %v11817_v4 }
0x208b   : > { %v11816_v24 = vpop.xlane.xlu0 %11815 }
0x208c   : > { %v11820_v59 = vmul.f32 0.00390625, %v11816_v24 }
0x208e   : > { %v11822_v34 = vadd.f32 1e-05, %v11820_v59 }
0x208f   : > { %v11819_v26 = vpop.xlane.xlu1 %11818 }
0x2090   : > { %15466 = vrsqrt.f32 %v11822_v34  ;;  %v11821_v10 = vmul.f32 0.00390625, %v11819_v26 }
0x2092   : > { %v11823_v40 = vadd.f32 1e-05, %v11821_v10 }
0x2094   : > { %15468 = vrsqrt.f32 %v11823_v40 }
0x209d   : > { %v15467_v47 = vpop.eup %15466 }
0x209e   : > { %v11826_v45 = vmul.f32 %v15467_v47, %v11806_v42  ;;  %v11827_v48 = vmul.f32 %v15467_v47, %v11807_v39 }
0x20a0   : > { %v11841_v5 = vmul.f32 %v11834_v27, %v11826_v45  ;;  %v11842_v12 = vmul.f32 %v11838_v33, %v11827_v48 }
0x20a1   : > { %v15469_v49 = vpop.eup %15468 }
0x20a2   : > { %v11828_v28 = vmul.f32 %v15469_v49, %v11808_v38  ;;  %v11829_v37 = vmul.f32 %v15469_v49, %v11809_v51  ;;  %v11856_v50 = vadd.f32 %v11849_v11, %v11841_v5  ;;  %v11857_v52 = vadd.f32 %v11853_v36, %v11842_v12 }
0x20a4   : > { %v11843_v0 = vmul.f32 %v11834_v27, %v11828_v28  ;;  %v11844_v46 = vmul.f32 %v11838_v33, %v11829_v37 }
0x20a6   : > { %v11858_v53 = vadd.f32 %v11849_v11, %v11843_v0  ;;  %v11859_v31 = vadd.f32 %v11853_v36, %v11844_v46 }
0x20a8   : > { %v11861_v35 = vpack.c.bf16 %v11859_v31, %v11857_v52  ;;  %v11860_v23 = vpack.c.bf16 %v11858_v53, %v11856_v50 }
0x20aa   : > { %12098 = vmatprep.mubr.bf16.mxu1 %v11861_v35 }
0x20ab   : > { %12099 = vmatmul.mubr.bf16.vlgmr.msra.gmra.mxu1 %v11860_v23 }
0x216b   : > { %v12100_v17 = vpop.f32.mrf.mxu1 }
0x216c   : > { %v12101_v21 = vadd.f32 %v12100_v17, %v11899_v22 }
0x216d   : > { %v12102_v18 = vpop.f32.mrf.mxu1 }
0x216e   : > { %12109 = vst [vmem:[%s795_s27] sm:$0xff] %v12101_v21  ;;  %v12103_v57 = vadd.f32 %v12102_v18, %v11903_v54 }
0x216f   : > { %v12104_v32 = vpop.f32.mrf.mxu1 }
0x2170   : > { %12110 = vst [vmem:[%s795_s27 + $0x8] sm:$0xff] %v12103_v57  ;;  %v12105_v42 = vadd.f32 %v12104_v32, %v11899_v22 }
0x2171   : > { %v12106_v19 = vpop.f32.mrf.mxu1 }
0x2172   : > { %12111 = vst [vmem:[%s795_s27 + $0x10] sm:$0xff] %v12105_v42  ;;  %v12107_v20 = vadd.f32 %v12106_v19, %v11903_v54 }
0x2174   : > { %12112 = vst [vmem:[%s795_s27 + $0x18] sm:$0xff] %v12107_v20 }
0x2175   : > { %15925 = shalt.err (!%p15922_p9)
}
0x2176   : > { %s15926_s25 = scalar_lea.hbm %s17052_s24, 512  ;;  %s15930_s27 = scalar_lea.hbm %s17172_s22, 1024 }
0x2177   : > { %p15927_p2 = scmp.ne.s32.totalorder %s17052_s24, %s15926_s25  ;;  %p15931_p5 = scmp.lt.s32.totalorder %s17052_s24, %s17172_s22 }
0x2178   : > { %p15932_p4 = scmp.lt.s32.totalorder %s15930_s27, %s15926_s25 }
0x2179   : > { %p15928_p6 = pnand %p15927_p2, %p17173_p8 }
0x217a   : > { %p15933_p7 = por %p15932_p4, %p15931_p5 }
0x217b   : > { %p15929_p13 = pneg %p15928_p6 }
0x217d   : > { %p15934_p12 = pnand %p15933_p7, %p15929_p13 }
0x217f   : > { %15937 = shalt.err (!%p15934_p12)
}
0x2180   : > { %s16042_s30 = smov 256   ;;  %s16043_s0 = smov 16  }
0x2181   : > { %13909 = dma.vmem_to_hbm [thread:$0]  (%p17173_p8), %s17047_s18, 512, %s17052_s24, %s17054_s19, %s16042_s30, %s16042_s30, %s16043_s0  }
0x2182 PF: > { %s17174_s1 = sld [smem:[#allocation42_spill]] }
0x2183   : > { %s17175_s21 = sld [smem:[#allocation40_spill]] }
0x2184   : > { %s17176_s4 = sld [smem:[#allocation46_spill]] }
0x2188   : > { %p14001_p11 = scmp.ge.s32.totalorder %s17174_s1, 2 }
0x2189   : > { %s12142_s26 = sand.u32 1, %s17175_s21  }
0x218a   : > { %p17177_p0 = scmp.ne.s32.totalorder %s17176_s4, 0  ;;  %s12143_s25 = scalar_lea.sflag [#allocation4], %s12142_s26 }
0x218c   : > { %p13964_p1 = pnand %p14001_p11, %p17177_p0 }
0x218e   : > { %p13965_p10 = pneg %p13964_p1 }
0x2190   : > { %15991 = dma.done.wait (%p13965_p10), %s12143_s25, 512  }
0x2191   : > { %15993 = vsyncadd (%p13965_p10), %s12143_s25, 4294966784  ;;  %s17178_s30 = sld [smem:[#allocation43_spill]]  ;;  %s17181_s27 = smov %s16000_s28 }
0x2192   : > { %s17179_s20 = sld [smem:[#allocation41_spill]] }
0x2193   : > { %s17180_s29 = sld [smem:[#allocation44_spill]] }
0x2197   : > { %p37_p3 = scmp.ge.s32.totalorder %s17178_s30, 4  }
0x2198   : > { %s17182_s28 = smov %s17179_s20 }
0x2199   :  { %39 = sbr.rel (!%p37_p3) target bundleno = 18 (0x12), region = 218 }
0x219e   :  { %12148 = vsyncpa [#allocation3], 1 }
0x219f   :  { %12150 = vsyncpa [#allocation3 + $0x1], 1 }
0x21a0   :  { %12151 = vsyncpa [#allocation6], 1 }
0x21a1   :  { %12152 = vsyncpa [#allocation9], 1 }
0x21a2   :  { %12153 = vsyncpa [#allocation12], 1 }
0x21a3   :  { %12154 = vsyncpa [#allocation15], 1 }
0x21a4   :  { %12155 = vsyncpa [#allocation18], 1 }
0x21a5   :  { %12156 = vsyncpa [#allocation21], 1 }
0x21a6   :  { %12157 = vsyncpa [#allocation24], 1 }
0x21a7   :  { %12158 = vsyncpa [#allocation27], 1 }
0x21a8   :  { %12159 = vsyncpa [#allocation4], 1 }
0x21a9   :  { %12161 = vsyncpa [#allocation4 + $0x1], 1 }

</bundles_post_ra>
